<compile_context>
chip_gen: v7x
topology: tpu7x:2x2x1
jax: 0.10.0
libtpu: 0.0.40
codegen_flags: <defaults>
</compile_context>

<pallas_src>
import functools
import math

import jax
import jax.numpy as jnp
from jax.experimental import pallas as pl
from jax.experimental.pallas import tpu as pltpu

LEAKY_SLOPE = 0.1
IN_CHANNELS = 6                       # two stacked RGB frames (FlowNetS convention)
ENC_CFG = [("level1", IN_CHANNELS, 16, 3),
           ("level2", 16, 32, 3),
           ("level3", 32, 64, 3)]
ENC_STRIDES = {"level1": 2, "level2": 2, "level3": 2}
DEC_CFG = [("level3", 64, 32), ("level2", 32, 16)]      # deconv: enc_ch -> dec_ch
DEC_COUT = {scope: cout for scope, _, cout in DEC_CFG}
# predict input channel groups per scope: (enc, dec, flow_up)
PRED_GROUPS = [("level3", (64,)), ("level2", (32, 32, 2)), ("level1", (16, 16, 2))]

_MXU_DTYPE = jnp.bfloat16


# --------------------------------------------------------------------------- #
# VMEM budgeting (generation-aware)
# --------------------------------------------------------------------------- #
_VMEM_CAP_CACHE = [None]


def _vmem_capacity_bytes():
    if _VMEM_CAP_CACHE[0] is None:
        cap = 64 << 20                         # conservative default: v7x per-TC VMEM
        try:
            got = getattr(pltpu.get_tpu_info(), "vmem_capacity_bytes", None)
            if got:
                cap = int(got)
        except Exception:
            pass
        _VMEM_CAP_CACHE[0] = cap
    return _VMEM_CAP_CACHE[0]


def _vmem_budget_bytes():
    # ~21 MiB on v7x (64 MiB/TC), ~42 MiB on v5e/v6e (128 MiB).
    return min(_vmem_capacity_bytes() // 3, 44 << 20)


def _vmem_limit_bytes(need):
    cap = _vmem_capacity_bytes()
    return int(min(max(need + (6 << 20), 32 << 20), (cap * 3) // 4))


# --------------------------------------------------------------------------- #
# Pallas kernel 1: fused  sum_g(A_g @ W_g) + bias  [+ LeakyReLU(0.1)]
# (row-tiled matmul; used for the im2col'd stride-2 encoder convs / fallback)
# --------------------------------------------------------------------------- #
def _fused_matmul_kernel(*refs, n_groups, negative_slope):
    a_refs = refs[:n_groups]
    w_refs = refs[n_groups:2 * n_groups]
    b_ref = refs[2 * n_groups]
    o_ref = refs[2 * n_groups + 1]
    acc = jnp.dot(a_refs[0][...], w_refs[0][...], preferred_element_type=jnp.float32)
    for g in range(1, n_groups):
        acc = acc + jnp.dot(a_refs[g][...], w_refs[g][...],
                            preferred_element_type=jnp.float32)
    acc = acc + b_ref[...].astype(jnp.float32)
    if negative_slope is not None:
        acc = jnp.maximum(acc, negative_slope * acc)
    o_ref[...] = acc.astype(o_ref.dtype)


def _matmul_vmem_need(tile_m, k_list, n, out_bytes):
    b = 0
    for k in k_list:
        b += 2 * tile_m * k * 2        # double-buffered bf16 activation tiles
        b += 2 * k * n * 2             # weights (conservatively counted double-buffered)
    b += 2 * tile_m * n * out_bytes    # double-buffered output tile
    b += 2 * tile_m * n * 4            # f32 accumulator + one live dot temporary
    b += 4 * n * 4                     # bias
    return b


def _pick_tile_m(m, k_list, n, out_bytes, cap=4096):
    budget = _vmem_budget_bytes()
    t = cap
    while t > 128 and _matmul_vmem_need(t, k_list, n, out_bytes) > budget:
        t //= 2
    if m < 16:
        return m                       # single full block (cannot split below 8 sublanes)
    # keep >= 2 grid steps so v7x's two TensorCores both get work (8-row aligned blocks)
    half = ((-(-m // 2) + 7) // 8) * 8
    return max(8, min(t, half, m))


def fused_matmul_multi(a_list, w_list, bias_row, *, negative_slope=None,
                       out_dtype=_MXU_DTYPE, tile_cap=4096):
    """sum_g (M,K_g) @ (K_g,N) + bias [+ LeakyReLU], row-tiled on the MXU."""
    m = a_list[0].shape[0]
    n = w_list[0].shape[1]
    k_list = [w.shape[0] for w in w_list]
    for a, k in zip(a_list, k_list):
        assert a.shape == (m, k), (a.shape, m, k)

    out_bytes = jnp.dtype(out_dtype).itemsize
    tile_m = _pick_tile_m(m, k_list, n, out_bytes, cap=tile_cap)
    grid = (pl.cdiv(m, tile_m),)       # partial last block handled by Pallas
    need = _matmul_vmem_need(tile_m, k_list, n, out_bytes)

    kernel = functools.partial(_fused_matmul_kernel, n_groups=len(a_list),
                               negative_slope=negative_slope)
    in_specs = ([pl.BlockSpec((tile_m, k), lambda i: (i, 0)) for k in k_list]
                + [pl.BlockSpec((k, n), lambda i: (0, 0)) for k in k_list]
                + [pl.BlockSpec((1, n), lambda i: (0, 0))])
    return pl.pallas_call(
        kernel,
        out_shape=jax.ShapeDtypeStruct((m, n), out_dtype),
        grid=grid,
        in_specs=in_specs,
        out_specs=pl.BlockSpec((tile_m, n), lambda i: (i, 0)),
        compiler_params=pltpu.CompilerParams(
            dimension_semantics=("parallel",),
            vmem_limit_bytes=_vmem_limit_bytes(need)),
    )(*a_list, *w_list, bias_row)


# --------------------------------------------------------------------------- #
# Pallas kernel 2: fused stride-1 3x3 conv (no im2col materialization)
#
# The padded input is flattened spatially: for an output "wide" row index
# m = h*(W+2) + w' (w' in [0, W+2)), tap (ty,tx) needs flat input index
# m + ty*(W+2) + tx, i.e. each tap is a *contiguous* shifted window -> one
# static in-kernel slice + one MXU matmul per (group, tap), accumulated in f32.
# Columns w' in {W, W+1} are wrap garbage and are sliced off in the wrapper.
# --------------------------------------------------------------------------- #
def _fused_conv3x3_kernel(*refs, n_groups, w2, m, negative_slope):
    x_refs = refs[:n_groups]
    w_refs = refs[n_groups:2 * n_groups]
    b_ref = refs[2 * n_groups]
    o_ref = refs[2 * n_groups + 1]
    acc = None
    for g in range(n_groups):
        for t in range(9):
            ty, tx = divmod(t, 3)
            off = ty * w2 + tx
            a = x_refs[g][0, off:off + m, :]               # (m, C_g) shifted flat window
            d = jnp.dot(a, w_refs[g][t], preferred_element_type=jnp.float32)
            acc = d if acc is None else acc + d
    acc = acc + b_ref[...].astype(jnp.float32)
    if negative_slope is not None:
        acc = jnp.maximum(acc, negative_slope * acc)
    o_ref[0] = acc.astype(o_ref.dtype)


def _pad_flatten_nhwc(x):
    # (N,H,W,C) -> (N, (H+3)*(W+2), C): pad 1 on each side + 1 extra bottom row so the
    # last tap's shifted window stays in bounds of the flattened buffer.
    n, h, w, c = x.shape
    xp = jnp.pad(x.astype(_MXU_DTYPE), ((0, 0), (1, 2), (1, 1), (0, 0)))
    return xp.reshape(n, (h + 3) * (w + 2), c)


def _conv_fused_vmem_need(l, m, c_list, cout, out_bytes):
    b = 0
    for c in c_list:
        b += 2 * l * c * 2             # double-buffered bf16 flat input
        b += 2 * 9 * c * cout * 2      # tap weights
        b += m * c * 2                 # one live sliced A window
    b += 2 * m * cout * out_bytes      # double-buffered output
    b += 2 * m * cout * 4              # f32 accumulator + one live dot temporary
    b += 4 * cout * 4                  # bias
    return b


def conv3x3_s1_groups(x_list, w_taps_list, bias_row, *, negative_slope=None,
                      out_dtype=_MXU_DTYPE):
    """3x3 / stride-1 / pad-1 conv over concat(x_list, channel axis) WITHOUT
    materializing the concat or an im2col matrix. w_taps_list[g]: (9, C_g, Cout)."""
    n, h, w, _ = x_list[0].shape
    cout = w_taps_list[0].shape[-1]
    c_list = [wt.shape[1] for wt in w_taps_list]
    for x, c in zip(x_list, c_list):
        assert x.shape == (n, h, w, c), (x.shape, (n, h, w, c))
    w2 = w + 2
    m = h * w2
    l = (h + 3) * w2
    out_bytes = jnp.dtype(out_dtype).itemsize
    need = _conv_fused_vmem_need(l, m, c_list, cout, out_bytes)

    if need > _vmem_budget_bytes():
        # TODO(synk): tile H bands (with halo DMA) instead of this im2col fallback for
        # images too large to hold one padded feature map per grid step in VMEM.
        a_list = [_im2col(x.astype(_MXU_DTYPE), 3, 3, 1, 1)[0] for x in x_list]
        wmats = [wt.reshape(9 * c, cout) for wt, c in zip(w_taps_list, c_list)]
        y = fused_matmul_multi(a_list, wmats, bias_row,
                               negative_slope=negative_slope, out_dtype=out_dtype)
        return y.reshape(n, h, w, cout)

    xf_list = [_pad_flatten_nhwc(x) for x in x_list]
    kernel = functools.partial(_fused_conv3x3_kernel, n_groups=len(x_list),
                               w2=w2, m=m, negative_slope=negative_slope)
    in_specs = ([pl.BlockSpec((1, l, c), lambda i: (i, 0, 0)) for c in c_list]
                + [pl.BlockSpec((9, c, cout), lambda i: (0, 0, 0)) for c in c_list]
                + [pl.BlockSpec((1, cout), lambda i: (0, 0))])
    # NOTE(v7x): grid is over batch; with batch >= 2 the "parallel" axis shards across
    # both TensorCores.
    y_flat = pl.pallas_call(
        kernel,
        out_shape=jax.ShapeDtypeStruct((n, m, cout), out_dtype),
        grid=(n,),
        in_specs=in_specs,
        out_specs=pl.BlockSpec((1, m, cout), lambda i: (i, 0, 0)),
        compiler_params=pltpu.CompilerParams(
            dimension_semantics=("parallel",),
            vmem_limit_bytes=_vmem_limit_bytes(need)),
    )(*xf_list, *w_taps_list, bias_row)
    # drop the 2 wrap columns produced by the flat-offset formulation (fuses with the
    # consumer's pad/flatten on the XLA side).
    return y_flat.reshape(n, h, w2, cout)[:, :, :w, :]


# --------------------------------------------------------------------------- #
# im2col glue (stride-2 encoder convs + oversized-image fallback)
# --------------------------------------------------------------------------- #
def _im2col(x, kh, kw, stride, pad):
    # x: [N, H, W, C] -> ([N*Ho*Wo, kh*kw*C], (N, Ho, Wo)); column order (ty, tx, c)
    xp = jnp.pad(x, ((0, 0), (pad, pad), (pad, pad), (0, 0)))
    n, hp, wp, c = xp.shape
    ho = (hp - kh) // stride + 1
    wo = (wp - kw) // stride + 1
    cols = []
    for i in range(kh):
        for j in range(kw):
            cols.append(xp[:, i:i + (ho - 1) * stride + 1:stride,
                           j:j + (wo - 1) * stride + 1:stride, :])
    a = jnp.concatenate(cols, axis=-1)
    return a.reshape(n * ho * wo, kh * kw * c), (n, ho, wo)


def conv2d_im2col(x, w_mat, bias_row, *, k, stride, pad, negative_slope=None,
                  out_dtype=_MXU_DTYPE):
    # TODO(synk): fuse the stride-2 encoder convs too (space-to-depth + fused tap loop)
    # to remove the remaining 2.25x im2col expansion.
    a, (n, ho, wo) = _im2col(x.astype(_MXU_DTYPE), k, k, stride, pad)
    y = fused_matmul_multi([a], [w_mat], bias_row,
                           negative_slope=negative_slope, out_dtype=out_dtype)
    return y.reshape(n, ho, wo, -1)


def deconv_k4s2p1(x, w_phase_taps, bias_row, *, cout, negative_slope=None):
    """ConvTranspose2d(k=4, s=2, p=1) via phase (sub-pixel) decomposition: one fused
    3x3/s1/p1 conv at the INPUT resolution producing 4*cout phase channels (lane-dense),
    then a pixel-shuffle. Never touches a 75%-zeros 2Hx2W tensor."""
    n, h, w, _ = x.shape
    y = conv3x3_s1_groups([x], [w_phase_taps], bias_row, negative_slope=negative_slope)
    y = y.reshape(n, h, w, 2, 2, cout)
    # TODO(synk): keep the phase layout end-to-end (phase-aware consumer gather) to drop
    # this shuffle entirely; as written it fuses with the consumer's pad into one copy.
    return jnp.transpose(y, (0, 1, 3, 2, 4, 5)).reshape(n, 2 * h, 2 * w, cout)


def _phase_weight_from_conv4(w4):
    """(4,4,cin,cout) equivalent-forward-conv weight -> (9, cin, 4*cout) tap tensor
    matching the fused 3x3/p1 conv (taps ordered (ty,tx), phase cols ordered (py,px,cout))."""
    _, _, cin, cout = w4.shape
    wp = jnp.zeros((3, 3, cin, 2, 2, cout), w4.dtype)
    tap_rows = {0: ((0, 0), (1, 2)), 1: ((1, 1), (2, 3))}
    for py in (0, 1):
        for px in (0, 1):
            for ty, ky in tap_rows[py]:
                for tx, kx in tap_rows[px]:
                    wp = wp.at[ty, tx, :, py, px, :].set(w4[ky, kx, :, :])
    return wp.reshape(9, cin, 4 * cout)


# --------------------------------------------------------------------------- #
# Parameters (deterministic, Kaiming-normal style as in FlowNetS._init).
# All weights stored kernel-ready (reshaped + cast to bf16 once, here).
# --------------------------------------------------------------------------- #
def init_params(key):
    params = {"encoder": {}, "decoder": {}, "upsample": {}, "predict": {}}
    keys = iter(jax.random.split(key, 64))

    def conv_w(cin, cout, k):
        std = math.sqrt(2.0 / (1.0 + LEAKY_SLOPE ** 2)) / math.sqrt(cin * k * k)
        return jax.random.normal(next(keys), (k, k, cin, cout), jnp.float32) * std

    for scope, cin, cout, k in ENC_CFG:            # conv(use_bn=False): bias + LeakyReLU
        w = conv_w(cin, cout, k)
        params["encoder"][scope] = {"w": w.reshape(k * k * cin, cout).astype(_MXU_DTYPE),
                                    "b": jnp.zeros((1, cout), jnp.float32)}
    for scope, cin, cout in DEC_CFG:               # deconv: no bias, LeakyReLU
        w4 = conv_w(cin, cout, 4)
        params["decoder"][scope] = {"w": _phase_weight_from_conv4(w4).astype(_MXU_DTYPE),
                                    "b": jnp.zeros((1, 4 * cout), jnp.float32)}
    for scope in ("level3", "level2"):             # flow upsample: 2 -> 2, no bias/act
        w4 = conv_w(2, 2, 4)
        params["upsample"][scope] = {"w": _phase_weight_from_conv4(w4).astype(_MXU_DTYPE),
                                     "b": jnp.zeros((1, 8), jnp.float32)}
    for scope, group_cins in PRED_GROUPS:          # predict: 3x3 -> 2, no bias/act
        w = conv_w(sum(group_cins), 2, 3)          # (3,3,cin_total,2)
        groups, start = [], 0
        for g in group_cins:                       # per-input-group (9, C_g, 2) tap tensors
            groups.append(w[:, :, start:start + g, :].reshape(9, g, 2).astype(_MXU_DTYPE))
            start += g
        params["predict"][scope] = {"w_groups": groups,
                                    "b": jnp.zeros((1, 2), jnp.float32)}
    return params


# --------------------------------------------------------------------------- #
# FlowNetS forward
# --------------------------------------------------------------------------- #
def flownet_s_forward(params, x_nchw, training=False):
    x = jnp.transpose(x_nchw, (0, 2, 3, 1)).astype(_MXU_DTYPE)   # NCHW -> NHWC, bf16
    encs = {}
    for scope, _, _, k in ENC_CFG:
        p = params["encoder"][scope]
        x = conv2d_im2col(x, p["w"], p["b"], k=k, stride=ENC_STRIDES[scope],
                          pad=(k - 1) // 2, negative_slope=LEAKY_SLOPE)
        encs[scope] = x

    enc_scopes = list(encs.keys())[::-1]
    last_scope = enc_scopes.pop(-1)
    dec, flow_up = None, None
    flows = []
    for scope in enc_scopes:
        pp = params["predict"][scope]
        feats = [f for f in (encs[scope], dec, flow_up) if f is not None]
        # predict: channel groups contracted separately, accumulated in-kernel (no concat);
        # emitted in f32 for parity (N=2, cheap).
        flow = conv3x3_s1_groups(feats, pp["w_groups"][:len(feats)], pp["b"],
                                 negative_slope=None, out_dtype=jnp.float32)
        pu = params["upsample"][scope]
        # TODO(synk): reference `upsample` uses ConvTranspose2d(k=2,s=1,p=0) which breaks the
        # spatial alignment of the later concat; using canonical k=4,s=2,p=1 flow upsampling.
        # TODO(synk): in eval mode this upsample could be composed with predict into one
        # 5x5-equivalent phase conv (drops a pallas_call + the lane-sparse N=2 intermediate).
        flow_up = deconv_k4s2p1(flow, pu["w"], pu["b"], cout=2, negative_slope=None)
        pd = params["decoder"][scope]
        dec = deconv_k4s2p1(encs[scope], pd["w"], pd["b"], cout=DEC_COUT[scope],
                            negative_slope=LEAKY_SLOPE)
        flows.append(flow)   # reference has flows.append(flows) (self-append bug); fixed

    pp = params["predict"][last_scope]
    # TODO(synk): reference indexes encs[scope] (stale loop var, spatial mismatch);
    # using encs[last_scope] as in canonical FlowNetS.
    flow = conv3x3_s1_groups([encs[last_scope], dec, flow_up], pp["w_groups"], pp["b"],
                             negative_slope=None, out_dtype=jnp.float32)
    flows.append(flow)

    to_nchw = lambda t: jnp.transpose(t, (0, 3, 1, 2)).astype(jnp.float32)
    if training:
        return {"flow": [to_nchw(f) for f in flows[::-1]]}
    return {"flow": to_nchw(flow)}                  # eval-mode semantics


# --------------------------------------------------------------------------- #
if __name__ == "__main__":
    key = jax.random.PRNGKey(0)
    pkey, xkey = jax.random.split(key)
    params = init_params(pkey)
    x = jax.random.normal(xkey, (2, IN_CHANNELS, 16, 16), jnp.float32)  # NCHW input

    fwd = jax.jit(functools.partial(flownet_s_forward, training=False))
    out = fwd(params, x)
    flow = jax.block_until_ready(out["flow"])
    assert flow.shape == (2, 2, 8, 8), flow.shape   # 2-ch flow at finest decoded scale
    assert bool(jnp.all(jnp.isfinite(flow)))
    print("KERNEL_OK")
</pallas_src>

<mosaic_0001>
module attributes {stable_mosaic.version = 11 : i64} {
  func.func @_fused_matmul_kernel(%arg0: i32, %arg1: memref<64x54xbf16, #tpu.memory_space<vmem>>, %arg2: memref<54x16xbf16, #tpu.memory_space<vmem>>, %arg3: memref<1x16xf32, #tpu.memory_space<vmem>>, %arg4: memref<64x16xbf16, #tpu.memory_space<vmem>>) attributes {dimension_semantics = [#tpu.dimension_semantics<parallel>], iteration_bounds = array<i64: 2>, scalar_prefetch = 0 : i64, scratch_operands = 0 : i64, tpu.core_type = #tpu.core_type<tc>, window_params = [{transform_indices = @transform_0, window_bounds = array<i64: 64, 54>}, {pipeline_mode = #tpu.pipeline_mode<synchronous>, transform_indices = @transform_1, window_bounds = array<i64: 54, 16>}, {pipeline_mode = #tpu.pipeline_mode<synchronous>, transform_indices = @transform_2, window_bounds = array<i64: 1, 16>}, {transform_indices = @transform_3, window_bounds = array<i64: 64, 16>}]} {
    %c0 = arith.constant 0 : index
    %c0_0 = arith.constant 0 : index
    %0 = vector.load %arg1[%c0, %c0_0] : memref<64x54xbf16, #tpu.memory_space<vmem>>, vector<64x54xbf16>
    %c0_1 = arith.constant 0 : index
    %c0_2 = arith.constant 0 : index
    %1 = vector.load %arg2[%c0_1, %c0_2] : memref<54x16xbf16, #tpu.memory_space<vmem>>, vector<54x16xbf16>
    %cst = arith.constant dense<0.000000e+00> : vector<64x16xf32>
    %2 = tpu.matmul %0, %1, %cst {dimension_numbers = #tpu.dot_dimension_numbers<[1], [0], [0], [1], [0, 0, 1, 1], [], []>} : vector<64x54xbf16>, vector<54x16xbf16>, vector<64x16xf32> -> vector<64x16xf32>
    %c0_3 = arith.constant 0 : index
    %c0_4 = arith.constant 0 : index
    %3 = vector.load %arg3[%c0_3, %c0_4] : memref<1x16xf32, #tpu.memory_space<vmem>>, vector<1x16xf32>
    %4 = vector.broadcast %3 : vector<1x16xf32> to vector<64x16xf32>
    %5 = arith.addf %2, %4 : vector<64x16xf32>
    %cst_5 = arith.constant 1.000000e-01 : f32
    %6 = vector.broadcast %cst_5 : f32 to vector<64x16xf32>
    %7 = arith.mulf %6, %5 : vector<64x16xf32>
    %8 = arith.maximumf %5, %7 : vector<64x16xf32>
    %9 = arith.truncf %8 : vector<64x16xf32> to vector<64x16xbf16>
    %c0_6 = arith.constant 0 : index
    %c0_7 = arith.constant 0 : index
    %10 = vector.load %arg4[%c0_6, %c0_7] : memref<64x16xbf16, #tpu.memory_space<vmem>>, vector<64x16xbf16>
    tpu.vector_store %arg4[%c0_6, %c0_7], %9 {strides = array<i32>} : memref<64x16xbf16, #tpu.memory_space<vmem>>, vector<64x16xbf16>,
    return
  }
  func.func @transform_0(%arg0: i32) -> (i32, i32) {
    %c0_i32 = arith.constant 0 : i32
    %c0_i32_0 = arith.constant 0 : i32
    return %arg0, %c0_i32 : i32, i32
  }
  func.func @transform_1(%arg0: i32) -> (i32, i32) {
    %c0_i32 = arith.constant 0 : i32
    %c0_i32_0 = arith.constant 0 : i32
    %c0_i32_1 = arith.constant 0 : i32
    return %c0_i32, %c0_i32_0 : i32, i32
  }
  func.func @transform_2(%arg0: i32) -> (i32, i32) {
    %c0_i32 = arith.constant 0 : i32
    %c0_i32_0 = arith.constant 0 : i32
    %c0_i32_1 = arith.constant 0 : i32
    return %c0_i32, %c0_i32_0 : i32, i32
  }
  func.func @transform_3(%arg0: i32) -> (i32, i32) {
    %c0_i32 = arith.constant 0 : i32
    %c0_i32_0 = arith.constant 0 : i32
    return %arg0, %c0_i32 : i32, i32
  }
}

module attributes {stable_mosaic.version = 11 : i64} {
  func.func @_fused_matmul_kernel(%arg0: i32, %arg1: memref<16x144xbf16, #tpu.memory_space<vmem>>, %arg2: memref<144x32xbf16, #tpu.memory_space<vmem>>, %arg3: memref<1x32xf32, #tpu.memory_space<vmem>>, %arg4: memref<16x32xbf16, #tpu.memory_space<vmem>>) attributes {dimension_semantics = [#tpu.dimension_semantics<parallel>], iteration_bounds = array<i64: 2>, scalar_prefetch = 0 : i64, scratch_operands = 0 : i64, tpu.core_type = #tpu.core_type<tc>, window_params = [{transform_indices = @transform_0, window_bounds = array<i64: 16, 144>}, {pipeline_mode = #tpu.pipeline_mode<synchronous>, transform_indices = @transform_1, window_bounds = array<i64: 144, 32>}, {pipeline_mode = #tpu.pipeline_mode<synchronous>, transform_indices = @transform_2, window_bounds = array<i64: 1, 32>}, {transform_indices = @transform_3, window_bounds = array<i64: 16, 32>}]} {
    %c0 = arith.constant 0 : index
    %c0_0 = arith.constant 0 : index
    %0 = vector.load %arg1[%c0, %c0_0] : memref<16x144xbf16, #tpu.memory_space<vmem>>, vector<16x144xbf16>
    %c0_1 = arith.constant 0 : index
    %c0_2 = arith.constant 0 : index
    %1 = vector.load %arg2[%c0_1, %c0_2] : memref<144x32xbf16, #tpu.memory_space<vmem>>, vector<144x32xbf16>
    %cst = arith.constant dense<0.000000e+00> : vector<16x32xf32>
    %2 = tpu.matmul %0, %1, %cst {dimension_numbers = #tpu.dot_dimension_numbers<[1], [0], [0], [1], [0, 0, 1, 1], [], []>} : vector<16x144xbf16>, vector<144x32xbf16>, vector<16x32xf32> -> vector<16x32xf32>
    %c0_3 = arith.constant 0 : index
    %c0_4 = arith.constant 0 : index
    %3 = vector.load %arg3[%c0_3, %c0_4] : memref<1x32xf32, #tpu.memory_space<vmem>>, vector<1x32xf32>
    %4 = vector.broadcast %3 : vector<1x32xf32> to vector<16x32xf32>
    %5 = arith.addf %2, %4 : vector<16x32xf32>
    %cst_5 = arith.constant 1.000000e-01 : f32
    %6 = vector.broadcast %cst_5 : f32 to vector<16x32xf32>
    %7 = arith.mulf %6, %5 : vector<16x32xf32>
    %8 = arith.maximumf %5, %7 : vector<16x32xf32>
    %9 = arith.truncf %8 : vector<16x32xf32> to vector<16x32xbf16>
    %c0_6 = arith.constant 0 : index
    %c0_7 = arith.constant 0 : index
    %10 = vector.load %arg4[%c0_6, %c0_7] : memref<16x32xbf16, #tpu.memory_space<vmem>>, vector<16x32xbf16>
    tpu.vector_store %arg4[%c0_6, %c0_7], %9 {strides = array<i32>} : memref<16x32xbf16, #tpu.memory_space<vmem>>, vector<16x32xbf16>,
    return
  }
  func.func @transform_0(%arg0: i32) -> (i32, i32) {
    %c0_i32 = arith.constant 0 : i32
    %c0_i32_0 = arith.constant 0 : i32
    return %arg0, %c0_i32 : i32, i32
  }
  func.func @transform_1(%arg0: i32) -> (i32, i32) {
    %c0_i32 = arith.constant 0 : i32
    %c0_i32_0 = arith.constant 0 : i32
    %c0_i32_1 = arith.constant 0 : i32
    return %c0_i32, %c0_i32_0 : i32, i32
  }
  func.func @transform_2(%arg0: i32) -> (i32, i32) {
    %c0_i32 = arith.constant 0 : i32
    %c0_i32_0 = arith.constant 0 : i32
    %c0_i32_1 = arith.constant 0 : i32
    return %c0_i32, %c0_i32_0 : i32, i32
  }
  func.func @transform_3(%arg0: i32) -> (i32, i32) {
    %c0_i32 = arith.constant 0 : i32
    %c0_i32_0 = arith.constant 0 : i32
    return %arg0, %c0_i32 : i32, i32
  }
}

module attributes {stable_mosaic.version = 11 : i64} {
  func.func @_fused_matmul_kernel(%arg0: i32, %arg1: memref<8x288xbf16, #tpu.memory_space<vmem>>, %arg2: memref<288x64xbf16, #tpu.memory_space<vmem>>, %arg3: memref<1x64xf32, #tpu.memory_space<vmem>>, %arg4: memref<8x64xbf16, #tpu.memory_space<vmem>>) attributes {dimension_semantics = [#tpu.dimension_semantics<parallel>], iteration_bounds = array<i64: 1>, scalar_prefetch = 0 : i64, scratch_operands = 0 : i64, tpu.core_type = #tpu.core_type<tc>, window_params = [{transform_indices = @transform_0, window_bounds = array<i64: 8, 288>}, {pipeline_mode = #tpu.pipeline_mode<synchronous>, transform_indices = @transform_1, window_bounds = array<i64: 288, 64>}, {pipeline_mode = #tpu.pipeline_mode<synchronous>, transform_indices = @transform_2, window_bounds = array<i64: 1, 64>}, {transform_indices = @transform_3, window_bounds = array<i64: 8, 64>}]} {
    %c0 = arith.constant 0 : index
    %c0_0 = arith.constant 0 : index
    %0 = vector.load %arg1[%c0, %c0_0] : memref<8x288xbf16, #tpu.memory_space<vmem>>, vector<8x288xbf16>
    %c0_1 = arith.constant 0 : index
    %c0_2 = arith.constant 0 : index
    %1 = vector.load %arg2[%c0_1, %c0_2] : memref<288x64xbf16, #tpu.memory_space<vmem>>, vector<288x64xbf16>
    %cst = arith.constant dense<0.000000e+00> : vector<8x64xf32>
    %2 = tpu.matmul %0, %1, %cst {dimension_numbers = #tpu.dot_dimension_numbers<[1], [0], [0], [1], [0, 0, 1, 1], [], []>} : vector<8x288xbf16>, vector<288x64xbf16>, vector<8x64xf32> -> vector<8x64xf32>
    %c0_3 = arith.constant 0 : index
    %c0_4 = arith.constant 0 : index
    %3 = vector.load %arg3[%c0_3, %c0_4] : memref<1x64xf32, #tpu.memory_space<vmem>>, vector<1x64xf32>
    %4 = vector.broadcast %3 : vector<1x64xf32> to vector<8x64xf32>
    %5 = arith.addf %2, %4 : vector<8x64xf32>
    %cst_5 = arith.constant 1.000000e-01 : f32
    %6 = vector.broadcast %cst_5 : f32 to vector<8x64xf32>
    %7 = arith.mulf %6, %5 : vector<8x64xf32>
    %8 = arith.maximumf %5, %7 : vector<8x64xf32>
    %9 = arith.truncf %8 : vector<8x64xf32> to vector<8x64xbf16>
    %c0_6 = arith.constant 0 : index
    %c0_7 = arith.constant 0 : index
    %10 = vector.load %arg4[%c0_6, %c0_7] : memref<8x64xbf16, #tpu.memory_space<vmem>>, vector<8x64xbf16>
    tpu.vector_store %arg4[%c0_6, %c0_7], %9 {strides = array<i32>} : memref<8x64xbf16, #tpu.memory_space<vmem>>, vector<8x64xbf16>,
    return
  }
  func.func @transform_0(%arg0: i32) -> (i32, i32) {
    %c0_i32 = arith.constant 0 : i32
    %c0_i32_0 = arith.constant 0 : i32
    return %arg0, %c0_i32 : i32, i32
  }
  func.func @transform_1(%arg0: i32) -> (i32, i32) {
    %c0_i32 = arith.constant 0 : i32
    %c0_i32_0 = arith.constant 0 : i32
    %c0_i32_1 = arith.constant 0 : i32
    return %c0_i32, %c0_i32_0 : i32, i32
  }
  func.func @transform_2(%arg0: i32) -> (i32, i32) {
    %c0_i32 = arith.constant 0 : i32
    %c0_i32_0 = arith.constant 0 : i32
    %c0_i32_1 = arith.constant 0 : i32
    return %c0_i32, %c0_i32_0 : i32, i32
  }
  func.func @transform_3(%arg0: i32) -> (i32, i32) {
    %c0_i32 = arith.constant 0 : i32
    %c0_i32_0 = arith.constant 0 : i32
    return %arg0, %c0_i32 : i32, i32
  }
}

module attributes {stable_mosaic.version = 11 : i64} {
  func.func @_fused_conv3x3_kernel(%arg0: i32, %arg1: memref<1x20x64xbf16, #tpu.memory_space<vmem>>, %arg2: memref<9x64x2xbf16, #tpu.memory_space<vmem>>, %arg3: memref<1x2xf32, #tpu.memory_space<vmem>>, %arg4: memref<1x8x2xf32, #tpu.memory_space<vmem>>) attributes {dimension_semantics = [#tpu.dimension_semantics<parallel>], iteration_bounds = array<i64: 2>, scalar_prefetch = 0 : i64, scratch_operands = 0 : i64, tpu.core_type = #tpu.core_type<tc>, window_params = [{transform_indices = @transform_0, window_bounds = array<i64: 1, 20, 64>}, {pipeline_mode = #tpu.pipeline_mode<synchronous>, transform_indices = @transform_1, window_bounds = array<i64: 9, 64, 2>}, {pipeline_mode = #tpu.pipeline_mode<synchronous>, transform_indices = @transform_2, window_bounds = array<i64: 1, 2>}, {transform_indices = @transform_3, window_bounds = array<i64: 1, 8, 2>}]} {
    %c0 = arith.constant 0 : index
    %c0_0 = arith.constant 0 : index
    %c0_1 = arith.constant 0 : index
    %0 = vector.load %arg1[%c0, %c0_0, %c0_1] : memref<1x20x64xbf16, #tpu.memory_space<vmem>>, vector<1x8x64xbf16>
    %1 = vector.shape_cast %0 : vector<1x8x64xbf16> to vector<8x64xbf16>
    %c0_2 = arith.constant 0 : index
    %c0_3 = arith.constant 0 : index
    %c0_4 = arith.constant 0 : index
    %2 = vector.load %arg2[%c0_2, %c0_3, %c0_4] : memref<9x64x2xbf16, #tpu.memory_space<vmem>>, vector<1x64x2xbf16>
    %3 = vector.shape_cast %2 : vector<1x64x2xbf16> to vector<64x2xbf16>
    %cst = arith.constant dense<0.000000e+00> : vector<8x2xf32>
    %4 = tpu.matmul %1, %3, %cst {dimension_numbers = #tpu.dot_dimension_numbers<[1], [0], [0], [1], [0, 0, 1, 1], [], []>} : vector<8x64xbf16>, vector<64x2xbf16>, vector<8x2xf32> -> vector<8x2xf32>
    %c0_5 = arith.constant 0 : index
    %c1 = arith.constant 1 : index
    %c0_6 = arith.constant 0 : index
    %5 = vector.load %arg1[%c0_5, %c1, %c0_6] : memref<1x20x64xbf16, #tpu.memory_space<vmem>>, vector<1x8x64xbf16>
    %6 = vector.shape_cast %5 : vector<1x8x64xbf16> to vector<8x64xbf16>
    %c1_7 = arith.constant 1 : index
    %c0_8 = arith.constant 0 : index
    %c0_9 = arith.constant 0 : index
    %7 = vector.load %arg2[%c1_7, %c0_8, %c0_9] : memref<9x64x2xbf16, #tpu.memory_space<vmem>>, vector<1x64x2xbf16>
    %8 = vector.shape_cast %7 : vector<1x64x2xbf16> to vector<64x2xbf16>
    %cst_10 = arith.constant dense<0.000000e+00> : vector<8x2xf32>
    %9 = tpu.matmul %6, %8, %cst_10 {dimension_numbers = #tpu.dot_dimension_numbers<[1], [0], [0], [1], [0, 0, 1, 1], [], []>} : vector<8x64xbf16>, vector<64x2xbf16>, vector<8x2xf32> -> vector<8x2xf32>
    %10 = arith.addf %4, %9 : vector<8x2xf32>
    %c0_11 = arith.constant 0 : index
    %c2 = arith.constant 2 : index
    %c0_12 = arith.constant 0 : index
    %11 = vector.load %arg1[%c0_11, %c2, %c0_12] : memref<1x20x64xbf16, #tpu.memory_space<vmem>>, vector<1x8x64xbf16>
    %12 = vector.shape_cast %11 : vector<1x8x64xbf16> to vector<8x64xbf16>
    %c2_13 = arith.constant 2 : index
    %c0_14 = arith.constant 0 : index
    %c0_15 = arith.constant 0 : index
    %13 = vector.load %arg2[%c2_13, %c0_14, %c0_15] : memref<9x64x2xbf16, #tpu.memory_space<vmem>>, vector<1x64x2xbf16>
    %14 = vector.shape_cast %13 : vector<1x64x2xbf16> to vector<64x2xbf16>
    %cst_16 = arith.constant dense<0.000000e+00> : vector<8x2xf32>
    %15 = tpu.matmul %12, %14, %cst_16 {dimension_numbers = #tpu.dot_dimension_numbers<[1], [0], [0], [1], [0, 0, 1, 1], [], []>} : vector<8x64xbf16>, vector<64x2xbf16>, vector<8x2xf32> -> vector<8x2xf32>
    %16 = arith.addf %10, %15 : vector<8x2xf32>
    %c0_17 = arith.constant 0 : index
    %c4 = arith.constant 4 : index
    %c0_18 = arith.constant 0 : index
    %17 = vector.load %arg1[%c0_17, %c4, %c0_18] : memref<1x20x64xbf16, #tpu.memory_space<vmem>>, vector<1x8x64xbf16>
    %18 = vector.shape_cast %17 : vector<1x8x64xbf16> to vector<8x64xbf16>
    %c3 = arith.constant 3 : index
    %c0_19 = arith.constant 0 : index
    %c0_20 = arith.constant 0 : index
    %19 = vector.load %arg2[%c3, %c0_19, %c0_20] : memref<9x64x2xbf16, #tpu.memory_space<vmem>>, vector<1x64x2xbf16>
    %20 = vector.shape_cast %19 : vector<1x64x2xbf16> to vector<64x2xbf16>
    %cst_21 = arith.constant dense<0.000000e+00> : vector<8x2xf32>
    %21 = tpu.matmul %18, %20, %cst_21 {dimension_numbers = #tpu.dot_dimension_numbers<[1], [0], [0], [1], [0, 0, 1, 1], [], []>} : vector<8x64xbf16>, vector<64x2xbf16>, vector<8x2xf32> -> vector<8x2xf32>
    %22 = arith.addf %16, %21 : vector<8x2xf32>
    %c0_22 = arith.constant 0 : index
    %c5 = arith.constant 5 : index
    %c0_23 = arith.constant 0 : index
    %23 = vector.load %arg1[%c0_22, %c5, %c0_23] : memref<1x20x64xbf16, #tpu.memory_space<vmem>>, vector<1x8x64xbf16>
    %24 = vector.shape_cast %23 : vector<1x8x64xbf16> to vector<8x64xbf16>
    %c4_24 = arith.constant 4 : index
    %c0_25 = arith.constant 0 : index
    %c0_26 = arith.constant 0 : index
    %25 = vector.load %arg2[%c4_24, %c0_25, %c0_26] : memref<9x64x2xbf16, #tpu.memory_space<vmem>>, vector<1x64x2xbf16>
    %26 = vector.shape_cast %25 : vector<1x64x2xbf16> to vector<64x2xbf16>
    %cst_27 = arith.constant dense<0.000000e+00> : vector<8x2xf32>
    %27 = tpu.matmul %24, %26, %cst_27 {dimension_numbers = #tpu.dot_dimension_numbers<[1], [0], [0], [1], [0, 0, 1, 1], [], []>} : vector<8x64xbf16>, vector<64x2xbf16>, vector<8x2xf32> -> vector<8x2xf32>
    %28 = arith.addf %22, %27 : vector<8x2xf32>
    %c0_28 = arith.constant 0 : index
    %c6 = arith.constant 6 : index
    %c0_29 = arith.constant 0 : index
    %29 = vector.load %arg1[%c0_28, %c6, %c0_29] : memref<1x20x64xbf16, #tpu.memory_space<vmem>>, vector<1x8x64xbf16>
    %30 = vector.shape_cast %29 : vector<1x8x64xbf16> to vector<8x64xbf16>
    %c5_30 = arith.constant 5 : index
    %c0_31 = arith.constant 0 : index
    %c0_32 = arith.constant 0 : index
    %31 = vector.load %arg2[%c5_30, %c0_31, %c0_32] : memref<9x64x2xbf16, #tpu.memory_space<vmem>>, vector<1x64x2xbf16>
    %32 = vector.shape_cast %31 : vector<1x64x2xbf16> to vector<64x2xbf16>
    %cst_33 = arith.constant dense<0.000000e+00> : vector<8x2xf32>
    %33 = tpu.matmul %30, %32, %cst_33 {dimension_numbers = #tpu.dot_dimension_numbers<[1], [0], [0], [1], [0, 0, 1, 1], [], []>} : vector<8x64xbf16>, vector<64x2xbf16>, vector<8x2xf32> -> vector<8x2xf32>
    %34 = arith.addf %28, %33 : vector<8x2xf32>
    %c0_34 = arith.constant 0 : index
    %c8 = arith.constant 8 : index
    %c0_35 = arith.constant 0 : index
    %35 = vector.load %arg1[%c0_34, %c8, %c0_35] : memref<1x20x64xbf16, #tpu.memory_space<vmem>>, vector<1x8x64xbf16>
    %36 = vector.shape_cast %35 : vector<1x8x64xbf16> to vector<8x64xbf16>
    %c6_36 = arith.constant 6 : index
    %c0_37 = arith.constant 0 : index
    %c0_38 = arith.constant 0 : index
    %37 = vector.load %arg2[%c6_36, %c0_37, %c0_38] : memref<9x64x2xbf16, #tpu.memory_space<vmem>>, vector<1x64x2xbf16>
    %38 = vector.shape_cast %37 : vector<1x64x2xbf16> to vector<64x2xbf16>
    %cst_39 = arith.constant dense<0.000000e+00> : vector<8x2xf32>
    %39 = tpu.matmul %36, %38, %cst_39 {dimension_numbers = #tpu.dot_dimension_numbers<[1], [0], [0], [1], [0, 0, 1, 1], [], []>} : vector<8x64xbf16>, vector<64x2xbf16>, vector<8x2xf32> -> vector<8x2xf32>
    %40 = arith.addf %34, %39 : vector<8x2xf32>
    %c0_40 = arith.constant 0 : index
    %c9 = arith.constant 9 : index
    %c0_41 = arith.constant 0 : index
    %41 = vector.load %arg1[%c0_40, %c9, %c0_41] : memref<1x20x64xbf16, #tpu.memory_space<vmem>>, vector<1x8x64xbf16>
    %42 = vector.shape_cast %41 : vector<1x8x64xbf16> to vector<8x64xbf16>
    %c7 = arith.constant 7 : index
    %c0_42 = arith.constant 0 : index
    %c0_43 = arith.constant 0 : index
    %43 = vector.load %arg2[%c7, %c0_42, %c0_43] : memref<9x64x2xbf16, #tpu.memory_space<vmem>>, vector<1x64x2xbf16>
    %44 = vector.shape_cast %43 : vector<1x64x2xbf16> to vector<64x2xbf16>
    %cst_44 = arith.constant dense<0.000000e+00> : vector<8x2xf32>
    %45 = tpu.matmul %42, %44, %cst_44 {dimension_numbers = #tpu.dot_dimension_numbers<[1], [0], [0], [1], [0, 0, 1, 1], [], []>} : vector<8x64xbf16>, vector<64x2xbf16>, vector<8x2xf32> -> vector<8x2xf32>
    %46 = arith.addf %40, %45 : vector<8x2xf32>
    %c0_45 = arith.constant 0 : index
    %c10 = arith.constant 10 : index
    %c0_46 = arith.constant 0 : index
    %47 = vector.load %arg1[%c0_45, %c10, %c0_46] : memref<1x20x64xbf16, #tpu.memory_space<vmem>>, vector<1x8x64xbf16>
    %48 = vector.shape_cast %47 : vector<1x8x64xbf16> to vector<8x64xbf16>
    %c8_47 = arith.constant 8 : index
    %c0_48 = arith.constant 0 : index
    %c0_49 = arith.constant 0 : index
    %49 = vector.load %arg2[%c8_47, %c0_48, %c0_49] : memref<9x64x2xbf16, #tpu.memory_space<vmem>>, vector<1x64x2xbf16>
    %50 = vector.shape_cast %49 : vector<1x64x2xbf16> to vector<64x2xbf16>
    %cst_50 = arith.constant dense<0.000000e+00> : vector<8x2xf32>
    %51 = tpu.matmul %48, %50, %cst_50 {dimension_numbers = #tpu.dot_dimension_numbers<[1], [0], [0], [1], [0, 0, 1, 1], [], []>} : vector<8x64xbf16>, vector<64x2xbf16>, vector<8x2xf32> -> vector<8x2xf32>
    %52 = arith.addf %46, %51 : vector<8x2xf32>
    %c0_51 = arith.constant 0 : index
    %c0_52 = arith.constant 0 : index
    %53 = vector.load %arg3[%c0_51, %c0_52] : memref<1x2xf32, #tpu.memory_space<vmem>>, vector<1x2xf32>
    %54 = vector.broadcast %53 : vector<1x2xf32> to vector<8x2xf32>
    %55 = arith.addf %52, %54 : vector<8x2xf32>
    %c0_53 = arith.constant 0 : index
    %c0_54 = arith.constant 0 : index
    %c0_55 = arith.constant 0 : index
    %56 = vector.load %arg4[%c0_53, %c0_54, %c0_55] : memref<1x8x2xf32, #tpu.memory_space<vmem>>, vector<1x8x2xf32>
    %57 = vector.shape_cast %56 : vector<1x8x2xf32> to vector<8x2xf32>
    %58 = vector.shape_cast %55 : vector<8x2xf32> to vector<1x8x2xf32>
    tpu.vector_store %arg4[%c0_53, %c0_54, %c0_55], %58 {strides = array<i32>} : memref<1x8x2xf32, #tpu.memory_space<vmem>>, vector<1x8x2xf32>,
    return
  }
  func.func @transform_0(%arg0: i32) -> (i32, i32, i32) {
    %c0_i32 = arith.constant 0 : i32
    %c0_i32_0 = arith.constant 0 : i32
    %c0_i32_1 = arith.constant 0 : i32
    return %arg0, %c0_i32, %c0_i32_0 : i32, i32, i32
  }
  func.func @transform_1(%arg0: i32) -> (i32, i32, i32) {
    %c0_i32 = arith.constant 0 : i32
    %c0_i32_0 = arith.constant 0 : i32
    %c0_i32_1 = arith.constant 0 : i32
    %c0_i32_2 = arith.constant 0 : i32
    return %c0_i32, %c0_i32_0, %c0_i32_1 : i32, i32, i32
  }
  func.func @transform_2(%arg0: i32) -> (i32, i32) {
    %c0_i32 = arith.constant 0 : i32
    %c0_i32_0 = arith.constant 0 : i32
    %c0_i32_1 = arith.constant 0 : i32
    return %c0_i32, %c0_i32_0 : i32, i32
  }
  func.func @transform_3(%arg0: i32) -> (i32, i32, i32) {
    %c0_i32 = arith.constant 0 : i32
    %c0_i32_0 = arith.constant 0 : i32
    %c0_i32_1 = arith.constant 0 : i32
    return %arg0, %c0_i32, %c0_i32_0 : i32, i32, i32
  }
}

module attributes {stable_mosaic.version = 11 : i64} {
  func.func @_fused_conv3x3_kernel(%arg0: i32, %arg1: memref<1x20x2xbf16, #tpu.memory_space<vmem>>, %arg2: memref<9x2x8xbf16, #tpu.memory_space<vmem>>, %arg3: memref<1x8xf32, #tpu.memory_space<vmem>>, %arg4: memref<1x8x8xbf16, #tpu.memory_space<vmem>>) attributes {dimension_semantics = [#tpu.dimension_semantics<parallel>], iteration_bounds = array<i64: 2>, scalar_prefetch = 0 : i64, scratch_operands = 0 : i64, tpu.core_type = #tpu.core_type<tc>, window_params = [{transform_indices = @transform_0, window_bounds = array<i64: 1, 20, 2>}, {pipeline_mode = #tpu.pipeline_mode<synchronous>, transform_indices = @transform_1, window_bounds = array<i64: 9, 2, 8>}, {pipeline_mode = #tpu.pipeline_mode<synchronous>, transform_indices = @transform_2, window_bounds = array<i64: 1, 8>}, {transform_indices = @transform_3, window_bounds = array<i64: 1, 8, 8>}]} {
    %c0 = arith.constant 0 : index
    %c0_0 = arith.constant 0 : index
    %c0_1 = arith.constant 0 : index
    %0 = vector.load %arg1[%c0, %c0_0, %c0_1] : memref<1x20x2xbf16, #tpu.memory_space<vmem>>, vector<1x8x2xbf16>
    %1 = vector.shape_cast %0 : vector<1x8x2xbf16> to vector<8x2xbf16>
    %c0_2 = arith.constant 0 : index
    %c0_3 = arith.constant 0 : index
    %c0_4 = arith.constant 0 : index
    %2 = vector.load %arg2[%c0_2, %c0_3, %c0_4] : memref<9x2x8xbf16, #tpu.memory_space<vmem>>, vector<1x2x8xbf16>
    %3 = vector.shape_cast %2 : vector<1x2x8xbf16> to vector<2x8xbf16>
    %cst = arith.constant dense<0.000000e+00> : vector<8x8xf32>
    %4 = tpu.matmul %1, %3, %cst {dimension_numbers = #tpu.dot_dimension_numbers<[1], [0], [0], [1], [0, 0, 1, 1], [], []>} : vector<8x2xbf16>, vector<2x8xbf16>, vector<8x8xf32> -> vector<8x8xf32>
    %c0_5 = arith.constant 0 : index
    %c1 = arith.constant 1 : index
    %c0_6 = arith.constant 0 : index
    %5 = vector.load %arg1[%c0_5, %c1, %c0_6] : memref<1x20x2xbf16, #tpu.memory_space<vmem>>, vector<1x8x2xbf16>
    %6 = vector.shape_cast %5 : vector<1x8x2xbf16> to vector<8x2xbf16>
    %c1_7 = arith.constant 1 : index
    %c0_8 = arith.constant 0 : index
    %c0_9 = arith.constant 0 : index
    %7 = vector.load %arg2[%c1_7, %c0_8, %c0_9] : memref<9x2x8xbf16, #tpu.memory_space<vmem>>, vector<1x2x8xbf16>
    %8 = vector.shape_cast %7 : vector<1x2x8xbf16> to vector<2x8xbf16>
    %cst_10 = arith.constant dense<0.000000e+00> : vector<8x8xf32>
    %9 = tpu.matmul %6, %8, %cst_10 {dimension_numbers = #tpu.dot_dimension_numbers<[1], [0], [0], [1], [0, 0, 1, 1], [], []>} : vector<8x2xbf16>, vector<2x8xbf16>, vector<8x8xf32> -> vector<8x8xf32>
    %10 = arith.addf %4, %9 : vector<8x8xf32>
    %c0_11 = arith.constant 0 : index
    %c2 = arith.constant 2 : index
    %c0_12 = arith.constant 0 : index
    %11 = vector.load %arg1[%c0_11, %c2, %c0_12] : memref<1x20x2xbf16, #tpu.memory_space<vmem>>, vector<1x8x2xbf16>
    %12 = vector.shape_cast %11 : vector<1x8x2xbf16> to vector<8x2xbf16>
    %c2_13 = arith.constant 2 : index
    %c0_14 = arith.constant 0 : index
    %c0_15 = arith.constant 0 : index
    %13 = vector.load %arg2[%c2_13, %c0_14, %c0_15] : memref<9x2x8xbf16, #tpu.memory_space<vmem>>, vector<1x2x8xbf16>
    %14 = vector.shape_cast %13 : vector<1x2x8xbf16> to vector<2x8xbf16>
    %cst_16 = arith.constant dense<0.000000e+00> : vector<8x8xf32>
    %15 = tpu.matmul %12, %14, %cst_16 {dimension_numbers = #tpu.dot_dimension_numbers<[1], [0], [0], [1], [0, 0, 1, 1], [], []>} : vector<8x2xbf16>, vector<2x8xbf16>, vector<8x8xf32> -> vector<8x8xf32>
    %16 = arith.addf %10, %15 : vector<8x8xf32>
    %c0_17 = arith.constant 0 : index
    %c4 = arith.constant 4 : index
    %c0_18 = arith.constant 0 : index
    %17 = vector.load %arg1[%c0_17, %c4, %c0_18] : memref<1x20x2xbf16, #tpu.memory_space<vmem>>, vector<1x8x2xbf16>
    %18 = vector.shape_cast %17 : vector<1x8x2xbf16> to vector<8x2xbf16>
    %c3 = arith.constant 3 : index
    %c0_19 = arith.constant 0 : index
    %c0_20 = arith.constant 0 : index
    %19 = vector.load %arg2[%c3, %c0_19, %c0_20] : memref<9x2x8xbf16, #tpu.memory_space<vmem>>, vector<1x2x8xbf16>
    %20 = vector.shape_cast %19 : vector<1x2x8xbf16> to vector<2x8xbf16>
    %cst_21 = arith.constant dense<0.000000e+00> : vector<8x8xf32>
    %21 = tpu.matmul %18, %20, %cst_21 {dimension_numbers = #tpu.dot_dimension_numbers<[1], [0], [0], [1], [0, 0, 1, 1], [], []>} : vector<8x2xbf16>, vector<2x8xbf16>, vector<8x8xf32> -> vector<8x8xf32>
    %22 = arith.addf %16, %21 : vector<8x8xf32>
    %c0_22 = arith.constant 0 : index
    %c5 = arith.constant 5 : index
    %c0_23 = arith.constant 0 : index
    %23 = vector.load %arg1[%c0_22, %c5, %c0_23] : memref<1x20x2xbf16, #tpu.memory_space<vmem>>, vector<1x8x2xbf16>
    %24 = vector.shape_cast %23 : vector<1x8x2xbf16> to vector<8x2xbf16>
    %c4_24 = arith.constant 4 : index
    %c0_25 = arith.constant 0 : index
    %c0_26 = arith.constant 0 : index
    %25 = vector.load %arg2[%c4_24, %c0_25, %c0_26] : memref<9x2x8xbf16, #tpu.memory_space<vmem>>, vector<1x2x8xbf16>
    %26 = vector.shape_cast %25 : vector<1x2x8xbf16> to vector<2x8xbf16>
    %cst_27 = arith.constant dense<0.000000e+00> : vector<8x8xf32>
    %27 = tpu.matmul %24, %26, %cst_27 {dimension_numbers = #tpu.dot_dimension_numbers<[1], [0], [0], [1], [0, 0, 1, 1], [], []>} : vector<8x2xbf16>, vector<2x8xbf16>, vector<8x8xf32> -> vector<8x8xf32>
    %28 = arith.addf %22, %27 : vector<8x8xf32>
    %c0_28 = arith.constant 0 : index
    %c6 = arith.constant 6 : index
    %c0_29 = arith.constant 0 : index
    %29 = vector.load %arg1[%c0_28, %c6, %c0_29] : memref<1x20x2xbf16, #tpu.memory_space<vmem>>, vector<1x8x2xbf16>
    %30 = vector.shape_cast %29 : vector<1x8x2xbf16> to vector<8x2xbf16>
    %c5_30 = arith.constant 5 : index
    %c0_31 = arith.constant 0 : index
    %c0_32 = arith.constant 0 : index
    %31 = vector.load %arg2[%c5_30, %c0_31, %c0_32] : memref<9x2x8xbf16, #tpu.memory_space<vmem>>, vector<1x2x8xbf16>
    %32 = vector.shape_cast %31 : vector<1x2x8xbf16> to vector<2x8xbf16>
    %cst_33 = arith.constant dense<0.000000e+00> : vector<8x8xf32>
    %33 = tpu.matmul %30, %32, %cst_33 {dimension_numbers = #tpu.dot_dimension_numbers<[1], [0], [0], [1], [0, 0, 1, 1], [], []>} : vector<8x2xbf16>, vector<2x8xbf16>, vector<8x8xf32> -> vector<8x8xf32>
    %34 = arith.addf %28, %33 : vector<8x8xf32>
    %c0_34 = arith.constant 0 : index
    %c8 = arith.constant 8 : index
    %c0_35 = arith.constant 0 : index
    %35 = vector.load %arg1[%c0_34, %c8, %c0_35] : memref<1x20x2xbf16, #tpu.memory_space<vmem>>, vector<1x8x2xbf16>
    %36 = vector.shape_cast %35 : vector<1x8x2xbf16> to vector<8x2xbf16>
    %c6_36 = arith.constant 6 : index
    %c0_37 = arith.constant 0 : index
    %c0_38 = arith.constant 0 : index
    %37 = vector.load %arg2[%c6_36, %c0_37, %c0_38] : memref<9x2x8xbf16, #tpu.memory_space<vmem>>, vector<1x2x8xbf16>
    %38 = vector.shape_cast %37 : vector<1x2x8xbf16> to vector<2x8xbf16>
    %cst_39 = arith.constant dense<0.000000e+00> : vector<8x8xf32>
    %39 = tpu.matmul %36, %38, %cst_39 {dimension_numbers = #tpu.dot_dimension_numbers<[1], [0], [0], [1], [0, 0, 1, 1], [], []>} : vector<8x2xbf16>, vector<2x8xbf16>, vector<8x8xf32> -> vector<8x8xf32>
    %40 = arith.addf %34, %39 : vector<8x8xf32>
    %c0_40 = arith.constant 0 : index
    %c9 = arith.constant 9 : index
    %c0_41 = arith.constant 0 : index
    %41 = vector.load %arg1[%c0_40, %c9, %c0_41] : memref<1x20x2xbf16, #tpu.memory_space<vmem>>, vector<1x8x2xbf16>
    %42 = vector.shape_cast %41 : vector<1x8x2xbf16> to vector<8x2xbf16>
    %c7 = arith.constant 7 : index
    %c0_42 = arith.constant 0 : index
    %c0_43 = arith.constant 0 : index
    %43 = vector.load %arg2[%c7, %c0_42, %c0_43] : memref<9x2x8xbf16, #tpu.memory_space<vmem>>, vector<1x2x8xbf16>
    %44 = vector.shape_cast %43 : vector<1x2x8xbf16> to vector<2x8xbf16>
    %cst_44 = arith.constant dense<0.000000e+00> : vector<8x8xf32>
    %45 = tpu.matmul %42, %44, %cst_44 {dimension_numbers = #tpu.dot_dimension_numbers<[1], [0], [0], [1], [0, 0, 1, 1], [], []>} : vector<8x2xbf16>, vector<2x8xbf16>, vector<8x8xf32> -> vector<8x8xf32>
    %46 = arith.addf %40, %45 : vector<8x8xf32>
    %c0_45 = arith.constant 0 : index
    %c10 = arith.constant 10 : index
    %c0_46 = arith.constant 0 : index
    %47 = vector.load %arg1[%c0_45, %c10, %c0_46] : memref<1x20x2xbf16, #tpu.memory_space<vmem>>, vector<1x8x2xbf16>
    %48 = vector.shape_cast %47 : vector<1x8x2xbf16> to vector<8x2xbf16>
    %c8_47 = arith.constant 8 : index
    %c0_48 = arith.constant 0 : index
    %c0_49 = arith.constant 0 : index
    %49 = vector.load %arg2[%c8_47, %c0_48, %c0_49] : memref<9x2x8xbf16, #tpu.memory_space<vmem>>, vector<1x2x8xbf16>
    %50 = vector.shape_cast %49 : vector<1x2x8xbf16> to vector<2x8xbf16>
    %cst_50 = arith.constant dense<0.000000e+00> : vector<8x8xf32>
    %51 = tpu.matmul %48, %50, %cst_50 {dimension_numbers = #tpu.dot_dimension_numbers<[1], [0], [0], [1], [0, 0, 1, 1], [], []>} : vector<8x2xbf16>, vector<2x8xbf16>, vector<8x8xf32> -> vector<8x8xf32>
    %52 = arith.addf %46, %51 : vector<8x8xf32>
    %c0_51 = arith.constant 0 : index
    %c0_52 = arith.constant 0 : index
    %53 = vector.load %arg3[%c0_51, %c0_52] : memref<1x8xf32, #tpu.memory_space<vmem>>, vector<1x8xf32>
    %54 = vector.broadcast %53 : vector<1x8xf32> to vector<8x8xf32>
    %55 = arith.addf %52, %54 : vector<8x8xf32>
    %56 = arith.truncf %55 : vector<8x8xf32> to vector<8x8xbf16>
    %c0_53 = arith.constant 0 : index
    %c0_54 = arith.constant 0 : index
    %c0_55 = arith.constant 0 : index
    %57 = vector.load %arg4[%c0_53, %c0_54, %c0_55] : memref<1x8x8xbf16, #tpu.memory_space<vmem>>, vector<1x8x8xbf16>
    %58 = vector.shape_cast %57 : vector<1x8x8xbf16> to vector<8x8xbf16>
    %59 = vector.shape_cast %56 : vector<8x8xbf16> to vector<1x8x8xbf16>
    tpu.vector_store %arg4[%c0_53, %c0_54, %c0_55], %59 {strides = array<i32>} : memref<1x8x8xbf16, #tpu.memory_space<vmem>>, vector<1x8x8xbf16>,
    return
  }
  func.func @transform_0(%arg0: i32) -> (i32, i32, i32) {
    %c0_i32 = arith.constant 0 : i32
    %c0_i32_0 = arith.constant 0 : i32
    %c0_i32_1 = arith.constant 0 : i32
    return %arg0, %c0_i32, %c0_i32_0 : i32, i32, i32
  }
  func.func @transform_1(%arg0: i32) -> (i32, i32, i32) {
    %c0_i32 = arith.constant 0 : i32
    %c0_i32_0 = arith.constant 0 : i32
    %c0_i32_1 = arith.constant 0 : i32
    %c0_i32_2 = arith.constant 0 : i32
    return %c0_i32, %c0_i32_0, %c0_i32_1 : i32, i32, i32
  }
  func.func @transform_2(%arg0: i32) -> (i32, i32) {
    %c0_i32 = arith.constant 0 : i32
    %c0_i32_0 = arith.constant 0 : i32
    %c0_i32_1 = arith.constant 0 : i32
    return %c0_i32, %c0_i32_0 : i32, i32
  }
  func.func @transform_3(%arg0: i32) -> (i32, i32, i32) {
    %c0_i32 = arith.constant 0 : i32
    %c0_i32_0 = arith.constant 0 : i32
    %c0_i32_1 = arith.constant 0 : i32
    return %arg0, %c0_i32, %c0_i32_0 : i32, i32, i32
  }
}

module attributes {stable_mosaic.version = 11 : i64} {
  func.func @_fused_conv3x3_kernel(%arg0: i32, %arg1: memref<1x20x64xbf16, #tpu.memory_space<vmem>>, %arg2: memref<9x64x128xbf16, #tpu.memory_space<vmem>>, %arg3: memref<1x128xf32, #tpu.memory_space<vmem>>, %arg4: memref<1x8x128xbf16, #tpu.memory_space<vmem>>) attributes {dimension_semantics = [#tpu.dimension_semantics<parallel>], iteration_bounds = array<i64: 2>, scalar_prefetch = 0 : i64, scratch_operands = 0 : i64, tpu.core_type = #tpu.core_type<tc>, window_params = [{transform_indices = @transform_0, window_bounds = array<i64: 1, 20, 64>}, {pipeline_mode = #tpu.pipeline_mode<synchronous>, transform_indices = @transform_1, window_bounds = array<i64: 9, 64, 128>}, {pipeline_mode = #tpu.pipeline_mode<synchronous>, transform_indices = @transform_2, window_bounds = array<i64: 1, 128>}, {transform_indices = @transform_3, window_bounds = array<i64: 1, 8, 128>}]} {
    %c0 = arith.constant 0 : index
    %c0_0 = arith.constant 0 : index
    %c0_1 = arith.constant 0 : index
    %0 = vector.load %arg1[%c0, %c0_0, %c0_1] : memref<1x20x64xbf16, #tpu.memory_space<vmem>>, vector<1x8x64xbf16>
    %1 = vector.shape_cast %0 : vector<1x8x64xbf16> to vector<8x64xbf16>
    %c0_2 = arith.constant 0 : index
    %c0_3 = arith.constant 0 : index
    %c0_4 = arith.constant 0 : index
    %2 = vector.load %arg2[%c0_2, %c0_3, %c0_4] : memref<9x64x128xbf16, #tpu.memory_space<vmem>>, vector<1x64x128xbf16>
    %3 = vector.shape_cast %2 : vector<1x64x128xbf16> to vector<64x128xbf16>
    %cst = arith.constant dense<0.000000e+00> : vector<8x128xf32>
    %4 = tpu.matmul %1, %3, %cst {dimension_numbers = #tpu.dot_dimension_numbers<[1], [0], [0], [1], [0, 0, 1, 1], [], []>} : vector<8x64xbf16>, vector<64x128xbf16>, vector<8x128xf32> -> vector<8x128xf32>
    %c0_5 = arith.constant 0 : index
    %c1 = arith.constant 1 : index
    %c0_6 = arith.constant 0 : index
    %5 = vector.load %arg1[%c0_5, %c1, %c0_6] : memref<1x20x64xbf16, #tpu.memory_space<vmem>>, vector<1x8x64xbf16>
    %6 = vector.shape_cast %5 : vector<1x8x64xbf16> to vector<8x64xbf16>
    %c1_7 = arith.constant 1 : index
    %c0_8 = arith.constant 0 : index
    %c0_9 = arith.constant 0 : index
    %7 = vector.load %arg2[%c1_7, %c0_8, %c0_9] : memref<9x64x128xbf16, #tpu.memory_space<vmem>>, vector<1x64x128xbf16>
    %8 = vector.shape_cast %7 : vector<1x64x128xbf16> to vector<64x128xbf16>
    %cst_10 = arith.constant dense<0.000000e+00> : vector<8x128xf32>
    %9 = tpu.matmul %6, %8, %cst_10 {dimension_numbers = #tpu.dot_dimension_numbers<[1], [0], [0], [1], [0, 0, 1, 1], [], []>} : vector<8x64xbf16>, vector<64x128xbf16>, vector<8x128xf32> -> vector<8x128xf32>
    %10 = arith.addf %4, %9 : vector<8x128xf32>
    %c0_11 = arith.constant 0 : index
    %c2 = arith.constant 2 : index
    %c0_12 = arith.constant 0 : index
    %11 = vector.load %arg1[%c0_11, %c2, %c0_12] : memref<1x20x64xbf16, #tpu.memory_space<vmem>>, vector<1x8x64xbf16>
    %12 = vector.shape_cast %11 : vector<1x8x64xbf16> to vector<8x64xbf16>
    %c2_13 = arith.constant 2 : index
    %c0_14 = arith.constant 0 : index
    %c0_15 = arith.constant 0 : index
    %13 = vector.load %arg2[%c2_13, %c0_14, %c0_15] : memref<9x64x128xbf16, #tpu.memory_space<vmem>>, vector<1x64x128xbf16>
    %14 = vector.shape_cast %13 : vector<1x64x128xbf16> to vector<64x128xbf16>
    %cst_16 = arith.constant dense<0.000000e+00> : vector<8x128xf32>
    %15 = tpu.matmul %12, %14, %cst_16 {dimension_numbers = #tpu.dot_dimension_numbers<[1], [0], [0], [1], [0, 0, 1, 1], [], []>} : vector<8x64xbf16>, vector<64x128xbf16>, vector<8x128xf32> -> vector<8x128xf32>
    %16 = arith.addf %10, %15 : vector<8x128xf32>
    %c0_17 = arith.constant 0 : index
    %c4 = arith.constant 4 : index
    %c0_18 = arith.constant 0 : index
    %17 = vector.load %arg1[%c0_17, %c4, %c0_18] : memref<1x20x64xbf16, #tpu.memory_space<vmem>>, vector<1x8x64xbf16>
    %18 = vector.shape_cast %17 : vector<1x8x64xbf16> to vector<8x64xbf16>
    %c3 = arith.constant 3 : index
    %c0_19 = arith.constant 0 : index
    %c0_20 = arith.constant 0 : index
    %19 = vector.load %arg2[%c3, %c0_19, %c0_20] : memref<9x64x128xbf16, #tpu.memory_space<vmem>>, vector<1x64x128xbf16>
    %20 = vector.shape_cast %19 : vector<1x64x128xbf16> to vector<64x128xbf16>
    %cst_21 = arith.constant dense<0.000000e+00> : vector<8x128xf32>
    %21 = tpu.matmul %18, %20, %cst_21 {dimension_numbers = #tpu.dot_dimension_numbers<[1], [0], [0], [1], [0, 0, 1, 1], [], []>} : vector<8x64xbf16>, vector<64x128xbf16>, vector<8x128xf32> -> vector<8x128xf32>
    %22 = arith.addf %16, %21 : vector<8x128xf32>
    %c0_22 = arith.constant 0 : index
    %c5 = arith.constant 5 : index
    %c0_23 = arith.constant 0 : index
    %23 = vector.load %arg1[%c0_22, %c5, %c0_23] : memref<1x20x64xbf16, #tpu.memory_space<vmem>>, vector<1x8x64xbf16>
    %24 = vector.shape_cast %23 : vector<1x8x64xbf16> to vector<8x64xbf16>
    %c4_24 = arith.constant 4 : index
    %c0_25 = arith.constant 0 : index
    %c0_26 = arith.constant 0 : index
    %25 = vector.load %arg2[%c4_24, %c0_25, %c0_26] : memref<9x64x128xbf16, #tpu.memory_space<vmem>>, vector<1x64x128xbf16>
    %26 = vector.shape_cast %25 : vector<1x64x128xbf16> to vector<64x128xbf16>
    %cst_27 = arith.constant dense<0.000000e+00> : vector<8x128xf32>
    %27 = tpu.matmul %24, %26, %cst_27 {dimension_numbers = #tpu.dot_dimension_numbers<[1], [0], [0], [1], [0, 0, 1, 1], [], []>} : vector<8x64xbf16>, vector<64x128xbf16>, vector<8x128xf32> -> vector<8x128xf32>
    %28 = arith.addf %22, %27 : vector<8x128xf32>
    %c0_28 = arith.constant 0 : index
    %c6 = arith.constant 6 : index
    %c0_29 = arith.constant 0 : index
    %29 = vector.load %arg1[%c0_28, %c6, %c0_29] : memref<1x20x64xbf16, #tpu.memory_space<vmem>>, vector<1x8x64xbf16>
    %30 = vector.shape_cast %29 : vector<1x8x64xbf16> to vector<8x64xbf16>
    %c5_30 = arith.constant 5 : index
    %c0_31 = arith.constant 0 : index
    %c0_32 = arith.constant 0 : index
    %31 = vector.load %arg2[%c5_30, %c0_31, %c0_32] : memref<9x64x128xbf16, #tpu.memory_space<vmem>>, vector<1x64x128xbf16>
    %32 = vector.shape_cast %31 : vector<1x64x128xbf16> to vector<64x128xbf16>
    %cst_33 = arith.constant dense<0.000000e+00> : vector<8x128xf32>
    %33 = tpu.matmul %30, %32, %cst_33 {dimension_numbers = #tpu.dot_dimension_numbers<[1], [0], [0], [1], [0, 0, 1, 1], [], []>} : vector<8x64xbf16>, vector<64x128xbf16>, vector<8x128xf32> -> vector<8x128xf32>
    %34 = arith.addf %28, %33 : vector<8x128xf32>
    %c0_34 = arith.constant 0 : index
    %c8 = arith.constant 8 : index
    %c0_35 = arith.constant 0 : index
    %35 = vector.load %arg1[%c0_34, %c8, %c0_35] : memref<1x20x64xbf16, #tpu.memory_space<vmem>>, vector<1x8x64xbf16>
    %36 = vector.shape_cast %35 : vector<1x8x64xbf16> to vector<8x64xbf16>
    %c6_36 = arith.constant 6 : index
    %c0_37 = arith.constant 0 : index
    %c0_38 = arith.constant 0 : index
    %37 = vector.load %arg2[%c6_36, %c0_37, %c0_38] : memref<9x64x128xbf16, #tpu.memory_space<vmem>>, vector<1x64x128xbf16>
    %38 = vector.shape_cast %37 : vector<1x64x128xbf16> to vector<64x128xbf16>
    %cst_39 = arith.constant dense<0.000000e+00> : vector<8x128xf32>
    %39 = tpu.matmul %36, %38, %cst_39 {dimension_numbers = #tpu.dot_dimension_numbers<[1], [0], [0], [1], [0, 0, 1, 1], [], []>} : vector<8x64xbf16>, vector<64x128xbf16>, vector<8x128xf32> -> vector<8x128xf32>
    %40 = arith.addf %34, %39 : vector<8x128xf32>
    %c0_40 = arith.constant 0 : index
    %c9 = arith.constant 9 : index
    %c0_41 = arith.constant 0 : index
    %41 = vector.load %arg1[%c0_40, %c9, %c0_41] : memref<1x20x64xbf16, #tpu.memory_space<vmem>>, vector<1x8x64xbf16>
    %42 = vector.shape_cast %41 : vector<1x8x64xbf16> to vector<8x64xbf16>
    %c7 = arith.constant 7 : index
    %c0_42 = arith.constant 0 : index
    %c0_43 = arith.constant 0 : index
    %43 = vector.load %arg2[%c7, %c0_42, %c0_43] : memref<9x64x128xbf16, #tpu.memory_space<vmem>>, vector<1x64x128xbf16>
    %44 = vector.shape_cast %43 : vector<1x64x128xbf16> to vector<64x128xbf16>
    %cst_44 = arith.constant dense<0.000000e+00> : vector<8x128xf32>
    %45 = tpu.matmul %42, %44, %cst_44 {dimension_numbers = #tpu.dot_dimension_numbers<[1], [0], [0], [1], [0, 0, 1, 1], [], []>} : vector<8x64xbf16>, vector<64x128xbf16>, vector<8x128xf32> -> vector<8x128xf32>
    %46 = arith.addf %40, %45 : vector<8x128xf32>
    %c0_45 = arith.constant 0 : index
    %c10 = arith.constant 10 : index
    %c0_46 = arith.constant 0 : index
    %47 = vector.load %arg1[%c0_45, %c10, %c0_46] : memref<1x20x64xbf16, #tpu.memory_space<vmem>>, vector<1x8x64xbf16>
    %48 = vector.shape_cast %47 : vector<1x8x64xbf16> to vector<8x64xbf16>
    %c8_47 = arith.constant 8 : index
    %c0_48 = arith.constant 0 : index
    %c0_49 = arith.constant 0 : index
    %49 = vector.load %arg2[%c8_47, %c0_48, %c0_49] : memref<9x64x128xbf16, #tpu.memory_space<vmem>>, vector<1x64x128xbf16>
    %50 = vector.shape_cast %49 : vector<1x64x128xbf16> to vector<64x128xbf16>
    %cst_50 = arith.constant dense<0.000000e+00> : vector<8x128xf32>
    %51 = tpu.matmul %48, %50, %cst_50 {dimension_numbers = #tpu.dot_dimension_numbers<[1], [0], [0], [1], [0, 0, 1, 1], [], []>} : vector<8x64xbf16>, vector<64x128xbf16>, vector<8x128xf32> -> vector<8x128xf32>
    %52 = arith.addf %46, %51 : vector<8x128xf32>
    %c0_51 = arith.constant 0 : index
    %c0_52 = arith.constant 0 : index
    %53 = vector.load %arg3[%c0_51, %c0_52] : memref<1x128xf32, #tpu.memory_space<vmem>>, vector<1x128xf32>
    %54 = vector.broadcast %53 : vector<1x128xf32> to vector<8x128xf32>
    %55 = arith.addf %52, %54 : vector<8x128xf32>
    %cst_53 = arith.constant 1.000000e-01 : f32
    %56 = vector.broadcast %cst_53 : f32 to vector<8x128xf32>
    %57 = arith.mulf %56, %55 : vector<8x128xf32>
    %58 = arith.maximumf %55, %57 : vector<8x128xf32>
    %59 = arith.truncf %58 : vector<8x128xf32> to vector<8x128xbf16>
    %c0_54 = arith.constant 0 : index
    %c0_55 = arith.constant 0 : index
    %c0_56 = arith.constant 0 : index
    %60 = vector.load %arg4[%c0_54, %c0_55, %c0_56] : memref<1x8x128xbf16, #tpu.memory_space<vmem>>, vector<1x8x128xbf16>
    %61 = vector.shape_cast %60 : vector<1x8x128xbf16> to vector<8x128xbf16>
    %62 = vector.shape_cast %59 : vector<8x128xbf16> to vector<1x8x128xbf16>
    tpu.vector_store %arg4[%c0_54, %c0_55, %c0_56], %62 {strides = array<i32>} : memref<1x8x128xbf16, #tpu.memory_space<vmem>>, vector<1x8x128xbf16>,
    return
  }
  func.func @transform_0(%arg0: i32) -> (i32, i32, i32) {
    %c0_i32 = arith.constant 0 : i32
    %c0_i32_0 = arith.constant 0 : i32
    %c0_i32_1 = arith.constant 0 : i32
    return %arg0, %c0_i32, %c0_i32_0 : i32, i32, i32
  }
  func.func @transform_1(%arg0: i32) -> (i32, i32, i32) {
    %c0_i32 = arith.constant 0 : i32
    %c0_i32_0 = arith.constant 0 : i32
    %c0_i32_1 = arith.constant 0 : i32
    %c0_i32_2 = arith.constant 0 : i32
    return %c0_i32, %c0_i32_0, %c0_i32_1 : i32, i32, i32
  }
  func.func @transform_2(%arg0: i32) -> (i32, i32) {
    %c0_i32 = arith.constant 0 : i32
    %c0_i32_0 = arith.constant 0 : i32
    %c0_i32_1 = arith.constant 0 : i32
    return %c0_i32, %c0_i32_0 : i32, i32
  }
  func.func @transform_3(%arg0: i32) -> (i32, i32, i32) {
    %c0_i32 = arith.constant 0 : i32
    %c0_i32_0 = arith.constant 0 : i32
    %c0_i32_1 = arith.constant 0 : i32
    return %arg0, %c0_i32, %c0_i32_0 : i32, i32, i32
  }
}

module attributes {stable_mosaic.version = 11 : i64} {
  func.func @_fused_conv3x3_kernel(%arg0: i32, %arg1: memref<1x42x32xbf16, #tpu.memory_space<vmem>>, %arg2: memref<1x42x32xbf16, #tpu.memory_space<vmem>>, %arg3: memref<1x42x2xbf16, #tpu.memory_space<vmem>>, %arg4: memref<9x32x2xbf16, #tpu.memory_space<vmem>>, %arg5: memref<9x32x2xbf16, #tpu.memory_space<vmem>>, %arg6: memref<9x2x2xbf16, #tpu.memory_space<vmem>>, %arg7: memref<1x2xf32, #tpu.memory_space<vmem>>, %arg8: memref<1x24x2xf32, #tpu.memory_space<vmem>>) attributes {dimension_semantics = [#tpu.dimension_semantics<parallel>], iteration_bounds = array<i64: 2>, scalar_prefetch = 0 : i64, scratch_operands = 0 : i64, tpu.core_type = #tpu.core_type<tc>, window_params = [{transform_indices = @transform_0, window_bounds = array<i64: 1, 42, 32>}, {transform_indices = @transform_1, window_bounds = array<i64: 1, 42, 32>}, {transform_indices = @transform_2, window_bounds = array<i64: 1, 42, 2>}, {pipeline_mode = #tpu.pipeline_mode<synchronous>, transform_indices = @transform_3, window_bounds = array<i64: 9, 32, 2>}, {pipeline_mode = #tpu.pipeline_mode<synchronous>, transform_indices = @transform_4, window_bounds = array<i64: 9, 32, 2>}, {pipeline_mode = #tpu.pipeline_mode<synchronous>, transform_indices = @transform_5, window_bounds = array<i64: 9, 2, 2>}, {pipeline_mode = #tpu.pipeline_mode<synchronous>, transform_indices = @transform_6, window_bounds = array<i64: 1, 2>}, {transform_indices = @transform_7, window_bounds = array<i64: 1, 24, 2>}]} {
    %c0 = arith.constant 0 : index
    %c0_0 = arith.constant 0 : index
    %c0_1 = arith.constant 0 : index
    %0 = vector.load %arg1[%c0, %c0_0, %c0_1] : memref<1x42x32xbf16, #tpu.memory_space<vmem>>, vector<1x24x32xbf16>
    %1 = vector.shape_cast %0 : vector<1x24x32xbf16> to vector<24x32xbf16>
    %c0_2 = arith.constant 0 : index
    %c0_3 = arith.constant 0 : index
    %c0_4 = arith.constant 0 : index
    %2 = vector.load %arg4[%c0_2, %c0_3, %c0_4] : memref<9x32x2xbf16, #tpu.memory_space<vmem>>, vector<1x32x2xbf16>
    %3 = vector.shape_cast %2 : vector<1x32x2xbf16> to vector<32x2xbf16>
    %cst = arith.constant dense<0.000000e+00> : vector<24x2xf32>
    %4 = tpu.matmul %1, %3, %cst {dimension_numbers = #tpu.dot_dimension_numbers<[1], [0], [0], [1], [0, 0, 1, 1], [], []>} : vector<24x32xbf16>, vector<32x2xbf16>, vector<24x2xf32> -> vector<24x2xf32>
    %c0_5 = arith.constant 0 : index
    %c1 = arith.constant 1 : index
    %c0_6 = arith.constant 0 : index
    %5 = vector.load %arg1[%c0_5, %c1, %c0_6] : memref<1x42x32xbf16, #tpu.memory_space<vmem>>, vector<1x24x32xbf16>
    %6 = vector.shape_cast %5 : vector<1x24x32xbf16> to vector<24x32xbf16>
    %c1_7 = arith.constant 1 : index
    %c0_8 = arith.constant 0 : index
    %c0_9 = arith.constant 0 : index
    %7 = vector.load %arg4[%c1_7, %c0_8, %c0_9] : memref<9x32x2xbf16, #tpu.memory_space<vmem>>, vector<1x32x2xbf16>
    %8 = vector.shape_cast %7 : vector<1x32x2xbf16> to vector<32x2xbf16>
    %cst_10 = arith.constant dense<0.000000e+00> : vector<24x2xf32>
    %9 = tpu.matmul %6, %8, %cst_10 {dimension_numbers = #tpu.dot_dimension_numbers<[1], [0], [0], [1], [0, 0, 1, 1], [], []>} : vector<24x32xbf16>, vector<32x2xbf16>, vector<24x2xf32> -> vector<24x2xf32>
    %10 = arith.addf %4, %9 : vector<24x2xf32>
    %c0_11 = arith.constant 0 : index
    %c2 = arith.constant 2 : index
    %c0_12 = arith.constant 0 : index
    %11 = vector.load %arg1[%c0_11, %c2, %c0_12] : memref<1x42x32xbf16, #tpu.memory_space<vmem>>, vector<1x24x32xbf16>
    %12 = vector.shape_cast %11 : vector<1x24x32xbf16> to vector<24x32xbf16>
    %c2_13 = arith.constant 2 : index
    %c0_14 = arith.constant 0 : index
    %c0_15 = arith.constant 0 : index
    %13 = vector.load %arg4[%c2_13, %c0_14, %c0_15] : memref<9x32x2xbf16, #tpu.memory_space<vmem>>, vector<1x32x2xbf16>
    %14 = vector.shape_cast %13 : vector<1x32x2xbf16> to vector<32x2xbf16>
    %cst_16 = arith.constant dense<0.000000e+00> : vector<24x2xf32>
    %15 = tpu.matmul %12, %14, %cst_16 {dimension_numbers = #tpu.dot_dimension_numbers<[1], [0], [0], [1], [0, 0, 1, 1], [], []>} : vector<24x32xbf16>, vector<32x2xbf16>, vector<24x2xf32> -> vector<24x2xf32>
    %16 = arith.addf %10, %15 : vector<24x2xf32>
    %c0_17 = arith.constant 0 : index
    %c6 = arith.constant 6 : index
    %c0_18 = arith.constant 0 : index
    %17 = vector.load %arg1[%c0_17, %c6, %c0_18] : memref<1x42x32xbf16, #tpu.memory_space<vmem>>, vector<1x24x32xbf16>
    %18 = vector.shape_cast %17 : vector<1x24x32xbf16> to vector<24x32xbf16>
    %c3 = arith.constant 3 : index
    %c0_19 = arith.constant 0 : index
    %c0_20 = arith.constant 0 : index
    %19 = vector.load %arg4[%c3, %c0_19, %c0_20] : memref<9x32x2xbf16, #tpu.memory_space<vmem>>, vector<1x32x2xbf16>
    %20 = vector.shape_cast %19 : vector<1x32x2xbf16> to vector<32x2xbf16>
    %cst_21 = arith.constant dense<0.000000e+00> : vector<24x2xf32>
    %21 = tpu.matmul %18, %20, %cst_21 {dimension_numbers = #tpu.dot_dimension_numbers<[1], [0], [0], [1], [0, 0, 1, 1], [], []>} : vector<24x32xbf16>, vector<32x2xbf16>, vector<24x2xf32> -> vector<24x2xf32>
    %22 = arith.addf %16, %21 : vector<24x2xf32>
    %c0_22 = arith.constant 0 : index
    %c7 = arith.constant 7 : index
    %c0_23 = arith.constant 0 : index
    %23 = vector.load %arg1[%c0_22, %c7, %c0_23] : memref<1x42x32xbf16, #tpu.memory_space<vmem>>, vector<1x24x32xbf16>
    %24 = vector.shape_cast %23 : vector<1x24x32xbf16> to vector<24x32xbf16>
    %c4 = arith.constant 4 : index
    %c0_24 = arith.constant 0 : index
    %c0_25 = arith.constant 0 : index
    %25 = vector.load %arg4[%c4, %c0_24, %c0_25] : memref<9x32x2xbf16, #tpu.memory_space<vmem>>, vector<1x32x2xbf16>
    %26 = vector.shape_cast %25 : vector<1x32x2xbf16> to vector<32x2xbf16>
    %cst_26 = arith.constant dense<0.000000e+00> : vector<24x2xf32>
    %27 = tpu.matmul %24, %26, %cst_26 {dimension_numbers = #tpu.dot_dimension_numbers<[1], [0], [0], [1], [0, 0, 1, 1], [], []>} : vector<24x32xbf16>, vector<32x2xbf16>, vector<24x2xf32> -> vector<24x2xf32>
    %28 = arith.addf %22, %27 : vector<24x2xf32>
    %c0_27 = arith.constant 0 : index
    %c8 = arith.constant 8 : index
    %c0_28 = arith.constant 0 : index
    %29 = vector.load %arg1[%c0_27, %c8, %c0_28] : memref<1x42x32xbf16, #tpu.memory_space<vmem>>, vector<1x24x32xbf16>
    %30 = vector.shape_cast %29 : vector<1x24x32xbf16> to vector<24x32xbf16>
    %c5 = arith.constant 5 : index
    %c0_29 = arith.constant 0 : index
    %c0_30 = arith.constant 0 : index
    %31 = vector.load %arg4[%c5, %c0_29, %c0_30] : memref<9x32x2xbf16, #tpu.memory_space<vmem>>, vector<1x32x2xbf16>
    %32 = vector.shape_cast %31 : vector<1x32x2xbf16> to vector<32x2xbf16>
    %cst_31 = arith.constant dense<0.000000e+00> : vector<24x2xf32>
    %33 = tpu.matmul %30, %32, %cst_31 {dimension_numbers = #tpu.dot_dimension_numbers<[1], [0], [0], [1], [0, 0, 1, 1], [], []>} : vector<24x32xbf16>, vector<32x2xbf16>, vector<24x2xf32> -> vector<24x2xf32>
    %34 = arith.addf %28, %33 : vector<24x2xf32>
    %c0_32 = arith.constant 0 : index
    %c12 = arith.constant 12 : index
    %c0_33 = arith.constant 0 : index
    %35 = vector.load %arg1[%c0_32, %c12, %c0_33] : memref<1x42x32xbf16, #tpu.memory_space<vmem>>, vector<1x24x32xbf16>
    %36 = vector.shape_cast %35 : vector<1x24x32xbf16> to vector<24x32xbf16>
    %c6_34 = arith.constant 6 : index
    %c0_35 = arith.constant 0 : index
    %c0_36 = arith.constant 0 : index
    %37 = vector.load %arg4[%c6_34, %c0_35, %c0_36] : memref<9x32x2xbf16, #tpu.memory_space<vmem>>, vector<1x32x2xbf16>
    %38 = vector.shape_cast %37 : vector<1x32x2xbf16> to vector<32x2xbf16>
    %cst_37 = arith.constant dense<0.000000e+00> : vector<24x2xf32>
    %39 = tpu.matmul %36, %38, %cst_37 {dimension_numbers = #tpu.dot_dimension_numbers<[1], [0], [0], [1], [0, 0, 1, 1], [], []>} : vector<24x32xbf16>, vector<32x2xbf16>, vector<24x2xf32> -> vector<24x2xf32>
    %40 = arith.addf %34, %39 : vector<24x2xf32>
    %c0_38 = arith.constant 0 : index
    %c13 = arith.constant 13 : index
    %c0_39 = arith.constant 0 : index
    %41 = vector.load %arg1[%c0_38, %c13, %c0_39] : memref<1x42x32xbf16, #tpu.memory_space<vmem>>, vector<1x24x32xbf16>
    %42 = vector.shape_cast %41 : vector<1x24x32xbf16> to vector<24x32xbf16>
    %c7_40 = arith.constant 7 : index
    %c0_41 = arith.constant 0 : index
    %c0_42 = arith.constant 0 : index
    %43 = vector.load %arg4[%c7_40, %c0_41, %c0_42] : memref<9x32x2xbf16, #tpu.memory_space<vmem>>, vector<1x32x2xbf16>
    %44 = vector.shape_cast %43 : vector<1x32x2xbf16> to vector<32x2xbf16>
    %cst_43 = arith.constant dense<0.000000e+00> : vector<24x2xf32>
    %45 = tpu.matmul %42, %44, %cst_43 {dimension_numbers = #tpu.dot_dimension_numbers<[1], [0], [0], [1], [0, 0, 1, 1], [], []>} : vector<24x32xbf16>, vector<32x2xbf16>, vector<24x2xf32> -> vector<24x2xf32>
    %46 = arith.addf %40, %45 : vector<24x2xf32>
    %c0_44 = arith.constant 0 : index
    %c14 = arith.constant 14 : index
    %c0_45 = arith.constant 0 : index
    %47 = vector.load %arg1[%c0_44, %c14, %c0_45] : memref<1x42x32xbf16, #tpu.memory_space<vmem>>, vector<1x24x32xbf16>
    %48 = vector.shape_cast %47 : vector<1x24x32xbf16> to vector<24x32xbf16>
    %c8_46 = arith.constant 8 : index
    %c0_47 = arith.constant 0 : index
    %c0_48 = arith.constant 0 : index
    %49 = vector.load %arg4[%c8_46, %c0_47, %c0_48] : memref<9x32x2xbf16, #tpu.memory_space<vmem>>, vector<1x32x2xbf16>
    %50 = vector.shape_cast %49 : vector<1x32x2xbf16> to vector<32x2xbf16>
    %cst_49 = arith.constant dense<0.000000e+00> : vector<24x2xf32>
    %51 = tpu.matmul %48, %50, %cst_49 {dimension_numbers = #tpu.dot_dimension_numbers<[1], [0], [0], [1], [0, 0, 1, 1], [], []>} : vector<24x32xbf16>, vector<32x2xbf16>, vector<24x2xf32> -> vector<24x2xf32>
    %52 = arith.addf %46, %51 : vector<24x2xf32>
    %c0_50 = arith.constant 0 : index
    %c0_51 = arith.constant 0 : index
    %c0_52 = arith.constant 0 : index
    %53 = vector.load %arg2[%c0_50, %c0_51, %c0_52] : memref<1x42x32xbf16, #tpu.memory_space<vmem>>, vector<1x24x32xbf16>
    %54 = vector.shape_cast %53 : vector<1x24x32xbf16> to vector<24x32xbf16>
    %c0_53 = arith.constant 0 : index
    %c0_54 = arith.constant 0 : index
    %c0_55 = arith.constant 0 : index
    %55 = vector.load %arg5[%c0_53, %c0_54, %c0_55] : memref<9x32x2xbf16, #tpu.memory_space<vmem>>, vector<1x32x2xbf16>
    %56 = vector.shape_cast %55 : vector<1x32x2xbf16> to vector<32x2xbf16>
    %cst_56 = arith.constant dense<0.000000e+00> : vector<24x2xf32>
    %57 = tpu.matmul %54, %56, %cst_56 {dimension_numbers = #tpu.dot_dimension_numbers<[1], [0], [0], [1], [0, 0, 1, 1], [], []>} : vector<24x32xbf16>, vector<32x2xbf16>, vector<24x2xf32> -> vector<24x2xf32>
    %58 = arith.addf %52, %57 : vector<24x2xf32>
    %c0_57 = arith.constant 0 : index
    %c1_58 = arith.constant 1 : index
    %c0_59 = arith.constant 0 : index
    %59 = vector.load %arg2[%c0_57, %c1_58, %c0_59] : memref<1x42x32xbf16, #tpu.memory_space<vmem>>, vector<1x24x32xbf16>
    %60 = vector.shape_cast %59 : vector<1x24x32xbf16> to vector<24x32xbf16>
    %c1_60 = arith.constant 1 : index
    %c0_61 = arith.constant 0 : index
    %c0_62 = arith.constant 0 : index
    %61 = vector.load %arg5[%c1_60, %c0_61, %c0_62] : memref<9x32x2xbf16, #tpu.memory_space<vmem>>, vector<1x32x2xbf16>
    %62 = vector.shape_cast %61 : vector<1x32x2xbf16> to vector<32x2xbf16>
    %cst_63 = arith.constant dense<0.000000e+00> : vector<24x2xf32>
    %63 = tpu.matmul %60, %62, %cst_63 {dimension_numbers = #tpu.dot_dimension_numbers<[1], [0], [0], [1], [0, 0, 1, 1], [], []>} : vector<24x32xbf16>, vector<32x2xbf16>, vector<24x2xf32> -> vector<24x2xf32>
    %64 = arith.addf %58, %63 : vector<24x2xf32>
    %c0_64 = arith.constant 0 : index
    %c2_65 = arith.constant 2 : index
    %c0_66 = arith.constant 0 : index
    %65 = vector.load %arg2[%c0_64, %c2_65, %c0_66] : memref<1x42x32xbf16, #tpu.memory_space<vmem>>, vector<1x24x32xbf16>
    %66 = vector.shape_cast %65 : vector<1x24x32xbf16> to vector<24x32xbf16>
    %c2_67 = arith.constant 2 : index
    %c0_68 = arith.constant 0 : index
    %c0_69 = arith.constant 0 : index
    %67 = vector.load %arg5[%c2_67, %c0_68, %c0_69] : memref<9x32x2xbf16, #tpu.memory_space<vmem>>, vector<1x32x2xbf16>
    %68 = vector.shape_cast %67 : vector<1x32x2xbf16> to vector<32x2xbf16>
    %cst_70 = arith.constant dense<0.000000e+00> : vector<24x2xf32>
    %69 = tpu.matmul %66, %68, %cst_70 {dimension_numbers = #tpu.dot_dimension_numbers<[1], [0], [0], [1], [0, 0, 1, 1], [], []>} : vector<24x32xbf16>, vector<32x2xbf16>, vector<24x2xf32> -> vector<24x2xf32>
    %70 = arith.addf %64, %69 : vector<24x2xf32>
    %c0_71 = arith.constant 0 : index
    %c6_72 = arith.constant 6 : index
    %c0_73 = arith.constant 0 : index
    %71 = vector.load %arg2[%c0_71, %c6_72, %c0_73] : memref<1x42x32xbf16, #tpu.memory_space<vmem>>, vector<1x24x32xbf16>
    %72 = vector.shape_cast %71 : vector<1x24x32xbf16> to vector<24x32xbf16>
    %c3_74 = arith.constant 3 : index
    %c0_75 = arith.constant 0 : index
    %c0_76 = arith.constant 0 : index
    %73 = vector.load %arg5[%c3_74, %c0_75, %c0_76] : memref<9x32x2xbf16, #tpu.memory_space<vmem>>, vector<1x32x2xbf16>
    %74 = vector.shape_cast %73 : vector<1x32x2xbf16> to vector<32x2xbf16>
    %cst_77 = arith.constant dense<0.000000e+00> : vector<24x2xf32>
    %75 = tpu.matmul %72, %74, %cst_77 {dimension_numbers = #tpu.dot_dimension_numbers<[1], [0], [0], [1], [0, 0, 1, 1], [], []>} : vector<24x32xbf16>, vector<32x2xbf16>, vector<24x2xf32> -> vector<24x2xf32>
    %76 = arith.addf %70, %75 : vector<24x2xf32>
    %c0_78 = arith.constant 0 : index
    %c7_79 = arith.constant 7 : index
    %c0_80 = arith.constant 0 : index
    %77 = vector.load %arg2[%c0_78, %c7_79, %c0_80] : memref<1x42x32xbf16, #tpu.memory_space<vmem>>, vector<1x24x32xbf16>
    %78 = vector.shape_cast %77 : vector<1x24x32xbf16> to vector<24x32xbf16>
    %c4_81 = arith.constant 4 : index
    %c0_82 = arith.constant 0 : index
    %c0_83 = arith.constant 0 : index
    %79 = vector.load %arg5[%c4_81, %c0_82, %c0_83] : memref<9x32x2xbf16, #tpu.memory_space<vmem>>, vector<1x32x2xbf16>
    %80 = vector.shape_cast %79 : vector<1x32x2xbf16> to vector<32x2xbf16>
    %cst_84 = arith.constant dense<0.000000e+00> : vector<24x2xf32>
    %81 = tpu.matmul %78, %80, %cst_84 {dimension_numbers = #tpu.dot_dimension_numbers<[1], [0], [0], [1], [0, 0, 1, 1], [], []>} : vector<24x32xbf16>, vector<32x2xbf16>, vector<24x2xf32> -> vector<24x2xf32>
    %82 = arith.addf %76, %81 : vector<24x2xf32>
    %c0_85 = arith.constant 0 : index
    %c8_86 = arith.constant 8 : index
    %c0_87 = arith.constant 0 : index
    %83 = vector.load %arg2[%c0_85, %c8_86, %c0_87] : memref<1x42x32xbf16, #tpu.memory_space<vmem>>, vector<1x24x32xbf16>
    %84 = vector.shape_cast %83 : vector<1x24x32xbf16> to vector<24x32xbf16>
    %c5_88 = arith.constant 5 : index
    %c0_89 = arith.constant 0 : index
    %c0_90 = arith.constant 0 : index
    %85 = vector.load %arg5[%c5_88, %c0_89, %c0_90] : memref<9x32x2xbf16, #tpu.memory_space<vmem>>, vector<1x32x2xbf16>
    %86 = vector.shape_cast %85 : vector<1x32x2xbf16> to vector<32x2xbf16>
    %cst_91 = arith.constant dense<0.000000e+00> : vector<24x2xf32>
    %87 = tpu.matmul %84, %86, %cst_91 {dimension_numbers = #tpu.dot_dimension_numbers<[1], [0], [0], [1], [0, 0, 1, 1], [], []>} : vector<24x32xbf16>, vector<32x2xbf16>, vector<24x2xf32> -> vector<24x2xf32>
    %88 = arith.addf %82, %87 : vector<24x2xf32>
    %c0_92 = arith.constant 0 : index
    %c12_93 = arith.constant 12 : index
    %c0_94 = arith.constant 0 : index
    %89 = vector.load %arg2[%c0_92, %c12_93, %c0_94] : memref<1x42x32xbf16, #tpu.memory_space<vmem>>, vector<1x24x32xbf16>
    %90 = vector.shape_cast %89 : vector<1x24x32xbf16> to vector<24x32xbf16>
    %c6_95 = arith.constant 6 : index
    %c0_96 = arith.constant 0 : index
    %c0_97 = arith.constant 0 : index
    %91 = vector.load %arg5[%c6_95, %c0_96, %c0_97] : memref<9x32x2xbf16, #tpu.memory_space<vmem>>, vector<1x32x2xbf16>
    %92 = vector.shape_cast %91 : vector<1x32x2xbf16> to vector<32x2xbf16>
    %cst_98 = arith.constant dense<0.000000e+00> : vector<24x2xf32>
    %93 = tpu.matmul %90, %92, %cst_98 {dimension_numbers = #tpu.dot_dimension_numbers<[1], [0], [0], [1], [0, 0, 1, 1], [], []>} : vector<24x32xbf16>, vector<32x2xbf16>, vector<24x2xf32> -> vector<24x2xf32>
    %94 = arith.addf %88, %93 : vector<24x2xf32>
    %c0_99 = arith.constant 0 : index
    %c13_100 = arith.constant 13 : index
    %c0_101 = arith.constant 0 : index
    %95 = vector.load %arg2[%c0_99, %c13_100, %c0_101] : memref<1x42x32xbf16, #tpu.memory_space<vmem>>, vector<1x24x32xbf16>
    %96 = vector.shape_cast %95 : vector<1x24x32xbf16> to vector<24x32xbf16>
    %c7_102 = arith.constant 7 : index
    %c0_103 = arith.constant 0 : index
    %c0_104 = arith.constant 0 : index
    %97 = vector.load %arg5[%c7_102, %c0_103, %c0_104] : memref<9x32x2xbf16, #tpu.memory_space<vmem>>, vector<1x32x2xbf16>
    %98 = vector.shape_cast %97 : vector<1x32x2xbf16> to vector<32x2xbf16>
    %cst_105 = arith.constant dense<0.000000e+00> : vector<24x2xf32>
    %99 = tpu.matmul %96, %98, %cst_105 {dimension_numbers = #tpu.dot_dimension_numbers<[1], [0], [0], [1], [0, 0, 1, 1], [], []>} : vector<24x32xbf16>, vector<32x2xbf16>, vector<24x2xf32> -> vector<24x2xf32>
    %100 = arith.addf %94, %99 : vector<24x2xf32>
    %c0_106 = arith.constant 0 : index
    %c14_107 = arith.constant 14 : index
    %c0_108 = arith.constant 0 : index
    %101 = vector.load %arg2[%c0_106, %c14_107, %c0_108] : memref<1x42x32xbf16, #tpu.memory_space<vmem>>, vector<1x24x32xbf16>
    %102 = vector.shape_cast %101 : vector<1x24x32xbf16> to vector<24x32xbf16>
    %c8_109 = arith.constant 8 : index
    %c0_110 = arith.constant 0 : index
    %c0_111 = arith.constant 0 : index
    %103 = vector.load %arg5[%c8_109, %c0_110, %c0_111] : memref<9x32x2xbf16, #tpu.memory_space<vmem>>, vector<1x32x2xbf16>
    %104 = vector.shape_cast %103 : vector<1x32x2xbf16> to vector<32x2xbf16>
    %cst_112 = arith.constant dense<0.000000e+00> : vector<24x2xf32>
    %105 = tpu.matmul %102, %104, %cst_112 {dimension_numbers = #tpu.dot_dimension_numbers<[1], [0], [0], [1], [0, 0, 1, 1], [], []>} : vector<24x32xbf16>, vector<32x2xbf16>, vector<24x2xf32> -> vector<24x2xf32>
    %106 = arith.addf %100, %105 : vector<24x2xf32>
    %c0_113 = arith.constant 0 : index
    %c0_114 = arith.constant 0 : index
    %c0_115 = arith.constant 0 : index
    %107 = vector.load %arg3[%c0_113, %c0_114, %c0_115] : memref<1x42x2xbf16, #tpu.memory_space<vmem>>, vector<1x24x2xbf16>
    %108 = vector.shape_cast %107 : vector<1x24x2xbf16> to vector<24x2xbf16>
    %c0_116 = arith.constant 0 : index
    %c0_117 = arith.constant 0 : index
    %c0_118 = arith.constant 0 : index
    %109 = vector.load %arg6[%c0_116, %c0_117, %c0_118] : memref<9x2x2xbf16, #tpu.memory_space<vmem>>, vector<1x2x2xbf16>
    %110 = vector.shape_cast %109 : vector<1x2x2xbf16> to vector<2x2xbf16>
    %cst_119 = arith.constant dense<0.000000e+00> : vector<24x2xf32>
    %111 = tpu.matmul %108, %110, %cst_119 {dimension_numbers = #tpu.dot_dimension_numbers<[1], [0], [0], [1], [0, 0, 1, 1], [], []>} : vector<24x2xbf16>, vector<2x2xbf16>, vector<24x2xf32> -> vector<24x2xf32>
    %112 = arith.addf %106, %111 : vector<24x2xf32>
    %c0_120 = arith.constant 0 : index
    %c1_121 = arith.constant 1 : index
    %c0_122 = arith.constant 0 : index
    %113 = vector.load %arg3[%c0_120, %c1_121, %c0_122] : memref<1x42x2xbf16, #tpu.memory_space<vmem>>, vector<1x24x2xbf16>
    %114 = vector.shape_cast %113 : vector<1x24x2xbf16> to vector<24x2xbf16>
    %c1_123 = arith.constant 1 : index
    %c0_124 = arith.constant 0 : index
    %c0_125 = arith.constant 0 : index
    %115 = vector.load %arg6[%c1_123, %c0_124, %c0_125] : memref<9x2x2xbf16, #tpu.memory_space<vmem>>, vector<1x2x2xbf16>
    %116 = vector.shape_cast %115 : vector<1x2x2xbf16> to vector<2x2xbf16>
    %cst_126 = arith.constant dense<0.000000e+00> : vector<24x2xf32>
    %117 = tpu.matmul %114, %116, %cst_126 {dimension_numbers = #tpu.dot_dimension_numbers<[1], [0], [0], [1], [0, 0, 1, 1], [], []>} : vector<24x2xbf16>, vector<2x2xbf16>, vector<24x2xf32> -> vector<24x2xf32>
    %118 = arith.addf %112, %117 : vector<24x2xf32>
    %c0_127 = arith.constant 0 : index
    %c2_128 = arith.constant 2 : index
    %c0_129 = arith.constant 0 : index
    %119 = vector.load %arg3[%c0_127, %c2_128, %c0_129] : memref<1x42x2xbf16, #tpu.memory_space<vmem>>, vector<1x24x2xbf16>
    %120 = vector.shape_cast %119 : vector<1x24x2xbf16> to vector<24x2xbf16>
    %c2_130 = arith.constant 2 : index
    %c0_131 = arith.constant 0 : index
    %c0_132 = arith.constant 0 : index
    %121 = vector.load %arg6[%c2_130, %c0_131, %c0_132] : memref<9x2x2xbf16, #tpu.memory_space<vmem>>, vector<1x2x2xbf16>
    %122 = vector.shape_cast %121 : vector<1x2x2xbf16> to vector<2x2xbf16>
    %cst_133 = arith.constant dense<0.000000e+00> : vector<24x2xf32>
    %123 = tpu.matmul %120, %122, %cst_133 {dimension_numbers = #tpu.dot_dimension_numbers<[1], [0], [0], [1], [0, 0, 1, 1], [], []>} : vector<24x2xbf16>, vector<2x2xbf16>, vector<24x2xf32> -> vector<24x2xf32>
    %124 = arith.addf %118, %123 : vector<24x2xf32>
    %c0_134 = arith.constant 0 : index
    %c6_135 = arith.constant 6 : index
    %c0_136 = arith.constant 0 : index
    %125 = vector.load %arg3[%c0_134, %c6_135, %c0_136] : memref<1x42x2xbf16, #tpu.memory_space<vmem>>, vector<1x24x2xbf16>
    %126 = vector.shape_cast %125 : vector<1x24x2xbf16> to vector<24x2xbf16>
    %c3_137 = arith.constant 3 : index
    %c0_138 = arith.constant 0 : index
    %c0_139 = arith.constant 0 : index
    %127 = vector.load %arg6[%c3_137, %c0_138, %c0_139] : memref<9x2x2xbf16, #tpu.memory_space<vmem>>, vector<1x2x2xbf16>
    %128 = vector.shape_cast %127 : vector<1x2x2xbf16> to vector<2x2xbf16>
    %cst_140 = arith.constant dense<0.000000e+00> : vector<24x2xf32>
    %129 = tpu.matmul %126, %128, %cst_140 {dimension_numbers = #tpu.dot_dimension_numbers<[1], [0], [0], [1], [0, 0, 1, 1], [], []>} : vector<24x2xbf16>, vector<2x2xbf16>, vector<24x2xf32> -> vector<24x2xf32>
    %130 = arith.addf %124, %129 : vector<24x2xf32>
    %c0_141 = arith.constant 0 : index
    %c7_142 = arith.constant 7 : index
    %c0_143 = arith.constant 0 : index
    %131 = vector.load %arg3[%c0_141, %c7_142, %c0_143] : memref<1x42x2xbf16, #tpu.memory_space<vmem>>, vector<1x24x2xbf16>
    %132 = vector.shape_cast %131 : vector<1x24x2xbf16> to vector<24x2xbf16>
    %c4_144 = arith.constant 4 : index
    %c0_145 = arith.constant 0 : index
    %c0_146 = arith.constant 0 : index
    %133 = vector.load %arg6[%c4_144, %c0_145, %c0_146] : memref<9x2x2xbf16, #tpu.memory_space<vmem>>, vector<1x2x2xbf16>
    %134 = vector.shape_cast %133 : vector<1x2x2xbf16> to vector<2x2xbf16>
    %cst_147 = arith.constant dense<0.000000e+00> : vector<24x2xf32>
    %135 = tpu.matmul %132, %134, %cst_147 {dimension_numbers = #tpu.dot_dimension_numbers<[1], [0], [0], [1], [0, 0, 1, 1], [], []>} : vector<24x2xbf16>, vector<2x2xbf16>, vector<24x2xf32> -> vector<24x2xf32>
    %136 = arith.addf %130, %135 : vector<24x2xf32>
    %c0_148 = arith.constant 0 : index
    %c8_149 = arith.constant 8 : index
    %c0_150 = arith.constant 0 : index
    %137 = vector.load %arg3[%c0_148, %c8_149, %c0_150] : memref<1x42x2xbf16, #tpu.memory_space<vmem>>, vector<1x24x2xbf16>
    %138 = vector.shape_cast %137 : vector<1x24x2xbf16> to vector<24x2xbf16>
    %c5_151 = arith.constant 5 : index
    %c0_152 = arith.constant 0 : index
    %c0_153 = arith.constant 0 : index
    %139 = vector.load %arg6[%c5_151, %c0_152, %c0_153] : memref<9x2x2xbf16, #tpu.memory_space<vmem>>, vector<1x2x2xbf16>
    %140 = vector.shape_cast %139 : vector<1x2x2xbf16> to vector<2x2xbf16>
    %cst_154 = arith.constant dense<0.000000e+00> : vector<24x2xf32>
    %141 = tpu.matmul %138, %140, %cst_154 {dimension_numbers = #tpu.dot_dimension_numbers<[1], [0], [0], [1], [0, 0, 1, 1], [], []>} : vector<24x2xbf16>, vector<2x2xbf16>, vector<24x2xf32> -> vector<24x2xf32>
    %142 = arith.addf %136, %141 : vector<24x2xf32>
    %c0_155 = arith.constant 0 : index
    %c12_156 = arith.constant 12 : index
    %c0_157 = arith.constant 0 : index
    %143 = vector.load %arg3[%c0_155, %c12_156, %c0_157] : memref<1x42x2xbf16, #tpu.memory_space<vmem>>, vector<1x24x2xbf16>
    %144 = vector.shape_cast %143 : vector<1x24x2xbf16> to vector<24x2xbf16>
    %c6_158 = arith.constant 6 : index
    %c0_159 = arith.constant 0 : index
    %c0_160 = arith.constant 0 : index
    %145 = vector.load %arg6[%c6_158, %c0_159, %c0_160] : memref<9x2x2xbf16, #tpu.memory_space<vmem>>, vector<1x2x2xbf16>
    %146 = vector.shape_cast %145 : vector<1x2x2xbf16> to vector<2x2xbf16>
    %cst_161 = arith.constant dense<0.000000e+00> : vector<24x2xf32>
    %147 = tpu.matmul %144, %146, %cst_161 {dimension_numbers = #tpu.dot_dimension_numbers<[1], [0], [0], [1], [0, 0, 1, 1], [], []>} : vector<24x2xbf16>, vector<2x2xbf16>, vector<24x2xf32> -> vector<24x2xf32>
    %148 = arith.addf %142, %147 : vector<24x2xf32>
    %c0_162 = arith.constant 0 : index
    %c13_163 = arith.constant 13 : index
    %c0_164 = arith.constant 0 : index
    %149 = vector.load %arg3[%c0_162, %c13_163, %c0_164] : memref<1x42x2xbf16, #tpu.memory_space<vmem>>, vector<1x24x2xbf16>
    %150 = vector.shape_cast %149 : vector<1x24x2xbf16> to vector<24x2xbf16>
    %c7_165 = arith.constant 7 : index
    %c0_166 = arith.constant 0 : index
    %c0_167 = arith.constant 0 : index
    %151 = vector.load %arg6[%c7_165, %c0_166, %c0_167] : memref<9x2x2xbf16, #tpu.memory_space<vmem>>, vector<1x2x2xbf16>
    %152 = vector.shape_cast %151 : vector<1x2x2xbf16> to vector<2x2xbf16>
    %cst_168 = arith.constant dense<0.000000e+00> : vector<24x2xf32>
    %153 = tpu.matmul %150, %152, %cst_168 {dimension_numbers = #tpu.dot_dimension_numbers<[1], [0], [0], [1], [0, 0, 1, 1], [], []>} : vector<24x2xbf16>, vector<2x2xbf16>, vector<24x2xf32> -> vector<24x2xf32>
    %154 = arith.addf %148, %153 : vector<24x2xf32>
    %c0_169 = arith.constant 0 : index
    %c14_170 = arith.constant 14 : index
    %c0_171 = arith.constant 0 : index
    %155 = vector.load %arg3[%c0_169, %c14_170, %c0_171] : memref<1x42x2xbf16, #tpu.memory_space<vmem>>, vector<1x24x2xbf16>
    %156 = vector.shape_cast %155 : vector<1x24x2xbf16> to vector<24x2xbf16>
    %c8_172 = arith.constant 8 : index
    %c0_173 = arith.constant 0 : index
    %c0_174 = arith.constant 0 : index
    %157 = vector.load %arg6[%c8_172, %c0_173, %c0_174] : memref<9x2x2xbf16, #tpu.memory_space<vmem>>, vector<1x2x2xbf16>
    %158 = vector.shape_cast %157 : vector<1x2x2xbf16> to vector<2x2xbf16>
    %cst_175 = arith.constant dense<0.000000e+00> : vector<24x2xf32>
    %159 = tpu.matmul %156, %158, %cst_175 {dimension_numbers = #tpu.dot_dimension_numbers<[1], [0], [0], [1], [0, 0, 1, 1], [], []>} : vector<24x2xbf16>, vector<2x2xbf16>, vector<24x2xf32> -> vector<24x2xf32>
    %160 = arith.addf %154, %159 : vector<24x2xf32>
    %c0_176 = arith.constant 0 : index
    %c0_177 = arith.constant 0 : index
    %161 = vector.load %arg7[%c0_176, %c0_177] : memref<1x2xf32, #tpu.memory_space<vmem>>, vector<1x2xf32>
    %162 = vector.broadcast %161 : vector<1x2xf32> to vector<24x2xf32>
    %163 = arith.addf %160, %162 : vector<24x2xf32>
    %c0_178 = arith.constant 0 : index
    %c0_179 = arith.constant 0 : index
    %c0_180 = arith.constant 0 : index
    %164 = vector.load %arg8[%c0_178, %c0_179, %c0_180] : memref<1x24x2xf32, #tpu.memory_space<vmem>>, vector<1x24x2xf32>
    %165 = vector.shape_cast %164 : vector<1x24x2xf32> to vector<24x2xf32>
    %166 = vector.shape_cast %163 : vector<24x2xf32> to vector<1x24x2xf32>
    tpu.vector_store %arg8[%c0_178, %c0_179, %c0_180], %166 {strides = array<i32>} : memref<1x24x2xf32, #tpu.memory_space<vmem>>, vector<1x24x2xf32>,
    return
  }
  func.func @transform_0(%arg0: i32) -> (i32, i32, i32) {
    %c0_i32 = arith.constant 0 : i32
    %c0_i32_0 = arith.constant 0 : i32
    %c0_i32_1 = arith.constant 0 : i32
    return %arg0, %c0_i32, %c0_i32_0 : i32, i32, i32
  }
  func.func @transform_1(%arg0: i32) -> (i32, i32, i32) {
    %c0_i32 = arith.constant 0 : i32
    %c0_i32_0 = arith.constant 0 : i32
    %c0_i32_1 = arith.constant 0 : i32
    return %arg0, %c0_i32, %c0_i32_0 : i32, i32, i32
  }
  func.func @transform_2(%arg0: i32) -> (i32, i32, i32) {
    %c0_i32 = arith.constant 0 : i32
    %c0_i32_0 = arith.constant 0 : i32
    %c0_i32_1 = arith.constant 0 : i32
    return %arg0, %c0_i32, %c0_i32_0 : i32, i32, i32
  }
  func.func @transform_3(%arg0: i32) -> (i32, i32, i32) {
    %c0_i32 = arith.constant 0 : i32
    %c0_i32_0 = arith.constant 0 : i32
    %c0_i32_1 = arith.constant 0 : i32
    %c0_i32_2 = arith.constant 0 : i32
    return %c0_i32, %c0_i32_0, %c0_i32_1 : i32, i32, i32
  }
  func.func @transform_4(%arg0: i32) -> (i32, i32, i32) {
    %c0_i32 = arith.constant 0 : i32
    %c0_i32_0 = arith.constant 0 : i32
    %c0_i32_1 = arith.constant 0 : i32
    %c0_i32_2 = arith.constant 0 : i32
    return %c0_i32, %c0_i32_0, %c0_i32_1 : i32, i32, i32
  }
  func.func @transform_5(%arg0: i32) -> (i32, i32, i32) {
    %c0_i32 = arith.constant 0 : i32
    %c0_i32_0 = arith.constant 0 : i32
    %c0_i32_1 = arith.constant 0 : i32
    %c0_i32_2 = arith.constant 0 : i32
    return %c0_i32, %c0_i32_0, %c0_i32_1 : i32, i32, i32
  }
  func.func @transform_6(%arg0: i32) -> (i32, i32) {
    %c0_i32 = arith.constant 0 : i32
    %c0_i32_0 = arith.constant 0 : i32
    %c0_i32_1 = arith.constant 0 : i32
    return %c0_i32, %c0_i32_0 : i32, i32
  }
  func.func @transform_7(%arg0: i32) -> (i32, i32, i32) {
    %c0_i32 = arith.constant 0 : i32
    %c0_i32_0 = arith.constant 0 : i32
    %c0_i32_1 = arith.constant 0 : i32
    return %arg0, %c0_i32, %c0_i32_0 : i32, i32, i32
  }
}

module attributes {stable_mosaic.version = 11 : i64} {
  func.func @_fused_conv3x3_kernel(%arg0: i32, %arg1: memref<1x42x2xbf16, #tpu.memory_space<vmem>>, %arg2: memref<9x2x8xbf16, #tpu.memory_space<vmem>>, %arg3: memref<1x8xf32, #tpu.memory_space<vmem>>, %arg4: memref<1x24x8xbf16, #tpu.memory_space<vmem>>) attributes {dimension_semantics = [#tpu.dimension_semantics<parallel>], iteration_bounds = array<i64: 2>, scalar_prefetch = 0 : i64, scratch_operands = 0 : i64, tpu.core_type = #tpu.core_type<tc>, window_params = [{transform_indices = @transform_0, window_bounds = array<i64: 1, 42, 2>}, {pipeline_mode = #tpu.pipeline_mode<synchronous>, transform_indices = @transform_1, window_bounds = array<i64: 9, 2, 8>}, {pipeline_mode = #tpu.pipeline_mode<synchronous>, transform_indices = @transform_2, window_bounds = array<i64: 1, 8>}, {transform_indices = @transform_3, window_bounds = array<i64: 1, 24, 8>}]} {
    %c0 = arith.constant 0 : index
    %c0_0 = arith.constant 0 : index
    %c0_1 = arith.constant 0 : index
    %0 = vector.load %arg1[%c0, %c0_0, %c0_1] : memref<1x42x2xbf16, #tpu.memory_space<vmem>>, vector<1x24x2xbf16>
    %1 = vector.shape_cast %0 : vector<1x24x2xbf16> to vector<24x2xbf16>
    %c0_2 = arith.constant 0 : index
    %c0_3 = arith.constant 0 : index
    %c0_4 = arith.constant 0 : index
    %2 = vector.load %arg2[%c0_2, %c0_3, %c0_4] : memref<9x2x8xbf16, #tpu.memory_space<vmem>>, vector<1x2x8xbf16>
    %3 = vector.shape_cast %2 : vector<1x2x8xbf16> to vector<2x8xbf16>
    %cst = arith.constant dense<0.000000e+00> : vector<24x8xf32>
    %4 = tpu.matmul %1, %3, %cst {dimension_numbers = #tpu.dot_dimension_numbers<[1], [0], [0], [1], [0, 0, 1, 1], [], []>} : vector<24x2xbf16>, vector<2x8xbf16>, vector<24x8xf32> -> vector<24x8xf32>
    %c0_5 = arith.constant 0 : index
    %c1 = arith.constant 1 : index
    %c0_6 = arith.constant 0 : index
    %5 = vector.load %arg1[%c0_5, %c1, %c0_6] : memref<1x42x2xbf16, #tpu.memory_space<vmem>>, vector<1x24x2xbf16>
    %6 = vector.shape_cast %5 : vector<1x24x2xbf16> to vector<24x2xbf16>
    %c1_7 = arith.constant 1 : index
    %c0_8 = arith.constant 0 : index
    %c0_9 = arith.constant 0 : index
    %7 = vector.load %arg2[%c1_7, %c0_8, %c0_9] : memref<9x2x8xbf16, #tpu.memory_space<vmem>>, vector<1x2x8xbf16>
    %8 = vector.shape_cast %7 : vector<1x2x8xbf16> to vector<2x8xbf16>
    %cst_10 = arith.constant dense<0.000000e+00> : vector<24x8xf32>
    %9 = tpu.matmul %6, %8, %cst_10 {dimension_numbers = #tpu.dot_dimension_numbers<[1], [0], [0], [1], [0, 0, 1, 1], [], []>} : vector<24x2xbf16>, vector<2x8xbf16>, vector<24x8xf32> -> vector<24x8xf32>
    %10 = arith.addf %4, %9 : vector<24x8xf32>
    %c0_11 = arith.constant 0 : index
    %c2 = arith.constant 2 : index
    %c0_12 = arith.constant 0 : index
    %11 = vector.load %arg1[%c0_11, %c2, %c0_12] : memref<1x42x2xbf16, #tpu.memory_space<vmem>>, vector<1x24x2xbf16>
    %12 = vector.shape_cast %11 : vector<1x24x2xbf16> to vector<24x2xbf16>
    %c2_13 = arith.constant 2 : index
    %c0_14 = arith.constant 0 : index
    %c0_15 = arith.constant 0 : index
    %13 = vector.load %arg2[%c2_13, %c0_14, %c0_15] : memref<9x2x8xbf16, #tpu.memory_space<vmem>>, vector<1x2x8xbf16>
    %14 = vector.shape_cast %13 : vector<1x2x8xbf16> to vector<2x8xbf16>
    %cst_16 = arith.constant dense<0.000000e+00> : vector<24x8xf32>
    %15 = tpu.matmul %12, %14, %cst_16 {dimension_numbers = #tpu.dot_dimension_numbers<[1], [0], [0], [1], [0, 0, 1, 1], [], []>} : vector<24x2xbf16>, vector<2x8xbf16>, vector<24x8xf32> -> vector<24x8xf32>
    %16 = arith.addf %10, %15 : vector<24x8xf32>
    %c0_17 = arith.constant 0 : index
    %c6 = arith.constant 6 : index
    %c0_18 = arith.constant 0 : index
    %17 = vector.load %arg1[%c0_17, %c6, %c0_18] : memref<1x42x2xbf16, #tpu.memory_space<vmem>>, vector<1x24x2xbf16>
    %18 = vector.shape_cast %17 : vector<1x24x2xbf16> to vector<24x2xbf16>
    %c3 = arith.constant 3 : index
    %c0_19 = arith.constant 0 : index
    %c0_20 = arith.constant 0 : index
    %19 = vector.load %arg2[%c3, %c0_19, %c0_20] : memref<9x2x8xbf16, #tpu.memory_space<vmem>>, vector<1x2x8xbf16>
    %20 = vector.shape_cast %19 : vector<1x2x8xbf16> to vector<2x8xbf16>
    %cst_21 = arith.constant dense<0.000000e+00> : vector<24x8xf32>
    %21 = tpu.matmul %18, %20, %cst_21 {dimension_numbers = #tpu.dot_dimension_numbers<[1], [0], [0], [1], [0, 0, 1, 1], [], []>} : vector<24x2xbf16>, vector<2x8xbf16>, vector<24x8xf32> -> vector<24x8xf32>
    %22 = arith.addf %16, %21 : vector<24x8xf32>
    %c0_22 = arith.constant 0 : index
    %c7 = arith.constant 7 : index
    %c0_23 = arith.constant 0 : index
    %23 = vector.load %arg1[%c0_22, %c7, %c0_23] : memref<1x42x2xbf16, #tpu.memory_space<vmem>>, vector<1x24x2xbf16>
    %24 = vector.shape_cast %23 : vector<1x24x2xbf16> to vector<24x2xbf16>
    %c4 = arith.constant 4 : index
    %c0_24 = arith.constant 0 : index
    %c0_25 = arith.constant 0 : index
    %25 = vector.load %arg2[%c4, %c0_24, %c0_25] : memref<9x2x8xbf16, #tpu.memory_space<vmem>>, vector<1x2x8xbf16>
    %26 = vector.shape_cast %25 : vector<1x2x8xbf16> to vector<2x8xbf16>
    %cst_26 = arith.constant dense<0.000000e+00> : vector<24x8xf32>
    %27 = tpu.matmul %24, %26, %cst_26 {dimension_numbers = #tpu.dot_dimension_numbers<[1], [0], [0], [1], [0, 0, 1, 1], [], []>} : vector<24x2xbf16>, vector<2x8xbf16>, vector<24x8xf32> -> vector<24x8xf32>
    %28 = arith.addf %22, %27 : vector<24x8xf32>
    %c0_27 = arith.constant 0 : index
    %c8 = arith.constant 8 : index
    %c0_28 = arith.constant 0 : index
    %29 = vector.load %arg1[%c0_27, %c8, %c0_28] : memref<1x42x2xbf16, #tpu.memory_space<vmem>>, vector<1x24x2xbf16>
    %30 = vector.shape_cast %29 : vector<1x24x2xbf16> to vector<24x2xbf16>
    %c5 = arith.constant 5 : index
    %c0_29 = arith.constant 0 : index
    %c0_30 = arith.constant 0 : index
    %31 = vector.load %arg2[%c5, %c0_29, %c0_30] : memref<9x2x8xbf16, #tpu.memory_space<vmem>>, vector<1x2x8xbf16>
    %32 = vector.shape_cast %31 : vector<1x2x8xbf16> to vector<2x8xbf16>
    %cst_31 = arith.constant dense<0.000000e+00> : vector<24x8xf32>
    %33 = tpu.matmul %30, %32, %cst_31 {dimension_numbers = #tpu.dot_dimension_numbers<[1], [0], [0], [1], [0, 0, 1, 1], [], []>} : vector<24x2xbf16>, vector<2x8xbf16>, vector<24x8xf32> -> vector<24x8xf32>
    %34 = arith.addf %28, %33 : vector<24x8xf32>
    %c0_32 = arith.constant 0 : index
    %c12 = arith.constant 12 : index
    %c0_33 = arith.constant 0 : index
    %35 = vector.load %arg1[%c0_32, %c12, %c0_33] : memref<1x42x2xbf16, #tpu.memory_space<vmem>>, vector<1x24x2xbf16>
    %36 = vector.shape_cast %35 : vector<1x24x2xbf16> to vector<24x2xbf16>
    %c6_34 = arith.constant 6 : index
    %c0_35 = arith.constant 0 : index
    %c0_36 = arith.constant 0 : index
    %37 = vector.load %arg2[%c6_34, %c0_35, %c0_36] : memref<9x2x8xbf16, #tpu.memory_space<vmem>>, vector<1x2x8xbf16>
    %38 = vector.shape_cast %37 : vector<1x2x8xbf16> to vector<2x8xbf16>
    %cst_37 = arith.constant dense<0.000000e+00> : vector<24x8xf32>
    %39 = tpu.matmul %36, %38, %cst_37 {dimension_numbers = #tpu.dot_dimension_numbers<[1], [0], [0], [1], [0, 0, 1, 1], [], []>} : vector<24x2xbf16>, vector<2x8xbf16>, vector<24x8xf32> -> vector<24x8xf32>
    %40 = arith.addf %34, %39 : vector<24x8xf32>
    %c0_38 = arith.constant 0 : index
    %c13 = arith.constant 13 : index
    %c0_39 = arith.constant 0 : index
    %41 = vector.load %arg1[%c0_38, %c13, %c0_39] : memref<1x42x2xbf16, #tpu.memory_space<vmem>>, vector<1x24x2xbf16>
    %42 = vector.shape_cast %41 : vector<1x24x2xbf16> to vector<24x2xbf16>
    %c7_40 = arith.constant 7 : index
    %c0_41 = arith.constant 0 : index
    %c0_42 = arith.constant 0 : index
    %43 = vector.load %arg2[%c7_40, %c0_41, %c0_42] : memref<9x2x8xbf16, #tpu.memory_space<vmem>>, vector<1x2x8xbf16>
    %44 = vector.shape_cast %43 : vector<1x2x8xbf16> to vector<2x8xbf16>
    %cst_43 = arith.constant dense<0.000000e+00> : vector<24x8xf32>
    %45 = tpu.matmul %42, %44, %cst_43 {dimension_numbers = #tpu.dot_dimension_numbers<[1], [0], [0], [1], [0, 0, 1, 1], [], []>} : vector<24x2xbf16>, vector<2x8xbf16>, vector<24x8xf32> -> vector<24x8xf32>
    %46 = arith.addf %40, %45 : vector<24x8xf32>
    %c0_44 = arith.constant 0 : index
    %c14 = arith.constant 14 : index
    %c0_45 = arith.constant 0 : index
    %47 = vector.load %arg1[%c0_44, %c14, %c0_45] : memref<1x42x2xbf16, #tpu.memory_space<vmem>>, vector<1x24x2xbf16>
    %48 = vector.shape_cast %47 : vector<1x24x2xbf16> to vector<24x2xbf16>
    %c8_46 = arith.constant 8 : index
    %c0_47 = arith.constant 0 : index
    %c0_48 = arith.constant 0 : index
    %49 = vector.load %arg2[%c8_46, %c0_47, %c0_48] : memref<9x2x8xbf16, #tpu.memory_space<vmem>>, vector<1x2x8xbf16>
    %50 = vector.shape_cast %49 : vector<1x2x8xbf16> to vector<2x8xbf16>
    %cst_49 = arith.constant dense<0.000000e+00> : vector<24x8xf32>
    %51 = tpu.matmul %48, %50, %cst_49 {dimension_numbers = #tpu.dot_dimension_numbers<[1], [0], [0], [1], [0, 0, 1, 1], [], []>} : vector<24x2xbf16>, vector<2x8xbf16>, vector<24x8xf32> -> vector<24x8xf32>
    %52 = arith.addf %46, %51 : vector<24x8xf32>
    %c0_50 = arith.constant 0 : index
    %c0_51 = arith.constant 0 : index
    %53 = vector.load %arg3[%c0_50, %c0_51] : memref<1x8xf32, #tpu.memory_space<vmem>>, vector<1x8xf32>
    %54 = vector.broadcast %53 : vector<1x8xf32> to vector<24x8xf32>
    %55 = arith.addf %52, %54 : vector<24x8xf32>
    %56 = arith.truncf %55 : vector<24x8xf32> to vector<24x8xbf16>
    %c0_52 = arith.constant 0 : index
    %c0_53 = arith.constant 0 : index
    %c0_54 = arith.constant 0 : index
    %57 = vector.load %arg4[%c0_52, %c0_53, %c0_54] : memref<1x24x8xbf16, #tpu.memory_space<vmem>>, vector<1x24x8xbf16>
    %58 = vector.shape_cast %57 : vector<1x24x8xbf16> to vector<24x8xbf16>
    %59 = vector.shape_cast %56 : vector<24x8xbf16> to vector<1x24x8xbf16>
    tpu.vector_store %arg4[%c0_52, %c0_53, %c0_54], %59 {strides = array<i32>} : memref<1x24x8xbf16, #tpu.memory_space<vmem>>, vector<1x24x8xbf16>,
    return
  }
  func.func @transform_0(%arg0: i32) -> (i32, i32, i32) {
    %c0_i32 = arith.constant 0 : i32
    %c0_i32_0 = arith.constant 0 : i32
    %c0_i32_1 = arith.constant 0 : i32
    return %arg0, %c0_i32, %c0_i32_0 : i32, i32, i32
  }
  func.func @transform_1(%arg0: i32) -> (i32, i32, i32) {
    %c0_i32 = arith.constant 0 : i32
    %c0_i32_0 = arith.constant 0 : i32
    %c0_i32_1 = arith.constant 0 : i32
    %c0_i32_2 = arith.constant 0 : i32
    return %c0_i32, %c0_i32_0, %c0_i32_1 : i32, i32, i32
  }
  func.func @transform_2(%arg0: i32) -> (i32, i32) {
    %c0_i32 = arith.constant 0 : i32
    %c0_i32_0 = arith.constant 0 : i32
    %c0_i32_1 = arith.constant 0 : i32
    return %c0_i32, %c0_i32_0 : i32, i32
  }
  func.func @transform_3(%arg0: i32) -> (i32, i32, i32) {
    %c0_i32 = arith.constant 0 : i32
    %c0_i32_0 = arith.constant 0 : i32
    %c0_i32_1 = arith.constant 0 : i32
    return %arg0, %c0_i32, %c0_i32_0 : i32, i32, i32
  }
}

module attributes {stable_mosaic.version = 11 : i64} {
  func.func @_fused_conv3x3_kernel(%arg0: i32, %arg1: memref<1x42x32xbf16, #tpu.memory_space<vmem>>, %arg2: memref<9x32x64xbf16, #tpu.memory_space<vmem>>, %arg3: memref<1x64xf32, #tpu.memory_space<vmem>>, %arg4: memref<1x24x64xbf16, #tpu.memory_space<vmem>>) attributes {dimension_semantics = [#tpu.dimension_semantics<parallel>], iteration_bounds = array<i64: 2>, scalar_prefetch = 0 : i64, scratch_operands = 0 : i64, tpu.core_type = #tpu.core_type<tc>, window_params = [{transform_indices = @transform_0, window_bounds = array<i64: 1, 42, 32>}, {pipeline_mode = #tpu.pipeline_mode<synchronous>, transform_indices = @transform_1, window_bounds = array<i64: 9, 32, 64>}, {pipeline_mode = #tpu.pipeline_mode<synchronous>, transform_indices = @transform_2, window_bounds = array<i64: 1, 64>}, {transform_indices = @transform_3, window_bounds = array<i64: 1, 24, 64>}]} {
    %c0 = arith.constant 0 : index
    %c0_0 = arith.constant 0 : index
    %c0_1 = arith.constant 0 : index
    %0 = vector.load %arg1[%c0, %c0_0, %c0_1] : memref<1x42x32xbf16, #tpu.memory_space<vmem>>, vector<1x24x32xbf16>
    %1 = vector.shape_cast %0 : vector<1x24x32xbf16> to vector<24x32xbf16>
    %c0_2 = arith.constant 0 : index
    %c0_3 = arith.constant 0 : index
    %c0_4 = arith.constant 0 : index
    %2 = vector.load %arg2[%c0_2, %c0_3, %c0_4] : memref<9x32x64xbf16, #tpu.memory_space<vmem>>, vector<1x32x64xbf16>
    %3 = vector.shape_cast %2 : vector<1x32x64xbf16> to vector<32x64xbf16>
    %cst = arith.constant dense<0.000000e+00> : vector<24x64xf32>
    %4 = tpu.matmul %1, %3, %cst {dimension_numbers = #tpu.dot_dimension_numbers<[1], [0], [0], [1], [0, 0, 1, 1], [], []>} : vector<24x32xbf16>, vector<32x64xbf16>, vector<24x64xf32> -> vector<24x64xf32>
    %c0_5 = arith.constant 0 : index
    %c1 = arith.constant 1 : index
    %c0_6 = arith.constant 0 : index
    %5 = vector.load %arg1[%c0_5, %c1, %c0_6] : memref<1x42x32xbf16, #tpu.memory_space<vmem>>, vector<1x24x32xbf16>
    %6 = vector.shape_cast %5 : vector<1x24x32xbf16> to vector<24x32xbf16>
    %c1_7 = arith.constant 1 : index
    %c0_8 = arith.constant 0 : index
    %c0_9 = arith.constant 0 : index
    %7 = vector.load %arg2[%c1_7, %c0_8, %c0_9] : memref<9x32x64xbf16, #tpu.memory_space<vmem>>, vector<1x32x64xbf16>
    %8 = vector.shape_cast %7 : vector<1x32x64xbf16> to vector<32x64xbf16>
    %cst_10 = arith.constant dense<0.000000e+00> : vector<24x64xf32>
    %9 = tpu.matmul %6, %8, %cst_10 {dimension_numbers = #tpu.dot_dimension_numbers<[1], [0], [0], [1], [0, 0, 1, 1], [], []>} : vector<24x32xbf16>, vector<32x64xbf16>, vector<24x64xf32> -> vector<24x64xf32>
    %10 = arith.addf %4, %9 : vector<24x64xf32>
    %c0_11 = arith.constant 0 : index
    %c2 = arith.constant 2 : index
    %c0_12 = arith.constant 0 : index
    %11 = vector.load %arg1[%c0_11, %c2, %c0_12] : memref<1x42x32xbf16, #tpu.memory_space<vmem>>, vector<1x24x32xbf16>
    %12 = vector.shape_cast %11 : vector<1x24x32xbf16> to vector<24x32xbf16>
    %c2_13 = arith.constant 2 : index
    %c0_14 = arith.constant 0 : index
    %c0_15 = arith.constant 0 : index
    %13 = vector.load %arg2[%c2_13, %c0_14, %c0_15] : memref<9x32x64xbf16, #tpu.memory_space<vmem>>, vector<1x32x64xbf16>
    %14 = vector.shape_cast %13 : vector<1x32x64xbf16> to vector<32x64xbf16>
    %cst_16 = arith.constant dense<0.000000e+00> : vector<24x64xf32>
    %15 = tpu.matmul %12, %14, %cst_16 {dimension_numbers = #tpu.dot_dimension_numbers<[1], [0], [0], [1], [0, 0, 1, 1], [], []>} : vector<24x32xbf16>, vector<32x64xbf16>, vector<24x64xf32> -> vector<24x64xf32>
    %16 = arith.addf %10, %15 : vector<24x64xf32>
    %c0_17 = arith.constant 0 : index
    %c6 = arith.constant 6 : index
    %c0_18 = arith.constant 0 : index
    %17 = vector.load %arg1[%c0_17, %c6, %c0_18] : memref<1x42x32xbf16, #tpu.memory_space<vmem>>, vector<1x24x32xbf16>
    %18 = vector.shape_cast %17 : vector<1x24x32xbf16> to vector<24x32xbf16>
    %c3 = arith.constant 3 : index
    %c0_19 = arith.constant 0 : index
    %c0_20 = arith.constant 0 : index
    %19 = vector.load %arg2[%c3, %c0_19, %c0_20] : memref<9x32x64xbf16, #tpu.memory_space<vmem>>, vector<1x32x64xbf16>
    %20 = vector.shape_cast %19 : vector<1x32x64xbf16> to vector<32x64xbf16>
    %cst_21 = arith.constant dense<0.000000e+00> : vector<24x64xf32>
    %21 = tpu.matmul %18, %20, %cst_21 {dimension_numbers = #tpu.dot_dimension_numbers<[1], [0], [0], [1], [0, 0, 1, 1], [], []>} : vector<24x32xbf16>, vector<32x64xbf16>, vector<24x64xf32> -> vector<24x64xf32>
    %22 = arith.addf %16, %21 : vector<24x64xf32>
    %c0_22 = arith.constant 0 : index
    %c7 = arith.constant 7 : index
    %c0_23 = arith.constant 0 : index
    %23 = vector.load %arg1[%c0_22, %c7, %c0_23] : memref<1x42x32xbf16, #tpu.memory_space<vmem>>, vector<1x24x32xbf16>
    %24 = vector.shape_cast %23 : vector<1x24x32xbf16> to vector<24x32xbf16>
    %c4 = arith.constant 4 : index
    %c0_24 = arith.constant 0 : index
    %c0_25 = arith.constant 0 : index
    %25 = vector.load %arg2[%c4, %c0_24, %c0_25] : memref<9x32x64xbf16, #tpu.memory_space<vmem>>, vector<1x32x64xbf16>
    %26 = vector.shape_cast %25 : vector<1x32x64xbf16> to vector<32x64xbf16>
    %cst_26 = arith.constant dense<0.000000e+00> : vector<24x64xf32>
    %27 = tpu.matmul %24, %26, %cst_26 {dimension_numbers = #tpu.dot_dimension_numbers<[1], [0], [0], [1], [0, 0, 1, 1], [], []>} : vector<24x32xbf16>, vector<32x64xbf16>, vector<24x64xf32> -> vector<24x64xf32>
    %28 = arith.addf %22, %27 : vector<24x64xf32>
    %c0_27 = arith.constant 0 : index
    %c8 = arith.constant 8 : index
    %c0_28 = arith.constant 0 : index
    %29 = vector.load %arg1[%c0_27, %c8, %c0_28] : memref<1x42x32xbf16, #tpu.memory_space<vmem>>, vector<1x24x32xbf16>
    %30 = vector.shape_cast %29 : vector<1x24x32xbf16> to vector<24x32xbf16>
    %c5 = arith.constant 5 : index
    %c0_29 = arith.constant 0 : index
    %c0_30 = arith.constant 0 : index
    %31 = vector.load %arg2[%c5, %c0_29, %c0_30] : memref<9x32x64xbf16, #tpu.memory_space<vmem>>, vector<1x32x64xbf16>
    %32 = vector.shape_cast %31 : vector<1x32x64xbf16> to vector<32x64xbf16>
    %cst_31 = arith.constant dense<0.000000e+00> : vector<24x64xf32>
    %33 = tpu.matmul %30, %32, %cst_31 {dimension_numbers = #tpu.dot_dimension_numbers<[1], [0], [0], [1], [0, 0, 1, 1], [], []>} : vector<24x32xbf16>, vector<32x64xbf16>, vector<24x64xf32> -> vector<24x64xf32>
    %34 = arith.addf %28, %33 : vector<24x64xf32>
    %c0_32 = arith.constant 0 : index
    %c12 = arith.constant 12 : index
    %c0_33 = arith.constant 0 : index
    %35 = vector.load %arg1[%c0_32, %c12, %c0_33] : memref<1x42x32xbf16, #tpu.memory_space<vmem>>, vector<1x24x32xbf16>
    %36 = vector.shape_cast %35 : vector<1x24x32xbf16> to vector<24x32xbf16>
    %c6_34 = arith.constant 6 : index
    %c0_35 = arith.constant 0 : index
    %c0_36 = arith.constant 0 : index
    %37 = vector.load %arg2[%c6_34, %c0_35, %c0_36] : memref<9x32x64xbf16, #tpu.memory_space<vmem>>, vector<1x32x64xbf16>
    %38 = vector.shape_cast %37 : vector<1x32x64xbf16> to vector<32x64xbf16>
    %cst_37 = arith.constant dense<0.000000e+00> : vector<24x64xf32>
    %39 = tpu.matmul %36, %38, %cst_37 {dimension_numbers = #tpu.dot_dimension_numbers<[1], [0], [0], [1], [0, 0, 1, 1], [], []>} : vector<24x32xbf16>, vector<32x64xbf16>, vector<24x64xf32> -> vector<24x64xf32>
    %40 = arith.addf %34, %39 : vector<24x64xf32>
    %c0_38 = arith.constant 0 : index
    %c13 = arith.constant 13 : index
    %c0_39 = arith.constant 0 : index
    %41 = vector.load %arg1[%c0_38, %c13, %c0_39] : memref<1x42x32xbf16, #tpu.memory_space<vmem>>, vector<1x24x32xbf16>
    %42 = vector.shape_cast %41 : vector<1x24x32xbf16> to vector<24x32xbf16>
    %c7_40 = arith.constant 7 : index
    %c0_41 = arith.constant 0 : index
    %c0_42 = arith.constant 0 : index
    %43 = vector.load %arg2[%c7_40, %c0_41, %c0_42] : memref<9x32x64xbf16, #tpu.memory_space<vmem>>, vector<1x32x64xbf16>
    %44 = vector.shape_cast %43 : vector<1x32x64xbf16> to vector<32x64xbf16>
    %cst_43 = arith.constant dense<0.000000e+00> : vector<24x64xf32>
    %45 = tpu.matmul %42, %44, %cst_43 {dimension_numbers = #tpu.dot_dimension_numbers<[1], [0], [0], [1], [0, 0, 1, 1], [], []>} : vector<24x32xbf16>, vector<32x64xbf16>, vector<24x64xf32> -> vector<24x64xf32>
    %46 = arith.addf %40, %45 : vector<24x64xf32>
    %c0_44 = arith.constant 0 : index
    %c14 = arith.constant 14 : index
    %c0_45 = arith.constant 0 : index
    %47 = vector.load %arg1[%c0_44, %c14, %c0_45] : memref<1x42x32xbf16, #tpu.memory_space<vmem>>, vector<1x24x32xbf16>
    %48 = vector.shape_cast %47 : vector<1x24x32xbf16> to vector<24x32xbf16>
    %c8_46 = arith.constant 8 : index
    %c0_47 = arith.constant 0 : index
    %c0_48 = arith.constant 0 : index
    %49 = vector.load %arg2[%c8_46, %c0_47, %c0_48] : memref<9x32x64xbf16, #tpu.memory_space<vmem>>, vector<1x32x64xbf16>
    %50 = vector.shape_cast %49 : vector<1x32x64xbf16> to vector<32x64xbf16>
    %cst_49 = arith.constant dense<0.000000e+00> : vector<24x64xf32>
    %51 = tpu.matmul %48, %50, %cst_49 {dimension_numbers = #tpu.dot_dimension_numbers<[1], [0], [0], [1], [0, 0, 1, 1], [], []>} : vector<24x32xbf16>, vector<32x64xbf16>, vector<24x64xf32> -> vector<24x64xf32>
    %52 = arith.addf %46, %51 : vector<24x64xf32>
    %c0_50 = arith.constant 0 : index
    %c0_51 = arith.constant 0 : index
    %53 = vector.load %arg3[%c0_50, %c0_51] : memref<1x64xf32, #tpu.memory_space<vmem>>, vector<1x64xf32>
    %54 = vector.broadcast %53 : vector<1x64xf32> to vector<24x64xf32>
    %55 = arith.addf %52, %54 : vector<24x64xf32>
    %cst_52 = arith.constant 1.000000e-01 : f32
    %56 = vector.broadcast %cst_52 : f32 to vector<24x64xf32>
    %57 = arith.mulf %56, %55 : vector<24x64xf32>
    %58 = arith.maximumf %55, %57 : vector<24x64xf32>
    %59 = arith.truncf %58 : vector<24x64xf32> to vector<24x64xbf16>
    %c0_53 = arith.constant 0 : index
    %c0_54 = arith.constant 0 : index
    %c0_55 = arith.constant 0 : index
    %60 = vector.load %arg4[%c0_53, %c0_54, %c0_55] : memref<1x24x64xbf16, #tpu.memory_space<vmem>>, vector<1x24x64xbf16>
    %61 = vector.shape_cast %60 : vector<1x24x64xbf16> to vector<24x64xbf16>
    %62 = vector.shape_cast %59 : vector<24x64xbf16> to vector<1x24x64xbf16>
    tpu.vector_store %arg4[%c0_53, %c0_54, %c0_55], %62 {strides = array<i32>} : memref<1x24x64xbf16, #tpu.memory_space<vmem>>, vector<1x24x64xbf16>,
    return
  }
  func.func @transform_0(%arg0: i32) -> (i32, i32, i32) {
    %c0_i32 = arith.constant 0 : i32
    %c0_i32_0 = arith.constant 0 : i32
    %c0_i32_1 = arith.constant 0 : i32
    return %arg0, %c0_i32, %c0_i32_0 : i32, i32, i32
  }
  func.func @transform_1(%arg0: i32) -> (i32, i32, i32) {
    %c0_i32 = arith.constant 0 : i32
    %c0_i32_0 = arith.constant 0 : i32
    %c0_i32_1 = arith.constant 0 : i32
    %c0_i32_2 = arith.constant 0 : i32
    return %c0_i32, %c0_i32_0, %c0_i32_1 : i32, i32, i32
  }
  func.func @transform_2(%arg0: i32) -> (i32, i32) {
    %c0_i32 = arith.constant 0 : i32
    %c0_i32_0 = arith.constant 0 : i32
    %c0_i32_1 = arith.constant 0 : i32
    return %c0_i32, %c0_i32_0 : i32, i32
  }
  func.func @transform_3(%arg0: i32) -> (i32, i32, i32) {
    %c0_i32 = arith.constant 0 : i32
    %c0_i32_0 = arith.constant 0 : i32
    %c0_i32_1 = arith.constant 0 : i32
    return %arg0, %c0_i32, %c0_i32_0 : i32, i32, i32
  }
}

module attributes {stable_mosaic.version = 11 : i64} {
  func.func @_fused_conv3x3_kernel(%arg0: i32, %arg1: memref<1x110x16xbf16, #tpu.memory_space<vmem>>, %arg2: memref<1x110x16xbf16, #tpu.memory_space<vmem>>, %arg3: memref<1x110x2xbf16, #tpu.memory_space<vmem>>, %arg4: memref<9x16x2xbf16, #tpu.memory_space<vmem>>, %arg5: memref<9x16x2xbf16, #tpu.memory_space<vmem>>, %arg6: memref<9x2x2xbf16, #tpu.memory_space<vmem>>, %arg7: memref<1x2xf32, #tpu.memory_space<vmem>>, %arg8: memref<1x80x2xf32, #tpu.memory_space<vmem>>) attributes {dimension_semantics = [#tpu.dimension_semantics<parallel>], iteration_bounds = array<i64: 2>, scalar_prefetch = 0 : i64, scratch_operands = 0 : i64, tpu.core_type = #tpu.core_type<tc>, window_params = [{transform_indices = @transform_0, window_bounds = array<i64: 1, 110, 16>}, {transform_indices = @transform_1, window_bounds = array<i64: 1, 110, 16>}, {transform_indices = @transform_2, window_bounds = array<i64: 1, 110, 2>}, {pipeline_mode = #tpu.pipeline_mode<synchronous>, transform_indices = @transform_3, window_bounds = array<i64: 9, 16, 2>}, {pipeline_mode = #tpu.pipeline_mode<synchronous>, transform_indices = @transform_4, window_bounds = array<i64: 9, 16, 2>}, {pipeline_mode = #tpu.pipeline_mode<synchronous>, transform_indices = @transform_5, window_bounds = array<i64: 9, 2, 2>}, {pipeline_mode = #tpu.pipeline_mode<synchronous>, transform_indices = @transform_6, window_bounds = array<i64: 1, 2>}, {transform_indices = @transform_7, window_bounds = array<i64: 1, 80, 2>}]} {
    %c0 = arith.constant 0 : index
    %c0_0 = arith.constant 0 : index
    %c0_1 = arith.constant 0 : index
    %0 = vector.load %arg1[%c0, %c0_0, %c0_1] : memref<1x110x16xbf16, #tpu.memory_space<vmem>>, vector<1x80x16xbf16>
    %1 = vector.shape_cast %0 : vector<1x80x16xbf16> to vector<80x16xbf16>
    %c0_2 = arith.constant 0 : index
    %c0_3 = arith.constant 0 : index
    %c0_4 = arith.constant 0 : index
    %2 = vector.load %arg4[%c0_2, %c0_3, %c0_4] : memref<9x16x2xbf16, #tpu.memory_space<vmem>>, vector<1x16x2xbf16>
    %3 = vector.shape_cast %2 : vector<1x16x2xbf16> to vector<16x2xbf16>
    %cst = arith.constant dense<0.000000e+00> : vector<80x2xf32>
    %4 = tpu.matmul %1, %3, %cst {dimension_numbers = #tpu.dot_dimension_numbers<[1], [0], [0], [1], [0, 0, 1, 1], [], []>} : vector<80x16xbf16>, vector<16x2xbf16>, vector<80x2xf32> -> vector<80x2xf32>
    %c0_5 = arith.constant 0 : index
    %c1 = arith.constant 1 : index
    %c0_6 = arith.constant 0 : index
    %5 = vector.load %arg1[%c0_5, %c1, %c0_6] : memref<1x110x16xbf16, #tpu.memory_space<vmem>>, vector<1x80x16xbf16>
    %6 = vector.shape_cast %5 : vector<1x80x16xbf16> to vector<80x16xbf16>
    %c1_7 = arith.constant 1 : index
    %c0_8 = arith.constant 0 : index
    %c0_9 = arith.constant 0 : index
    %7 = vector.load %arg4[%c1_7, %c0_8, %c0_9] : memref<9x16x2xbf16, #tpu.memory_space<vmem>>, vector<1x16x2xbf16>
    %8 = vector.shape_cast %7 : vector<1x16x2xbf16> to vector<16x2xbf16>
    %cst_10 = arith.constant dense<0.000000e+00> : vector<80x2xf32>
    %9 = tpu.matmul %6, %8, %cst_10 {dimension_numbers = #tpu.dot_dimension_numbers<[1], [0], [0], [1], [0, 0, 1, 1], [], []>} : vector<80x16xbf16>, vector<16x2xbf16>, vector<80x2xf32> -> vector<80x2xf32>
    %10 = arith.addf %4, %9 : vector<80x2xf32>
    %c0_11 = arith.constant 0 : index
    %c2 = arith.constant 2 : index
    %c0_12 = arith.constant 0 : index
    %11 = vector.load %arg1[%c0_11, %c2, %c0_12] : memref<1x110x16xbf16, #tpu.memory_space<vmem>>, vector<1x80x16xbf16>
    %12 = vector.shape_cast %11 : vector<1x80x16xbf16> to vector<80x16xbf16>
    %c2_13 = arith.constant 2 : index
    %c0_14 = arith.constant 0 : index
    %c0_15 = arith.constant 0 : index
    %13 = vector.load %arg4[%c2_13, %c0_14, %c0_15] : memref<9x16x2xbf16, #tpu.memory_space<vmem>>, vector<1x16x2xbf16>
    %14 = vector.shape_cast %13 : vector<1x16x2xbf16> to vector<16x2xbf16>
    %cst_16 = arith.constant dense<0.000000e+00> : vector<80x2xf32>
    %15 = tpu.matmul %12, %14, %cst_16 {dimension_numbers = #tpu.dot_dimension_numbers<[1], [0], [0], [1], [0, 0, 1, 1], [], []>} : vector<80x16xbf16>, vector<16x2xbf16>, vector<80x2xf32> -> vector<80x2xf32>
    %16 = arith.addf %10, %15 : vector<80x2xf32>
    %c0_17 = arith.constant 0 : index
    %c10 = arith.constant 10 : index
    %c0_18 = arith.constant 0 : index
    %17 = vector.load %arg1[%c0_17, %c10, %c0_18] : memref<1x110x16xbf16, #tpu.memory_space<vmem>>, vector<1x80x16xbf16>
    %18 = vector.shape_cast %17 : vector<1x80x16xbf16> to vector<80x16xbf16>
    %c3 = arith.constant 3 : index
    %c0_19 = arith.constant 0 : index
    %c0_20 = arith.constant 0 : index
    %19 = vector.load %arg4[%c3, %c0_19, %c0_20] : memref<9x16x2xbf16, #tpu.memory_space<vmem>>, vector<1x16x2xbf16>
    %20 = vector.shape_cast %19 : vector<1x16x2xbf16> to vector<16x2xbf16>
    %cst_21 = arith.constant dense<0.000000e+00> : vector<80x2xf32>
    %21 = tpu.matmul %18, %20, %cst_21 {dimension_numbers = #tpu.dot_dimension_numbers<[1], [0], [0], [1], [0, 0, 1, 1], [], []>} : vector<80x16xbf16>, vector<16x2xbf16>, vector<80x2xf32> -> vector<80x2xf32>
    %22 = arith.addf %16, %21 : vector<80x2xf32>
    %c0_22 = arith.constant 0 : index
    %c11 = arith.constant 11 : index
    %c0_23 = arith.constant 0 : index
    %23 = vector.load %arg1[%c0_22, %c11, %c0_23] : memref<1x110x16xbf16, #tpu.memory_space<vmem>>, vector<1x80x16xbf16>
    %24 = vector.shape_cast %23 : vector<1x80x16xbf16> to vector<80x16xbf16>
    %c4 = arith.constant 4 : index
    %c0_24 = arith.constant 0 : index
    %c0_25 = arith.constant 0 : index
    %25 = vector.load %arg4[%c4, %c0_24, %c0_25] : memref<9x16x2xbf16, #tpu.memory_space<vmem>>, vector<1x16x2xbf16>
    %26 = vector.shape_cast %25 : vector<1x16x2xbf16> to vector<16x2xbf16>
    %cst_26 = arith.constant dense<0.000000e+00> : vector<80x2xf32>
    %27 = tpu.matmul %24, %26, %cst_26 {dimension_numbers = #tpu.dot_dimension_numbers<[1], [0], [0], [1], [0, 0, 1, 1], [], []>} : vector<80x16xbf16>, vector<16x2xbf16>, vector<80x2xf32> -> vector<80x2xf32>
    %28 = arith.addf %22, %27 : vector<80x2xf32>
    %c0_27 = arith.constant 0 : index
    %c12 = arith.constant 12 : index
    %c0_28 = arith.constant 0 : index
    %29 = vector.load %arg1[%c0_27, %c12, %c0_28] : memref<1x110x16xbf16, #tpu.memory_space<vmem>>, vector<1x80x16xbf16>
    %30 = vector.shape_cast %29 : vector<1x80x16xbf16> to vector<80x16xbf16>
    %c5 = arith.constant 5 : index
    %c0_29 = arith.constant 0 : index
    %c0_30 = arith.constant 0 : index
    %31 = vector.load %arg4[%c5, %c0_29, %c0_30] : memref<9x16x2xbf16, #tpu.memory_space<vmem>>, vector<1x16x2xbf16>
    %32 = vector.shape_cast %31 : vector<1x16x2xbf16> to vector<16x2xbf16>
    %cst_31 = arith.constant dense<0.000000e+00> : vector<80x2xf32>
    %33 = tpu.matmul %30, %32, %cst_31 {dimension_numbers = #tpu.dot_dimension_numbers<[1], [0], [0], [1], [0, 0, 1, 1], [], []>} : vector<80x16xbf16>, vector<16x2xbf16>, vector<80x2xf32> -> vector<80x2xf32>
    %34 = arith.addf %28, %33 : vector<80x2xf32>
    %c0_32 = arith.constant 0 : index
    %c20 = arith.constant 20 : index
    %c0_33 = arith.constant 0 : index
    %35 = vector.load %arg1[%c0_32, %c20, %c0_33] : memref<1x110x16xbf16, #tpu.memory_space<vmem>>, vector<1x80x16xbf16>
    %36 = vector.shape_cast %35 : vector<1x80x16xbf16> to vector<80x16xbf16>
    %c6 = arith.constant 6 : index
    %c0_34 = arith.constant 0 : index
    %c0_35 = arith.constant 0 : index
    %37 = vector.load %arg4[%c6, %c0_34, %c0_35] : memref<9x16x2xbf16, #tpu.memory_space<vmem>>, vector<1x16x2xbf16>
    %38 = vector.shape_cast %37 : vector<1x16x2xbf16> to vector<16x2xbf16>
    %cst_36 = arith.constant dense<0.000000e+00> : vector<80x2xf32>
    %39 = tpu.matmul %36, %38, %cst_36 {dimension_numbers = #tpu.dot_dimension_numbers<[1], [0], [0], [1], [0, 0, 1, 1], [], []>} : vector<80x16xbf16>, vector<16x2xbf16>, vector<80x2xf32> -> vector<80x2xf32>
    %40 = arith.addf %34, %39 : vector<80x2xf32>
    %c0_37 = arith.constant 0 : index
    %c21 = arith.constant 21 : index
    %c0_38 = arith.constant 0 : index
    %41 = vector.load %arg1[%c0_37, %c21, %c0_38] : memref<1x110x16xbf16, #tpu.memory_space<vmem>>, vector<1x80x16xbf16>
    %42 = vector.shape_cast %41 : vector<1x80x16xbf16> to vector<80x16xbf16>
    %c7 = arith.constant 7 : index
    %c0_39 = arith.constant 0 : index
    %c0_40 = arith.constant 0 : index
    %43 = vector.load %arg4[%c7, %c0_39, %c0_40] : memref<9x16x2xbf16, #tpu.memory_space<vmem>>, vector<1x16x2xbf16>
    %44 = vector.shape_cast %43 : vector<1x16x2xbf16> to vector<16x2xbf16>
    %cst_41 = arith.constant dense<0.000000e+00> : vector<80x2xf32>
    %45 = tpu.matmul %42, %44, %cst_41 {dimension_numbers = #tpu.dot_dimension_numbers<[1], [0], [0], [1], [0, 0, 1, 1], [], []>} : vector<80x16xbf16>, vector<16x2xbf16>, vector<80x2xf32> -> vector<80x2xf32>
    %46 = arith.addf %40, %45 : vector<80x2xf32>
    %c0_42 = arith.constant 0 : index
    %c22 = arith.constant 22 : index
    %c0_43 = arith.constant 0 : index
    %47 = vector.load %arg1[%c0_42, %c22, %c0_43] : memref<1x110x16xbf16, #tpu.memory_space<vmem>>, vector<1x80x16xbf16>
    %48 = vector.shape_cast %47 : vector<1x80x16xbf16> to vector<80x16xbf16>
    %c8 = arith.constant 8 : index
    %c0_44 = arith.constant 0 : index
    %c0_45 = arith.constant 0 : index
    %49 = vector.load %arg4[%c8, %c0_44, %c0_45] : memref<9x16x2xbf16, #tpu.memory_space<vmem>>, vector<1x16x2xbf16>
    %50 = vector.shape_cast %49 : vector<1x16x2xbf16> to vector<16x2xbf16>
    %cst_46 = arith.constant dense<0.000000e+00> : vector<80x2xf32>
    %51 = tpu.matmul %48, %50, %cst_46 {dimension_numbers = #tpu.dot_dimension_numbers<[1], [0], [0], [1], [0, 0, 1, 1], [], []>} : vector<80x16xbf16>, vector<16x2xbf16>, vector<80x2xf32> -> vector<80x2xf32>
    %52 = arith.addf %46, %51 : vector<80x2xf32>
    %c0_47 = arith.constant 0 : index
    %c0_48 = arith.constant 0 : index
    %c0_49 = arith.constant 0 : index
    %53 = vector.load %arg2[%c0_47, %c0_48, %c0_49] : memref<1x110x16xbf16, #tpu.memory_space<vmem>>, vector<1x80x16xbf16>
    %54 = vector.shape_cast %53 : vector<1x80x16xbf16> to vector<80x16xbf16>
    %c0_50 = arith.constant 0 : index
    %c0_51 = arith.constant 0 : index
    %c0_52 = arith.constant 0 : index
    %55 = vector.load %arg5[%c0_50, %c0_51, %c0_52] : memref<9x16x2xbf16, #tpu.memory_space<vmem>>, vector<1x16x2xbf16>
    %56 = vector.shape_cast %55 : vector<1x16x2xbf16> to vector<16x2xbf16>
    %cst_53 = arith.constant dense<0.000000e+00> : vector<80x2xf32>
    %57 = tpu.matmul %54, %56, %cst_53 {dimension_numbers = #tpu.dot_dimension_numbers<[1], [0], [0], [1], [0, 0, 1, 1], [], []>} : vector<80x16xbf16>, vector<16x2xbf16>, vector<80x2xf32> -> vector<80x2xf32>
    %58 = arith.addf %52, %57 : vector<80x2xf32>
    %c0_54 = arith.constant 0 : index
    %c1_55 = arith.constant 1 : index
    %c0_56 = arith.constant 0 : index
    %59 = vector.load %arg2[%c0_54, %c1_55, %c0_56] : memref<1x110x16xbf16, #tpu.memory_space<vmem>>, vector<1x80x16xbf16>
    %60 = vector.shape_cast %59 : vector<1x80x16xbf16> to vector<80x16xbf16>
    %c1_57 = arith.constant 1 : index
    %c0_58 = arith.constant 0 : index
    %c0_59 = arith.constant 0 : index
    %61 = vector.load %arg5[%c1_57, %c0_58, %c0_59] : memref<9x16x2xbf16, #tpu.memory_space<vmem>>, vector<1x16x2xbf16>
    %62 = vector.shape_cast %61 : vector<1x16x2xbf16> to vector<16x2xbf16>
    %cst_60 = arith.constant dense<0.000000e+00> : vector<80x2xf32>
    %63 = tpu.matmul %60, %62, %cst_60 {dimension_numbers = #tpu.dot_dimension_numbers<[1], [0], [0], [1], [0, 0, 1, 1], [], []>} : vector<80x16xbf16>, vector<16x2xbf16>, vector<80x2xf32> -> vector<80x2xf32>
    %64 = arith.addf %58, %63 : vector<80x2xf32>
    %c0_61 = arith.constant 0 : index
    %c2_62 = arith.constant 2 : index
    %c0_63 = arith.constant 0 : index
    %65 = vector.load %arg2[%c0_61, %c2_62, %c0_63] : memref<1x110x16xbf16, #tpu.memory_space<vmem>>, vector<1x80x16xbf16>
    %66 = vector.shape_cast %65 : vector<1x80x16xbf16> to vector<80x16xbf16>
    %c2_64 = arith.constant 2 : index
    %c0_65 = arith.constant 0 : index
    %c0_66 = arith.constant 0 : index
    %67 = vector.load %arg5[%c2_64, %c0_65, %c0_66] : memref<9x16x2xbf16, #tpu.memory_space<vmem>>, vector<1x16x2xbf16>
    %68 = vector.shape_cast %67 : vector<1x16x2xbf16> to vector<16x2xbf16>
    %cst_67 = arith.constant dense<0.000000e+00> : vector<80x2xf32>
    %69 = tpu.matmul %66, %68, %cst_67 {dimension_numbers = #tpu.dot_dimension_numbers<[1], [0], [0], [1], [0, 0, 1, 1], [], []>} : vector<80x16xbf16>, vector<16x2xbf16>, vector<80x2xf32> -> vector<80x2xf32>
    %70 = arith.addf %64, %69 : vector<80x2xf32>
    %c0_68 = arith.constant 0 : index
    %c10_69 = arith.constant 10 : index
    %c0_70 = arith.constant 0 : index
    %71 = vector.load %arg2[%c0_68, %c10_69, %c0_70] : memref<1x110x16xbf16, #tpu.memory_space<vmem>>, vector<1x80x16xbf16>
    %72 = vector.shape_cast %71 : vector<1x80x16xbf16> to vector<80x16xbf16>
    %c3_71 = arith.constant 3 : index
    %c0_72 = arith.constant 0 : index
    %c0_73 = arith.constant 0 : index
    %73 = vector.load %arg5[%c3_71, %c0_72, %c0_73] : memref<9x16x2xbf16, #tpu.memory_space<vmem>>, vector<1x16x2xbf16>
    %74 = vector.shape_cast %73 : vector<1x16x2xbf16> to vector<16x2xbf16>
    %cst_74 = arith.constant dense<0.000000e+00> : vector<80x2xf32>
    %75 = tpu.matmul %72, %74, %cst_74 {dimension_numbers = #tpu.dot_dimension_numbers<[1], [0], [0], [1], [0, 0, 1, 1], [], []>} : vector<80x16xbf16>, vector<16x2xbf16>, vector<80x2xf32> -> vector<80x2xf32>
    %76 = arith.addf %70, %75 : vector<80x2xf32>
    %c0_75 = arith.constant 0 : index
    %c11_76 = arith.constant 11 : index
    %c0_77 = arith.constant 0 : index
    %77 = vector.load %arg2[%c0_75, %c11_76, %c0_77] : memref<1x110x16xbf16, #tpu.memory_space<vmem>>, vector<1x80x16xbf16>
    %78 = vector.shape_cast %77 : vector<1x80x16xbf16> to vector<80x16xbf16>
    %c4_78 = arith.constant 4 : index
    %c0_79 = arith.constant 0 : index
    %c0_80 = arith.constant 0 : index
    %79 = vector.load %arg5[%c4_78, %c0_79, %c0_80] : memref<9x16x2xbf16, #tpu.memory_space<vmem>>, vector<1x16x2xbf16>
    %80 = vector.shape_cast %79 : vector<1x16x2xbf16> to vector<16x2xbf16>
    %cst_81 = arith.constant dense<0.000000e+00> : vector<80x2xf32>
    %81 = tpu.matmul %78, %80, %cst_81 {dimension_numbers = #tpu.dot_dimension_numbers<[1], [0], [0], [1], [0, 0, 1, 1], [], []>} : vector<80x16xbf16>, vector<16x2xbf16>, vector<80x2xf32> -> vector<80x2xf32>
    %82 = arith.addf %76, %81 : vector<80x2xf32>
    %c0_82 = arith.constant 0 : index
    %c12_83 = arith.constant 12 : index
    %c0_84 = arith.constant 0 : index
    %83 = vector.load %arg2[%c0_82, %c12_83, %c0_84] : memref<1x110x16xbf16, #tpu.memory_space<vmem>>, vector<1x80x16xbf16>
    %84 = vector.shape_cast %83 : vector<1x80x16xbf16> to vector<80x16xbf16>
    %c5_85 = arith.constant 5 : index
    %c0_86 = arith.constant 0 : index
    %c0_87 = arith.constant 0 : index
    %85 = vector.load %arg5[%c5_85, %c0_86, %c0_87] : memref<9x16x2xbf16, #tpu.memory_space<vmem>>, vector<1x16x2xbf16>
    %86 = vector.shape_cast %85 : vector<1x16x2xbf16> to vector<16x2xbf16>
    %cst_88 = arith.constant dense<0.000000e+00> : vector<80x2xf32>
    %87 = tpu.matmul %84, %86, %cst_88 {dimension_numbers = #tpu.dot_dimension_numbers<[1], [0], [0], [1], [0, 0, 1, 1], [], []>} : vector<80x16xbf16>, vector<16x2xbf16>, vector<80x2xf32> -> vector<80x2xf32>
    %88 = arith.addf %82, %87 : vector<80x2xf32>
    %c0_89 = arith.constant 0 : index
    %c20_90 = arith.constant 20 : index
    %c0_91 = arith.constant 0 : index
    %89 = vector.load %arg2[%c0_89, %c20_90, %c0_91] : memref<1x110x16xbf16, #tpu.memory_space<vmem>>, vector<1x80x16xbf16>
    %90 = vector.shape_cast %89 : vector<1x80x16xbf16> to vector<80x16xbf16>
    %c6_92 = arith.constant 6 : index
    %c0_93 = arith.constant 0 : index
    %c0_94 = arith.constant 0 : index
    %91 = vector.load %arg5[%c6_92, %c0_93, %c0_94] : memref<9x16x2xbf16, #tpu.memory_space<vmem>>, vector<1x16x2xbf16>
    %92 = vector.shape_cast %91 : vector<1x16x2xbf16> to vector<16x2xbf16>
    %cst_95 = arith.constant dense<0.000000e+00> : vector<80x2xf32>
    %93 = tpu.matmul %90, %92, %cst_95 {dimension_numbers = #tpu.dot_dimension_numbers<[1], [0], [0], [1], [0, 0, 1, 1], [], []>} : vector<80x16xbf16>, vector<16x2xbf16>, vector<80x2xf32> -> vector<80x2xf32>
    %94 = arith.addf %88, %93 : vector<80x2xf32>
    %c0_96 = arith.constant 0 : index
    %c21_97 = arith.constant 21 : index
    %c0_98 = arith.constant 0 : index
    %95 = vector.load %arg2[%c0_96, %c21_97, %c0_98] : memref<1x110x16xbf16, #tpu.memory_space<vmem>>, vector<1x80x16xbf16>
    %96 = vector.shape_cast %95 : vector<1x80x16xbf16> to vector<80x16xbf16>
    %c7_99 = arith.constant 7 : index
    %c0_100 = arith.constant 0 : index
    %c0_101 = arith.constant 0 : index
    %97 = vector.load %arg5[%c7_99, %c0_100, %c0_101] : memref<9x16x2xbf16, #tpu.memory_space<vmem>>, vector<1x16x2xbf16>
    %98 = vector.shape_cast %97 : vector<1x16x2xbf16> to vector<16x2xbf16>
    %cst_102 = arith.constant dense<0.000000e+00> : vector<80x2xf32>
    %99 = tpu.matmul %96, %98, %cst_102 {dimension_numbers = #tpu.dot_dimension_numbers<[1], [0], [0], [1], [0, 0, 1, 1], [], []>} : vector<80x16xbf16>, vector<16x2xbf16>, vector<80x2xf32> -> vector<80x2xf32>
    %100 = arith.addf %94, %99 : vector<80x2xf32>
    %c0_103 = arith.constant 0 : index
    %c22_104 = arith.constant 22 : index
    %c0_105 = arith.constant 0 : index
    %101 = vector.load %arg2[%c0_103, %c22_104, %c0_105] : memref<1x110x16xbf16, #tpu.memory_space<vmem>>, vector<1x80x16xbf16>
    %102 = vector.shape_cast %101 : vector<1x80x16xbf16> to vector<80x16xbf16>
    %c8_106 = arith.constant 8 : index
    %c0_107 = arith.constant 0 : index
    %c0_108 = arith.constant 0 : index
    %103 = vector.load %arg5[%c8_106, %c0_107, %c0_108] : memref<9x16x2xbf16, #tpu.memory_space<vmem>>, vector<1x16x2xbf16>
    %104 = vector.shape_cast %103 : vector<1x16x2xbf16> to vector<16x2xbf16>
    %cst_109 = arith.constant dense<0.000000e+00> : vector<80x2xf32>
    %105 = tpu.matmul %102, %104, %cst_109 {dimension_numbers = #tpu.dot_dimension_numbers<[1], [0], [0], [1], [0, 0, 1, 1], [], []>} : vector<80x16xbf16>, vector<16x2xbf16>, vector<80x2xf32> -> vector<80x2xf32>
    %106 = arith.addf %100, %105 : vector<80x2xf32>
    %c0_110 = arith.constant 0 : index
    %c0_111 = arith.constant 0 : index
    %c0_112 = arith.constant 0 : index
    %107 = vector.load %arg3[%c0_110, %c0_111, %c0_112] : memref<1x110x2xbf16, #tpu.memory_space<vmem>>, vector<1x80x2xbf16>
    %108 = vector.shape_cast %107 : vector<1x80x2xbf16> to vector<80x2xbf16>
    %c0_113 = arith.constant 0 : index
    %c0_114 = arith.constant 0 : index
    %c0_115 = arith.constant 0 : index
    %109 = vector.load %arg6[%c0_113, %c0_114, %c0_115] : memref<9x2x2xbf16, #tpu.memory_space<vmem>>, vector<1x2x2xbf16>
    %110 = vector.shape_cast %109 : vector<1x2x2xbf16> to vector<2x2xbf16>
    %cst_116 = arith.constant dense<0.000000e+00> : vector<80x2xf32>
    %111 = tpu.matmul %108, %110, %cst_116 {dimension_numbers = #tpu.dot_dimension_numbers<[1], [0], [0], [1], [0, 0, 1, 1], [], []>} : vector<80x2xbf16>, vector<2x2xbf16>, vector<80x2xf32> -> vector<80x2xf32>
    %112 = arith.addf %106, %111 : vector<80x2xf32>
    %c0_117 = arith.constant 0 : index
    %c1_118 = arith.constant 1 : index
    %c0_119 = arith.constant 0 : index
    %113 = vector.load %arg3[%c0_117, %c1_118, %c0_119] : memref<1x110x2xbf16, #tpu.memory_space<vmem>>, vector<1x80x2xbf16>
    %114 = vector.shape_cast %113 : vector<1x80x2xbf16> to vector<80x2xbf16>
    %c1_120 = arith.constant 1 : index
    %c0_121 = arith.constant 0 : index
    %c0_122 = arith.constant 0 : index
    %115 = vector.load %arg6[%c1_120, %c0_121, %c0_122] : memref<9x2x2xbf16, #tpu.memory_space<vmem>>, vector<1x2x2xbf16>
    %116 = vector.shape_cast %115 : vector<1x2x2xbf16> to vector<2x2xbf16>
    %cst_123 = arith.constant dense<0.000000e+00> : vector<80x2xf32>
    %117 = tpu.matmul %114, %116, %cst_123 {dimension_numbers = #tpu.dot_dimension_numbers<[1], [0], [0], [1], [0, 0, 1, 1], [], []>} : vector<80x2xbf16>, vector<2x2xbf16>, vector<80x2xf32> -> vector<80x2xf32>
    %118 = arith.addf %112, %117 : vector<80x2xf32>
    %c0_124 = arith.constant 0 : index
    %c2_125 = arith.constant 2 : index
    %c0_126 = arith.constant 0 : index
    %119 = vector.load %arg3[%c0_124, %c2_125, %c0_126] : memref<1x110x2xbf16, #tpu.memory_space<vmem>>, vector<1x80x2xbf16>
    %120 = vector.shape_cast %119 : vector<1x80x2xbf16> to vector<80x2xbf16>
    %c2_127 = arith.constant 2 : index
    %c0_128 = arith.constant 0 : index
    %c0_129 = arith.constant 0 : index
    %121 = vector.load %arg6[%c2_127, %c0_128, %c0_129] : memref<9x2x2xbf16, #tpu.memory_space<vmem>>, vector<1x2x2xbf16>
    %122 = vector.shape_cast %121 : vector<1x2x2xbf16> to vector<2x2xbf16>
    %cst_130 = arith.constant dense<0.000000e+00> : vector<80x2xf32>
    %123 = tpu.matmul %120, %122, %cst_130 {dimension_numbers = #tpu.dot_dimension_numbers<[1], [0], [0], [1], [0, 0, 1, 1], [], []>} : vector<80x2xbf16>, vector<2x2xbf16>, vector<80x2xf32> -> vector<80x2xf32>
    %124 = arith.addf %118, %123 : vector<80x2xf32>
    %c0_131 = arith.constant 0 : index
    %c10_132 = arith.constant 10 : index
    %c0_133 = arith.constant 0 : index
    %125 = vector.load %arg3[%c0_131, %c10_132, %c0_133] : memref<1x110x2xbf16, #tpu.memory_space<vmem>>, vector<1x80x2xbf16>
    %126 = vector.shape_cast %125 : vector<1x80x2xbf16> to vector<80x2xbf16>
    %c3_134 = arith.constant 3 : index
    %c0_135 = arith.constant 0 : index
    %c0_136 = arith.constant 0 : index
    %127 = vector.load %arg6[%c3_134, %c0_135, %c0_136] : memref<9x2x2xbf16, #tpu.memory_space<vmem>>, vector<1x2x2xbf16>
    %128 = vector.shape_cast %127 : vector<1x2x2xbf16> to vector<2x2xbf16>
    %cst_137 = arith.constant dense<0.000000e+00> : vector<80x2xf32>
    %129 = tpu.matmul %126, %128, %cst_137 {dimension_numbers = #tpu.dot_dimension_numbers<[1], [0], [0], [1], [0, 0, 1, 1], [], []>} : vector<80x2xbf16>, vector<2x2xbf16>, vector<80x2xf32> -> vector<80x2xf32>
    %130 = arith.addf %124, %129 : vector<80x2xf32>
    %c0_138 = arith.constant 0 : index
    %c11_139 = arith.constant 11 : index
    %c0_140 = arith.constant 0 : index
    %131 = vector.load %arg3[%c0_138, %c11_139, %c0_140] : memref<1x110x2xbf16, #tpu.memory_space<vmem>>, vector<1x80x2xbf16>
    %132 = vector.shape_cast %131 : vector<1x80x2xbf16> to vector<80x2xbf16>
    %c4_141 = arith.constant 4 : index
    %c0_142 = arith.constant 0 : index
    %c0_143 = arith.constant 0 : index
    %133 = vector.load %arg6[%c4_141, %c0_142, %c0_143] : memref<9x2x2xbf16, #tpu.memory_space<vmem>>, vector<1x2x2xbf16>
    %134 = vector.shape_cast %133 : vector<1x2x2xbf16> to vector<2x2xbf16>
    %cst_144 = arith.constant dense<0.000000e+00> : vector<80x2xf32>
    %135 = tpu.matmul %132, %134, %cst_144 {dimension_numbers = #tpu.dot_dimension_numbers<[1], [0], [0], [1], [0, 0, 1, 1], [], []>} : vector<80x2xbf16>, vector<2x2xbf16>, vector<80x2xf32> -> vector<80x2xf32>
    %136 = arith.addf %130, %135 : vector<80x2xf32>
    %c0_145 = arith.constant 0 : index
    %c12_146 = arith.constant 12 : index
    %c0_147 = arith.constant 0 : index
    %137 = vector.load %arg3[%c0_145, %c12_146, %c0_147] : memref<1x110x2xbf16, #tpu.memory_space<vmem>>, vector<1x80x2xbf16>
    %138 = vector.shape_cast %137 : vector<1x80x2xbf16> to vector<80x2xbf16>
    %c5_148 = arith.constant 5 : index
    %c0_149 = arith.constant 0 : index
    %c0_150 = arith.constant 0 : index
    %139 = vector.load %arg6[%c5_148, %c0_149, %c0_150] : memref<9x2x2xbf16, #tpu.memory_space<vmem>>, vector<1x2x2xbf16>
    %140 = vector.shape_cast %139 : vector<1x2x2xbf16> to vector<2x2xbf16>
    %cst_151 = arith.constant dense<0.000000e+00> : vector<80x2xf32>
    %141 = tpu.matmul %138, %140, %cst_151 {dimension_numbers = #tpu.dot_dimension_numbers<[1], [0], [0], [1], [0, 0, 1, 1], [], []>} : vector<80x2xbf16>, vector<2x2xbf16>, vector<80x2xf32> -> vector<80x2xf32>
    %142 = arith.addf %136, %141 : vector<80x2xf32>
    %c0_152 = arith.constant 0 : index
    %c20_153 = arith.constant 20 : index
    %c0_154 = arith.constant 0 : index
    %143 = vector.load %arg3[%c0_152, %c20_153, %c0_154] : memref<1x110x2xbf16, #tpu.memory_space<vmem>>, vector<1x80x2xbf16>
    %144 = vector.shape_cast %143 : vector<1x80x2xbf16> to vector<80x2xbf16>
    %c6_155 = arith.constant 6 : index
    %c0_156 = arith.constant 0 : index
    %c0_157 = arith.constant 0 : index
    %145 = vector.load %arg6[%c6_155, %c0_156, %c0_157] : memref<9x2x2xbf16, #tpu.memory_space<vmem>>, vector<1x2x2xbf16>
    %146 = vector.shape_cast %145 : vector<1x2x2xbf16> to vector<2x2xbf16>
    %cst_158 = arith.constant dense<0.000000e+00> : vector<80x2xf32>
    %147 = tpu.matmul %144, %146, %cst_158 {dimension_numbers = #tpu.dot_dimension_numbers<[1], [0], [0], [1], [0, 0, 1, 1], [], []>} : vector<80x2xbf16>, vector<2x2xbf16>, vector<80x2xf32> -> vector<80x2xf32>
    %148 = arith.addf %142, %147 : vector<80x2xf32>
    %c0_159 = arith.constant 0 : index
    %c21_160 = arith.constant 21 : index
    %c0_161 = arith.constant 0 : index
    %149 = vector.load %arg3[%c0_159, %c21_160, %c0_161] : memref<1x110x2xbf16, #tpu.memory_space<vmem>>, vector<1x80x2xbf16>
    %150 = vector.shape_cast %149 : vector<1x80x2xbf16> to vector<80x2xbf16>
    %c7_162 = arith.constant 7 : index
    %c0_163 = arith.constant 0 : index
    %c0_164 = arith.constant 0 : index
    %151 = vector.load %arg6[%c7_162, %c0_163, %c0_164] : memref<9x2x2xbf16, #tpu.memory_space<vmem>>, vector<1x2x2xbf16>
    %152 = vector.shape_cast %151 : vector<1x2x2xbf16> to vector<2x2xbf16>
    %cst_165 = arith.constant dense<0.000000e+00> : vector<80x2xf32>
    %153 = tpu.matmul %150, %152, %cst_165 {dimension_numbers = #tpu.dot_dimension_numbers<[1], [0], [0], [1], [0, 0, 1, 1], [], []>} : vector<80x2xbf16>, vector<2x2xbf16>, vector<80x2xf32> -> vector<80x2xf32>
    %154 = arith.addf %148, %153 : vector<80x2xf32>
    %c0_166 = arith.constant 0 : index
    %c22_167 = arith.constant 22 : index
    %c0_168 = arith.constant 0 : index
    %155 = vector.load %arg3[%c0_166, %c22_167, %c0_168] : memref<1x110x2xbf16, #tpu.memory_space<vmem>>, vector<1x80x2xbf16>
    %156 = vector.shape_cast %155 : vector<1x80x2xbf16> to vector<80x2xbf16>
    %c8_169 = arith.constant 8 : index
    %c0_170 = arith.constant 0 : index
    %c0_171 = arith.constant 0 : index
    %157 = vector.load %arg6[%c8_169, %c0_170, %c0_171] : memref<9x2x2xbf16, #tpu.memory_space<vmem>>, vector<1x2x2xbf16>
    %158 = vector.shape_cast %157 : vector<1x2x2xbf16> to vector<2x2xbf16>
    %cst_172 = arith.constant dense<0.000000e+00> : vector<80x2xf32>
    %159 = tpu.matmul %156, %158, %cst_172 {dimension_numbers = #tpu.dot_dimension_numbers<[1], [0], [0], [1], [0, 0, 1, 1], [], []>} : vector<80x2xbf16>, vector<2x2xbf16>, vector<80x2xf32> -> vector<80x2xf32>
    %160 = arith.addf %154, %159 : vector<80x2xf32>
    %c0_173 = arith.constant 0 : index
    %c0_174 = arith.constant 0 : index
    %161 = vector.load %arg7[%c0_173, %c0_174] : memref<1x2xf32, #tpu.memory_space<vmem>>, vector<1x2xf32>
    %162 = vector.broadcast %161 : vector<1x2xf32> to vector<80x2xf32>
    %163 = arith.addf %160, %162 : vector<80x2xf32>
    %c0_175 = arith.constant 0 : index
    %c0_176 = arith.constant 0 : index
    %c0_177 = arith.constant 0 : index
    %164 = vector.load %arg8[%c0_175, %c0_176, %c0_177] : memref<1x80x2xf32, #tpu.memory_space<vmem>>, vector<1x80x2xf32>
    %165 = vector.shape_cast %164 : vector<1x80x2xf32> to vector<80x2xf32>
    %166 = vector.shape_cast %163 : vector<80x2xf32> to vector<1x80x2xf32>
    tpu.vector_store %arg8[%c0_175, %c0_176, %c0_177], %166 {strides = array<i32>} : memref<1x80x2xf32, #tpu.memory_space<vmem>>, vector<1x80x2xf32>,
    return
  }
  func.func @transform_0(%arg0: i32) -> (i32, i32, i32) {
    %c0_i32 = arith.constant 0 : i32
    %c0_i32_0 = arith.constant 0 : i32
    %c0_i32_1 = arith.constant 0 : i32
    return %arg0, %c0_i32, %c0_i32_0 : i32, i32, i32
  }
  func.func @transform_1(%arg0: i32) -> (i32, i32, i32) {
    %c0_i32 = arith.constant 0 : i32
    %c0_i32_0 = arith.constant 0 : i32
    %c0_i32_1 = arith.constant 0 : i32
    return %arg0, %c0_i32, %c0_i32_0 : i32, i32, i32
  }
  func.func @transform_2(%arg0: i32) -> (i32, i32, i32) {
    %c0_i32 = arith.constant 0 : i32
    %c0_i32_0 = arith.constant 0 : i32
    %c0_i32_1 = arith.constant 0 : i32
    return %arg0, %c0_i32, %c0_i32_0 : i32, i32, i32
  }
  func.func @transform_3(%arg0: i32) -> (i32, i32, i32) {
    %c0_i32 = arith.constant 0 : i32
    %c0_i32_0 = arith.constant 0 : i32
    %c0_i32_1 = arith.constant 0 : i32
    %c0_i32_2 = arith.constant 0 : i32
    return %c0_i32, %c0_i32_0, %c0_i32_1 : i32, i32, i32
  }
  func.func @transform_4(%arg0: i32) -> (i32, i32, i32) {
    %c0_i32 = arith.constant 0 : i32
    %c0_i32_0 = arith.constant 0 : i32
    %c0_i32_1 = arith.constant 0 : i32
    %c0_i32_2 = arith.constant 0 : i32
    return %c0_i32, %c0_i32_0, %c0_i32_1 : i32, i32, i32
  }
  func.func @transform_5(%arg0: i32) -> (i32, i32, i32) {
    %c0_i32 = arith.constant 0 : i32
    %c0_i32_0 = arith.constant 0 : i32
    %c0_i32_1 = arith.constant 0 : i32
    %c0_i32_2 = arith.constant 0 : i32
    return %c0_i32, %c0_i32_0, %c0_i32_1 : i32, i32, i32
  }
  func.func @transform_6(%arg0: i32) -> (i32, i32) {
    %c0_i32 = arith.constant 0 : i32
    %c0_i32_0 = arith.constant 0 : i32
    %c0_i32_1 = arith.constant 0 : i32
    return %c0_i32, %c0_i32_0 : i32, i32
  }
  func.func @transform_7(%arg0: i32) -> (i32, i32, i32) {
    %c0_i32 = arith.constant 0 : i32
    %c0_i32_0 = arith.constant 0 : i32
    %c0_i32_1 = arith.constant 0 : i32
    return %arg0, %c0_i32, %c0_i32_0 : i32, i32, i32
  }
}

</mosaic_0001>

<bundles_post_ra>
// kernel: flownet_s_forward.10
= control target key start
LH: loop header
LB: loop body
LE: loop exit
PB: predicated region body
PF: predicated region fallthrough
CT: control target
= control target key end

     0   :  { %s551_s12 = smov 0   ;;  %s602_s0 = inlined_call_operand.vmem [shape: bf16[128,54], index: 0, kind: input, shape index: {}]   ;;  %s603_s1 = inlined_call_operand.vmem [shape: bf16[54,16], index: 1, kind: input, shape index: {}]   ;;  %s604_s2 = inlined_call_operand.vmem [shape: f32[1,16], index: 2, kind: input, shape index: {}]   ;;  %s605_s3 = inlined_call_operand.vmem [shape: bf16[128,16], index: 3, kind: output, shape index: {}]  }
   0x1 LB: > { %s433_s13 = sadd.s32 4294967295, %s529_s12   ;;  %p437_p0 = scmp.ge.s32.totalorder %s529_s12, 1  ;;  %s529_s12 = sphi %s551_s12, %s13_s12  }
   0x2   : > { %p138_p1 = scmp.lt.s32.totalorder %s529_s12, 3 }
   0x4   : > { %p139_p2 = pnand %p437_p0, %p138_p1 }
   0x5   : > { %v515_v0 = vld [vmem:[%s603_s1] sm:$0xff] (!%p139_p2)   ;;  %v516_v1 = vld [vmem:[%s603_s1 + $0x8] sm:$0xff] (!%p139_p2)   ;;  %s438_s18 = sshll.u32 (!%p139_p2), %s433_s13, 3  ;;  %v517_v2 = vld [vmem:[%s603_s1 + $0x10] sm:$0xff] (!%p139_p2)   ;;  %vm238_vm0 = vcmask (!%p139_p2), 441344   ;;  %vm251_vm1 = vcmask (!%p139_p2), 1042432  }
   0x6   : > { %142 = sbr.rel (%p139_p2) target bundleno = 246 (0xf6), region = 32  ;;  %481 = vmatprep.subr.bf16.mxu0 (!%p139_p2), %v515_v0  ;;  %497 = vmatprep.subr.bf16.mxu1 (!%p139_p2), %v515_v0  ;;  %p163_p3 = scmp.lt.s32.totalorder (!%p139_p2), %s438_s18, 15  ;;  %v518_v3 = vld [vmem:[%s603_s1 + $0x18] ss:$0 sps:$4 sm:$0x77] (!%p139_p2)   ;;  %vm368_vm2 = vcmask (!%p139_p2), 125952  }
   0x7   : > { %482 = vmatpush3.bf16.msra.mxu0 (!%p139_p2), %v515_v0  ;;  %501 = vmatpush3.bf16.msra.mxu1 (!%p139_p2), %v515_v0  ;;  %v253_v6 = vsel (!%p139_p2), %vm251_vm1, %v518_v3, 0  ;;  %v442_v9 = vld [vmem:[%s604_s2] ss:$0 sm:$0xff] (!%p139_p2) }
   0x8   : > { %483 = vmatprep.subr.bf16.mxu0 (!%p139_p2), %v516_v1  ;;  %498 = vmatprep.subr.bf16.mxu1 (!%p139_p2), %v516_v1 }
   0xb   : > { %484 = vmatpush3.bf16.msra.mxu0 (!%p139_p2), %v516_v1  ;;  %502 = vmatpush3.bf16.msra.mxu1 (!%p139_p2), %v516_v1 }
   0xc   : > { %485 = vmatprep.subr.bf16.mxu0 (!%p139_p2), %v517_v2  ;;  %499 = vmatprep.subr.bf16.mxu1 (!%p139_p2), %v517_v2 }
   0xd   : > { %s607_s18 = smov (!%p163_p3, %s438_s18), 15 }
   0xe   : > { %s439_s21 = sshll.u32 %s607_s18, 2 }
   0xf   : > { %s166_s26 = scalar_lea.vmem %s602_s0, %s439_s21  ;;  %486 = vmatpush3.bf16.msra.mxu0 %v517_v2  ;;  %503 = vmatpush3.bf16.msra.mxu1 %v517_v2  ;;  %s172_s4 = scalar_lea.vmem %s605_s3, %s439_s21 }
  0x10   : > { %v519_v4 = vld [vmem:[%s166_s26] sm:$0xff]   ;;  %v520_v5 = vld [vmem:[%s166_s26 + $0x10] sm:$0xff]   ;;  %505 = vmatprep.subr.msk.bf16.mxu0 %vm251_vm1, %v518_v3  ;;  %506 = vmatprep.subr.msk.bf16.mxu1 %vm251_vm1, %v518_v3  ;;  %v521_v7 = vld [vmem:[%s166_s26 + $0x8] sm:$0xff]  }
  0x11   : > { %489 = vmatprep.mubr.msk.bf16.mxu0 %vm238_vm0, %v519_v4  ;;  %493 = vmatprep.mubr.msk.bf16.mxu1 %vm238_vm0, %v520_v5  ;;  %v522_v8 = vld [vmem:[%s166_s26 + $0x18] sm:$0xff]  }
  0x13   : > { %488 = vmatpush3.bf16.msra.mxu0 %v253_v6  ;;  %504 = vmatpush3.bf16.msra.mxu1 %v253_v6 }
  0x16   : > { %490 = vmatmul.mubr.msk.bf16.vlgmr.msra.gmra.mrb[0].mxu0 %vm238_vm0, %v521_v7  ;;  %494 = vmatmul.mubr.msk.bf16.vlgmr.msra.gmra.mrb[0].mxu1 %vm238_vm0, %v522_v8 }
  0xe9   : > { %v491_v10 = vpop.f32.mrb[0].mxu0  ;;  %v495_v11 = vpop.f32.mrb[0].mxu1 }
  0xea   : > { %v298_v12 = vadd.f32 %v491_v10, %v442_v9  ;;  %v314_v13 = vadd.f32 %v495_v11, %v442_v9  ;;  %v289_v14 = vpop.f32.mrb[1].mxu0  ;;  %v305_v15 = vpop.f32.mrb[1].mxu1 }
  0xeb   : > { %v290_v16 = vadd.f32 %v442_v9, %v289_v14  ;;  %v306_v17 = vadd.f32 %v442_v9, %v305_v15  ;;  %v492_v18 = vpop.f32.mrb[2].mxu0  ;;  %v496_v19 = vpop.f32.mrb[2].mxu1 }
  0xec   : > { %v322_v20 = vmul.f32 0.1, %v298_v12  ;;  %v326_v21 = vmul.f32 0.1, %v314_v13  ;;  %v301_v22 = vadd.f32 %v492_v18, %v442_v9  ;;  %v317_v23 = vadd.f32 %v496_v19, %v442_v9  ;;  %v292_v24 = vpop.f32.mrb[3].mxu0  ;;  %v308_v25 = vpop.f32.mrb[3].mxu1 }
  0xed   : > { %v320_v26 = vmul.f32 0.1, %v290_v16  ;;  %v324_v27 = vmul.f32 0.1, %v306_v17  ;;  %v293_v28 = vadd.f32 %v442_v9, %v292_v24  ;;  %v309_v29 = vadd.f32 %v442_v9, %v308_v25 }
  0xee   : > { %v330_v30 = vmax.f32 %v298_v12, %v322_v20  ;;  %v334_v31 = vmax.f32 %v314_v13, %v326_v21  ;;  %v323_v32 = vmul.f32 0.1, %v301_v22  ;;  %v327_v33 = vmul.f32 0.1, %v317_v23 }
  0xef   : > { %v328_v34 = vmax.f32 %v290_v16, %v320_v26  ;;  %v332_v35 = vmax.f32 %v306_v17, %v324_v27  ;;  %v321_v36 = vmul.f32 0.1, %v293_v28  ;;  %v325_v37 = vmul.f32 0.1, %v309_v29 }
  0xf0   : > { %v467_v38 = vpack.c.bf16 %v330_v30, %v330_v30  ;;  %v471_v39 = vpack.c.bf16 %v334_v31, %v334_v31  ;;  %v331_v40 = vmax.f32 %v301_v22, %v323_v32  ;;  %v335_v41 = vmax.f32 %v317_v23, %v327_v33 }
  0xf1   : > { %v465_v42 = vpack.c.bf16 %v328_v34, %v328_v34  ;;  %v469_v43 = vpack.c.bf16 %v332_v35, %v332_v35  ;;  %v329_v44 = vmax.f32 %v293_v28, %v321_v36  ;;  %v333_v45 = vmax.f32 %v309_v29, %v325_v37 }
  0xf2   : > { %371 = vst.msk [vmem:[%s172_s4 + $0x8] sm:$0xf] %vm368_vm2, %v467_v38  ;;  %375 = vst.msk [vmem:[%s172_s4 + $0x18] sm:$0xf] %vm368_vm2, %v471_v39  ;;  %v468_v46 = vpack.c.bf16 %v331_v40, %v331_v40  ;;  %v472_v47 = vpack.c.bf16 %v335_v41, %v335_v41 }
  0xf3   : > { %369 = vst.msk [vmem:[%s172_s4] sm:$0xf] %vm368_vm2, %v465_v42  ;;  %373 = vst.msk [vmem:[%s172_s4 + $0x10] sm:$0xf] %vm368_vm2, %v469_v43  ;;  %v466_v48 = vpack.c.bf16 %v329_v44, %v329_v44  ;;  %v470_v49 = vpack.c.bf16 %v333_v45, %v333_v45 }
  0xf4   : > { %372 = vst.msk [vmem:[%s172_s4 + $0xc] sm:$0xf] %vm368_vm2, %v468_v46  ;;  %376 = vst.msk [vmem:[%s172_s4 + $0x1c] sm:$0xf] %vm368_vm2, %v472_v47 }
  0xf5   : > { %370 = vst.msk [vmem:[%s172_s4 + $0x4] sm:$0xf] %vm368_vm2, %v466_v48  ;;  %374 = vst.msk [vmem:[%s172_s4 + $0x14] sm:$0xf] %vm368_vm2, %v470_v49 }
  0xf6 PF: > { %s13_s12 = sadd.s32 1, %s529_s12  }
  0xf7   : > { %p10_p4 = scmp.ge.s32.totalorder %s13_s12, 4  }
  0xf9   :  { %12 = sbr.rel (!%p10_p4) target bundleno = 1 (0x1), region = 62 }

// kernel: flownet_s_forward.11
= control target key start
LH: loop header
LB: loop body
LE: loop exit
PB: predicated region body
PF: predicated region fallthrough
CT: control target
= control target key end

     0   :  { %s464_s12 = smov 0   ;;  %s515_s0 = inlined_call_operand.vmem [shape: bf16[32,144], index: 0, kind: input, shape index: {}]   ;;  %s516_s1 = inlined_call_operand.vmem [shape: bf16[144,32], index: 1, kind: input, shape index: {}]   ;;  %s517_s2 = inlined_call_operand.vmem [shape: f32[1,32], index: 2, kind: input, shape index: {}]   ;;  %s518_s3 = inlined_call_operand.vmem [shape: bf16[32,32], index: 3, kind: output, shape index: {}]  }
   0x1 LB: > { %s384_s13 = sadd.s32 4294967295, %s441_s12   ;;  %p388_p0 = scmp.ge.s32.totalorder %s441_s12, 1  ;;  %s441_s12 = sphi %s464_s12, %s13_s12  }
   0x2   : > { %p139_p1 = scmp.lt.s32.totalorder %s441_s12, 3 }
   0x4   : > { %p140_p2 = pnand %p388_p0, %p139_p1 }
   0x5   : > { %v423_v0 = vld [vmem:[%s516_s1] sm:$0xff] (!%p140_p2)   ;;  %v443_v1 = vmov (!%p140_p2), 0   ;;  %s389_s16 = sshll.u32 (!%p140_p2), %s384_s13, 1  ;;  %v424_v2 = vld [vmem:[%s516_s1 + $0x8] sm:$0xff] (!%p140_p2)   ;;  %v425_v3 = vld [vmem:[%s516_s1 + $0x10] sm:$0xff] (!%p140_p2)   ;;  %vm268_vm0 = vcmask (!%p140_p2), 130048  }
   0x6   : > { %143 = sbr.rel (%p140_p2) target bundleno = 265 (0x109), region = 32  ;;  %272 = vmatprep.subr.bf16.mxu0 (!%p140_p2), %v443_v1  ;;  %p165_p3 = scmp.lt.s32.totalorder (!%p140_p2), %s389_s16, 3  ;;  %v426_v4 = vld [vmem:[%s516_s1 + $0x18] sm:$0xff] (!%p140_p2)   ;;  %v427_v6 = vld [vmem:[%s516_s1 + $0x20] sm:$0xff] (!%p140_p2)   ;;  %v428_v7 = vld [vmem:[%s516_s1 + $0x28] sm:$0xff] (!%p140_p2)   ;;  %vm325_vm1 = vcmask (!%p140_p2), 257024  }
   0x7   : > { %273 = vmatpush1.bf16.msra.mxu0 (!%p140_p2), %v423_v0  ;;  %v429_v8 = vld [vmem:[%s516_s1 + $0x30] sm:$0xff] (!%p140_p2)   ;;  %v430_v9 = vld [vmem:[%s516_s1 + $0x38] sm:$0xff] (!%p140_p2)   ;;  %v431_v10 = vld [vmem:[%s516_s1 + $0x40] sm:$0xff] (!%p140_p2)  }
   0x8   : > { %274 = vmatprep.subr.bf16.mxu0 (!%p140_p2), %v443_v1  ;;  %v394_v12 = vld [vmem:[%s517_s2] ss:$0 sm:$0xff] (!%p140_p2) }
   0xb   : > { %275 = vmatpush1.bf16.msra.mxu0 (!%p140_p2), %v424_v2 }
   0xc   : > { %276 = vmatprep.subr.bf16.mxu0 (!%p140_p2), %v443_v1 }
   0xd   : > { %s520_s16 = smov (!%p165_p3, %s389_s16), 3 }
   0xe   : > { %s411_s21 = sshll.u32 %s520_s16, 3  ;;  %s393_s13 = sshll.u32 %s520_s16, 2 }
   0xf   : > { %s169_s24 = scalar_lea.vmem %s515_s0, %s411_s21  ;;  %277 = vmatpush1.bf16.msra.mxu0 %v425_v3  ;;  %s175_s17 = scalar_lea.vmem %s518_s3, %s393_s13 }
  0x10   : > { %v434_v5 = vld [vmem:[%s169_s24 + $0x4] ss:$8 sps:$4 sm:$0xff]   ;;  %278 = vmatprep.subr.bf16.mxu0 %v443_v1  ;;  %v432_v11 = vld [vmem:[%s169_s24] ss:$8 sps:$4 sm:$0xff]  }
  0x11   : > { %406 = vmatprep.mubr.msk.bf16.mxu0 %vm268_vm0, %v434_v5 }
  0x13   : > { %279 = vmatpush1.bf16.msra.mxu0 %v426_v4 }
  0x14   : > { %280 = vmatprep.subr.bf16.mxu0 %v443_v1 }
  0x17   : > { %281 = vmatpush1.bf16.msra.mxu0 %v427_v6 }
  0x18   : > { %282 = vmatprep.subr.bf16.mxu0 %v443_v1 }
  0x1b   : > { %283 = vmatpush1.bf16.msra.mxu0 %v428_v7 }
  0x1c   : > { %284 = vmatprep.subr.bf16.mxu0 %v443_v1 }
  0x1f   : > { %285 = vmatpush1.bf16.msra.mxu0 %v429_v8 }
  0x20   : > { %286 = vmatprep.subr.bf16.mxu0 %v443_v1 }
  0x23   : > { %287 = vmatpush1.bf16.msra.mxu0 %v430_v9 }
  0x24   : > { %288 = vmatprep.subr.bf16.mxu0 %v443_v1 }
  0x27   : > { %289 = vmatpush1.bf16.msra.mxu0 %v431_v10 }
  0x2a   : > { %305 = vmatmul.mubr.bf16.vlgmr.msra.gmra.mrb[0].mxu0 %v432_v11 }
  0xfd   : > { %v306_v13 = vpop.f32.mrb[0].mxu0 }
  0xfe   : > { %v307_v14 = vadd.f32 %v394_v12, %v306_v13  ;;  %v308_v15 = vpop.f32.mrb[1].mxu0 }
  0xff   : > { %v309_v16 = vpop.f32.mrb[2].mxu0 }
 0x100   : > { %v313_v17 = vmul.f32 0.1, %v307_v14  ;;  %v310_v18 = vadd.f32 %v394_v12, %v309_v16  ;;  %v311_v19 = vpop.f32.mrb[3].mxu0 }
 0x102   : > { %v315_v20 = vmax.f32 %v307_v14, %v313_v17  ;;  %v314_v21 = vmul.f32 0.1, %v310_v18 }
 0x104   : > { %v412_v22 = vpack.c.bf16 %v315_v20, %v315_v20  ;;  %v316_v23 = vmax.f32 %v310_v18, %v314_v21 }
 0x106   : > { %326 = vst.msk [vmem:[%s175_s17] sm:$0xf] %vm325_vm1, %v412_v22  ;;  %v413_v24 = vpack.c.bf16 %v316_v23, %v316_v23 }
 0x108   : > { %327 = vst.msk [vmem:[%s175_s17 + $0x4] sm:$0xf] %vm325_vm1, %v413_v24 }
 0x109 PF: > { %s13_s12 = sadd.s32 1, %s441_s12  }
 0x10a   : > { %p10_p4 = scmp.ge.s32.totalorder %s13_s12, 4  }
 0x10c   :  { %12 = sbr.rel (!%p10_p4) target bundleno = 1 (0x1), region = 62 }

// kernel: flownet_s_forward.12
= control target key start
LH: loop header
LB: loop body
LE: loop exit
PB: predicated region body
PF: predicated region fallthrough
CT: control target
= control target key end

     0   :  { %v350_v1 = vmov 0.0   ;;  %vm351_vm0 = vmmov 0   ;;  %vm178_vm1 = vcmask 261120   ;;  %vm265_vm2 = vcmask 519168   ;;  %s438_s1 = inlined_call_operand.vmem [shape: bf16[288,64], index: 1, kind: input, shape index: {}]   ;;  %s439_s0 = inlined_call_operand.vmem [shape: bf16[8,288], index: 0, kind: input, shape index: {}]   ;;  %s440_s2 = inlined_call_operand.vmem [shape: f32[1,64], index: 2, kind: input, shape index: {}]   ;;  %s441_s3 = inlined_call_operand.vmem [shape: bf16[8,64], index: 3, kind: output, shape index: {}]  }
   0x1   :  { %v329_v0 = vld [vmem:[%s438_s1 + $0x40] sm:$0xff]   ;;  %319 = vmatprep.subr.bf16.mxu1 %v350_v1  ;;  %323 = vmatprep.mubr.msk.bf16.mxu1 %vm351_vm0, %v350_v1  ;;  %v331_v3 = vld [vmem:[%s438_s1 + $0x48] sm:$0xff]   ;;  %v333_v5 = vld [vmem:[%s438_s1 + $0x50] sm:$0xff]  }
   0x2   :  { %v330_v2 = vld [vmem:[%s438_s1] sm:$0xff]   ;;  %294 = vmatprep.subr.bf16.mxu0 %v329_v0  ;;  %v332_v4 = vld [vmem:[%s438_s1 + $0x8] sm:$0xff]   ;;  %v334_v6 = vld [vmem:[%s438_s1 + $0x10] sm:$0xff]  }
   0x3   :  { %295 = vmatpush3.bf16.msra.mxu0 %v330_v2  ;;  %v335_v7 = vld [vmem:[%s438_s1 + $0x58] sm:$0xff]   ;;  %v337_v9 = vld [vmem:[%s438_s1 + $0x60] sm:$0xff]   ;;  %v339_v12 = vld [vmem:[%s438_s1 + $0x68] sm:$0xff]  }
   0x4   :  { %296 = vmatprep.subr.bf16.mxu0 %v331_v3  ;;  %v336_v8 = vld [vmem:[%s438_s1 + $0x18] sm:$0xff]   ;;  %v343_v10 = vld [vmem:[%s438_s1 + $0x80] sm:$0xff]   ;;  %v349_v15 = vld [vmem:[%s438_s1 + $0x88] sm:$0xff]  }
   0x5   :  { %v338_v11 = vld [vmem:[%s438_s1 + $0x20] sm:$0xff]   ;;  %320 = vmatpush3.bf16.msra.mxu1 %v343_v10  ;;  %v340_v16 = vld [vmem:[%s438_s1 + $0x28] sm:$0xff]   ;;  %v341_v17 = vld [vmem:[%s438_s1 + $0x70] sm:$0xff]  }
   0x6   :  { %321 = vmatprep.subr.bf16.mxu1 %v350_v1  ;;  %v15_v13 = vld [vmem:[%s439_s0] sm:$0xff]  ;;  %v348_v18 = vld [vmem:[%s439_s0 + $0x8] ss:$0 sps:$4 sm:$0xff]   ;;  %v342_v19 = vld [vmem:[%s438_s1 + $0x30] sm:$0xff]  }
   0x7   :  { %297 = vmatpush3.bf16.msra.mxu0 %v332_v4  ;;  %v273_v14 = vcombine.high %v15_v13, %v15_v13  ;;  %v344_v20 = vld [vmem:[%s438_s1 + $0x78] sm:$0xff]   ;;  %v272_v22 = vcombine.low %v15_v13, %v15_v13  ;;  %v271_v29 = vld [vmem:[%s440_s2] ss:$0 sm:$0xff] }
   0x8   :  { %298 = vmatprep.subr.bf16.mxu0 %v333_v5  ;;  %v345_v21 = vld [vmem:[%s438_s1 + $0x38] sm:$0xff]  }
   0x9   :  { %214 = vmatprep.mubr.bf16.mxu0 %v273_v14  ;;  %322 = vmatpush3.bf16.msra.mxu1 %v349_v15 }
   0xb   :  { %299 = vmatpush3.bf16.msra.mxu0 %v334_v6 }
   0xc   :  { %300 = vmatprep.subr.bf16.mxu0 %v335_v7  ;;  %324 = vmatmul.mubr.msk.bf16.vlgmr.msra.gmra.mrb[0].mxu1 %vm178_vm1, %v348_v18 }
   0xf   :  { %301 = vmatpush3.bf16.msra.mxu0 %v336_v8 }
  0x10   :  { %302 = vmatprep.subr.bf16.mxu0 %v337_v9 }
  0x13   :  { %303 = vmatpush3.bf16.msra.mxu0 %v338_v11 }
  0x14   :  { %304 = vmatprep.subr.bf16.mxu0 %v339_v12 }
  0x17   :  { %305 = vmatpush3.bf16.msra.mxu0 %v340_v16 }
  0x18   :  { %306 = vmatprep.subr.bf16.mxu0 %v341_v17 }
  0x1b   :  { %307 = vmatpush3.bf16.msra.mxu0 %v342_v19 }
  0x1c   :  { %308 = vmatprep.subr.bf16.mxu0 %v344_v20 }
  0x1f   :  { %309 = vmatpush3.bf16.msra.mxu0 %v345_v21 }
  0x22   :  { %215 = vmatmul.mubr.bf16.vlgmr.msra.gmra.mrb[0].mxu0 %v272_v22 }
  0xdf   :  { %v256_v23 = vpop.f32.mrb[0].mxu1 }
  0xe0   :  { %v325_v24 = vpop.f32.mrb[1].mxu1 }
  0xe1   :  { %v259_v25 = vpop.f32.mrb[2].mxu1 }
  0xe2   :  { %v326_v26 = vpop.f32.mrb[3].mxu1 }
  0xf5   :  { %v310_v27 = vpop.f32.mrb[0].mxu0 }
  0xf6   :  { %v311_v28 = vpop.f32.mrb[1].mxu0 }
  0xf7   :  { %v312_v30 = vadd.f32 %v311_v28, %v310_v27  ;;  %v313_v31 = vpop.f32.mrb[2].mxu0 }
  0xf8   :  { %v314_v32 = vpop.f32.mrb[3].mxu0 }
  0xf9   :  { %v217_v33 = vadd.f32 %v312_v30, %v271_v29 }
  0xfb   :  { %v257_v34 = vadd.f32 %v256_v23, %v217_v33 }
  0xfd   :  { %v262_v35 = vmul.f32 0.1, %v257_v34 }
  0xff   :  { %v263_v36 = vmax.f32 %v257_v34, %v262_v35 }
 0x101   :  { %v264_v37 = vpack.c.bf16 %v263_v36, %v263_v36 }
 0x103   :  { %266 = vst.msk [vmem:[%s441_s3] sm:$0xf] %vm265_vm2, %v264_v37 }

// kernel: flownet_s_forward.13
= control target key start
LH: loop header
LB: loop body
LE: loop exit
PB: predicated region body
PF: predicated region fallthrough
CT: control target
= control target key end

     0   :  { %s1351_s12 = smov 0   ;;  %s1559_s0 = inlined_call_operand.vmem [shape: bf16[2,20,64], index: 0, kind: input, shape index: {}]   ;;  %s1560_s1 = inlined_call_operand.vmem [shape: bf16[9,64,2], index: 1, kind: input, shape index: {}]   ;;  %s1561_s2 = inlined_call_operand.vmem [shape: f32[1,2], index: 2, kind: input, shape index: {}]   ;;  %s1562_s3 = inlined_call_operand.vmem [shape: f32[2,8,2], index: 3, kind: output, shape index: {}]  }
   0x1 LB: > { %s988_s13 = sadd.s32 4294967295, %s1327_s12   ;;  %p992_p0 = scmp.ge.s32.totalorder %s1327_s12, 1  ;;  %s1327_s12 = sphi %s1351_s12, %s13_s12  }
   0x2   : > { %p137_p1 = scmp.lt.s32.totalorder %s1327_s12, 3 }
   0x4   : > { %p138_p2 = pnand %p992_p0, %p137_p1 }
   0x5   : > { %v1278_v0 = vld [vmem:[%s1560_s1 + $0x20] sm:$0xff] (!%p138_p2)   ;;  %v1329_v1 = vmov (!%p138_p2), 0.0   ;;  %v1280_v3 = vld [vmem:[%s1560_s1 + $0x28] sm:$0xff] (!%p138_p2)   ;;  %vm1330_vm0 = vmmov (!%p138_p2), 0   ;;  %p160_p3 = scmp.lt.s32.totalorder (!%p138_p2), %s988_s13, 1  ;;  %v1282_v5 = vld [vmem:[%s1560_s1 + $0x30] sm:$0xff] (!%p138_p2)  }
   0x6   : > { %141 = sbr.rel (%p138_p2) target bundleno = 307 (0x133), region = 32  ;;  %1159 = vmatprep.subr.bf16.mxu0 (!%p138_p2), %v1329_v1  ;;  %1171 = vmatprep.subr.bf16.mxu1 (!%p138_p2), %v1329_v1  ;;  %v1279_v2 = vld [vmem:[%s1560_s1] sm:$0xff] (!%p138_p2)   ;;  %v1281_v4 = vld [vmem:[%s1560_s1 + $0x8] sm:$0xff] (!%p138_p2)   ;;  %v1283_v6 = vld [vmem:[%s1560_s1 + $0x10] sm:$0xff] (!%p138_p2)   ;;  %vm225_vm1 = vcmask (!%p138_p2), 523264   ;;  %vm933_vm2 = vcmask (!%p138_p2), 15360  }
   0x7   : > { %1160 = vmatpush3.bf16.msra.mxu0 (!%p138_p2), %v1278_v0  ;;  %1167 = vmatprep.mubr.msk.bf16.mxu0 (!%p138_p2), %vm1330_vm0, %v1329_v1  ;;  %v1284_v9 = vld [vmem:[%s1560_s1 + $0x38] sm:$0xff] (!%p138_p2)   ;;  %v1287_v15 = vld [vmem:[%s1560_s1 + $0x40] sm:$0xff] (!%p138_p2)   ;;  %v1289_v18 = vld [vmem:[%s1560_s1 + $0x48] sm:$0xff] (!%p138_p2)  }
   0x8   : > { %1172 = vmatpush3.bf16.msra.mxu1 (!%p138_p2), %v1279_v2  ;;  %1161 = vmatprep.subr.bf16.mxu0 (!%p138_p2), %v1329_v1  ;;  %v1285_v11 = vld [vmem:[%s1560_s1 + $0x18] sm:$0xff] (!%p138_p2)   ;;  %v1288_v16 = vld [vmem:[%s1560_s1 + $0x60] sm:$0xff] (!%p138_p2)   ;;  %v1290_v19 = vld [vmem:[%s1560_s1 + $0x68] sm:$0xff] (!%p138_p2)  }
   0x9   : > { %1173 = vmatprep.subr.bf16.mxu1 (!%p138_p2), %v1329_v1  ;;  %1179 = vmatprep.mubr.msk.bf16.mxu1 (!%p138_p2), %vm1330_vm0, %v1329_v1  ;;  %v1291_v20 = vld [vmem:[%s1560_s1 + $0x50] sm:$0xff] (!%p138_p2)   ;;  %v1293_v25 = vld [vmem:[%s1560_s1 + $0x58] sm:$0xff] (!%p138_p2)   ;;  %v1296_v29 = vld [vmem:[%s1560_s1 + $0x80] sm:$0xff] (!%p138_p2)  }
   0xa   : > { %v1292_v21 = vld [vmem:[%s1560_s1 + $0x70] sm:$0xff] (!%p138_p2)   ;;  %v1294_v28 = vld [vmem:[%s1560_s1 + $0x78] sm:$0xff] (!%p138_p2)   ;;  %v1299_v33 = vld [vmem:[%s1560_s1 + $0xa0] sm:$0xff] (!%p138_p2)  }
   0xb   : > { %1162 = vmatpush3.bf16.msra.mxu0 (!%p138_p2), %v1280_v3  ;;  %v1300_v35 = vld [vmem:[%s1560_s1 + $0x88] sm:$0xff] (!%p138_p2)   ;;  %v1302_v39 = vld [vmem:[%s1560_s1 + $0x90] sm:$0xff] (!%p138_p2)   ;;  %v1304_v45 = vld [vmem:[%s1560_s1 + $0x98] sm:$0xff] (!%p138_p2)  }
   0xc   : > { %1174 = vmatpush3.bf16.msra.mxu1 (!%p138_p2), %v1281_v4  ;;  %1163 = vmatprep.subr.bf16.mxu0 (!%p138_p2), %v1329_v1  ;;  %v1301_v36 = vld [vmem:[%s1560_s1 + $0xa8] sm:$0xff] (!%p138_p2)   ;;  %v1303_v40 = vld [vmem:[%s1560_s1 + $0xb0] sm:$0xff] (!%p138_p2)   ;;  %v1305_v46 = vld [vmem:[%s1560_s1 + $0xb8] sm:$0xff] (!%p138_p2)  }
   0xd   : > { %s1564_s13 = smov (!%p160_p3, %s988_s13), 1  ;;  %1175 = vmatprep.subr.bf16.mxu1 %v1329_v1  ;;  %v1306_v48 = vld [vmem:[%s1560_s1 + $0xc0] sm:$0xff]   ;;  %v1309_v54 = vld [vmem:[%s1560_s1 + $0xc8] sm:$0xff]   ;;  %v1311_v57 = vld [vmem:[%s1560_s1 + $0xd0] sm:$0xff]  }
   0xe   : > { %s1267_s24 = smul.u32 12, %s1564_s13  ;;  %v1308_v50 = vld [vmem:[%s1560_s1 + $0xe0] sm:$0xff]   ;;  %v1310_v55 = vld [vmem:[%s1560_s1 + $0xe8] sm:$0xff]   ;;  %v1312_v58 = vld [vmem:[%s1560_s1 + $0xf0] sm:$0xff]  }
   0xf   : > { %1164 = vmatpush3.bf16.msra.mxu0 %v1282_v5  ;;  %v1313_v61 = vld [vmem:[%s1560_s1 + $0xd8] sm:$0xff]   ;;  %v1315_v2 = vld [vmem:[%s1560_s1 + $0x100] sm:$0xff]   ;;  %v1317_v3 = vld [vmem:[%s1560_s1 + $0x108] sm:$0xff]  }
  0x10   : > { %s1393_s29 = scalar_lea.vmem %s1559_s0, %s1267_s24  ;;  %1176 = vmatpush3.bf16.msra.mxu1 %v1283_v6  ;;  %1165 = vmatprep.subr.bf16.mxu0 %v1329_v1  ;;  %v1314_v62 = vld [vmem:[%s1560_s1 + $0xf8] sm:$0xff]   ;;  %v1318_v4 = vld [vmem:[%s1560_s1 + $0x110] sm:$0xff]  }
  0x11   : > { %v170_v7 = vld [vmem:[%s1393_s29] sm:$0xf]  ;;  %v179_v8 = vld [vmem:[%s1393_s29 + $0x4] sm:$0x1]  ;;  %1177 = vmatprep.subr.bf16.mxu1 %v1329_v1  ;;  %v753_v52 = vld [vmem:[%s1393_s29 + $0x8] sm:$0x1] }
  0x12   : > { %v1003_v10 = vcombine.low %v170_v7, %v179_v8  ;;  %v336_v22 = vld [vmem:[%s1393_s29] sm:$0xe]  ;;  %v419_v24 = vld [vmem:[%s1393_s29 + $0x4] sm:$0x3] }
  0x13   : > { %1166 = vmatpush3.bf16.msra.mxu0 %v1284_v9  ;;  %v418_v23 = vld [vmem:[%s1393_s29] sm:$0xc]  ;;  %v1022_v26 = vcombine.low %v336_v22, %v179_v8  ;;  %v503_v30 = vld [vmem:[%s1393_s29 + $0x4] sm:$0x7] }
  0x14   : > { %v195_v12 = vshrl.u32 %v1003_v10, 16  ;;  %v197_v13 = vshll.u32 %v1003_v10, 16  ;;  %1178 = vmatpush3.bf16.msra.mxu1 %v1285_v11  ;;  %1183 = vmatprep.subr.bf16.mxu0 %v1329_v1  ;;  %v1036_v27 = vcombine.low %v418_v23, %v419_v24  ;;  %v1050_v34 = vcombine.low %v418_v23, %v503_v30  ;;  %v592_v41 = vld [vmem:[%s1393_s29] sm:$0x8]  ;;  %v752_v51 = vld [vmem:[%s1393_s29 + $0x4] sm:$0xf] }
  0x15   : > { %1195 = vmatprep.subr.bf16.mxu1 %v1329_v1  ;;  %v349_v31 = vrot.slane %v1022_v26, 1  ;;  %v1064_v44 = vcombine.low %v592_v41, %v503_v30  ;;  %v1091_v53 = vcombine.low %v752_v51, %v753_v52  ;;  %v674_v0 = vld [vmem:[%s1393_s29 + $0x4] sm:$0xf] }
  0x16   : > { %v199_v14 = vrot.slane %v197_v13, 1  ;;  %v434_v32 = vrot.slane %v1036_v27, 2  ;;  %v517_v37 = vshrl.u32 %v1050_v34, 16  ;;  %v520_v38 = vshll.u32 %v1050_v34, 16  ;;  %v843_v5 = vld [vmem:[%s1393_s29 + $0x4] sm:$0xe] }
  0x17   : > { %1180 = vmatmul.mubr.msk.bf16.vlgmr.msra.gmra.mrb[0].mxu1 %vm225_vm1, %v170_v7  ;;  %v605_v49 = vrot.slane %v1064_v44, 3  ;;  %v771_v56 = vshll.u32 %v1091_v53, 16  ;;  %v769_v59 = vshrl.u32 %v1091_v53, 16  ;;  %v1105_v6 = vcombine.low %v843_v5, %v753_v52  ;;  %v1319_v7 = vld [vmem:[%s1560_s1 + $0x118] sm:$0xff]   ;;  %s994_s29 = sshll.u32 %s1564_s13, 3 }
  0x18   : > { %v200_v17 = vor.u32 %v199_v14, %v195_v12  ;;  %1196 = vmatpush3.bf16.msra.mxu1 %v1288_v16  ;;  %1203 = vmatprep.mubr.msk.bf16.mxu1 %vm1330_vm0, %v1329_v1  ;;  %v519_v42 = vrot.slane %v517_v37, 2  ;;  %v522_v43 = vrot.slane %v520_v38, 3  ;;  %s168_s21 = scalar_lea.vmem %s1562_s3, %s994_s29 }
  0x19   : > { %1197 = vmatprep.subr.bf16.mxu1 %v1329_v1  ;;  %v773_v60 = vrot.slane %v771_v56, 1  ;;  %v856_v8 = vrot.slane %v1105_v6, 1 }
  0x1a   : > { %1168 = vmatmul.mubr.msk.bf16.vlgmr.msra.gmra.mrb[0].mxu0 %vm225_vm1, %v200_v17  ;;  %v523_v47 = vor.u32 %v522_v43, %v519_v42 }
  0x1b   : > { %1184 = vmatpush3.bf16.msra.mxu0 %v1287_v15  ;;  %1191 = vmatprep.mubr.msk.bf16.mxu0 %vm1330_vm0, %v1329_v1  ;;  %v774_v63 = vor.u32 %v773_v60, %v769_v59 }
  0x1c   : > { %1185 = vmatprep.subr.bf16.mxu0 %v1329_v1  ;;  %1198 = vmatpush3.bf16.msra.mxu1 %v1290_v19 }
  0x1d   : > { %1199 = vmatprep.subr.bf16.mxu1 %v1329_v1 }
  0x1f   : > { %1186 = vmatpush3.bf16.msra.mxu0 %v1289_v18 }
  0x20   : > { %1187 = vmatprep.subr.bf16.mxu0 %v1329_v1  ;;  %1200 = vmatpush3.bf16.msra.mxu1 %v1292_v21 }
  0x21   : > { %1201 = vmatprep.subr.bf16.mxu1 %v1329_v1 }
  0x23   : > { %1188 = vmatpush3.bf16.msra.mxu0 %v1291_v20 }
  0x24   : > { %1189 = vmatprep.subr.bf16.mxu0 %v1329_v1  ;;  %1202 = vmatpush3.bf16.msra.mxu1 %v1294_v28 }
  0x25   : > { %1219 = vmatprep.subr.bf16.mxu1 %v1329_v1 }
  0x27   : > { %1190 = vmatpush3.bf16.msra.mxu0 %v1293_v25  ;;  %1204 = vmatmul.mubr.msk.bf16.vlgmr.msra.gmra.mrb[4].mxu1 %vm225_vm1, %v434_v32 }
  0x28   : > { %1207 = vmatprep.subr.bf16.mxu0 %v1329_v1  ;;  %1220 = vmatpush3.bf16.msra.mxu1 %v1299_v33 }
  0x29   : > { %1221 = vmatprep.subr.bf16.mxu1 %v1329_v1  ;;  %1227 = vmatprep.mubr.msk.bf16.mxu1 %vm1330_vm0, %v1329_v1 }
  0x2a   : > { %1192 = vmatmul.mubr.msk.bf16.vlgmr.msra.gmra.mrb[4].mxu0 %vm225_vm1, %v349_v31 }
  0x2b   : > { %1208 = vmatpush3.bf16.msra.mxu0 %v1296_v29  ;;  %1215 = vmatprep.mubr.msk.bf16.mxu0 %vm1330_vm0, %v1329_v1 }
  0x2c   : > { %1209 = vmatprep.subr.bf16.mxu0 %v1329_v1  ;;  %1222 = vmatpush3.bf16.msra.mxu1 %v1301_v36 }
  0x2d   : > { %1223 = vmatprep.subr.bf16.mxu1 %v1329_v1 }
  0x2f   : > { %1210 = vmatpush3.bf16.msra.mxu0 %v1300_v35 }
  0x30   : > { %1211 = vmatprep.subr.bf16.mxu0 %v1329_v1  ;;  %1224 = vmatpush3.bf16.msra.mxu1 %v1303_v40 }
  0x31   : > { %1225 = vmatprep.subr.bf16.mxu1 %v1329_v1 }
  0x33   : > { %1212 = vmatpush3.bf16.msra.mxu0 %v1302_v39 }
  0x34   : > { %1213 = vmatprep.subr.bf16.mxu0 %v1329_v1  ;;  %1226 = vmatpush3.bf16.msra.mxu1 %v1305_v46 }
  0x35   : > { %1243 = vmatprep.subr.bf16.mxu1 %v1329_v1 }
  0x37   : > { %1214 = vmatpush3.bf16.msra.mxu0 %v1304_v45  ;;  %1228 = vmatmul.mubr.msk.bf16.vlgmr.msra.gmra.mrb[8].mxu1 %vm225_vm1, %v605_v49 }
  0x38   : > { %1231 = vmatprep.subr.bf16.mxu0 %v1329_v1  ;;  %1244 = vmatpush3.bf16.msra.mxu1 %v1308_v50 }
  0x39   : > { %1245 = vmatprep.subr.bf16.mxu1 %v1329_v1  ;;  %1251 = vmatprep.mubr.msk.bf16.mxu1 %vm1330_vm0, %v1329_v1 }
  0x3a   : > { %1216 = vmatmul.mubr.msk.bf16.vlgmr.msra.gmra.mrb[8].mxu0 %vm225_vm1, %v523_v47 }
  0x3b   : > { %1232 = vmatpush3.bf16.msra.mxu0 %v1306_v48  ;;  %1239 = vmatprep.mubr.msk.bf16.mxu0 %vm1330_vm0, %v1329_v1  ;;  %v1111_v48 = vld [vmem:[%s1561_s2] ss:$0 sm:$0xff] }
  0x3c   : > { %1233 = vmatprep.subr.bf16.mxu0 %v1329_v1  ;;  %1246 = vmatpush3.bf16.msra.mxu1 %v1310_v55 }
  0x3d   : > { %1247 = vmatprep.subr.bf16.mxu1 %v1329_v1 }
  0x3f   : > { %1234 = vmatpush3.bf16.msra.mxu0 %v1309_v54 }
  0x40   : > { %1235 = vmatprep.subr.bf16.mxu0 %v1329_v1  ;;  %1248 = vmatpush3.bf16.msra.mxu1 %v1312_v58 }
  0x41   : > { %1249 = vmatprep.subr.bf16.mxu1 %v1329_v1 }
  0x43   : > { %1236 = vmatpush3.bf16.msra.mxu0 %v1311_v57 }
  0x44   : > { %1237 = vmatprep.subr.bf16.mxu0 %v1329_v1  ;;  %1250 = vmatpush3.bf16.msra.mxu1 %v1314_v62 }
  0x47   : > { %1238 = vmatpush3.bf16.msra.mxu0 %v1313_v61  ;;  %1252 = vmatmul.mubr.msk.bf16.vlgmr.msra.gmra.mrb[12].mxu1 %vm225_vm1, %v774_v63 }
  0x48   : > { %1255 = vmatprep.subr.bf16.mxu0 %v1329_v1 }
  0x4a   : > { %1240 = vmatmul.mubr.msk.bf16.vlgmr.msra.gmra.mrb[12].mxu0 %vm225_vm1, %v674_v0 }
  0x4b   : > { %1256 = vmatpush3.bf16.msra.mxu0 %v1315_v2  ;;  %1263 = vmatprep.mubr.msk.bf16.mxu0 %vm1330_vm0, %v1329_v1 }
  0x4c   : > { %1257 = vmatprep.subr.bf16.mxu0 %v1329_v1 }
  0x4f   : > { %1258 = vmatpush3.bf16.msra.mxu0 %v1317_v3 }
  0x50   : > { %1259 = vmatprep.subr.bf16.mxu0 %v1329_v1 }
  0x53   : > { %1260 = vmatpush3.bf16.msra.mxu0 %v1318_v4 }
  0x54   : > { %1261 = vmatprep.subr.bf16.mxu0 %v1329_v1 }
  0x57   : > { %1262 = vmatpush3.bf16.msra.mxu0 %v1319_v7 }
  0x5a   : > { %1264 = vmatmul.mubr.msk.bf16.vlgmr.msra.gmra.mrb[16].mxu0 %vm225_vm1, %v856_v8 }
  0xea   : > { %v330_v10 = vpop.f32.mrb[0].mxu1 }
  0xeb   : > { %v1181_v13 = vpop.f32.mrb[1].mxu1 }
  0xec   : > { %v333_v15 = vpop.f32.mrb[2].mxu1 }
  0xed   : > { %v263_v9 = vpop.f32.mrb[0].mxu0  ;;  %v1182_v17 = vpop.f32.mrb[3].mxu1 }
  0xee   : > { %v1169_v11 = vpop.f32.mrb[1].mxu0  ;;  %v331_v12 = vadd.f32 %v330_v10, %v263_v9 }
  0xef   : > { %v266_v14 = vpop.f32.mrb[2].mxu0 }
  0xf0   : > { %v1170_v16 = vpop.f32.mrb[3].mxu0 }
  0xfa   : > { %v496_v19 = vpop.f32.mrb[4].mxu1 }
  0xfb   : > { %v1205_v22 = vpop.f32.mrb[5].mxu1 }
  0xfc   : > { %v499_v1 = vpop.f32.mrb[6].mxu1 }
  0xfd   : > { %v411_v18 = vpop.f32.mrb[4].mxu0  ;;  %v1206_v26 = vpop.f32.mrb[7].mxu1 }
  0xfe   : > { %v417_v20 = vadd.f32 %v411_v18, %v331_v12  ;;  %v1193_v21 = vpop.f32.mrb[5].mxu0 }
  0xff   : > { %v414_v23 = vpop.f32.mrb[6].mxu0 }
 0x100   : > { %v502_v24 = vadd.f32 %v496_v19, %v417_v20  ;;  %v1194_v25 = vpop.f32.mrb[7].mxu0 }
 0x10a   : > { %v667_v28 = vpop.f32.mrb[8].mxu1 }
 0x10b   : > { %v1229_v31 = vpop.f32.mrb[9].mxu1 }
 0x10c   : > { %v670_v33 = vpop.f32.mrb[10].mxu1 }
 0x10d   : > { %v585_v27 = vpop.f32.mrb[8].mxu0  ;;  %v1230_v36 = vpop.f32.mrb[11].mxu1 }
 0x10e   : > { %v591_v29 = vadd.f32 %v585_v27, %v502_v24  ;;  %v1217_v30 = vpop.f32.mrb[9].mxu0 }
 0x10f   : > { %v588_v32 = vpop.f32.mrb[10].mxu0 }
 0x110   : > { %v673_v34 = vadd.f32 %v667_v28, %v591_v29  ;;  %v1218_v35 = vpop.f32.mrb[11].mxu0 }
 0x11a   : > { %v836_v38 = vpop.f32.mrb[12].mxu1 }
 0x11b   : > { %v1253_v41 = vpop.f32.mrb[13].mxu1 }
 0x11c   : > { %v839_v43 = vpop.f32.mrb[14].mxu1 }
 0x11d   : > { %v745_v37 = vpop.f32.mrb[12].mxu0  ;;  %v1254_v46 = vpop.f32.mrb[15].mxu1 }
 0x11e   : > { %v751_v39 = vadd.f32 %v745_v37, %v673_v34  ;;  %v1241_v40 = vpop.f32.mrb[13].mxu0 }
 0x11f   : > { %v748_v42 = vpop.f32.mrb[14].mxu0 }
 0x120   : > { %v842_v44 = vadd.f32 %v836_v38, %v751_v39  ;;  %v1242_v45 = vpop.f32.mrb[15].mxu0 }
 0x12d   : > { %v918_v47 = vpop.f32.mrb[16].mxu0 }
 0x12e   : > { %v924_v49 = vadd.f32 %v918_v47, %v842_v44  ;;  %v1265_v50 = vpop.f32.mrb[17].mxu0 }
 0x12f   : > { %v921_v51 = vpop.f32.mrb[18].mxu0 }
 0x130   : > { %v932_v52 = vadd.f32 %v1111_v48, %v924_v49  ;;  %v1266_v53 = vpop.f32.mrb[19].mxu0 }
 0x132   : > { %934 = vst.msk [vmem:[%s168_s21] sm:$0xff] %vm933_vm2, %v932_v52 }
 0x133 PF: > { %s13_s12 = sadd.s32 1, %s1327_s12  }
 0x134   : > { %p10_p4 = scmp.ge.s32.totalorder %s13_s12, 4  }
 0x136   :  { %12 = sbr.rel (!%p10_p4) target bundleno = 1 (0x1), region = 70 }

// kernel: flownet_s_forward.14
= control target key start
LH: loop header
LB: loop body
LE: loop exit
PB: predicated region body
PF: predicated region fallthrough
CT: control target
= control target key end

     0   :  { %s892_s12 = smov 0   ;;  %s1001_s0 = inlined_call_operand.vmem [shape: bf16[2,20,2], index: 0, kind: input, shape index: {}]   ;;  %s1002_s1 = inlined_call_operand.vmem [shape: bf16[9,2,8], index: 1, kind: input, shape index: {}]   ;;  %s1003_s2 = inlined_call_operand.vmem [shape: f32[1,8], index: 2, kind: input, shape index: {}]   ;;  %s1004_s3 = inlined_call_operand.vmem [shape: bf16[2,8,8], index: 3, kind: output, shape index: {}]  }
   0x1 LB: > { %s738_s13 = sadd.s32 4294967295, %s868_s12   ;;  %p742_p0 = scmp.ge.s32.totalorder %s868_s12, 1  ;;  %s868_s12 = sphi %s892_s12, %s13_s12  }
   0x2   : > { %p137_p1 = scmp.lt.s32.totalorder %s868_s12, 3 }
   0x4   : > { %p138_p2 = pnand %p742_p0, %p137_p1 }
   0x5   : > { %v745_v0 = vld [vmem:[%s1002_s1 + $0x1] sm:$0x1] (!%p138_p2)  ;;  %vm191_vm0 = vcmask (!%p138_p2), 1040384   ;;  %v171_v1 = vld [vmem:[%s1002_s1] sm:$0x1] (!%p138_p2)  ;;  %v870_v2 = vmov (!%p138_p2), 0.0  }
   0x6   : > { %141 = sbr.rel (%p138_p2) target bundleno = 277 (0x115), region = 32  ;;  %790 = vmatprep.subr.bf16.mxu0 (!%p138_p2), %v870_v2  ;;  %v193_v3 = vsel (!%p138_p2), %vm191_vm0, %v745_v0, 0  ;;  %796 = vmatprep.subr.bf16.mxu1 (!%p138_p2), %v870_v2  ;;  %v239_v4 = vsel (!%p138_p2), %vm191_vm0, %v171_v1, 0  ;;  %p160_p3 = scmp.lt.s32.totalorder (!%p138_p2), %s738_s13, 1  ;;  %vm871_vm1 = vmmov (!%p138_p2), 0   ;;  %vm187_vm2 = vcmask (!%p138_p2), 15360  }
   0x7   : > { %791 = vmatpush3.bf16.msra.mxu0 (!%p138_p2), %v193_v3  ;;  %797 = vmatpush3.bf16.msra.mxu1 (!%p138_p2), %v239_v4  ;;  %v752_v5 = vld [vmem:[%s1002_s1 + $0x3] sm:$0x1] (!%p138_p2)  ;;  %v749_v15 = vld [vmem:[%s1002_s1 + $0x2] sm:$0x1] (!%p138_p2)  ;;  %v758_v16 = vld [vmem:[%s1002_s1 + $0x5] sm:$0x1] (!%p138_p2) }
   0x8   : > { %792 = vmatprep.mubr.msk.bf16.mxu0 (!%p138_p2), %vm871_vm1, %v870_v2  ;;  %798 = vmatprep.mubr.msk.bf16.mxu1 (!%p138_p2), %vm871_vm1, %v870_v2  ;;  %v349_v6 = vsel (!%p138_p2), %vm191_vm0, %v752_v5, 0  ;;  %v292_v25 = vsel (!%p138_p2), %vm191_vm0, %v749_v15, 0  ;;  %v464_v27 = vsel (!%p138_p2), %vm191_vm0, %v758_v16, 0  ;;  %v755_v32 = vld [vmem:[%s1002_s1 + $0x4] sm:$0x1] (!%p138_p2)  ;;  %vm683_vm3 = vcmask (!%p138_p2), 60416  }
   0x9   : > { %802 = vmatprep.subr.bf16.mxu0 (!%p138_p2), %v870_v2  ;;  %808 = vmatprep.subr.bf16.mxu1 (!%p138_p2), %v870_v2  ;;  %v763_v36 = vld [vmem:[%s1002_s1 + $0x7] sm:$0x1] (!%p138_p2)  ;;  %v410_v38 = vsel (!%p138_p2), %vm191_vm0, %v755_v32, 0  ;;  %v761_v44 = vld [vmem:[%s1002_s1 + $0x6] sm:$0x1] (!%p138_p2) }
   0xa   : > { %v577_v39 = vsel (!%p138_p2), %vm191_vm0, %v763_v36, 0  ;;  %v514_v47 = vsel (!%p138_p2), %vm191_vm0, %v761_v44, 0  ;;  %v766_v48 = vld [vmem:[%s1002_s1 + $0x8] sm:$0x1] (!%p138_p2) }
   0xb   : > { %v631_v51 = vsel (!%p138_p2), %vm191_vm0, %v766_v48, 0 }
   0xd   : > { %s1006_s13 = smov (!%p160_p3, %s738_s13), 1 }
   0xe   : > { %s844_s20 = smul.u32 12, %s1006_s13  ;;  %s744_s11 = sshll.u32 %s1006_s13, 2 }
   0xf   : > { %s168_s16 = scalar_lea.vmem %s1004_s3, %s744_s11 }
  0x10   : > { %s925_s23 = scalar_lea.vmem %s1001_s0, %s844_s20 }
  0x11   : > { %v170_v7 = vld [vmem:[%s925_s23] sm:$0xf]  ;;  %v172_v8 = vld [vmem:[%s925_s23 + $0x4] sm:$0x1]  ;;  %v558_v23 = vld [vmem:[%s925_s23 + $0x8] sm:$0x1] }
  0x12   : > { %v746_v9 = vcombine.low %v170_v7, %v172_v8  ;;  %799 = vmatmul.mubr.msk.bf16.vlgmr.msra.gmra.mrb[0].mxu1 %vm187_vm2, %v170_v7  ;;  %v335_v10 = vld [vmem:[%s925_s23] sm:$0xc]  ;;  %v336_v11 = vld [vmem:[%s925_s23 + $0x4] sm:$0x3] }
  0x13   : > { %809 = vmatpush3.bf16.msra.mxu1 %v349_v6  ;;  %810 = vmatprep.mubr.msk.bf16.mxu1 %vm871_vm1, %v870_v2  ;;  %v753_v12 = vcombine.low %v335_v10, %v336_v11  ;;  %v281_v18 = vld [vmem:[%s925_s23] sm:$0xe]  ;;  %v392_v20 = vld [vmem:[%s925_s23 + $0x4] sm:$0x7] }
  0x14   : > { %v181_v13 = vshrl.u32 %v746_v9, 16  ;;  %v183_v14 = vshll.u32 %v746_v9, 16  ;;  %820 = vmatprep.subr.bf16.mxu1 %v870_v2  ;;  %v453_v21 = vld [vmem:[%s925_s23] sm:$0x8]  ;;  %v557_v22 = vld [vmem:[%s925_s23 + $0x4] sm:$0xf]  ;;  %v750_v26 = vcombine.low %v281_v18, %v172_v8  ;;  %v756_v28 = vcombine.low %v335_v10, %v392_v20 }
  0x15   : > { %v344_v19 = vrot.slane %v753_v12, 2  ;;  %v759_v29 = vcombine.low %v453_v21, %v392_v20  ;;  %v764_v30 = vcombine.low %v557_v22, %v558_v23  ;;  %v507_v49 = vld [vmem:[%s925_s23 + $0x4] sm:$0xf] }
  0x16   : > { %v185_v17 = vrot.slane %v183_v14, 1  ;;  %v287_v31 = vrot.slane %v750_v26, 1  ;;  %v399_v33 = vshrl.u32 %v756_v28, 16  ;;  %v402_v34 = vshll.u32 %v756_v28, 16  ;;  %v620_v50 = vld [vmem:[%s925_s23 + $0x4] sm:$0xe] }
  0x17   : > { %v459_v35 = vrot.slane %v759_v29, 3  ;;  %v569_v37 = vshll.u32 %v764_v30, 16  ;;  %v567_v42 = vshrl.u32 %v764_v30, 16  ;;  %v767_v52 = vcombine.low %v620_v50, %v558_v23  ;;  %v769_v30 = vld [vmem:[%s1003_s2] ss:$0 sm:$0xff] }
  0x18   : > { %v186_v24 = vor.u32 %v185_v17, %v181_v13  ;;  %v401_v40 = vrot.slane %v399_v33, 2  ;;  %v404_v41 = vrot.slane %v402_v34, 3 }
  0x19   : > { %v571_v43 = vrot.slane %v569_v37, 1  ;;  %v626_v53 = vrot.slane %v767_v52, 1 }
  0x1a   : > { %793 = vmatmul.mubr.msk.bf16.vlgmr.msra.gmra.mrb[0].mxu0 %vm187_vm2, %v186_v24  ;;  %811 = vmatmul.mubr.msk.bf16.vlgmr.msra.gmra.mrb[4].mxu1 %vm187_vm2, %v344_v19  ;;  %v405_v45 = vor.u32 %v404_v41, %v401_v40 }
  0x1b   : > { %803 = vmatpush3.bf16.msra.mxu0 %v292_v25  ;;  %804 = vmatprep.mubr.msk.bf16.mxu0 %vm871_vm1, %v870_v2  ;;  %v572_v46 = vor.u32 %v571_v43, %v567_v42 }
  0x1c   : > { %814 = vmatprep.subr.bf16.mxu0 %v870_v2  ;;  %821 = vmatpush3.bf16.msra.mxu1 %v464_v27 }
  0x1d   : > { %822 = vmatprep.mubr.msk.bf16.mxu1 %vm871_vm1, %v870_v2  ;;  %832 = vmatprep.subr.bf16.mxu1 %v870_v2 }
  0x22   : > { %805 = vmatmul.mubr.msk.bf16.vlgmr.msra.gmra.mrb[4].mxu0 %vm187_vm2, %v287_v31  ;;  %823 = vmatmul.mubr.msk.bf16.vlgmr.msra.gmra.mrb[8].mxu1 %vm187_vm2, %v459_v35 }
  0x23   : > { %815 = vmatpush3.bf16.msra.mxu0 %v410_v38  ;;  %816 = vmatprep.mubr.msk.bf16.mxu0 %vm871_vm1, %v870_v2 }
  0x24   : > { %826 = vmatprep.subr.bf16.mxu0 %v870_v2  ;;  %833 = vmatpush3.bf16.msra.mxu1 %v577_v39 }
  0x25   : > { %834 = vmatprep.mubr.msk.bf16.mxu1 %vm871_vm1, %v870_v2 }
  0x2a   : > { %817 = vmatmul.mubr.msk.bf16.vlgmr.msra.gmra.mrb[8].mxu0 %vm187_vm2, %v405_v45  ;;  %835 = vmatmul.mubr.msk.bf16.vlgmr.msra.gmra.mrb[12].mxu1 %vm187_vm2, %v572_v46 }
  0x2b   : > { %827 = vmatpush3.bf16.msra.mxu0 %v514_v47  ;;  %828 = vmatprep.mubr.msk.bf16.mxu0 %vm871_vm1, %v870_v2 }
  0x2c   : > { %838 = vmatprep.subr.bf16.mxu0 %v870_v2 }
  0x32   : > { %829 = vmatmul.mubr.msk.bf16.vlgmr.msra.gmra.mrb[12].mxu0 %vm187_vm2, %v507_v49 }
  0x33   : > { %839 = vmatpush3.bf16.msra.mxu0 %v631_v51  ;;  %840 = vmatprep.mubr.msk.bf16.mxu0 %vm871_vm1, %v870_v2 }
  0x3a   : > { %841 = vmatmul.mubr.msk.bf16.vlgmr.msra.gmra.mrb[16].mxu0 %vm187_vm2, %v626_v53 }
  0xe5   : > { %v275_v54 = vpop.f32.mrb[0].mxu1 }
  0xe6   : > { %v800_v55 = vpop.f32.mrb[1].mxu1 }
  0xe7   : > { %v278_v56 = vpop.f32.mrb[2].mxu1 }
  0xe8   : > { %v801_v57 = vpop.f32.mrb[3].mxu1 }
  0xed   : > { %v229_v58 = vpop.f32.mrb[0].mxu0  ;;  %v385_v59 = vpop.f32.mrb[4].mxu1 }
  0xee   : > { %v276_v60 = vadd.f32 %v275_v54, %v229_v58  ;;  %v794_v61 = vpop.f32.mrb[1].mxu0  ;;  %v812_v62 = vpop.f32.mrb[5].mxu1 }
  0xef   : > { %v232_v63 = vpop.f32.mrb[2].mxu0  ;;  %v388_v0 = vpop.f32.mrb[6].mxu1 }
  0xf0   : > { %v795_v1 = vpop.f32.mrb[3].mxu0  ;;  %v813_v3 = vpop.f32.mrb[7].mxu1 }
  0xf5   : > { %v328_v4 = vpop.f32.mrb[4].mxu0  ;;  %v500_v5 = vpop.f32.mrb[8].mxu1 }
  0xf6   : > { %v334_v6 = vadd.f32 %v328_v4, %v276_v60  ;;  %v806_v2 = vpop.f32.mrb[5].mxu0  ;;  %v824_v7 = vpop.f32.mrb[9].mxu1 }
  0xf7   : > { %v331_v8 = vpop.f32.mrb[6].mxu0  ;;  %v503_v9 = vpop.f32.mrb[10].mxu1 }
  0xf8   : > { %v391_v10 = vadd.f32 %v385_v59, %v334_v6  ;;  %v807_v11 = vpop.f32.mrb[7].mxu0  ;;  %v825_v12 = vpop.f32.mrb[11].mxu1 }
  0xfd   : > { %v446_v13 = vpop.f32.mrb[8].mxu0  ;;  %v613_v14 = vpop.f32.mrb[12].mxu1 }
  0xfe   : > { %v452_v15 = vadd.f32 %v446_v13, %v391_v10  ;;  %v818_v16 = vpop.f32.mrb[9].mxu0  ;;  %v836_v17 = vpop.f32.mrb[13].mxu1 }
  0xff   : > { %v449_v18 = vpop.f32.mrb[10].mxu0  ;;  %v616_v19 = vpop.f32.mrb[14].mxu1 }
 0x100   : > { %v506_v20 = vadd.f32 %v500_v5, %v452_v15  ;;  %v819_v21 = vpop.f32.mrb[11].mxu0  ;;  %v837_v22 = vpop.f32.mrb[15].mxu1 }
 0x105   : > { %v550_v23 = vpop.f32.mrb[12].mxu0 }
 0x106   : > { %v556_v24 = vadd.f32 %v550_v23, %v506_v20  ;;  %v830_v25 = vpop.f32.mrb[13].mxu0 }
 0x107   : > { %v553_v26 = vpop.f32.mrb[14].mxu0 }
 0x108   : > { %v619_v27 = vadd.f32 %v613_v14, %v556_v24  ;;  %v831_v28 = vpop.f32.mrb[15].mxu0 }
 0x10d   : > { %v667_v29 = vpop.f32.mrb[16].mxu0 }
 0x10e   : > { %v673_v31 = vadd.f32 %v667_v29, %v619_v27  ;;  %v842_v32 = vpop.f32.mrb[17].mxu0 }
 0x10f   : > { %v670_v33 = vpop.f32.mrb[18].mxu0 }
 0x110   : > { %v681_v34 = vadd.f32 %v769_v30, %v673_v31  ;;  %v843_v35 = vpop.f32.mrb[19].mxu0 }
 0x112   : > { %v682_v36 = vpack.c.bf16 %v681_v34, %v681_v34 }
 0x114   : > { %684 = vst.msk [vmem:[%s168_s16] sm:$0xf] %vm683_vm3, %v682_v36 }
 0x115 PF: > { %s13_s12 = sadd.s32 1, %s868_s12  }
 0x116   : > { %p10_p4 = scmp.ge.s32.totalorder %s13_s12, 4  }
 0x118   :  { %12 = sbr.rel (!%p10_p4) target bundleno = 1 (0x1), region = 70 }

// kernel: flownet_s_forward.15
= control target key start
LH: loop header
LB: loop body
LE: loop exit
PB: predicated region body
PF: predicated region fallthrough
CT: control target
= control target key end

     0   :  { %s1353_s12 = smov 0   ;;  %s1561_s0 = inlined_call_operand.vmem [shape: bf16[2,20,64], index: 0, kind: input, shape index: {}]   ;;  %s1562_s1 = inlined_call_operand.vmem [shape: bf16[9,64,128], index: 1, kind: input, shape index: {}]   ;;  %s1563_s2 = inlined_call_operand.vmem [shape: f32[1,128], index: 2, kind: input, shape index: {}]   ;;  %s1564_s3 = inlined_call_operand.vmem [shape: bf16[2,8,128], index: 3, kind: output, shape index: {}]  }
   0x1 LB: > { %s990_s13 = sadd.s32 4294967295, %s1329_s12   ;;  %p994_p0 = scmp.ge.s32.totalorder %s1329_s12, 1  ;;  %s1329_s12 = sphi %s1353_s12, %s13_s12  }
   0x2   : > { %p137_p1 = scmp.lt.s32.totalorder %s1329_s12, 3 }
   0x4   : > { %p138_p2 = pnand %p994_p0, %p137_p1 }
   0x5   : > { %v1280_v0 = vld [vmem:[%s1562_s1 + $0x20] sm:$0xff] (!%p138_p2)   ;;  %v1331_v1 = vmov (!%p138_p2), 0.0   ;;  %v1282_v3 = vld [vmem:[%s1562_s1 + $0x28] sm:$0xff] (!%p138_p2)   ;;  %vm1332_vm0 = vmmov (!%p138_p2), 0   ;;  %p160_p3 = scmp.lt.s32.totalorder (!%p138_p2), %s990_s13, 1  ;;  %v1284_v5 = vld [vmem:[%s1562_s1 + $0x30] sm:$0xff] (!%p138_p2)  }
   0x6   : > { %141 = sbr.rel (%p138_p2) target bundleno = 313 (0x139), region = 32  ;;  %1161 = vmatprep.subr.bf16.mxu0 (!%p138_p2), %v1331_v1  ;;  %1173 = vmatprep.subr.bf16.mxu1 (!%p138_p2), %v1331_v1  ;;  %v1281_v2 = vld [vmem:[%s1562_s1] sm:$0xff] (!%p138_p2)   ;;  %v1283_v4 = vld [vmem:[%s1562_s1 + $0x8] sm:$0xff] (!%p138_p2)   ;;  %v1285_v6 = vld [vmem:[%s1562_s1 + $0x10] sm:$0xff] (!%p138_p2)   ;;  %vm225_vm1 = vcmask (!%p138_p2), 523264  }
   0x7   : > { %1162 = vmatpush3.bf16.msra.mxu0 (!%p138_p2), %v1280_v0  ;;  %1169 = vmatprep.mubr.msk.bf16.mxu0 (!%p138_p2), %vm1332_vm0, %v1331_v1  ;;  %v1286_v9 = vld [vmem:[%s1562_s1 + $0x38] sm:$0xff] (!%p138_p2)   ;;  %v1289_v15 = vld [vmem:[%s1562_s1 + $0x40] sm:$0xff] (!%p138_p2)   ;;  %v1291_v18 = vld [vmem:[%s1562_s1 + $0x48] sm:$0xff] (!%p138_p2)  }
   0x8   : > { %1174 = vmatpush3.bf16.msra.mxu1 (!%p138_p2), %v1281_v2  ;;  %1163 = vmatprep.subr.bf16.mxu0 (!%p138_p2), %v1331_v1  ;;  %v1287_v11 = vld [vmem:[%s1562_s1 + $0x18] sm:$0xff] (!%p138_p2)   ;;  %v1290_v16 = vld [vmem:[%s1562_s1 + $0x60] sm:$0xff] (!%p138_p2)   ;;  %v1292_v19 = vld [vmem:[%s1562_s1 + $0x68] sm:$0xff] (!%p138_p2)  }
   0x9   : > { %1175 = vmatprep.subr.bf16.mxu1 (!%p138_p2), %v1331_v1  ;;  %1181 = vmatprep.mubr.msk.bf16.mxu1 (!%p138_p2), %vm1332_vm0, %v1331_v1  ;;  %v1293_v20 = vld [vmem:[%s1562_s1 + $0x50] sm:$0xff] (!%p138_p2)   ;;  %v1295_v25 = vld [vmem:[%s1562_s1 + $0x58] sm:$0xff] (!%p138_p2)   ;;  %v1298_v29 = vld [vmem:[%s1562_s1 + $0x80] sm:$0xff] (!%p138_p2)  }
   0xa   : > { %v1294_v21 = vld [vmem:[%s1562_s1 + $0x70] sm:$0xff] (!%p138_p2)   ;;  %v1296_v28 = vld [vmem:[%s1562_s1 + $0x78] sm:$0xff] (!%p138_p2)   ;;  %v1301_v33 = vld [vmem:[%s1562_s1 + $0xa0] sm:$0xff] (!%p138_p2)  }
   0xb   : > { %1164 = vmatpush3.bf16.msra.mxu0 (!%p138_p2), %v1282_v3  ;;  %v1302_v35 = vld [vmem:[%s1562_s1 + $0x88] sm:$0xff] (!%p138_p2)   ;;  %v1304_v39 = vld [vmem:[%s1562_s1 + $0x90] sm:$0xff] (!%p138_p2)   ;;  %v1306_v45 = vld [vmem:[%s1562_s1 + $0x98] sm:$0xff] (!%p138_p2)  }
   0xc   : > { %1176 = vmatpush3.bf16.msra.mxu1 (!%p138_p2), %v1283_v4  ;;  %1165 = vmatprep.subr.bf16.mxu0 (!%p138_p2), %v1331_v1  ;;  %v1303_v36 = vld [vmem:[%s1562_s1 + $0xa8] sm:$0xff] (!%p138_p2)   ;;  %v1305_v40 = vld [vmem:[%s1562_s1 + $0xb0] sm:$0xff] (!%p138_p2)   ;;  %v1307_v46 = vld [vmem:[%s1562_s1 + $0xb8] sm:$0xff] (!%p138_p2)  }
   0xd   : > { %s1566_s13 = smov (!%p160_p3, %s990_s13), 1  ;;  %1177 = vmatprep.subr.bf16.mxu1 %v1331_v1  ;;  %v1308_v48 = vld [vmem:[%s1562_s1 + $0xc0] sm:$0xff]   ;;  %v1311_v54 = vld [vmem:[%s1562_s1 + $0xc8] sm:$0xff]   ;;  %v1313_v57 = vld [vmem:[%s1562_s1 + $0xd0] sm:$0xff]  }
   0xe   : > { %s1269_s24 = smul.u32 12, %s1566_s13  ;;  %v1310_v50 = vld [vmem:[%s1562_s1 + $0xe0] sm:$0xff]   ;;  %v1312_v55 = vld [vmem:[%s1562_s1 + $0xe8] sm:$0xff]   ;;  %v1314_v58 = vld [vmem:[%s1562_s1 + $0xf0] sm:$0xff]   ;;  %s996_s18 = sshll.u32 %s1566_s13, 2 }
   0xf   : > { %1166 = vmatpush3.bf16.msra.mxu0 %v1284_v5  ;;  %v1315_v61 = vld [vmem:[%s1562_s1 + $0xd8] sm:$0xff]   ;;  %v1317_v2 = vld [vmem:[%s1562_s1 + $0x100] sm:$0xff]   ;;  %v1319_v3 = vld [vmem:[%s1562_s1 + $0x108] sm:$0xff]   ;;  %s168_s21 = scalar_lea.vmem %s1564_s3, %s996_s18 }
  0x10   : > { %s1395_s29 = scalar_lea.vmem %s1561_s0, %s1269_s24  ;;  %1178 = vmatpush3.bf16.msra.mxu1 %v1285_v6  ;;  %1167 = vmatprep.subr.bf16.mxu0 %v1331_v1  ;;  %v1316_v62 = vld [vmem:[%s1562_s1 + $0xf8] sm:$0xff]   ;;  %v1320_v4 = vld [vmem:[%s1562_s1 + $0x110] sm:$0xff]  }
  0x11   : > { %v170_v7 = vld [vmem:[%s1395_s29] sm:$0xf]  ;;  %v179_v8 = vld [vmem:[%s1395_s29 + $0x4] sm:$0x1]  ;;  %1179 = vmatprep.subr.bf16.mxu1 %v1331_v1  ;;  %v753_v52 = vld [vmem:[%s1395_s29 + $0x8] sm:$0x1] }
  0x12   : > { %v1005_v10 = vcombine.low %v170_v7, %v179_v8  ;;  %v336_v22 = vld [vmem:[%s1395_s29] sm:$0xe]  ;;  %v419_v24 = vld [vmem:[%s1395_s29 + $0x4] sm:$0x3] }
  0x13   : > { %1168 = vmatpush3.bf16.msra.mxu0 %v1286_v9  ;;  %v418_v23 = vld [vmem:[%s1395_s29] sm:$0xc]  ;;  %v1024_v26 = vcombine.low %v336_v22, %v179_v8  ;;  %v503_v30 = vld [vmem:[%s1395_s29 + $0x4] sm:$0x7] }
  0x14   : > { %v195_v12 = vshrl.u32 %v1005_v10, 16  ;;  %v197_v13 = vshll.u32 %v1005_v10, 16  ;;  %1180 = vmatpush3.bf16.msra.mxu1 %v1287_v11  ;;  %1185 = vmatprep.subr.bf16.mxu0 %v1331_v1  ;;  %v1038_v27 = vcombine.low %v418_v23, %v419_v24  ;;  %v1052_v34 = vcombine.low %v418_v23, %v503_v30  ;;  %v592_v41 = vld [vmem:[%s1395_s29] sm:$0x8]  ;;  %v752_v51 = vld [vmem:[%s1395_s29 + $0x4] sm:$0xf] }
  0x15   : > { %1197 = vmatprep.subr.bf16.mxu1 %v1331_v1  ;;  %v349_v31 = vrot.slane %v1024_v26, 1  ;;  %v1066_v44 = vcombine.low %v592_v41, %v503_v30  ;;  %v1093_v53 = vcombine.low %v752_v51, %v753_v52  ;;  %v674_v0 = vld [vmem:[%s1395_s29 + $0x4] sm:$0xf] }
  0x16   : > { %v199_v14 = vrot.slane %v197_v13, 1  ;;  %v434_v32 = vrot.slane %v1038_v27, 2  ;;  %v517_v37 = vshrl.u32 %v1052_v34, 16  ;;  %v520_v38 = vshll.u32 %v1052_v34, 16  ;;  %v843_v5 = vld [vmem:[%s1395_s29 + $0x4] sm:$0xe] }
  0x17   : > { %1182 = vmatmul.mubr.msk.bf16.vlgmr.msra.gmra.mrb[0].mxu1 %vm225_vm1, %v170_v7  ;;  %v605_v49 = vrot.slane %v1066_v44, 3  ;;  %v771_v56 = vshll.u32 %v1093_v53, 16  ;;  %v769_v59 = vshrl.u32 %v1093_v53, 16  ;;  %v1107_v6 = vcombine.low %v843_v5, %v753_v52  ;;  %v1321_v7 = vld [vmem:[%s1562_s1 + $0x118] sm:$0xff]  }
  0x18   : > { %v200_v17 = vor.u32 %v199_v14, %v195_v12  ;;  %1198 = vmatpush3.bf16.msra.mxu1 %v1290_v16  ;;  %1205 = vmatprep.mubr.msk.bf16.mxu1 %vm1332_vm0, %v1331_v1  ;;  %v519_v42 = vrot.slane %v517_v37, 2  ;;  %v522_v43 = vrot.slane %v520_v38, 3 }
  0x19   : > { %1199 = vmatprep.subr.bf16.mxu1 %v1331_v1  ;;  %v773_v60 = vrot.slane %v771_v56, 1  ;;  %v856_v8 = vrot.slane %v1107_v6, 1 }
  0x1a   : > { %1170 = vmatmul.mubr.msk.bf16.vlgmr.msra.gmra.mrb[0].mxu0 %vm225_vm1, %v200_v17  ;;  %v523_v47 = vor.u32 %v522_v43, %v519_v42 }
  0x1b   : > { %1186 = vmatpush3.bf16.msra.mxu0 %v1289_v15  ;;  %1193 = vmatprep.mubr.msk.bf16.mxu0 %vm1332_vm0, %v1331_v1  ;;  %v774_v63 = vor.u32 %v773_v60, %v769_v59 }
  0x1c   : > { %1187 = vmatprep.subr.bf16.mxu0 %v1331_v1  ;;  %1200 = vmatpush3.bf16.msra.mxu1 %v1292_v19 }
  0x1d   : > { %1201 = vmatprep.subr.bf16.mxu1 %v1331_v1 }
  0x1f   : > { %1188 = vmatpush3.bf16.msra.mxu0 %v1291_v18 }
  0x20   : > { %1189 = vmatprep.subr.bf16.mxu0 %v1331_v1  ;;  %1202 = vmatpush3.bf16.msra.mxu1 %v1294_v21 }
  0x21   : > { %1203 = vmatprep.subr.bf16.mxu1 %v1331_v1 }
  0x23   : > { %1190 = vmatpush3.bf16.msra.mxu0 %v1293_v20 }
  0x24   : > { %1191 = vmatprep.subr.bf16.mxu0 %v1331_v1  ;;  %1204 = vmatpush3.bf16.msra.mxu1 %v1296_v28 }
  0x25   : > { %1221 = vmatprep.subr.bf16.mxu1 %v1331_v1 }
  0x27   : > { %1192 = vmatpush3.bf16.msra.mxu0 %v1295_v25  ;;  %1206 = vmatmul.mubr.msk.bf16.vlgmr.msra.gmra.mrb[4].mxu1 %vm225_vm1, %v434_v32 }
  0x28   : > { %1209 = vmatprep.subr.bf16.mxu0 %v1331_v1  ;;  %1222 = vmatpush3.bf16.msra.mxu1 %v1301_v33 }
  0x29   : > { %1223 = vmatprep.subr.bf16.mxu1 %v1331_v1  ;;  %1229 = vmatprep.mubr.msk.bf16.mxu1 %vm1332_vm0, %v1331_v1 }
  0x2a   : > { %1194 = vmatmul.mubr.msk.bf16.vlgmr.msra.gmra.mrb[4].mxu0 %vm225_vm1, %v349_v31 }
  0x2b   : > { %1210 = vmatpush3.bf16.msra.mxu0 %v1298_v29  ;;  %1217 = vmatprep.mubr.msk.bf16.mxu0 %vm1332_vm0, %v1331_v1 }
  0x2c   : > { %1211 = vmatprep.subr.bf16.mxu0 %v1331_v1  ;;  %1224 = vmatpush3.bf16.msra.mxu1 %v1303_v36 }
  0x2d   : > { %1225 = vmatprep.subr.bf16.mxu1 %v1331_v1 }
  0x2f   : > { %1212 = vmatpush3.bf16.msra.mxu0 %v1302_v35 }
  0x30   : > { %1213 = vmatprep.subr.bf16.mxu0 %v1331_v1  ;;  %1226 = vmatpush3.bf16.msra.mxu1 %v1305_v40 }
  0x31   : > { %1227 = vmatprep.subr.bf16.mxu1 %v1331_v1 }
  0x33   : > { %1214 = vmatpush3.bf16.msra.mxu0 %v1304_v39 }
  0x34   : > { %1215 = vmatprep.subr.bf16.mxu0 %v1331_v1  ;;  %1228 = vmatpush3.bf16.msra.mxu1 %v1307_v46 }
  0x35   : > { %1245 = vmatprep.subr.bf16.mxu1 %v1331_v1 }
  0x37   : > { %1216 = vmatpush3.bf16.msra.mxu0 %v1306_v45  ;;  %1230 = vmatmul.mubr.msk.bf16.vlgmr.msra.gmra.mrb[8].mxu1 %vm225_vm1, %v605_v49 }
  0x38   : > { %1233 = vmatprep.subr.bf16.mxu0 %v1331_v1  ;;  %1246 = vmatpush3.bf16.msra.mxu1 %v1310_v50 }
  0x39   : > { %1247 = vmatprep.subr.bf16.mxu1 %v1331_v1  ;;  %1253 = vmatprep.mubr.msk.bf16.mxu1 %vm1332_vm0, %v1331_v1 }
  0x3a   : > { %1218 = vmatmul.mubr.msk.bf16.vlgmr.msra.gmra.mrb[8].mxu0 %vm225_vm1, %v523_v47 }
  0x3b   : > { %1234 = vmatpush3.bf16.msra.mxu0 %v1308_v48  ;;  %1241 = vmatprep.mubr.msk.bf16.mxu0 %vm1332_vm0, %v1331_v1  ;;  %v1113_v48 = vld [vmem:[%s1563_s2] ss:$0 sm:$0xff] }
  0x3c   : > { %1235 = vmatprep.subr.bf16.mxu0 %v1331_v1  ;;  %1248 = vmatpush3.bf16.msra.mxu1 %v1312_v55 }
  0x3d   : > { %1249 = vmatprep.subr.bf16.mxu1 %v1331_v1 }
  0x3f   : > { %1236 = vmatpush3.bf16.msra.mxu0 %v1311_v54 }
  0x40   : > { %1237 = vmatprep.subr.bf16.mxu0 %v1331_v1  ;;  %1250 = vmatpush3.bf16.msra.mxu1 %v1314_v58 }
  0x41   : > { %1251 = vmatprep.subr.bf16.mxu1 %v1331_v1 }
  0x43   : > { %1238 = vmatpush3.bf16.msra.mxu0 %v1313_v57 }
  0x44   : > { %1239 = vmatprep.subr.bf16.mxu0 %v1331_v1  ;;  %1252 = vmatpush3.bf16.msra.mxu1 %v1316_v62 }
  0x47   : > { %1240 = vmatpush3.bf16.msra.mxu0 %v1315_v61  ;;  %1254 = vmatmul.mubr.msk.bf16.vlgmr.msra.gmra.mrb[12].mxu1 %vm225_vm1, %v774_v63 }
  0x48   : > { %1257 = vmatprep.subr.bf16.mxu0 %v1331_v1 }
  0x4a   : > { %1242 = vmatmul.mubr.msk.bf16.vlgmr.msra.gmra.mrb[12].mxu0 %vm225_vm1, %v674_v0 }
  0x4b   : > { %1258 = vmatpush3.bf16.msra.mxu0 %v1317_v2  ;;  %1265 = vmatprep.mubr.msk.bf16.mxu0 %vm1332_vm0, %v1331_v1 }
  0x4c   : > { %1259 = vmatprep.subr.bf16.mxu0 %v1331_v1 }
  0x4f   : > { %1260 = vmatpush3.bf16.msra.mxu0 %v1319_v3 }
  0x50   : > { %1261 = vmatprep.subr.bf16.mxu0 %v1331_v1 }
  0x53   : > { %1262 = vmatpush3.bf16.msra.mxu0 %v1320_v4 }
  0x54   : > { %1263 = vmatprep.subr.bf16.mxu0 %v1331_v1 }
  0x57   : > { %1264 = vmatpush3.bf16.msra.mxu0 %v1321_v7 }
  0x5a   : > { %1266 = vmatmul.mubr.msk.bf16.vlgmr.msra.gmra.mrb[16].mxu0 %vm225_vm1, %v856_v8 }
  0xea   : > { %v330_v10 = vpop.f32.mrb[0].mxu1 }
  0xeb   : > { %v1183_v13 = vpop.f32.mrb[1].mxu1 }
  0xec   : > { %v333_v15 = vpop.f32.mrb[2].mxu1 }
  0xed   : > { %v263_v9 = vpop.f32.mrb[0].mxu0  ;;  %v1184_v17 = vpop.f32.mrb[3].mxu1 }
  0xee   : > { %v1171_v11 = vpop.f32.mrb[1].mxu0  ;;  %v331_v12 = vadd.f32 %v330_v10, %v263_v9 }
  0xef   : > { %v266_v14 = vpop.f32.mrb[2].mxu0 }
  0xf0   : > { %v1172_v16 = vpop.f32.mrb[3].mxu0 }
  0xfa   : > { %v496_v19 = vpop.f32.mrb[4].mxu1 }
  0xfb   : > { %v1207_v22 = vpop.f32.mrb[5].mxu1 }
  0xfc   : > { %v499_v1 = vpop.f32.mrb[6].mxu1 }
  0xfd   : > { %v411_v18 = vpop.f32.mrb[4].mxu0  ;;  %v1208_v26 = vpop.f32.mrb[7].mxu1 }
  0xfe   : > { %v417_v20 = vadd.f32 %v411_v18, %v331_v12  ;;  %v1195_v21 = vpop.f32.mrb[5].mxu0 }
  0xff   : > { %v414_v23 = vpop.f32.mrb[6].mxu0 }
 0x100   : > { %v502_v24 = vadd.f32 %v496_v19, %v417_v20  ;;  %v1196_v25 = vpop.f32.mrb[7].mxu0 }
 0x10a   : > { %v667_v28 = vpop.f32.mrb[8].mxu1 }
 0x10b   : > { %v1231_v31 = vpop.f32.mrb[9].mxu1 }
 0x10c   : > { %v670_v33 = vpop.f32.mrb[10].mxu1 }
 0x10d   : > { %v585_v27 = vpop.f32.mrb[8].mxu0  ;;  %v1232_v36 = vpop.f32.mrb[11].mxu1 }
 0x10e   : > { %v591_v29 = vadd.f32 %v585_v27, %v502_v24  ;;  %v1219_v30 = vpop.f32.mrb[9].mxu0 }
 0x10f   : > { %v588_v32 = vpop.f32.mrb[10].mxu0 }
 0x110   : > { %v673_v34 = vadd.f32 %v667_v28, %v591_v29  ;;  %v1220_v35 = vpop.f32.mrb[11].mxu0 }
 0x11a   : > { %v836_v38 = vpop.f32.mrb[12].mxu1 }
 0x11b   : > { %v1255_v41 = vpop.f32.mrb[13].mxu1 }
 0x11c   : > { %v839_v43 = vpop.f32.mrb[14].mxu1 }
 0x11d   : > { %v745_v37 = vpop.f32.mrb[12].mxu0  ;;  %v1256_v46 = vpop.f32.mrb[15].mxu1 }
 0x11e   : > { %v751_v39 = vadd.f32 %v745_v37, %v673_v34  ;;  %v1243_v40 = vpop.f32.mrb[13].mxu0 }
 0x11f   : > { %v748_v42 = vpop.f32.mrb[14].mxu0 }
 0x120   : > { %v842_v44 = vadd.f32 %v836_v38, %v751_v39  ;;  %v1244_v45 = vpop.f32.mrb[15].mxu0 }
 0x12d   : > { %v918_v47 = vpop.f32.mrb[16].mxu0 }
 0x12e   : > { %v924_v49 = vadd.f32 %v918_v47, %v842_v44  ;;  %v1267_v50 = vpop.f32.mrb[17].mxu0 }
 0x12f   : > { %v921_v51 = vpop.f32.mrb[18].mxu0 }
 0x130   : > { %v932_v52 = vadd.f32 %v1113_v48, %v924_v49  ;;  %v1268_v53 = vpop.f32.mrb[19].mxu0 }
 0x132   : > { %v933_v54 = vmul.f32 0.1, %v932_v52 }
 0x134   : > { %v934_v55 = vmax.f32 %v932_v52, %v933_v54 }
 0x136   : > { %v935_v56 = vpack.c.bf16 %v934_v55, %v934_v55 }
 0x138   : > { %936 = vst [vmem:[%s168_s21] sm:$0xf] %v935_v56 }
 0x139 PF: > { %s13_s12 = sadd.s32 1, %s1329_s12  }
 0x13a   : > { %p10_p4 = scmp.ge.s32.totalorder %s13_s12, 4  }
 0x13c   :  { %12 = sbr.rel (!%p10_p4) target bundleno = 1 (0x1), region = 70 }

// kernel: flownet_s_forward.17
= control target key start
LH: loop header
LB: loop body
LE: loop exit
PB: predicated region body
PF: predicated region fallthrough
CT: control target
= control target key end

     0   :  { %s1124_s12 = smov 0   ;;  %s1259_s0 = inlined_call_operand.vmem [shape: bf16[2,42,2], index: 0, kind: input, shape index: {}]   ;;  %s1260_s1 = inlined_call_operand.vmem [shape: bf16[9,2,8], index: 1, kind: input, shape index: {}]   ;;  %s1261_s2 = inlined_call_operand.vmem [shape: f32[1,8], index: 2, kind: input, shape index: {}]   ;;  %s1262_s3 = inlined_call_operand.vmem [shape: bf16[2,24,8], index: 3, kind: output, shape index: {}]  }
   0x1 LB: > { %s928_s13 = sadd.s32 4294967295, %s1102_s12   ;;  %p932_p0 = scmp.ge.s32.totalorder %s1102_s12, 1  ;;  %s1102_s12 = sphi %s1124_s12, %s13_s12  }
   0x2   : > { %p137_p1 = scmp.lt.s32.totalorder %s1102_s12, 3 }
   0x4   : > { %p138_p2 = pnand %p932_p0, %p137_p1 }
   0x5   : > { %v935_v0 = vld [vmem:[%s1260_s1 + $0x1] sm:$0x1] (!%p138_p2)  ;;  %vm212_vm0 = vcmask (!%p138_p2), 1040384   ;;  %v175_v1 = vld [vmem:[%s1260_s1] sm:$0x1] (!%p138_p2)  ;;  %p161_p3 = scmp.lt.s32.totalorder (!%p138_p2), %s928_s13, 1 }
   0x6   : > { %141 = sbr.rel (%p138_p2) target bundleno = 282 (0x11a), region = 32  ;;  %1064 = vmatprep.subr.msk.bf16.mxu0 (!%p138_p2), %vm212_vm0, %v935_v0  ;;  %v214_v2 = vsel (!%p138_p2), %vm212_vm0, %v935_v0, 0  ;;  %1065 = vmatprep.subr.msk.bf16.mxu1 (!%p138_p2), %vm212_vm0, %v175_v1  ;;  %v271_v3 = vsel (!%p138_p2), %vm212_vm0, %v175_v1, 0  ;;  %v943_v4 = vld [vmem:[%s1260_s1 + $0x2] sm:$0x1] (!%p138_p2)  ;;  %vm205_vm2 = vcmask (!%p138_p2), 15360  }
   0x7   : > { %1011 = vmatpush3.bf16.msra.mxu0 (!%p138_p2), %v214_v2  ;;  %1017 = vmatpush3.bf16.msra.mxu1 (!%p138_p2), %v271_v3  ;;  %v947_v5 = vld [vmem:[%s1260_s1 + $0x3] sm:$0x1] (!%p138_p2)  ;;  %vm189_vm1 = vsmask.f32 (!%p138_p2), 7424  ;;  %vm327_vm3 = vcmask (!%p138_p2), 1046528   ;;  %vm401_vm4 = vcmask (!%p138_p2), 1044480  }
   0x8   : > { %1066 = vmatprep.subr.msk.bf16.mxu0 (!%p138_p2), %vm212_vm0, %v943_v4  ;;  %1067 = vmatprep.subr.msk.bf16.mxu1 (!%p138_p2), %vm212_vm0, %v947_v5  ;;  %v412_v6 = vsel (!%p138_p2), %vm212_vm0, %v947_v5, 0  ;;  %v956_v23 = vld [vmem:[%s1260_s1 + $0x5] sm:$0x1] (!%p138_p2)  ;;  %v338_v39 = vsel (!%p138_p2), %vm212_vm0, %v943_v4, 0  ;;  %v952_v52 = vld [vmem:[%s1260_s1 + $0x4] sm:$0x1] (!%p138_p2) }
   0x9   : > { %v560_v55 = vsel (!%p138_p2), %vm212_vm0, %v956_v23, 0  ;;  %v966_v57 = vld [vmem:[%s1260_s1 + $0x7] sm:$0x1] (!%p138_p2)  ;;  %vm471_vm5 = vsmask.f32 (!%p138_p2), 4352  ;;  %vm629_vm7 = vcmask (!%p138_p2), 1045504  }
   0xa   : > { %vm699_vm6 = vsmask.f32 (!%p138_p2), 5376  ;;  %vm869_vm8 = vcmask (!%p138_p2), 60416  }
   0xd   : > { %s1264_s13 = smov (!%p161_p3, %s928_s13), 1 }
   0xe   : > { %s1073_s22 = smul.u32 24, %s1264_s13 }
   0xf   : > { %s1074_s9 = smul.u32 12, %s1264_s13 }
  0x10   : > { %s1156_s25 = scalar_lea.vmem %s1259_s0, %s1073_s22 }
  0x11   : > { %v172_v7 = vld [vmem:[%s1156_s25] sm:$0xf]  ;;  %v1161_v8 = vld [vmem:[%s1156_s25 + $0x4] sm:$0xf]  ;;  %v1164_v9 = vld [vmem:[%s1156_s25 + $0x8] sm:$0xf]  ;;  %s170_s16 = scalar_lea.vmem %s1262_s3, %s1074_s9 }
  0x12   : > { %v176_v10 = vld [vmem:[%s1156_s25 + $0xc] sm:$0x1]  ;;  %v936_v11 = vcombine.low %v172_v7, %v1161_v8  ;;  %v940_v12 = vcombine.low %v1164_v9, %v1164_v9  ;;  %v321_v13 = vld [vmem:[%s1156_s25] sm:$0xe]  ;;  %v613_v33 = vld [vmem:[%s1156_s25 + $0x4] sm:$0xc]  ;;  %v957_v53 = vcombine.low %v1161_v8, %v1164_v9 }
  0x13   : > { %v391_v14 = vld [vmem:[%s1156_s25] sm:$0x8]  ;;  %v1173_v15 = vcombine.low %v1164_v9, %v176_v10  ;;  %v944_v16 = vcombine.low %v321_v13, %v1161_v8  ;;  %v392_v17 = vld [vmem:[%s1156_s25 + $0xc] sm:$0x7]  ;;  %v1195_v37 = vld [vmem:[%s1156_s25 + $0x8] sm:$0xf] }
  0x14   : > { %v948_v18 = vcombine.low %v391_v14, %v1161_v8  ;;  %v1179_v19 = vld [vmem:[%s1156_s25 + $0xc] sm:$0xf]  ;;  %v191_v20 = vshrl.u32 %v936_v11, 16  ;;  %v193_v21 = vshll.u32 %v936_v11, 16  ;;  %1018 = vmatprep.mubr.msk.bf16.mxu1 %vm205_vm2, %v936_v11  ;;  %v949_v22 = vcombine.low %v1164_v9, %v392_v17  ;;  %v693_v43 = vld [vmem:[%s1156_s25 + $0x10] sm:$0x7] }
  0x15   : > { %v953_v24 = vcombine.low %v1164_v9, %v1179_v19  ;;  %v198_v25 = vshll.u32 %v1173_v15, 16  ;;  %v202_v26 = vshrl.u32 %v1173_v15, 16  ;;  %1019 = vmatmul.mubr.msk.bf16.vlgmr.msra.gmra.mrb[0].mxu1 %vm205_vm2, %v940_v12  ;;  %v328_v27 = vrot.slane %v944_v16, 1  ;;  %v615_v42 = vld [vmem:[%s1156_s25 + $0xc] sm:$0xf] }
  0x16   : > { %v329_v28 = vrot.slane %v1173_v15, 1  ;;  %v195_v29 = vrot.slane %v193_v21, 1  ;;  %1029 = vmatpush3.bf16.msra.mxu1 %v412_v6  ;;  %v402_v30 = vrot.slane %v948_v18, 3  ;;  %v403_v31 = vrot.slane %v949_v22, 3  ;;  %v616_v0 = vld [vmem:[%s1156_s25 + $0x10] sm:$0x3] }
  0x17   : > { %v473_v32 = vshrl.u32 %v948_v18, 16  ;;  %v200_v34 = vrot.slane %v198_v25, 1  ;;  %1069 = vmatprep.subr.msk.bf16.mxu1 %vm212_vm0, %v956_v23  ;;  %v476_v35 = vshll.u32 %v948_v18, 16  ;;  %v481_v36 = vshrl.u32 %v953_v24, 16  ;;  %v961_v10 = vld [vmem:[%s1260_s1 + $0x6] sm:$0x1] }
  0x18   : > { %v196_v38 = vor.u32 %v195_v29, %v191_v20  ;;  %v404_v40 = vsel %vm401_vm4, %v402_v30, %v403_v31  ;;  %v484_v41 = vshll.u32 %v953_v24, 16  ;;  %v330_v45 = vsel %vm327_vm3, %v328_v27, %v329_v28  ;;  %v777_v15 = vld [vmem:[%s1156_s25 + $0x4] sm:$0x8] }
  0x19   : > { %v204_v44 = vor.u32 %v202_v26, %v200_v34  ;;  %1030 = vmatprep.mubr.msk.bf16.mxu1 %vm205_vm2, %v404_v40  ;;  %v475_v46 = vrot.slane %v473_v32, 3  ;;  %v478_v47 = vrot.slane %v476_v35, 4  ;;  %v483_v49 = vrot.slane %v481_v36, 3 }
  0x1a   : > { %v201_v48 = vsel %vm189_vm1, %v196_v38, %v200_v34  ;;  %v486_v50 = vrot.slane %v484_v41, 4  ;;  %v962_v51 = vcombine.low %v613_v33, %v1195_v37  ;;  %v967_v54 = vcombine.low %v615_v42, %v693_v43 }
  0x1b   : > { %1012 = vmatprep.mubr.msk.bf16.mxu0 %vm205_vm2, %v201_v48  ;;  %v479_v61 = vor.u32 %v478_v47, %v475_v46  ;;  %v496_v6 = vsel %vm212_vm0, %v952_v52, 0  ;;  %v958_v8 = vcombine.low %v1179_v19, %v1179_v19  ;;  %v963_v9 = vcombine.low %v615_v42, %v616_v0  ;;  %v970_v19 = vld [vmem:[%s1260_s1 + $0x8] sm:$0x1] }
  0x1c   : > { %1013 = vmatmul.mubr.msk.bf16.vlgmr.msra.gmra.mrb[0].mxu0 %vm205_vm2, %v204_v44  ;;  %v701_v56 = vshrl.u32 %v962_v51, 16  ;;  %v704_v58 = vshll.u32 %v962_v51, 16  ;;  %v709_v59 = vshrl.u32 %v967_v54, 16  ;;  %v712_v60 = vshll.u32 %v967_v54, 16 }
  0x1d   : > { %1023 = vmatpush3.bf16.msra.mxu0 %v338_v39  ;;  %1024 = vmatprep.mubr.msk.bf16.mxu0 %vm205_vm2, %v330_v45  ;;  %v487_v62 = vor.u32 %v486_v50, %v483_v49  ;;  %v724_v11 = vsel %vm212_vm0, %v966_v57, 0  ;;  %v630_v13 = vrot.slane %v962_v51, 2  ;;  %v631_v14 = vrot.slane %v963_v9, 2 }
  0x1e   : > { %1068 = vmatprep.subr.msk.bf16.mxu0 %vm212_vm0, %v952_v52  ;;  %1031 = vmatmul.mubr.msk.bf16.vlgmr.msra.gmra.mrb[4].mxu1 %vm205_vm2, %v403_v31  ;;  %v703_v63 = vrot.slane %v701_v56, 2  ;;  %v706_v1 = vrot.slane %v704_v58, 3  ;;  %v711_v2 = vrot.slane %v709_v59, 2  ;;  %v714_v3 = vrot.slane %v712_v60, 3 }
  0x1f   : > { %1041 = vmatpush3.bf16.msra.mxu1 %v560_v55  ;;  %1042 = vmatprep.mubr.msk.bf16.mxu1 %vm205_vm2, %v957_v53  ;;  %v488_v7 = vsel %vm471_vm5, %v479_v61, %v487_v62  ;;  %v640_v16 = vsel %vm212_vm0, %v961_v10, 0  ;;  %v632_v17 = vsel %vm629_vm7, %v630_v13, %v631_v14  ;;  %v971_v18 = vcombine.low %v777_v15, %v1195_v37 }
  0x20   : > { %1071 = vmatprep.subr.msk.bf16.mxu1 %vm212_vm0, %v966_v57  ;;  %v707_v4 = vor.u32 %v706_v1, %v703_v63  ;;  %v715_v5 = vor.u32 %v714_v3, %v711_v2  ;;  %v784_v21 = vrot.slane %v967_v54, 3  ;;  %v793_v22 = vsel %vm212_vm0, %v970_v19, 0 }
  0x21   : > { %v783_v20 = vrot.slane %v971_v18, 3 }
  0x22   : > { %v716_v12 = vsel %vm699_vm6, %v707_v4, %v715_v5 }
  0x23   : > { %v785_v23 = vsel %vm401_vm4, %v783_v20, %v784_v21 }
  0x24   : > { %1025 = vmatmul.mubr.msk.bf16.vlgmr.msra.gmra.mrb[4].mxu0 %vm205_vm2, %v329_v28 }
  0x25   : > { %1035 = vmatpush3.bf16.msra.mxu0 %v496_v6  ;;  %1036 = vmatprep.mubr.msk.bf16.mxu0 %vm205_vm2, %v488_v7 }
  0x26   : > { %1070 = vmatprep.subr.msk.bf16.mxu0 %vm212_vm0, %v961_v10  ;;  %1043 = vmatmul.mubr.msk.bf16.vlgmr.msra.gmra.mrb[8].mxu1 %vm205_vm2, %v958_v8 }
  0x27   : > { %1053 = vmatpush3.bf16.msra.mxu1 %v724_v11  ;;  %1054 = vmatprep.mubr.msk.bf16.mxu1 %vm205_vm2, %v716_v12 }
  0x2c   : > { %1037 = vmatmul.mubr.msk.bf16.vlgmr.msra.gmra.mrb[8].mxu0 %vm205_vm2, %v487_v62 }
  0x2d   : > { %1047 = vmatpush3.bf16.msra.mxu0 %v640_v16  ;;  %1048 = vmatprep.mubr.msk.bf16.mxu0 %vm205_vm2, %v632_v17 }
  0x2e   : > { %1072 = vmatprep.subr.msk.bf16.mxu0 %vm212_vm0, %v970_v19  ;;  %1055 = vmatmul.mubr.msk.bf16.vlgmr.msra.gmra.mrb[12].mxu1 %vm205_vm2, %v715_v5 }
  0x34   : > { %1049 = vmatmul.mubr.msk.bf16.vlgmr.msra.gmra.mrb[12].mxu0 %vm205_vm2, %v631_v14  ;;  %v974_v14 = vld [vmem:[%s1261_s2] ss:$0 sm:$0xff] }
  0x35   : > { %1059 = vmatpush3.bf16.msra.mxu0 %v793_v22  ;;  %1060 = vmatprep.mubr.msk.bf16.mxu0 %vm205_vm2, %v785_v23 }
  0x3c   : > { %1061 = vmatmul.mubr.msk.bf16.vlgmr.msra.gmra.mrb[16].mxu0 %vm205_vm2, %v784_v21 }
  0xe8   : > { %v1020_v24 = vpop.f32.mrb[0].mxu1 }
  0xe9   : > { %v307_v25 = vpop.f32.mrb[1].mxu1 }
  0xea   : > { %v1021_v26 = vpop.f32.mrb[2].mxu1 }
  0xeb   : > { %v310_v27 = vpop.f32.mrb[3].mxu1 }
  0xef   : > { %v1014_v28 = vpop.f32.mrb[0].mxu0 }
  0xf0   : > { %v316_v29 = vadd.f32 %v1020_v24, %v1014_v28  ;;  %v250_v30 = vpop.f32.mrb[1].mxu0 }
  0xf1   : > { %v308_v31 = vadd.f32 %v307_v25, %v250_v30  ;;  %v1015_v32 = vpop.f32.mrb[2].mxu0  ;;  %v1032_v33 = vpop.f32.mrb[4].mxu1 }
  0xf2   : > { %v253_v34 = vpop.f32.mrb[3].mxu0  ;;  %v448_v35 = vpop.f32.mrb[5].mxu1 }
  0xf3   : > { %v311_v36 = vadd.f32 %v310_v27, %v253_v34  ;;  %v1033_v37 = vpop.f32.mrb[6].mxu1 }
  0xf4   : > { %v451_v38 = vpop.f32.mrb[7].mxu1 }
  0xf7   : > { %v1026_v39 = vpop.f32.mrb[4].mxu0 }
  0xf8   : > { %v390_v40 = vadd.f32 %v1026_v39, %v316_v29  ;;  %v374_v41 = vpop.f32.mrb[5].mxu0 }
  0xf9   : > { %v388_v42 = vadd.f32 %v374_v41, %v308_v31  ;;  %v1027_v43 = vpop.f32.mrb[6].mxu0  ;;  %v1044_v44 = vpop.f32.mrb[8].mxu1 }
  0xfa   : > { %v464_v45 = vadd.f32 %v1032_v33, %v390_v40  ;;  %v377_v46 = vpop.f32.mrb[7].mxu0  ;;  %v596_v47 = vpop.f32.mrb[9].mxu1 }
  0xfb   : > { %v389_v48 = vadd.f32 %v377_v46, %v311_v36  ;;  %v462_v49 = vadd.f32 %v448_v35, %v388_v42  ;;  %v1045_v50 = vpop.f32.mrb[10].mxu1 }
  0xfc   : > { %v599_v51 = vpop.f32.mrb[11].mxu1 }
  0xfd   : > { %v463_v52 = vadd.f32 %v451_v38, %v389_v48 }
  0xff   : > { %v1038_v53 = vpop.f32.mrb[8].mxu0 }
 0x100   : > { %v548_v54 = vadd.f32 %v1038_v53, %v464_v45  ;;  %v532_v55 = vpop.f32.mrb[9].mxu0 }
 0x101   : > { %v546_v56 = vadd.f32 %v532_v55, %v462_v49  ;;  %v1039_v57 = vpop.f32.mrb[10].mxu0  ;;  %v1056_v58 = vpop.f32.mrb[12].mxu1 }
 0x102   : > { %v612_v59 = vadd.f32 %v1044_v44, %v548_v54  ;;  %v535_v60 = vpop.f32.mrb[11].mxu0  ;;  %v760_v61 = vpop.f32.mrb[13].mxu1 }
 0x103   : > { %v547_v62 = vadd.f32 %v535_v60, %v463_v52  ;;  %v610_v63 = vadd.f32 %v596_v47, %v546_v56  ;;  %v1057_v0 = vpop.f32.mrb[14].mxu1 }
 0x104   : > { %v763_v1 = vpop.f32.mrb[15].mxu1 }
 0x105   : > { %v611_v2 = vadd.f32 %v599_v51, %v547_v62 }
 0x107   : > { %v1050_v3 = vpop.f32.mrb[12].mxu0 }
 0x108   : > { %v692_v4 = vadd.f32 %v1050_v3, %v612_v59  ;;  %v676_v5 = vpop.f32.mrb[13].mxu0 }
 0x109   : > { %v690_v6 = vadd.f32 %v676_v5, %v610_v63  ;;  %v1051_v7 = vpop.f32.mrb[14].mxu0 }
 0x10a   : > { %v776_v8 = vadd.f32 %v1056_v58, %v692_v4  ;;  %v679_v9 = vpop.f32.mrb[15].mxu0 }
 0x10b   : > { %v691_v10 = vadd.f32 %v679_v9, %v611_v2  ;;  %v774_v11 = vadd.f32 %v760_v61, %v690_v6 }
 0x10d   : > { %v775_v12 = vadd.f32 %v763_v1, %v691_v10 }
 0x10f   : > { %v1062_v13 = vpop.f32.mrb[16].mxu0 }
 0x110   : > { %v845_v15 = vadd.f32 %v1062_v13, %v776_v8  ;;  %v829_v16 = vpop.f32.mrb[17].mxu0 }
 0x111   : > { %v843_v17 = vadd.f32 %v829_v16, %v774_v11  ;;  %v1063_v18 = vpop.f32.mrb[18].mxu0 }
 0x112   : > { %v855_v19 = vadd.f32 %v974_v14, %v845_v15  ;;  %v832_v20 = vpop.f32.mrb[19].mxu0 }
 0x113   : > { %v853_v21 = vadd.f32 %v974_v14, %v843_v17  ;;  %v844_v22 = vadd.f32 %v832_v20, %v775_v12 }
 0x114   : > { %v982_v23 = vpack.c.bf16 %v855_v19, %v855_v19 }
 0x115   : > { %v980_v24 = vpack.c.bf16 %v853_v21, %v853_v21  ;;  %v854_v25 = vadd.f32 %v974_v14, %v844_v22 }
 0x116   : > { %872 = vst.msk [vmem:[%s170_s16 + $0x8] sm:$0xf] %vm869_vm8, %v982_v23 }
 0x117   : > { %870 = vst.msk [vmem:[%s170_s16] sm:$0xf] %vm869_vm8, %v980_v24  ;;  %v981_v26 = vpack.c.bf16 %v854_v25, %v854_v25 }
 0x119   : > { %871 = vst.msk [vmem:[%s170_s16 + $0x4] sm:$0xf] %vm869_vm8, %v981_v26 }
 0x11a PF: > { %s13_s12 = sadd.s32 1, %s1102_s12  }
 0x11b   : > { %p10_p4 = scmp.ge.s32.totalorder %s13_s12, 4  }
 0x11d   :  { %12 = sbr.rel (!%p10_p4) target bundleno = 1 (0x1), region = 70 }

// kernel: flownet_s_forward.16
= control target key start
LH: loop header
LB: loop body
LE: loop exit
PB: predicated region body
PF: predicated region fallthrough
CT: control target
= control target key end

     0   :  { %s3324_s24 = smov 0   ;;  %s3752_s0 = inlined_call_operand.vmem [shape: bf16[2,42,32], index: 0, kind: input, shape index: {}]   ;;  %s3753_s1 = inlined_call_operand.vmem [shape: bf16[2,42,32], index: 1, kind: input, shape index: {}]   ;;  %s3754_s2 = inlined_call_operand.vmem [shape: bf16[2,42,2], index: 2, kind: input, shape index: {}]   ;;  %s3755_s3 = inlined_call_operand.vmem [shape: bf16[9,32,2], index: 3, kind: input, shape index: {}]   ;;  %s3756_s4 = inlined_call_operand.vmem [shape: bf16[9,32,2], index: 4, kind: input, shape index: {}]   ;;  %s3757_s5 = inlined_call_operand.vmem [shape: bf16[9,2,2], index: 5, kind: input, shape index: {}]   ;;  %s3758_s6 = inlined_call_operand.vmem [shape: f32[1,2], index: 6, kind: input, shape index: {}]   ;;  %s3759_s7 = inlined_call_operand.vmem [shape: f32[2,24,2], index: 7, kind: output, shape index: {}]  }
   0x1 LB: > { %s2669_s25 = sadd.s32 4294967295, %s3282_s24   ;;  %p2673_p0 = scmp.ge.s32.totalorder %s3282_s24, 1  ;;  %s3282_s24 = sphi %s3324_s24, %s17_s24  }
   0x2   : > { %p257_p1 = scmp.lt.s32.totalorder %s3282_s24, 3 }
   0x4   : > { %p258_p2 = pnand %p2673_p0, %p257_p1 }
   0x5   : > { %v3199_v0 = vld [vmem:[%s3755_s3 + $0x10] sm:$0xff] (!%p258_p2)   ;;  %p299_p3 = scmp.lt.s32.totalorder (!%p258_p2), %s2669_s25, 1  ;;  %v3200_v1 = vld [vmem:[%s3755_s3] sm:$0xff] (!%p258_p2)   ;;  %v3201_v2 = vld [vmem:[%s3755_s3 + $0x18] sm:$0xff] (!%p258_p2)   ;;  %vm371_vm0 = vcmask (!%p258_p2), 261120   ;;  %vm501_vm2 = vcmask (!%p258_p2), 1046528  }
   0x6   : > { %261 = sbr.rel (%p258_p2) target bundleno = 352 (0x160), region = 48  ;;  %2983 = vmatprep.subr.bf16.mxu0 (!%p258_p2), %v3199_v0  ;;  %2991 = vmatprep.subr.bf16.mxu1 (!%p258_p2), %v3200_v1  ;;  %v3202_v3 = vld [vmem:[%s3755_s3 + $0x8] sm:$0xff] (!%p258_p2)   ;;  %v3205_v4 = vld [vmem:[%s3755_s3 + $0x20] sm:$0xff] (!%p258_p2)   ;;  %v3207_v5 = vld [vmem:[%s3755_s3 + $0x30] sm:$0xff] (!%p258_p2)   ;;  %vm343_vm1 = vsmask.f32 (!%p258_p2), 7424 }
   0x7   : > { %2984 = vmatpush3.bf16.msra.mxu0 (!%p258_p2), %v3199_v0  ;;  %2992 = vmatpush3.bf16.msra.mxu1 (!%p258_p2), %v3200_v1  ;;  %v3209_v13 = vld [vmem:[%s3755_s3 + $0x38] sm:$0xff] (!%p258_p2)   ;;  %v3214_v28 = vld [vmem:[%s3755_s3 + $0x50] sm:$0xff] (!%p258_p2)   ;;  %vm587_vm3 = vcmask (!%p258_p2), 1044480   ;;  %v3208_v36 = vld [vmem:[%s3755_s3 + $0x28] sm:$0xff] (!%p258_p2)   ;;  %vm669_vm4 = vsmask.f32 (!%p258_p2), 4352 }
   0x8   : > { %2985 = vmatprep.subr.bf16.mxu0 (!%p258_p2), %v3201_v2  ;;  %2993 = vmatprep.subr.bf16.mxu1 (!%p258_p2), %v3202_v3  ;;  %v3216_v42 = vld [vmem:[%s3755_s3 + $0x58] sm:$0xff] (!%p258_p2)   ;;  %v3211_v46 = vld [vmem:[%s3755_s3 + $0x40] sm:$0xff] (!%p258_p2)   ;;  %v3221_v50 = vld [vmem:[%s3755_s3 + $0x70] sm:$0xff] (!%p258_p2)   ;;  %vm851_vm5 = vcmask (!%p258_p2), 1045504   ;;  %vm933_vm6 = vsmask.f32 (!%p258_p2), 5376 }
   0x9   : > { %v3215_v61 = vld [vmem:[%s3755_s3 + $0x48] sm:$0xff] (!%p258_p2)   ;;  %v3223_v63 = vld [vmem:[%s3755_s3 + $0x78] sm:$0xff] (!%p258_p2)   ;;  %vm1911_vm7 = vcmask (!%p258_p2), 1040384   ;;  %vm1904_vm8 = vcmask (!%p258_p2), 15360  }
   0xb   : > { %2986 = vmatpush3.bf16.msra.mxu0 (!%p258_p2), %v3201_v2  ;;  %2994 = vmatpush3.bf16.msra.mxu1 (!%p258_p2), %v3202_v3 }
   0xc   : > { %2999 = vmatprep.subr.bf16.mxu0 (!%p258_p2), %v3205_v4  ;;  %3007 = vmatprep.subr.bf16.mxu1 (!%p258_p2), %v3207_v5 }
   0xd   : > { %s3761_s25 = smov (!%p299_p3, %s2669_s25), 1 }
   0xe   : > { %s3344_s11 = smul.u32 24, %s3761_s25 }
  0x10   : > { %s3353_s16 = scalar_lea.vmem %s3752_s0, %s3344_s11  ;;  %s3451_s19 = scalar_lea.vmem %s3753_s1, %s3344_s11 }
  0x11   : > { %v320_v6 = vld [vmem:[%s3353_s16] sm:$0xf]  ;;  %v3360_v7 = vld [vmem:[%s3353_s16 + $0x4] sm:$0xf]  ;;  %v3363_v8 = vld [vmem:[%s3353_s16 + $0x8] sm:$0xf]  ;;  %s3555_s26 = scalar_lea.vmem %s3754_s2, %s3344_s11  ;;  %s318_s25 = scalar_lea.vmem %s3759_s7, %s3344_s11 }
  0x12   : > { %v327_v9 = vld [vmem:[%s3353_s16 + $0xc] sm:$0x1]  ;;  %v2682_v10 = vcombine.low %v320_v6, %v3360_v7  ;;  %v2688_v11 = vcombine.low %v3363_v8, %v3363_v8  ;;  %v492_v14 = vld [vmem:[%s3353_s16] sm:$0xe]  ;;  %v2725_v41 = vcombine.low %v3360_v7, %v3363_v8  ;;  %v832_v52 = vld [vmem:[%s3353_s16 + $0x4] sm:$0xc] }
  0x13   : > { %v3370_v12 = vcombine.low %v3363_v8, %v327_v9  ;;  %v2697_v17 = vcombine.low %v492_v14, %v3360_v7  ;;  %v574_v21 = vld [vmem:[%s3353_s16] sm:$0x8]  ;;  %v575_v24 = vld [vmem:[%s3353_s16 + $0xc] sm:$0x7]  ;;  %v3421_v53 = vld [vmem:[%s3353_s16 + $0x8] sm:$0xf] }
  0x14   : > { %v345_v15 = vshrl.u32 %v2682_v10, 16  ;;  %v347_v16 = vshll.u32 %v2682_v10, 16  ;;  %2995 = vmatprep.mubr.msk.bf16.mxu1 %vm371_vm0, %v2682_v10  ;;  %v2706_v25 = vcombine.low %v574_v21, %v3360_v7  ;;  %v2707_v27 = vcombine.low %v3363_v8, %v575_v24  ;;  %v3393_v34 = vld [vmem:[%s3353_s16 + $0xc] sm:$0xf]  ;;  %v835_v56 = vld [vmem:[%s3353_s16 + $0x10] sm:$0x3] }
  0x15   : > { %v352_v18 = vshll.u32 %v3370_v12, 16  ;;  %v356_v19 = vshrl.u32 %v3370_v12, 16  ;;  %2996 = vmatmul.mubr.msk.bf16.vlgmr.msra.gmra.mrb[0].mxu1 %vm371_vm0, %v2688_v11  ;;  %v503_v20 = vrot.slane %v3370_v12, 1  ;;  %v502_v23 = vrot.slane %v2697_v17, 1  ;;  %v834_v54 = vld [vmem:[%s3353_s16 + $0xc] sm:$0xf] }
  0x16   : > { %v349_v22 = vrot.slane %v347_v16, 1  ;;  %3008 = vmatpush3.bf16.msra.mxu1 %v3207_v5  ;;  %v588_v30 = vrot.slane %v2706_v25, 3  ;;  %v589_v33 = vrot.slane %v2707_v27, 3  ;;  %v2716_v37 = vcombine.low %v3363_v8, %v3393_v34  ;;  %v924_v58 = vld [vmem:[%s3353_s16 + $0x10] sm:$0x7]  ;;  %v3218_v5 = vld [vmem:[%s3755_s3 + $0x60] sm:$0xff]  }
  0x17   : > { %v354_v26 = vrot.slane %v352_v18, 1  ;;  %3009 = vmatprep.subr.bf16.mxu1 %v3209_v13  ;;  %v504_v32 = vsel %vm501_vm2, %v502_v23, %v503_v20  ;;  %v671_v38 = vshrl.u32 %v2706_v25, 16  ;;  %v674_v40 = vshll.u32 %v2706_v25, 16  ;;  %v3222_v16 = vld [vmem:[%s3755_s3 + $0x68] sm:$0xff]   ;;  %v3233_v21 = vld [vmem:[%s3451_s19] sm:$0xff]  }
  0x18   : > { %v350_v29 = vor.u32 %v349_v22, %v345_v15  ;;  %v590_v39 = vsel %vm587_vm3, %v588_v30, %v589_v33  ;;  %v679_v44 = vshrl.u32 %v2716_v37, 16  ;;  %v682_v45 = vshll.u32 %v2716_v37, 16  ;;  %v3228_v15 = vld [vmem:[%s3756_s4] sm:$0xff]   ;;  %v3478_v25 = vld [vmem:[%s3451_s19 + $0x8] sm:$0xf] }
  0x19   : > { %v358_v31 = vor.u32 %v356_v19, %v354_v26  ;;  %3011 = vmatprep.mubr.msk.bf16.mxu1 %vm371_vm0, %v590_v39  ;;  %v673_v43 = vrot.slane %v671_v38, 3  ;;  %v676_v47 = vrot.slane %v674_v40, 4  ;;  %v2735_v57 = vcombine.low %v832_v52, %v3421_v53  ;;  %v3230_v19 = vld [vmem:[%s3756_s4 + $0x8] sm:$0xff]   ;;  %v3227_v22 = vld [vmem:[%s3755_s3 + $0x80] sm:$0xff]  }
  0x1a   : > { %v355_v35 = vsel %vm343_vm1, %v350_v29, %v354_v26  ;;  %3010 = vmatpush3.bf16.msra.mxu1 %v3209_v13  ;;  %v681_v48 = vrot.slane %v679_v44, 3  ;;  %v684_v49 = vrot.slane %v682_v45, 4  ;;  %v2726_v59 = vcombine.low %v3393_v34, %v3393_v34  ;;  %v1020_v13 = vld [vmem:[%s3353_s16 + $0x4] sm:$0x8]  ;;  %v1185_v23 = vld [vmem:[%s3451_s19] sm:$0xf] }
  0x1b   : > { %2987 = vmatprep.mubr.msk.bf16.mxu0 %vm371_vm0, %v355_v35  ;;  %3023 = vmatprep.subr.bf16.mxu1 %v3214_v28  ;;  %v677_v51 = vor.u32 %v676_v47, %v673_v43  ;;  %v3429_v60 = vcombine.low %v834_v54, %v924_v58  ;;  %v2736_v0 = vcombine.low %v834_v54, %v835_v56  ;;  %v935_v1 = vshrl.u32 %v2735_v57, 16  ;;  %v3475_v24 = vld [vmem:[%s3451_s19 + $0x4] sm:$0xf]  ;;  %v1188_v26 = vld [vmem:[%s3451_s19 + $0xc] sm:$0x1] }
  0x1c   : > { %2988 = vmatmul.mubr.msk.bf16.vlgmr.msra.gmra.mrb[0].mxu0 %vm371_vm0, %v358_v31  ;;  %v685_v55 = vor.u32 %v684_v49, %v681_v48  ;;  %v938_v2 = vshll.u32 %v2735_v57, 16  ;;  %v852_v10 = vrot.slane %v2735_v57, 2  ;;  %v2769_v27 = vcombine.low %v1185_v23, %v3475_v24  ;;  %v1288_v31 = vld [vmem:[%s3451_s19] sm:$0xe]  ;;  %v3229_v34 = vld [vmem:[%s3755_s3 + $0x88] sm:$0xff]   ;;  %v3232_v48 = vld [vmem:[%s3756_s4 + $0x10] sm:$0xff]  }
  0x1d   : > { %3000 = vmatpush3.bf16.msra.mxu0 %v3205_v4  ;;  %3003 = vmatprep.mubr.msk.bf16.mxu0 %vm371_vm0, %v504_v32  ;;  %v943_v3 = vshrl.u32 %v3429_v60, 16  ;;  %v946_v4 = vshll.u32 %v3429_v60, 16  ;;  %v937_v6 = vrot.slane %v935_v1, 2  ;;  %v853_v11 = vrot.slane %v2736_v0, 2  ;;  %v3234_v35 = vld [vmem:[%s3451_s19 + $0x8] ss:$0 sps:$4 sm:$0xff]  }
  0x1e   : > { %3001 = vmatprep.subr.bf16.mxu0 %v3208_v36  ;;  %3012 = vmatmul.mubr.msk.bf16.vlgmr.msra.gmra.mrb[4].mxu1 %vm371_vm0, %v589_v33  ;;  %v686_v62 = vsel %vm669_vm4, %v677_v51, %v685_v55  ;;  %v940_v7 = vrot.slane %v938_v2, 3  ;;  %v1030_v29 = vrot.slane %v3429_v60, 3  ;;  %v3486_v30 = vcombine.low %v3478_v25, %v1188_v26  ;;  %v1369_v43 = vld [vmem:[%s3451_s19] sm:$0x8]  ;;  %v3237_v44 = vld [vmem:[%s3756_s4 + $0x28] sm:$0xff]   ;;  %v3236_v0 = vld [vmem:[%s3756_s4 + $0x18] sm:$0xff]  }
  0x1f   : > { %3024 = vmatpush3.bf16.msra.mxu1 %v3214_v28  ;;  %3027 = vmatprep.mubr.msk.bf16.mxu1 %vm371_vm0, %v2725_v41  ;;  %v945_v8 = vrot.slane %v943_v3, 2  ;;  %v948_v9 = vrot.slane %v946_v4, 3  ;;  %v854_v18 = vsel %vm851_vm5, %v852_v10, %v853_v11  ;;  %v1207_v32 = vshll.u32 %v2769_v27, 16  ;;  %v3511_v47 = vld [vmem:[%s3451_s19 + $0xc] sm:$0xf]  ;;  %v3242_v58 = vld [vmem:[%s3756_s4 + $0x40] sm:$0xff]  }
  0x20   : > { %3025 = vmatprep.subr.bf16.mxu1 %v3216_v42  ;;  %v941_v12 = vor.u32 %v940_v7, %v937_v6  ;;  %v2779_v33 = vcombine.low %v1288_v31, %v3475_v24  ;;  %v1298_v37 = vrot.slane %v3486_v30, 1  ;;  %v1205_v38 = vshrl.u32 %v2769_v27, 16  ;;  %v1370_v49 = vld [vmem:[%s3451_s19 + $0xc] sm:$0x7]  ;;  %v1966_v26 = vld [vmem:[%s3555_s26] sm:$0xf] }
  0x21   : > { %3002 = vmatpush3.bf16.msra.mxu0 %v3208_v36  ;;  %v949_v14 = vor.u32 %v948_v9, %v945_v8  ;;  %v3235_v36 = vld [vmem:[%s3756_s4 + $0x20] sm:$0xff]   ;;  %v1209_v41 = vrot.slane %v1207_v32, 1  ;;  %v3506_v45 = vcombine.low %v1369_v43, %v3475_v24  ;;  %v2789_v2 = vcombine.low %v3478_v25, %v1370_v49  ;;  %v1627_v4 = vld [vmem:[%s3451_s19 + $0xc] sm:$0xf]  ;;  %v3582_v32 = vld [vmem:[%s3555_s26 + $0x8] sm:$0xf] }
  0x22   : > { %3015 = vmatprep.subr.bf16.mxu0 %v3211_v46  ;;  %v1297_v39 = vrot.slane %v2779_v33, 1  ;;  %v1216_v7 = vshrl.u32 %v3486_v30, 16  ;;  %v3244_v8 = vld [vmem:[%s3756_s4 + $0x48] sm:$0xff]   ;;  %v3571_v27 = vld [vmem:[%s3555_s26 + $0x4] sm:$0xf] }
  0x23   : > { %3026 = vmatpush3.bf16.msra.mxu1 %v3216_v42  ;;  %v950_v17 = vsel %vm933_vm6, %v941_v12, %v949_v14  ;;  %v1212_v42 = vshll.u32 %v3486_v30, 16  ;;  %v1464_v51 = vshrl.u32 %v3506_v45, 16  ;;  %v1210_v52 = vor.u32 %v1209_v41, %v1205_v38  ;;  %v3240_v12 = vld [vmem:[%s3756_s4 + $0x30] sm:$0xff]   ;;  %v1969_v33 = vld [vmem:[%s3555_s26 + $0xc] sm:$0x1] }
  0x24   : > { %3004 = vmatmul.mubr.msk.bf16.vlgmr.msra.gmra.mrb[4].mxu0 %vm371_vm0, %v503_v20  ;;  %3039 = vmatprep.subr.bf16.mxu1 %v3221_v50  ;;  %v2754_v20 = vcombine.low %v1020_v13, %v3421_v53  ;;  %v1467_v54 = vshll.u32 %v3506_v45, 16  ;;  %v1382_v13 = vrot.slane %v3506_v45, 3  ;;  %v2846_v31 = vcombine.low %v1966_v26, %v3571_v27  ;;  %v3250_v45 = vld [vmem:[%s3756_s4 + $0x58] sm:$0xff]  }
  0x25   : > { %3016 = vmatpush3.bf16.msra.mxu0 %v3211_v46  ;;  %3019 = vmatprep.mubr.msk.bf16.mxu0 %vm371_vm0, %v686_v62  ;;  %v1299_v46 = vsel %vm501_vm2, %v1297_v39, %v1298_v37  ;;  %v1214_v53 = vrot.slane %v1212_v42, 1  ;;  %v1625_v62 = vld [vmem:[%s3451_s19 + $0x4] sm:$0xc]  ;;  %v3597_v42 = vcombine.low %v3582_v32, %v1969_v33 }
  0x26   : > { %3017 = vmatprep.subr.bf16.mxu0 %v3215_v61  ;;  %3028 = vmatmul.mubr.msk.bf16.vlgmr.msra.gmra.mrb[8].mxu1 %vm371_vm0, %v2726_v59  ;;  %v1029_v28 = vrot.slane %v2754_v20, 3  ;;  %v1469_v59 = vrot.slane %v1467_v54, 4  ;;  %v1811_v20 = vld [vmem:[%s3451_s19 + $0x4] sm:$0x8]  ;;  %v1985_v43 = vshll.u32 %v2846_v31, 16  ;;  %v3253_v54 = vld [vmem:[%s3756_s4 + $0x70] sm:$0xff]  }
  0x27   : > { %3040 = vmatpush3.bf16.msra.mxu1 %v3221_v50  ;;  %3043 = vmatprep.mubr.msk.bf16.mxu1 %vm371_vm0, %v950_v17  ;;  %v2798_v50 = vcombine.low %v3478_v25, %v3511_v47  ;;  %v1215_v1 = vsel %vm343_vm1, %v1210_v52, %v1214_v53  ;;  %v3249_v17 = vld [vmem:[%s3756_s4 + $0x60] sm:$0xff]  }
  0x28   : > { %3041 = vmatprep.subr.bf16.mxu1 %v3223_v63  ;;  %v1031_v40 = vsel %vm587_vm3, %v1029_v28, %v1030_v29  ;;  %v3251_v28 = vld [vmem:[%s3756_s4 + $0x68] sm:$0xff]   ;;  %v3258_v39 = vld [vmem:[%s3756_s4 + $0x80] sm:$0xff]  }
  0x29   : > { %3018 = vmatpush3.bf16.msra.mxu0 %v3215_v61  ;;  %v1472_v56 = vshrl.u32 %v2798_v50, 16  ;;  %v1475_v57 = vshll.u32 %v2798_v50, 16 }
  0x2a   : > { %3031 = vmatprep.subr.bf16.mxu0 %v3218_v5 }
  0x2b   : > { %3042 = vmatpush3.bf16.msra.mxu1 %v3223_v63  ;;  %v1474_v60 = vrot.slane %v1472_v56, 3  ;;  %v1477_v61 = vrot.slane %v1475_v57, 4  ;;  %v3529_v63 = vld [vmem:[%s3451_s19 + $0x8] sm:$0xf]  ;;  %v2808_v57 = vcombine.low %v3511_v47, %v3511_v47 }
  0x2c   : > { %3020 = vmatmul.mubr.msk.bf16.vlgmr.msra.gmra.mrb[8].mxu0 %vm371_vm0, %v685_v55  ;;  %3055 = vmatprep.subr.bf16.mxu1 %v3228_v15  ;;  %v1466_v55 = vrot.slane %v1464_v51, 3  ;;  %v2817_v9 = vcombine.low %v1625_v62, %v3529_v63  ;;  %v2836_v30 = vcombine.low %v1811_v20, %v3529_v63  ;;  %v3260_v51 = vld [vmem:[%s3756_s4 + $0x88] sm:$0xff]   ;;  %v3259_v63 = vld [vmem:[%s3756_s4 + $0x78] sm:$0xff]   ;;  %v2850_v20 = vld [vmem:[%s3757_s5 + $0x2] sm:$0x1] }
  0x2d   : > { %3032 = vmatpush3.bf16.msra.mxu0 %v3218_v5  ;;  %3035 = vmatprep.mubr.msk.bf16.mxu0 %vm371_vm0, %v854_v18  ;;  %v1628_v5 = vld [vmem:[%s3451_s19 + $0x10] sm:$0x3]  ;;  %v1478_v6 = vor.u32 %v1477_v61, %v1474_v60  ;;  %v2845_v60 = vld [vmem:[%s3757_s5 + $0x1] sm:$0x1]  ;;  %v2126_v61 = vld [vmem:[%s3555_s26] sm:$0x8] }
  0x2e   : > { %3033 = vmatprep.subr.bf16.mxu0 %v3222_v16  ;;  %3044 = vmatmul.mubr.msk.bf16.vlgmr.msra.gmra.mrb[12].mxu1 %vm371_vm0, %v949_v14  ;;  %v1470_v3 = vor.u32 %v1469_v59, %v1466_v55  ;;  %v2818_v10 = vcombine.low %v1627_v4, %v1628_v5  ;;  %v1383_v14 = vrot.slane %v2789_v2, 3  ;;  %v1644_v18 = vrot.slane %v2817_v9, 2  ;;  %v2127_v62 = vld [vmem:[%s3555_s26 + $0xc] sm:$0x7] }
  0x2f   : > { %3056 = vmatpush3.bf16.msra.mxu1 %v3228_v15  ;;  %3059 = vmatprep.mubr.msk.bf16.mxu1 %vm371_vm0, %v3233_v21  ;;  %v1716_v15 = vld [vmem:[%s3451_s19 + $0x10] sm:$0x7]  ;;  %v3243_v21 = vld [vmem:[%s3756_s4 + $0x38] sm:$0xff]   ;;  %v2004_v47 = vsel %vm1911_vm7, %v2845_v60, 0  ;;  %v2855_v2 = vcombine.low %v2126_v61, %v3571_v27  ;;  %v1994_v5 = vshrl.u32 %v3597_v42, 16 }
  0x30   : > { %3057 = vmatprep.subr.bf16.mxu1 %v3230_v19  ;;  %v3567_v23 = vcombine.low %v1627_v4, %v1716_v15  ;;  %v2854_v4 = vld [vmem:[%s3757_s5 + $0x3] sm:$0x1]  ;;  %v3655_v15 = vld [vmem:[%s3555_s26 + $0xc] sm:$0xf]  ;;  %v2868_v61 = vld [vmem:[%s3757_s5 + $0x6] sm:$0x1] }
  0x31   : > { %3034 = vmatpush3.bf16.msra.mxu0 %v3222_v16  ;;  %v1218_v16 = vor.u32 %v1216_v7, %v1214_v53  ;;  %v1990_v53 = vshll.u32 %v3597_v42, 16  ;;  %v1895_v7 = vld [vmem:[%s3757_s5] sm:$0x1]  ;;  %v2209_v33 = vshll.u32 %v2855_v2, 16 }
  0x32   : > { %3047 = vmatprep.subr.bf16.mxu0 %v3227_v22  ;;  %v1737_v38 = vshll.u32 %v3567_v23, 16  ;;  %v1821_v41 = vrot.slane %v3567_v23, 3 }
  0x33   : > { %3058 = vmatpush3.bf16.msra.mxu1 %v3230_v19  ;;  %v1645_v19 = vrot.slane %v2818_v10, 2  ;;  %v1992_v59 = vrot.slane %v1990_v53, 1  ;;  %v2136_v10 = vrot.slane %v2855_v2, 3  ;;  %v2873_v53 = vld [vmem:[%s3757_s5 + $0x7] sm:$0x1] }
  0x34   : > { %3036 = vmatmul.mubr.msk.bf16.vlgmr.msra.gmra.mrb[12].mxu0 %vm371_vm0, %v853_v11  ;;  %3071 = vmatprep.subr.bf16.mxu1 %v3235_v36  ;;  %v1479_v11 = vsel %vm669_vm4, %v1470_v3, %v1478_v6  ;;  %v1739_v50 = vrot.slane %v1737_v38, 3  ;;  %v2856_v3 = vcombine.low %v3582_v32, %v2127_v62  ;;  %v2455_v62 = vsel %vm1911_vm7, %v2873_v53, 0 }
  0x35   : > { %3048 = vmatpush3.bf16.msra.mxu0 %v3227_v22  ;;  %3051 = vmatprep.mubr.msk.bf16.mxu0 %vm371_vm0, %v1031_v40  ;;  %v1384_v22 = vsel %vm587_vm3, %v1382_v13, %v1383_v14  ;;  %v1820_v40 = vrot.slane %v2836_v30, 3  ;;  %v2863_v30 = vld [vmem:[%s3757_s5 + $0x5] sm:$0x1] }
  0x36   : > { %3049 = vmatprep.subr.bf16.mxu0 %v3229_v34  ;;  %3060 = vmatmul.mubr.msk.bf16.vlgmr.msra.gmra.mrb[16].mxu1 %vm371_vm0, %v3234_v35  ;;  %v1726_v35 = vshrl.u32 %v2817_v9, 16 }
  0x37   : > { %3072 = vmatpush3.bf16.msra.mxu1 %v3235_v36  ;;  %3075 = vmatprep.mubr.msk.bf16.mxu1 %vm371_vm0, %v1299_v46  ;;  %v1729_v36 = vshll.u32 %v2817_v9, 16  ;;  %v1822_v52 = vsel %vm587_vm3, %v1820_v40, %v1821_v41  ;;  %v3262_v9 = vld [vmem:[%s3555_s26] sm:$0xff]  }
  0x38   : > { %3073 = vmatprep.subr.bf16.mxu1 %v3237_v44  ;;  %v1728_v46 = vrot.slane %v1726_v35, 2 }
  0x39   : > { %3050 = vmatpush3.bf16.msra.mxu0 %v3229_v34  ;;  %v3247_v34 = vld [vmem:[%s3756_s4 + $0x50] sm:$0xff]  }
  0x3a   : > { %3063 = vmatprep.subr.bf16.mxu0 %v3232_v48 }
  0x3b   : > { %3074 = vmatpush3.bf16.msra.mxu1 %v3237_v44  ;;  %v2807_v44 = vcombine.low %v3475_v24, %v3478_v25  ;;  %v1983_v24 = vshrl.u32 %v2846_v31, 16  ;;  %v1987_v25 = vrot.slane %v1985_v43, 1  ;;  %v2206_v31 = vshrl.u32 %v2855_v2, 16 }
  0x3c   : > { %3052 = vmatmul.mubr.msk.bf16.vlgmr.msra.gmra.mrb[16].mxu0 %vm371_vm0, %v1030_v29  ;;  %3087 = vmatprep.subr.bf16.mxu1 %v3242_v58  ;;  %v1646_v29 = vsel %vm851_vm5, %v1644_v18, %v1645_v19  ;;  %v1996_v18 = vor.u32 %v1994_v5, %v1992_v59  ;;  %v2372_v2 = vsel %vm1911_vm7, %v2868_v61, 0  ;;  %v2877_v5 = vld [vmem:[%s3757_s5 + $0x8] sm:$0x1] }
  0x3d   : > { %3064 = vmatpush3.bf16.msra.mxu0 %v3232_v48  ;;  %3067 = vmatprep.mubr.msk.bf16.mxu0 %vm371_vm0, %v1215_v1  ;;  %v1731_v48 = vrot.slane %v1729_v36, 3  ;;  %v3263_v36 = vld [vmem:[%s3555_s26 + $0x8] ss:$0 sps:$4 sm:$0xff]   ;;  %v2208_v43 = vrot.slane %v2206_v31, 3 }
  0x3e   : > { %3065 = vmatprep.subr.bf16.mxu0 %v3236_v0  ;;  %3076 = vmatmul.mubr.msk.bf16.vlgmr.msra.gmra.mrb[20].mxu1 %vm371_vm0, %v1298_v37  ;;  %v1734_v37 = vshrl.u32 %v3567_v23, 16 }
  0x3f   : > { %3088 = vmatpush3.bf16.msra.mxu1 %v3242_v58  ;;  %3091 = vmatprep.mubr.msk.bf16.mxu1 %vm371_vm0, %v1479_v11  ;;  %v1732_v55 = vor.u32 %v1731_v48, %v1728_v46  ;;  %v1988_v58 = vor.u32 %v1987_v25, %v1983_v24  ;;  %v2137_v11 = vrot.slane %v2856_v3, 3  ;;  %v2859_v48 = vld [vmem:[%s3757_s5 + $0x4] sm:$0x1] }
  0x40   : > { %3089 = vmatprep.subr.bf16.mxu1 %v3244_v8  ;;  %v1736_v49 = vrot.slane %v1734_v37, 2 }
  0x41   : > { %3066 = vmatpush3.bf16.msra.mxu0 %v3236_v0  ;;  %v1993_v1 = vsel %vm343_vm1, %v1988_v58, %v1992_v59 }
  0x42   : > { %3079 = vmatprep.subr.bf16.mxu0 %v3240_v12  ;;  %v1740_v56 = vor.u32 %v1739_v50, %v1736_v49  ;;  %v2293_v49 = vsel %vm1911_vm7, %v2863_v30, 0  ;;  %v2864_v50 = vcombine.low %v3571_v27, %v3582_v32 }
  0x43   : > { %3090 = vmatpush3.bf16.msra.mxu1 %v3244_v8  ;;  %v3645_v8 = vld [vmem:[%s3555_s26 + $0xc] sm:$0xf] }
  0x44   : > { %3068 = vmatmul.mubr.msk.bf16.vlgmr.msra.gmra.mrb[20].mxu0 %vm371_vm0, %v1218_v16  ;;  %3103 = vmatprep.subr.bf16.mxu1 %v3249_v17  ;;  %v1741_v0 = vsel %vm933_vm6, %v1732_v55, %v1740_v56  ;;  %v2425_v16 = vld [vmem:[%s3555_s26 + $0x10] sm:$0x7]  ;;  %v2865_v59 = vcombine.low %v3645_v8, %v3645_v8 }
  0x45   : > { %3080 = vmatpush3.bf16.msra.mxu0 %v3240_v12  ;;  %3083 = vmatprep.mubr.msk.bf16.mxu0 %vm371_vm0, %v1384_v22  ;;  %v2346_v12 = vld [vmem:[%s3555_s26 + $0x4] sm:$0xc]  ;;  %v2138_v22 = vsel %vm587_vm3, %v2136_v10, %v2137_v11  ;;  %v3672_v26 = vcombine.low %v3655_v15, %v2425_v16 }
  0x46   : > { %3081 = vmatprep.subr.bf16.mxu0 %v3243_v21  ;;  %3092 = vmatmul.mubr.msk.bf16.vlgmr.msra.gmra.mrb[24].mxu1 %vm371_vm0, %v1478_v6  ;;  %v2057_v6 = vld [vmem:[%s3555_s26] sm:$0xe] }
  0x47   : > { %3104 = vmatpush3.bf16.msra.mxu1 %v3249_v17  ;;  %3107 = vmatprep.mubr.msk.bf16.mxu1 %vm371_vm0, %v1646_v29  ;;  %v2851_v13 = vcombine.low %v2057_v6, %v3571_v27  ;;  %v1913_v17 = vsel %vm1911_vm7, %v1895_v7, 0  ;;  %v2064_v29 = vrot.slane %v3597_v42, 1  ;;  %v2443_v40 = vshll.u32 %v3672_v26, 16  ;;  %v2349_v27 = vld [vmem:[%s3555_s26 + $0x10] sm:$0x3] }
  0x48   : > { %3105 = vmatprep.subr.bf16.mxu1 %v3251_v28 }
  0x49   : > { %3082 = vmatpush3.bf16.msra.mxu0 %v3243_v21  ;;  %v2146_v21 = vsel %vm1911_vm7, %v2854_v4, 0  ;;  %v2445_v25 = vrot.slane %v2443_v40, 3 }
  0x4a   : > { %3095 = vmatprep.subr.bf16.mxu0 %v3247_v34 }
  0x4b   : > { %3106 = vmatpush3.bf16.msra.mxu1 %v3251_v28  ;;  %v2063_v28 = vrot.slane %v2851_v13, 1 }
  0x4c   : > { %3084 = vmatmul.mubr.msk.bf16.vlgmr.msra.gmra.mrb[24].mxu0 %vm371_vm0, %v1383_v14  ;;  %3119 = vmatprep.subr.bf16.mxu1 %v3258_v39  ;;  %v3652_v14 = vld [vmem:[%s3555_s26 + $0x8] sm:$0xf] }
  0x4d   : > { %3096 = vmatpush3.bf16.msra.mxu0 %v3247_v34  ;;  %3099 = vmatprep.mubr.msk.bf16.mxu0 %vm371_vm0, %v2807_v44  ;;  %v3669_v23 = vcombine.low %v2346_v12, %v3652_v14  ;;  %v2065_v42 = vsel %vm501_vm2, %v2063_v28, %v2064_v29  ;;  %v2211_v44 = vrot.slane %v2209_v33, 4 }
  0x4e   : > { %3097 = vmatprep.subr.bf16.mxu0 %v3250_v45  ;;  %3108 = vmatmul.mubr.msk.bf16.vlgmr.msra.gmra.mrb[28].mxu1 %vm371_vm0, %v1645_v19  ;;  %v2860_v19 = vcombine.low %v3582_v32, %v3645_v8  ;;  %v2524_v8 = vsel %vm1911_vm7, %v2877_v5, 0 }
  0x4f   : > { %3120 = vmatpush3.bf16.msra.mxu1 %v3258_v39  ;;  %3123 = vmatprep.mubr.msk.bf16.mxu1 %vm371_vm0, %v1822_v52  ;;  %v2432_v37 = vshrl.u32 %v3669_v23, 16  ;;  %v2435_v38 = vshll.u32 %v3669_v23, 16  ;;  %v2440_v39 = vshrl.u32 %v3672_v26, 16 }
  0x50   : > { %3121 = vmatprep.subr.bf16.mxu1 %v3260_v51  ;;  %v2214_v34 = vshrl.u32 %v2860_v19, 16  ;;  %v2217_v35 = vshll.u32 %v2860_v19, 16 }
  0x51   : > { %3098 = vmatpush3.bf16.msra.mxu0 %v3250_v45  ;;  %v2437_v52 = vrot.slane %v2435_v38, 3  ;;  %v2442_v24 = vrot.slane %v2440_v39, 2 }
  0x52   : > { %3111 = vmatprep.subr.bf16.mxu0 %v3253_v54  ;;  %v2216_v45 = vrot.slane %v2214_v34, 3  ;;  %v2219_v46 = vrot.slane %v2217_v35, 4 }
  0x53   : > { %3122 = vmatpush3.bf16.msra.mxu1 %v3260_v51  ;;  %v2434_v51 = vrot.slane %v2432_v37, 2 }
  0x54   : > { %3100 = vmatmul.mubr.msk.bf16.vlgmr.msra.gmra.mrb[28].mxu0 %vm371_vm0, %v2808_v57  ;;  %3182 = vmatprep.subr.msk.bf16.mxu1 %vm1911_vm7, %v2845_v60  ;;  %v2220_v55 = vor.u32 %v2219_v46, %v2216_v45  ;;  %v2229_v57 = vsel %vm1911_vm7, %v2859_v48, 0  ;;  %v2870_v60 = vcombine.low %v3655_v15, %v2349_v27 }
  0x55   : > { %3112 = vmatpush3.bf16.msra.mxu0 %v3253_v54  ;;  %3115 = vmatprep.mubr.msk.bf16.mxu0 %vm371_vm0, %v1741_v0  ;;  %v2212_v54 = vor.u32 %v2211_v44, %v2208_v43  ;;  %v2438_v32 = vor.u32 %v2437_v52, %v2434_v51  ;;  %v2362_v0 = vrot.slane %v3669_v23, 2 }
  0x56   : > { %3113 = vmatprep.subr.bf16.mxu0 %v3259_v63  ;;  %3124 = vmatmul.mubr.msk.bf16.vlgmr.msra.gmra.mrb[32].mxu1 %vm371_vm0, %v1821_v41  ;;  %v2073_v41 = vsel %vm1911_vm7, %v2850_v20, 0 }
  0x57   : > { %3134 = vmatpush3.bf16.msra.mxu1 %v2004_v47  ;;  %3135 = vmatprep.mubr.msk.bf16.mxu1 %vm1904_vm8, %v1993_v1  ;;  %v2221_v58 = vsel %vm669_vm4, %v2212_v54, %v2220_v55  ;;  %v2363_v47 = vrot.slane %v2870_v60, 2  ;;  %v2508_v1 = vld [vmem:[%s3555_s26 + $0x4] sm:$0x8] }
  0x58   : > { %3184 = vmatprep.subr.msk.bf16.mxu1 %vm1911_vm7, %v2854_v4  ;;  %v2878_v4 = vcombine.low %v2508_v1, %v3652_v14 }
  0x59   : > { %3114 = vmatpush3.bf16.msra.mxu0 %v3259_v63  ;;  %v2364_v3 = vsel %vm851_vm5, %v2362_v0, %v2363_v47 }
  0x5a   : > { %3181 = vmatprep.subr.msk.bf16.mxu0 %vm1911_vm7, %v1895_v7  ;;  %v2514_v6 = vrot.slane %v2878_v4, 3  ;;  %v2515_v7 = vrot.slane %v3672_v26, 3 }
  0x5c   : > { %3116 = vmatmul.mubr.msk.bf16.vlgmr.msra.gmra.mrb[32].mxu0 %vm371_vm0, %v1740_v56  ;;  %v2446_v56 = vor.u32 %v2445_v25, %v2442_v24 }
  0x5d   : > { %3128 = vmatpush3.bf16.msra.mxu0 %v1913_v17  ;;  %3129 = vmatprep.mubr.msk.bf16.mxu0 %vm1904_vm8, %v3262_v9  ;;  %v2516_v9 = vsel %vm587_vm3, %v2514_v6, %v2515_v7 }
  0x5e   : > { %3183 = vmatprep.subr.msk.bf16.mxu0 %vm1911_vm7, %v2850_v20  ;;  %3136 = vmatmul.mubr.msk.bf16.vlgmr.msra.gmra.mrb[36].mxu1 %vm1904_vm8, %v1996_v18  ;;  %v2447_v63 = vsel %vm933_vm6, %v2438_v32, %v2446_v56 }
  0x5f   : > { %3146 = vmatpush3.bf16.msra.mxu1 %v2146_v21  ;;  %3147 = vmatprep.mubr.msk.bf16.mxu1 %vm1904_vm8, %v2138_v22 }
  0x60   : > { %3186 = vmatprep.subr.msk.bf16.mxu1 %vm1911_vm7, %v2863_v30 }
  0x64   : > { %3130 = vmatmul.mubr.msk.bf16.vlgmr.msra.gmra.mrb[36].mxu0 %vm1904_vm8, %v3263_v36 }
  0x65   : > { %3140 = vmatpush3.bf16.msra.mxu0 %v2073_v41  ;;  %3141 = vmatprep.mubr.msk.bf16.mxu0 %vm1904_vm8, %v2065_v42 }
  0x66   : > { %3185 = vmatprep.subr.msk.bf16.mxu0 %vm1911_vm7, %v2859_v48  ;;  %3148 = vmatmul.mubr.msk.bf16.vlgmr.msra.gmra.mrb[40].mxu1 %vm1904_vm8, %v2137_v11 }
  0x67   : > { %3158 = vmatpush3.bf16.msra.mxu1 %v2293_v49  ;;  %3159 = vmatprep.mubr.msk.bf16.mxu1 %vm1904_vm8, %v2864_v50 }
  0x68   : > { %3188 = vmatprep.subr.msk.bf16.mxu1 %vm1911_vm7, %v2873_v53 }
  0x6c   : > { %3142 = vmatmul.mubr.msk.bf16.vlgmr.msra.gmra.mrb[40].mxu0 %vm1904_vm8, %v2064_v29 }
  0x6d   : > { %3152 = vmatpush3.bf16.msra.mxu0 %v2229_v57  ;;  %3153 = vmatprep.mubr.msk.bf16.mxu0 %vm1904_vm8, %v2221_v58 }
  0x6e   : > { %3187 = vmatprep.subr.msk.bf16.mxu0 %vm1911_vm7, %v2868_v61  ;;  %3160 = vmatmul.mubr.msk.bf16.vlgmr.msra.gmra.mrb[44].mxu1 %vm1904_vm8, %v2865_v59 }
  0x6f   : > { %3170 = vmatpush3.bf16.msra.mxu1 %v2455_v62  ;;  %3171 = vmatprep.mubr.msk.bf16.mxu1 %vm1904_vm8, %v2447_v63 }
  0x74   : > { %3154 = vmatmul.mubr.msk.bf16.vlgmr.msra.gmra.mrb[44].mxu0 %vm1904_vm8, %v2220_v55 }
  0x75   : > { %3164 = vmatpush3.bf16.msra.mxu0 %v2372_v2  ;;  %3165 = vmatprep.mubr.msk.bf16.mxu0 %vm1904_vm8, %v2364_v3 }
  0x76   : > { %3189 = vmatprep.subr.msk.bf16.mxu0 %vm1911_vm7, %v2877_v5  ;;  %3172 = vmatmul.mubr.msk.bf16.vlgmr.msra.gmra.mrb[48].mxu1 %vm1904_vm8, %v2446_v56 }
  0x7c   : > { %3166 = vmatmul.mubr.msk.bf16.vlgmr.msra.gmra.mrb[48].mxu0 %vm1904_vm8, %v2363_v47 }
  0x7d   : > { %3176 = vmatpush3.bf16.msra.mxu0 %v2524_v8  ;;  %3177 = vmatprep.mubr.msk.bf16.mxu0 %vm1904_vm8, %v2516_v9 }
  0x84   : > { %3178 = vmatmul.mubr.msk.bf16.vlgmr.msra.gmra.mrb[52].mxu0 %vm1904_vm8, %v2515_v7 }
  0xe8   : > { %v2997_v10 = vpop.f32.mrb[0].mxu1 }
  0xe9   : > { %v478_v11 = vpop.f32.mrb[1].mxu1 }
  0xea   : > { %v2998_v12 = vpop.f32.mrb[2].mxu1 }
  0xeb   : > { %v481_v13 = vpop.f32.mrb[3].mxu1 }
  0xef   : > { %v2989_v14 = vpop.f32.mrb[0].mxu0 }
  0xf0   : > { %v487_v15 = vadd.f32 %v2997_v10, %v2989_v14  ;;  %v412_v16 = vpop.f32.mrb[1].mxu0 }
  0xf1   : > { %v479_v17 = vadd.f32 %v478_v11, %v412_v16  ;;  %v2990_v18 = vpop.f32.mrb[2].mxu0  ;;  %v3013_v19 = vpop.f32.mrb[4].mxu1 }
  0xf2   : > { %v415_v20 = vpop.f32.mrb[3].mxu0  ;;  %v643_v21 = vpop.f32.mrb[5].mxu1 }
  0xf3   : > { %v482_v22 = vadd.f32 %v481_v13, %v415_v20  ;;  %v3014_v23 = vpop.f32.mrb[6].mxu1 }
  0xf4   : > { %v646_v26 = vpop.f32.mrb[7].mxu1 }
  0xf7   : > { %v3005_v28 = vpop.f32.mrb[4].mxu0 }
  0xf8   : > { %v573_v29 = vadd.f32 %v3005_v28, %v487_v15  ;;  %v557_v30 = vpop.f32.mrb[5].mxu0 }
  0xf9   : > { %v571_v31 = vadd.f32 %v557_v30, %v479_v17  ;;  %v3006_v33 = vpop.f32.mrb[6].mxu0  ;;  %v3029_v34 = vpop.f32.mrb[8].mxu1 }
  0xfa   : > { %v659_v35 = vadd.f32 %v3013_v19, %v573_v29  ;;  %v560_v36 = vpop.f32.mrb[7].mxu0  ;;  %v815_v37 = vpop.f32.mrb[9].mxu1 }
  0xfb   : > { %v572_v38 = vadd.f32 %v560_v36, %v482_v22  ;;  %v657_v39 = vadd.f32 %v643_v21, %v571_v31  ;;  %v3030_v40 = vpop.f32.mrb[10].mxu1 }
  0xfc   : > { %v818_v41 = vpop.f32.mrb[11].mxu1 }
  0xfd   : > { %v658_v42 = vadd.f32 %v646_v26, %v572_v38 }
  0xff   : > { %v3021_v43 = vpop.f32.mrb[8].mxu0 }
 0x100   : > { %v755_v44 = vadd.f32 %v3021_v43, %v659_v35  ;;  %v739_v45 = vpop.f32.mrb[9].mxu0 }
 0x101   : > { %v753_v46 = vadd.f32 %v739_v45, %v657_v39  ;;  %v3022_v48 = vpop.f32.mrb[10].mxu0  ;;  %v3045_v49 = vpop.f32.mrb[12].mxu1 }
 0x102   : > { %v831_v50 = vadd.f32 %v3029_v34, %v755_v44  ;;  %v742_v51 = vpop.f32.mrb[11].mxu0  ;;  %v1003_v52 = vpop.f32.mrb[13].mxu1 }
 0x103   : > { %v754_v24 = vadd.f32 %v742_v51, %v658_v42  ;;  %v829_v25 = vadd.f32 %v815_v37, %v753_v46  ;;  %v3046_v53 = vpop.f32.mrb[14].mxu1 }
 0x104   : > { %v1006_v54 = vpop.f32.mrb[15].mxu1 }
 0x105   : > { %v830_v55 = vadd.f32 %v818_v41, %v754_v24 }
 0x107   : > { %v3037_v27 = vpop.f32.mrb[12].mxu0 }
 0x108   : > { %v923_v32 = vadd.f32 %v3037_v27, %v831_v50  ;;  %v907_v56 = vpop.f32.mrb[13].mxu0 }
 0x109   : > { %v921_v57 = vadd.f32 %v907_v56, %v829_v25  ;;  %v3038_v58 = vpop.f32.mrb[14].mxu0  ;;  %v3061_v59 = vpop.f32.mrb[16].mxu1 }
 0x10a   : > { %v1019_v60 = vadd.f32 %v3045_v49, %v923_v32  ;;  %v910_v61 = vpop.f32.mrb[15].mxu0  ;;  %v1168_v62 = vpop.f32.mrb[17].mxu1 }
 0x10b   : > { %v922_v63 = vadd.f32 %v910_v61, %v830_v55  ;;  %v1017_v0 = vadd.f32 %v1003_v52, %v921_v57  ;;  %v3062_v47 = vpop.f32.mrb[18].mxu1 }
 0x10c   : > { %v1171_v1 = vpop.f32.mrb[19].mxu1 }
 0x10d   : > { %v1018_v2 = vadd.f32 %v1006_v54, %v922_v63 }
 0x10f   : > { %v3053_v3 = vpop.f32.mrb[16].mxu0 }
 0x110   : > { %v1100_v4 = vadd.f32 %v3053_v3, %v1019_v60  ;;  %v1084_v5 = vpop.f32.mrb[17].mxu0 }
 0x111   : > { %v1098_v6 = vadd.f32 %v1084_v5, %v1017_v0  ;;  %v3054_v7 = vpop.f32.mrb[18].mxu0  ;;  %v3077_v8 = vpop.f32.mrb[20].mxu1 }
 0x112   : > { %v1184_v9 = vadd.f32 %v3061_v59, %v1100_v4  ;;  %v1087_v10 = vpop.f32.mrb[19].mxu0  ;;  %v1352_v11 = vpop.f32.mrb[21].mxu1 }
 0x113   : > { %v1099_v12 = vadd.f32 %v1087_v10, %v1018_v2  ;;  %v1182_v13 = vadd.f32 %v1168_v62, %v1098_v6  ;;  %v3078_v14 = vpop.f32.mrb[22].mxu1 }
 0x114   : > { %v1355_v15 = vpop.f32.mrb[23].mxu1 }
 0x115   : > { %v1183_v16 = vadd.f32 %v1171_v1, %v1099_v12 }
 0x117   : > { %v3069_v17 = vpop.f32.mrb[20].mxu0 }
 0x118   : > { %v1287_v18 = vadd.f32 %v3069_v17, %v1184_v9  ;;  %v1271_v19 = vpop.f32.mrb[21].mxu0 }
 0x119   : > { %v1285_v20 = vadd.f32 %v1271_v19, %v1182_v13  ;;  %v3070_v21 = vpop.f32.mrb[22].mxu0  ;;  %v3093_v22 = vpop.f32.mrb[24].mxu1 }
 0x11a   : > { %v1368_v23 = vadd.f32 %v3077_v8, %v1287_v18  ;;  %v1274_v26 = vpop.f32.mrb[23].mxu0  ;;  %v1532_v28 = vpop.f32.mrb[25].mxu1 }
 0x11b   : > { %v1286_v29 = vadd.f32 %v1274_v26, %v1183_v16  ;;  %v1366_v30 = vadd.f32 %v1352_v11, %v1285_v20  ;;  %v3094_v31 = vpop.f32.mrb[26].mxu1 }
 0x11c   : > { %v1535_v33 = vpop.f32.mrb[27].mxu1 }
 0x11d   : > { %v1367_v34 = vadd.f32 %v1355_v15, %v1286_v29 }
 0x11f   : > { %v3085_v35 = vpop.f32.mrb[24].mxu0 }
 0x120   : > { %v1453_v36 = vadd.f32 %v3085_v35, %v1368_v23  ;;  %v1437_v37 = vpop.f32.mrb[25].mxu0 }
 0x121   : > { %v1451_v38 = vadd.f32 %v1437_v37, %v1366_v30  ;;  %v3086_v39 = vpop.f32.mrb[26].mxu0  ;;  %v3109_v40 = vpop.f32.mrb[28].mxu1 }
 0x122   : > { %v1548_v41 = vadd.f32 %v3093_v22, %v1453_v36  ;;  %v1440_v42 = vpop.f32.mrb[27].mxu0  ;;  %v1699_v43 = vpop.f32.mrb[29].mxu1 }
 0x123   : > { %v1452_v44 = vadd.f32 %v1440_v42, %v1367_v34  ;;  %v1546_v45 = vadd.f32 %v1532_v28, %v1451_v38  ;;  %v3110_v46 = vpop.f32.mrb[30].mxu1 }
 0x124   : > { %v1702_v48 = vpop.f32.mrb[31].mxu1 }
 0x125   : > { %v1547_v49 = vadd.f32 %v1535_v33, %v1452_v44 }
 0x127   : > { %v3101_v50 = vpop.f32.mrb[28].mxu0 }
 0x128   : > { %v1624_v51 = vadd.f32 %v3101_v50, %v1548_v41  ;;  %v1608_v52 = vpop.f32.mrb[29].mxu0 }
 0x129   : > { %v1622_v24 = vadd.f32 %v1608_v52, %v1546_v45  ;;  %v3102_v25 = vpop.f32.mrb[30].mxu0  ;;  %v3125_v53 = vpop.f32.mrb[32].mxu1 }
 0x12a   : > { %v1715_v54 = vadd.f32 %v3109_v40, %v1624_v51  ;;  %v1611_v55 = vpop.f32.mrb[31].mxu0  ;;  %v1875_v27 = vpop.f32.mrb[33].mxu1 }
 0x12b   : > { %v1623_v32 = vadd.f32 %v1611_v55, %v1547_v49  ;;  %v1713_v56 = vadd.f32 %v1699_v43, %v1622_v24  ;;  %v3126_v57 = vpop.f32.mrb[34].mxu1 }
 0x12c   : > { %v1878_v58 = vpop.f32.mrb[35].mxu1 }
 0x12d   : > { %v1714_v59 = vadd.f32 %v1702_v48, %v1623_v32 }
 0x12f   : > { %v3117_v60 = vpop.f32.mrb[32].mxu0 }
 0x130   : > { %v1810_v61 = vadd.f32 %v3117_v60, %v1715_v54  ;;  %v1794_v62 = vpop.f32.mrb[33].mxu0 }
 0x131   : > { %v1808_v63 = vadd.f32 %v1794_v62, %v1713_v56  ;;  %v3118_v0 = vpop.f32.mrb[34].mxu0  ;;  %v3137_v47 = vpop.f32.mrb[36].mxu1 }
 0x132   : > { %v1891_v1 = vadd.f32 %v3125_v53, %v1810_v61  ;;  %v1797_v2 = vpop.f32.mrb[35].mxu0  ;;  %v2040_v3 = vpop.f32.mrb[37].mxu1 }
 0x133   : > { %v1809_v4 = vadd.f32 %v1797_v2, %v1714_v59  ;;  %v1889_v5 = vadd.f32 %v1875_v27, %v1808_v63  ;;  %v3138_v6 = vpop.f32.mrb[38].mxu1  ;;  %v2881_v63 = vld [vmem:[%s3758_s6] ss:$0 sm:$0xff] }
 0x134   : > { %v2043_v7 = vpop.f32.mrb[39].mxu1 }
 0x135   : > { %v1890_v8 = vadd.f32 %v1878_v58, %v1809_v4 }
 0x137   : > { %v3131_v9 = vpop.f32.mrb[36].mxu0 }
 0x138   : > { %v1965_v10 = vadd.f32 %v3131_v9, %v1891_v1  ;;  %v1949_v11 = vpop.f32.mrb[37].mxu0 }
 0x139   : > { %v1963_v12 = vadd.f32 %v1949_v11, %v1889_v5  ;;  %v3132_v13 = vpop.f32.mrb[38].mxu0  ;;  %v3149_v14 = vpop.f32.mrb[40].mxu1 }
 0x13a   : > { %v2056_v15 = vadd.f32 %v3137_v47, %v1965_v10  ;;  %v1952_v16 = vpop.f32.mrb[39].mxu0  ;;  %v2182_v17 = vpop.f32.mrb[41].mxu1 }
 0x13b   : > { %v1964_v18 = vadd.f32 %v1952_v16, %v1890_v8  ;;  %v2054_v19 = vadd.f32 %v2040_v3, %v1963_v12  ;;  %v3150_v20 = vpop.f32.mrb[42].mxu1 }
 0x13c   : > { %v2185_v21 = vpop.f32.mrb[43].mxu1 }
 0x13d   : > { %v2055_v22 = vadd.f32 %v2043_v7, %v1964_v18 }
 0x13f   : > { %v3143_v23 = vpop.f32.mrb[40].mxu0 }
 0x140   : > { %v2125_v26 = vadd.f32 %v3143_v23, %v2056_v15  ;;  %v2109_v28 = vpop.f32.mrb[41].mxu0 }
 0x141   : > { %v2123_v29 = vadd.f32 %v2109_v28, %v2054_v19  ;;  %v3144_v30 = vpop.f32.mrb[42].mxu0  ;;  %v3161_v31 = vpop.f32.mrb[44].mxu1 }
 0x142   : > { %v2198_v33 = vadd.f32 %v3149_v14, %v2125_v26  ;;  %v2112_v34 = vpop.f32.mrb[43].mxu0  ;;  %v2329_v35 = vpop.f32.mrb[45].mxu1 }
 0x143   : > { %v2124_v36 = vadd.f32 %v2112_v34, %v2055_v22  ;;  %v2196_v37 = vadd.f32 %v2182_v17, %v2123_v29  ;;  %v3162_v38 = vpop.f32.mrb[46].mxu1 }
 0x144   : > { %v2332_v39 = vpop.f32.mrb[47].mxu1 }
 0x145   : > { %v2197_v40 = vadd.f32 %v2185_v21, %v2124_v36 }
 0x147   : > { %v3155_v41 = vpop.f32.mrb[44].mxu0 }
 0x148   : > { %v2281_v42 = vadd.f32 %v3155_v41, %v2198_v33  ;;  %v2265_v43 = vpop.f32.mrb[45].mxu0 }
 0x149   : > { %v2279_v44 = vadd.f32 %v2265_v43, %v2196_v37  ;;  %v3156_v45 = vpop.f32.mrb[46].mxu0  ;;  %v3173_v46 = vpop.f32.mrb[48].mxu1 }
 0x14a   : > { %v2345_v48 = vadd.f32 %v3161_v31, %v2281_v42  ;;  %v2268_v49 = vpop.f32.mrb[47].mxu0  ;;  %v2491_v50 = vpop.f32.mrb[49].mxu1 }
 0x14b   : > { %v2280_v51 = vadd.f32 %v2268_v49, %v2197_v40  ;;  %v2343_v52 = vadd.f32 %v2329_v35, %v2279_v44  ;;  %v3174_v24 = vpop.f32.mrb[50].mxu1 }
 0x14c   : > { %v2494_v25 = vpop.f32.mrb[51].mxu1 }
 0x14d   : > { %v2344_v53 = vadd.f32 %v2332_v39, %v2280_v51 }
 0x14f   : > { %v3167_v54 = vpop.f32.mrb[48].mxu0 }
 0x150   : > { %v2424_v55 = vadd.f32 %v3167_v54, %v2345_v48  ;;  %v2408_v27 = vpop.f32.mrb[49].mxu0 }
 0x151   : > { %v2422_v32 = vadd.f32 %v2408_v27, %v2343_v52  ;;  %v3168_v56 = vpop.f32.mrb[50].mxu0 }
 0x152   : > { %v2507_v57 = vadd.f32 %v3173_v46, %v2424_v55  ;;  %v2411_v58 = vpop.f32.mrb[51].mxu0 }
 0x153   : > { %v2423_v59 = vadd.f32 %v2411_v58, %v2344_v53  ;;  %v2505_v60 = vadd.f32 %v2491_v50, %v2422_v32 }
 0x155   : > { %v2506_v61 = vadd.f32 %v2494_v25, %v2423_v59 }
 0x157   : > { %v3179_v62 = vpop.f32.mrb[52].mxu0 }
 0x158   : > { %v2576_v0 = vadd.f32 %v3179_v62, %v2507_v57  ;;  %v2560_v47 = vpop.f32.mrb[53].mxu0 }
 0x159   : > { %v2574_v1 = vadd.f32 %v2560_v47, %v2505_v60  ;;  %v3180_v2 = vpop.f32.mrb[54].mxu0 }
 0x15a   : > { %v2586_v3 = vadd.f32 %v2881_v63, %v2576_v0  ;;  %v2563_v4 = vpop.f32.mrb[55].mxu0 }
 0x15b   : > { %v2584_v5 = vadd.f32 %v2881_v63, %v2574_v1  ;;  %v2575_v6 = vadd.f32 %v2563_v4, %v2506_v61 }
 0x15c   : > { %2589 = vst.msk [vmem:[%s318_s25 + $0x10] sm:$0xff] %vm1904_vm8, %v2586_v3 }
 0x15d   : > { %2587 = vst.msk [vmem:[%s318_s25] sm:$0xff] %vm1904_vm8, %v2584_v5  ;;  %v2585_v7 = vadd.f32 %v2881_v63, %v2575_v6 }
 0x15f   : > { %2588 = vst.msk [vmem:[%s318_s25 + $0x8] sm:$0xff] %vm1904_vm8, %v2585_v7 }
 0x160 PF: > { %s17_s24 = sadd.s32 1, %s3282_s24  }
 0x161   : > { %p14_p4 = scmp.ge.s32.totalorder %s17_s24, 4  }
 0x163   :  { %16 = sbr.rel (!%p14_p4) target bundleno = 1 (0x1), region = 108 }

// kernel: flownet_s_forward.18
= control target key start
LH: loop header
LB: loop body
LE: loop exit
PB: predicated region body
PF: predicated region fallthrough
CT: control target
= control target key end

     0   :  { %s1315_s12 = smov 0   ;;  %s1455_s0 = inlined_call_operand.vmem [shape: bf16[2,42,32], index: 0, kind: input, shape index: {}]   ;;  %s1456_s1 = inlined_call_operand.vmem [shape: bf16[9,32,64], index: 1, kind: input, shape index: {}]   ;;  %s1457_s2 = inlined_call_operand.vmem [shape: f32[1,64], index: 2, kind: input, shape index: {}]   ;;  %s1458_s3 = inlined_call_operand.vmem [shape: bf16[2,24,64], index: 3, kind: output, shape index: {}]  }
   0x1 LB: > { %s1041_s13 = sadd.s32 4294967295, %s1293_s12   ;;  %p1045_p0 = scmp.ge.s32.totalorder %s1293_s12, 1  ;;  %s1293_s12 = sphi %s1315_s12, %s13_s12  }
   0x2   : > { %p137_p1 = scmp.lt.s32.totalorder %s1293_s12, 3 }
   0x4   : > { %p138_p2 = pnand %p1045_p0, %p137_p1 }
   0x5   : > { %v1256_v0 = vld [vmem:[%s1456_s1 + $0x10] sm:$0xff] (!%p138_p2)   ;;  %p161_p3 = scmp.lt.s32.totalorder (!%p138_p2), %s1041_s13, 1  ;;  %v1257_v1 = vld [vmem:[%s1456_s1] sm:$0xff] (!%p138_p2)   ;;  %v1258_v2 = vld [vmem:[%s1456_s1 + $0x18] sm:$0xff] (!%p138_p2)   ;;  %vm223_vm0 = vcmask (!%p138_p2), 261120   ;;  %vm353_vm2 = vcmask (!%p138_p2), 1046528  }
   0x6   : > { %141 = sbr.rel (%p138_p2) target bundleno = 286 (0x11e), region = 32  ;;  %1174 = vmatprep.subr.bf16.mxu0 (!%p138_p2), %v1256_v0  ;;  %1182 = vmatprep.subr.bf16.mxu1 (!%p138_p2), %v1257_v1  ;;  %v1259_v3 = vld [vmem:[%s1456_s1 + $0x8] sm:$0xff] (!%p138_p2)   ;;  %v1262_v4 = vld [vmem:[%s1456_s1 + $0x20] sm:$0xff] (!%p138_p2)   ;;  %v1264_v5 = vld [vmem:[%s1456_s1 + $0x30] sm:$0xff] (!%p138_p2)   ;;  %vm195_vm1 = vsmask.f32 (!%p138_p2), 7424 }
   0x7   : > { %1175 = vmatpush3.bf16.msra.mxu0 (!%p138_p2), %v1256_v0  ;;  %1183 = vmatpush3.bf16.msra.mxu1 (!%p138_p2), %v1257_v1  ;;  %v1266_v13 = vld [vmem:[%s1456_s1 + $0x38] sm:$0xff] (!%p138_p2)   ;;  %v1271_v28 = vld [vmem:[%s1456_s1 + $0x50] sm:$0xff] (!%p138_p2)   ;;  %vm439_vm3 = vcmask (!%p138_p2), 1044480   ;;  %v1265_v36 = vld [vmem:[%s1456_s1 + $0x28] sm:$0xff] (!%p138_p2)   ;;  %vm521_vm4 = vsmask.f32 (!%p138_p2), 4352 }
   0x8   : > { %1176 = vmatprep.subr.bf16.mxu0 (!%p138_p2), %v1258_v2  ;;  %1184 = vmatprep.subr.bf16.mxu1 (!%p138_p2), %v1259_v3  ;;  %v1273_v42 = vld [vmem:[%s1456_s1 + $0x58] sm:$0xff] (!%p138_p2)   ;;  %v1268_v46 = vld [vmem:[%s1456_s1 + $0x40] sm:$0xff] (!%p138_p2)   ;;  %v1278_v50 = vld [vmem:[%s1456_s1 + $0x70] sm:$0xff] (!%p138_p2)   ;;  %vm785_vm5 = vsmask.f32 (!%p138_p2), 5376  ;;  %vm703_vm6 = vcmask (!%p138_p2), 1045504  }
   0x9   : > { %v1272_v61 = vld [vmem:[%s1456_s1 + $0x48] sm:$0xff] (!%p138_p2)   ;;  %vm982_vm7 = vcmask (!%p138_p2), 519168  }
   0xb   : > { %1177 = vmatpush3.bf16.msra.mxu0 (!%p138_p2), %v1258_v2  ;;  %1185 = vmatpush3.bf16.msra.mxu1 (!%p138_p2), %v1259_v3 }
   0xc   : > { %1190 = vmatprep.subr.bf16.mxu0 (!%p138_p2), %v1262_v4  ;;  %1198 = vmatprep.subr.bf16.mxu1 (!%p138_p2), %v1264_v5 }
   0xd   : > { %s1460_s13 = smov (!%p161_p3, %s1041_s13), 1 }
   0xe   : > { %s1246_s22 = smul.u32 24, %s1460_s13 }
   0xf   : > { %s1247_s4 = smul.u32 12, %s1460_s13 }
  0x10   : > { %s1344_s27 = scalar_lea.vmem %s1455_s0, %s1246_s22 }
  0x11   : > { %v172_v6 = vld [vmem:[%s1344_s27] sm:$0xf]  ;;  %v1351_v7 = vld [vmem:[%s1344_s27 + $0x4] sm:$0xf]  ;;  %v1354_v8 = vld [vmem:[%s1344_s27 + $0x8] sm:$0xf]  ;;  %s170_s7 = scalar_lea.vmem %s1458_s3, %s1247_s4 }
  0x12   : > { %v179_v9 = vld [vmem:[%s1344_s27 + $0xc] sm:$0x1]  ;;  %v1052_v10 = vcombine.low %v172_v6, %v1351_v7  ;;  %v1058_v11 = vcombine.low %v1354_v8, %v1354_v8  ;;  %v344_v14 = vld [vmem:[%s1344_s27] sm:$0xe]  ;;  %v1095_v41 = vcombine.low %v1351_v7, %v1354_v8  ;;  %v684_v52 = vld [vmem:[%s1344_s27 + $0x4] sm:$0xc] }
  0x13   : > { %v1361_v12 = vcombine.low %v1354_v8, %v179_v9  ;;  %v1067_v17 = vcombine.low %v344_v14, %v1351_v7  ;;  %v426_v21 = vld [vmem:[%s1344_s27] sm:$0x8]  ;;  %v427_v24 = vld [vmem:[%s1344_s27 + $0xc] sm:$0x7]  ;;  %v685_v53 = vld [vmem:[%s1344_s27 + $0x8] sm:$0xf] }
  0x14   : > { %v197_v15 = vshrl.u32 %v1052_v10, 16  ;;  %v199_v16 = vshll.u32 %v1052_v10, 16  ;;  %1186 = vmatprep.mubr.msk.bf16.mxu1 %vm223_vm0, %v1052_v10  ;;  %v1076_v25 = vcombine.low %v426_v21, %v1351_v7  ;;  %v1077_v27 = vcombine.low %v1354_v8, %v427_v24  ;;  %v512_v34 = vld [vmem:[%s1344_s27 + $0xc] sm:$0xf]  ;;  %v687_v56 = vld [vmem:[%s1344_s27 + $0x10] sm:$0x3] }
  0x15   : > { %v204_v18 = vshll.u32 %v1361_v12, 16  ;;  %v208_v19 = vshrl.u32 %v1361_v12, 16  ;;  %1187 = vmatmul.mubr.msk.bf16.vlgmr.msra.gmra.mrb[0].mxu1 %vm223_vm0, %v1058_v11  ;;  %v355_v20 = vrot.slane %v1361_v12, 1  ;;  %v354_v23 = vrot.slane %v1067_v17, 1  ;;  %v686_v54 = vld [vmem:[%s1344_s27 + $0xc] sm:$0xf] }
  0x16   : > { %v201_v22 = vrot.slane %v199_v16, 1  ;;  %1199 = vmatpush3.bf16.msra.mxu1 %v1264_v5  ;;  %v440_v30 = vrot.slane %v1076_v25, 3  ;;  %v441_v33 = vrot.slane %v1077_v27, 3  ;;  %v1086_v37 = vcombine.low %v1354_v8, %v512_v34  ;;  %v776_v58 = vld [vmem:[%s1344_s27 + $0x10] sm:$0x7]  ;;  %v1275_v9 = vld [vmem:[%s1456_s1 + $0x60] sm:$0xff]  }
  0x17   : > { %v206_v26 = vrot.slane %v204_v18, 1  ;;  %1200 = vmatprep.subr.bf16.mxu1 %v1266_v13  ;;  %v356_v32 = vsel %vm353_vm2, %v354_v23, %v355_v20  ;;  %v523_v38 = vshrl.u32 %v1076_v25, 16  ;;  %v526_v40 = vshll.u32 %v1076_v25, 16  ;;  %v872_v14 = vld [vmem:[%s1344_s27 + $0x4] sm:$0x8]  ;;  %v1279_v16 = vld [vmem:[%s1456_s1 + $0x68] sm:$0xff]  }
  0x18   : > { %v202_v29 = vor.u32 %v201_v22, %v197_v15  ;;  %v442_v39 = vsel %vm439_vm3, %v440_v30, %v441_v33  ;;  %v531_v44 = vshrl.u32 %v1086_v37, 16  ;;  %v534_v45 = vshll.u32 %v1086_v37, 16  ;;  %v1285_v22 = vld [vmem:[%s1456_s1 + $0x88] sm:$0xff]  }
  0x19   : > { %v210_v31 = vor.u32 %v208_v19, %v206_v26  ;;  %1202 = vmatprep.mubr.msk.bf16.mxu1 %vm223_vm0, %v442_v39  ;;  %v525_v43 = vrot.slane %v523_v38, 3  ;;  %v528_v47 = vrot.slane %v526_v40, 4  ;;  %v1105_v57 = vcombine.low %v684_v52, %v685_v53  ;;  %v1284_v19 = vld [vmem:[%s1456_s1 + $0x80] sm:$0xff]  }
  0x1a   : > { %v207_v35 = vsel %vm195_vm1, %v202_v29, %v206_v26  ;;  %1201 = vmatpush3.bf16.msra.mxu1 %v1266_v13  ;;  %v533_v48 = vrot.slane %v531_v44, 3  ;;  %v536_v49 = vrot.slane %v534_v45, 4  ;;  %v1096_v59 = vcombine.low %v512_v34, %v512_v34 }
  0x1b   : > { %1178 = vmatprep.mubr.msk.bf16.mxu0 %vm223_vm0, %v207_v35  ;;  %1214 = vmatprep.subr.bf16.mxu1 %v1271_v28  ;;  %v529_v51 = vor.u32 %v528_v47, %v525_v43  ;;  %v1115_v60 = vcombine.low %v686_v54, %v776_v58  ;;  %v1106_v63 = vcombine.low %v686_v54, %v687_v56  ;;  %v787_v0 = vshrl.u32 %v1105_v57, 16 }
  0x1c   : > { %1179 = vmatmul.mubr.msk.bf16.vlgmr.msra.gmra.mrb[0].mxu0 %vm223_vm0, %v210_v31  ;;  %v537_v55 = vor.u32 %v536_v49, %v533_v48  ;;  %v790_v1 = vshll.u32 %v1105_v57, 16  ;;  %v704_v10 = vrot.slane %v1105_v57, 2  ;;  %v1124_v18 = vcombine.low %v872_v14, %v685_v53  ;;  %v1129_v14 = vld [vmem:[%s1457_s2] ss:$0 sm:$0xff] }
  0x1d   : > { %1191 = vmatpush3.bf16.msra.mxu0 %v1262_v4  ;;  %1194 = vmatprep.mubr.msk.bf16.mxu0 %vm223_vm0, %v356_v32  ;;  %v795_v2 = vshrl.u32 %v1115_v60, 16  ;;  %v798_v3 = vshll.u32 %v1115_v60, 16  ;;  %v1280_v4 = vld [vmem:[%s1456_s1 + $0x78] sm:$0xff]   ;;  %v789_v5 = vrot.slane %v787_v0, 2  ;;  %v705_v11 = vrot.slane %v1106_v63, 2 }
  0x1e   : > { %1192 = vmatprep.subr.bf16.mxu0 %v1265_v36  ;;  %1203 = vmatmul.mubr.msk.bf16.vlgmr.msra.gmra.mrb[4].mxu1 %vm223_vm0, %v441_v33  ;;  %v538_v62 = vsel %vm521_vm4, %v529_v51, %v537_v55  ;;  %v792_v6 = vrot.slane %v790_v1, 3  ;;  %v882_v21 = vrot.slane %v1115_v60, 3 }
  0x1f   : > { %1215 = vmatpush3.bf16.msra.mxu1 %v1271_v28  ;;  %1218 = vmatprep.mubr.msk.bf16.mxu1 %vm223_vm0, %v1095_v41  ;;  %v797_v7 = vrot.slane %v795_v2, 2  ;;  %v800_v8 = vrot.slane %v798_v3, 3  ;;  %v706_v17 = vsel %vm703_vm6, %v704_v10, %v705_v11 }
  0x20   : > { %1216 = vmatprep.subr.bf16.mxu1 %v1273_v42  ;;  %v793_v12 = vor.u32 %v792_v6, %v789_v5 }
  0x21   : > { %1193 = vmatpush3.bf16.msra.mxu0 %v1265_v36  ;;  %v801_v13 = vor.u32 %v800_v8, %v797_v7 }
  0x22   : > { %1206 = vmatprep.subr.bf16.mxu0 %v1268_v46 }
  0x23   : > { %1217 = vmatpush3.bf16.msra.mxu1 %v1273_v42  ;;  %v802_v15 = vsel %vm785_vm5, %v793_v12, %v801_v13 }
  0x24   : > { %1195 = vmatmul.mubr.msk.bf16.vlgmr.msra.gmra.mrb[4].mxu0 %vm223_vm0, %v355_v20  ;;  %1230 = vmatprep.subr.bf16.mxu1 %v1278_v50  ;;  %v881_v20 = vrot.slane %v1124_v18, 3 }
  0x25   : > { %1207 = vmatpush3.bf16.msra.mxu0 %v1268_v46  ;;  %1210 = vmatprep.mubr.msk.bf16.mxu0 %vm223_vm0, %v538_v62 }
  0x26   : > { %1208 = vmatprep.subr.bf16.mxu0 %v1272_v61  ;;  %1219 = vmatmul.mubr.msk.bf16.vlgmr.msra.gmra.mrb[8].mxu1 %vm223_vm0, %v1096_v59  ;;  %v883_v23 = vsel %vm439_vm3, %v881_v20, %v882_v21 }
  0x27   : > { %1231 = vmatpush3.bf16.msra.mxu1 %v1278_v50  ;;  %1234 = vmatprep.mubr.msk.bf16.mxu1 %vm223_vm0, %v802_v15 }
  0x28   : > { %1232 = vmatprep.subr.bf16.mxu1 %v1280_v4 }
  0x29   : > { %1209 = vmatpush3.bf16.msra.mxu0 %v1272_v61 }
  0x2a   : > { %1222 = vmatprep.subr.bf16.mxu0 %v1275_v9 }
  0x2b   : > { %1233 = vmatpush3.bf16.msra.mxu1 %v1280_v4 }
  0x2c   : > { %1211 = vmatmul.mubr.msk.bf16.vlgmr.msra.gmra.mrb[8].mxu0 %vm223_vm0, %v537_v55 }
  0x2d   : > { %1223 = vmatpush3.bf16.msra.mxu0 %v1275_v9  ;;  %1226 = vmatprep.mubr.msk.bf16.mxu0 %vm223_vm0, %v706_v17 }
  0x2e   : > { %1224 = vmatprep.subr.bf16.mxu0 %v1279_v16  ;;  %1235 = vmatmul.mubr.msk.bf16.vlgmr.msra.gmra.mrb[12].mxu1 %vm223_vm0, %v801_v13 }
  0x31   : > { %1225 = vmatpush3.bf16.msra.mxu0 %v1279_v16 }
  0x32   : > { %1238 = vmatprep.subr.bf16.mxu0 %v1284_v19 }
  0x34   : > { %1227 = vmatmul.mubr.msk.bf16.vlgmr.msra.gmra.mrb[12].mxu0 %vm223_vm0, %v705_v11 }
  0x35   : > { %1239 = vmatpush3.bf16.msra.mxu0 %v1284_v19  ;;  %1242 = vmatprep.mubr.msk.bf16.mxu0 %vm223_vm0, %v883_v23 }
  0x36   : > { %1240 = vmatprep.subr.bf16.mxu0 %v1285_v22 }
  0x39   : > { %1241 = vmatpush3.bf16.msra.mxu0 %v1285_v22 }
  0x3c   : > { %1243 = vmatmul.mubr.msk.bf16.vlgmr.msra.gmra.mrb[16].mxu0 %vm223_vm0, %v882_v21 }
  0xe8   : > { %v1188_v24 = vpop.f32.mrb[0].mxu1 }
  0xe9   : > { %v330_v25 = vpop.f32.mrb[1].mxu1 }
  0xea   : > { %v1189_v26 = vpop.f32.mrb[2].mxu1 }
  0xeb   : > { %v333_v27 = vpop.f32.mrb[3].mxu1 }
  0xef   : > { %v1180_v28 = vpop.f32.mrb[0].mxu0 }
  0xf0   : > { %v339_v29 = vadd.f32 %v1188_v24, %v1180_v28  ;;  %v264_v30 = vpop.f32.mrb[1].mxu0 }
  0xf1   : > { %v331_v31 = vadd.f32 %v330_v25, %v264_v30  ;;  %v1181_v32 = vpop.f32.mrb[2].mxu0  ;;  %v1204_v33 = vpop.f32.mrb[4].mxu1 }
  0xf2   : > { %v267_v34 = vpop.f32.mrb[3].mxu0  ;;  %v495_v35 = vpop.f32.mrb[5].mxu1 }
  0xf3   : > { %v334_v36 = vadd.f32 %v333_v27, %v267_v34  ;;  %v1205_v37 = vpop.f32.mrb[6].mxu1 }
  0xf4   : > { %v498_v38 = vpop.f32.mrb[7].mxu1 }
  0xf7   : > { %v1196_v39 = vpop.f32.mrb[4].mxu0 }
  0xf8   : > { %v425_v40 = vadd.f32 %v1196_v39, %v339_v29  ;;  %v409_v41 = vpop.f32.mrb[5].mxu0 }
  0xf9   : > { %v423_v42 = vadd.f32 %v409_v41, %v331_v31  ;;  %v1197_v43 = vpop.f32.mrb[6].mxu0  ;;  %v1220_v44 = vpop.f32.mrb[8].mxu1 }
  0xfa   : > { %v511_v45 = vadd.f32 %v1204_v33, %v425_v40  ;;  %v412_v46 = vpop.f32.mrb[7].mxu0  ;;  %v667_v47 = vpop.f32.mrb[9].mxu1 }
  0xfb   : > { %v424_v48 = vadd.f32 %v412_v46, %v334_v36  ;;  %v509_v49 = vadd.f32 %v495_v35, %v423_v42  ;;  %v1221_v50 = vpop.f32.mrb[10].mxu1 }
  0xfc   : > { %v670_v51 = vpop.f32.mrb[11].mxu1 }
  0xfd   : > { %v510_v52 = vadd.f32 %v498_v38, %v424_v48 }
  0xff   : > { %v1212_v53 = vpop.f32.mrb[8].mxu0 }
 0x100   : > { %v607_v54 = vadd.f32 %v1212_v53, %v511_v45  ;;  %v591_v55 = vpop.f32.mrb[9].mxu0 }
 0x101   : > { %v605_v56 = vadd.f32 %v591_v55, %v509_v49  ;;  %v1213_v57 = vpop.f32.mrb[10].mxu0  ;;  %v1236_v58 = vpop.f32.mrb[12].mxu1 }
 0x102   : > { %v683_v59 = vadd.f32 %v1220_v44, %v607_v54  ;;  %v594_v60 = vpop.f32.mrb[11].mxu0  ;;  %v855_v61 = vpop.f32.mrb[13].mxu1 }
 0x103   : > { %v606_v62 = vadd.f32 %v594_v60, %v510_v52  ;;  %v681_v63 = vadd.f32 %v667_v47, %v605_v56  ;;  %v1237_v0 = vpop.f32.mrb[14].mxu1 }
 0x104   : > { %v858_v1 = vpop.f32.mrb[15].mxu1 }
 0x105   : > { %v682_v2 = vadd.f32 %v670_v51, %v606_v62 }
 0x107   : > { %v1228_v3 = vpop.f32.mrb[12].mxu0 }
 0x108   : > { %v775_v4 = vadd.f32 %v1228_v3, %v683_v59  ;;  %v759_v5 = vpop.f32.mrb[13].mxu0 }
 0x109   : > { %v773_v6 = vadd.f32 %v759_v5, %v681_v63  ;;  %v1229_v7 = vpop.f32.mrb[14].mxu0 }
 0x10a   : > { %v871_v8 = vadd.f32 %v1236_v58, %v775_v4  ;;  %v762_v9 = vpop.f32.mrb[15].mxu0 }
 0x10b   : > { %v774_v10 = vadd.f32 %v762_v9, %v682_v2  ;;  %v869_v11 = vadd.f32 %v855_v61, %v773_v6 }
 0x10d   : > { %v870_v12 = vadd.f32 %v858_v1, %v774_v10 }
 0x10f   : > { %v1244_v13 = vpop.f32.mrb[16].mxu0 }
 0x110   : > { %v952_v15 = vadd.f32 %v1244_v13, %v871_v8  ;;  %v936_v16 = vpop.f32.mrb[17].mxu0 }
 0x111   : > { %v950_v17 = vadd.f32 %v936_v16, %v869_v11  ;;  %v1245_v18 = vpop.f32.mrb[18].mxu0 }
 0x112   : > { %v962_v19 = vadd.f32 %v1129_v14, %v952_v15  ;;  %v939_v20 = vpop.f32.mrb[19].mxu0 }
 0x113   : > { %v960_v21 = vadd.f32 %v1129_v14, %v950_v17  ;;  %v951_v22 = vadd.f32 %v939_v20, %v870_v12 }
 0x114   : > { %v965_v23 = vmul.f32 0.1, %v962_v19 }
 0x115   : > { %v963_v24 = vmul.f32 0.1, %v960_v21  ;;  %v961_v25 = vadd.f32 %v1129_v14, %v951_v22 }
 0x116   : > { %v968_v26 = vmax.f32 %v962_v19, %v965_v23 }
 0x117   : > { %v966_v27 = vmax.f32 %v960_v21, %v963_v24  ;;  %v964_v28 = vmul.f32 0.1, %v961_v25 }
 0x118   : > { %v1137_v29 = vpack.c.bf16 %v968_v26, %v968_v26 }
 0x119   : > { %v1135_v30 = vpack.c.bf16 %v966_v27, %v966_v27  ;;  %v967_v31 = vmax.f32 %v961_v25, %v964_v28 }
 0x11a   : > { %985 = vst.msk [vmem:[%s170_s7 + $0x8] sm:$0xf] %vm982_vm7, %v1137_v29 }
 0x11b   : > { %983 = vst.msk [vmem:[%s170_s7] sm:$0xf] %vm982_vm7, %v1135_v30  ;;  %v1136_v32 = vpack.c.bf16 %v967_v31, %v967_v31 }
 0x11d   : > { %984 = vst.msk [vmem:[%s170_s7 + $0x4] sm:$0xf] %vm982_vm7, %v1136_v32 }
 0x11e PF: > { %s13_s12 = sadd.s32 1, %s1293_s12  }
 0x11f   : > { %p10_p4 = scmp.ge.s32.totalorder %s13_s12, 4  }
 0x121   :  { %12 = sbr.rel (!%p10_p4) target bundleno = 1 (0x1), region = 70 }

// kernel: flownet_s_forward.19
= control target key start
LH: loop header
LB: loop body
LE: loop exit
PB: predicated region body
PF: predicated region fallthrough
CT: control target
= control target key end

     0   :  { %s5557_s24 = smov 0   ;;  %s6881_s0 = inlined_call_operand.vmem [shape: bf16[2,110,16], index: 0, kind: input, shape index: {}]   ;;  %s6882_s1 = inlined_call_operand.vmem [shape: bf16[2,110,16], index: 1, kind: input, shape index: {}]   ;;  %s6883_s2 = inlined_call_operand.vmem [shape: bf16[2,110,2], index: 2, kind: input, shape index: {}]   ;;  %s6884_s3 = inlined_call_operand.vmem [shape: bf16[9,16,2], index: 3, kind: input, shape index: {}]   ;;  %s6885_s4 = inlined_call_operand.vmem [shape: bf16[9,16,2], index: 4, kind: input, shape index: {}]   ;;  %s6886_s5 = inlined_call_operand.vmem [shape: bf16[9,2,2], index: 5, kind: input, shape index: {}]   ;;  %s6887_s6 = inlined_call_operand.vmem [shape: f32[1,2], index: 6, kind: input, shape index: {}]   ;;  %s6888_s7 = inlined_call_operand.vmem [shape: f32[2,80,2], index: 7, kind: output, shape index: {}]  }
   0x1 LB: > { %s4356_s25 = sadd.s32 4294967295, %s5513_s24   ;;  %p4360_p0 = scmp.ge.s32.totalorder %s5513_s24, 1  ;;  %s5513_s24 = sphi %s5557_s24, %s17_s24  }
   0x2   : > { %p257_p1 = scmp.lt.s32.totalorder %s5513_s24, 3 }
   0x4   : > { %p258_p2 = pnand %p4360_p0, %p257_p1 }
   0x5   : > { %v5410_v0 = vld [vmem:[%s6884_s3 + $0x8] sm:$0xff] (!%p258_p2)   ;;  %v5515_v1 = vmov (!%p258_p2), 0.0   ;;  %p299_p3 = scmp.lt.s32.totalorder (!%p258_p2), %s4356_s25, 1  ;;  %vm5516_vm0 = vmmov (!%p258_p2), 0   ;;  %vm364_vm1 = vsmask.f32 (!%p258_p2), 7424 }
   0x6   : > { %261 = sbr.rel (%p258_p2) target bundleno = 782 (0x30e), region = 48  ;;  %4802 = vmatprep.subr.bf16.mxu0 (!%p258_p2), %v5515_v1  ;;  %5396 = vmatprep.subr.bf16.mxu1 (!%p258_p2), %v5515_v1  ;;  %vm415_vm2 = vcmask (!%p258_p2), 130048   ;;  %v5415_v20 = vld [vmem:[%s6884_s3 + $0x10] sm:$0xff] (!%p258_p2)   ;;  %v5416_v24 = vld [vmem:[%s6884_s3] sm:$0xff] (!%p258_p2)   ;;  %v5419_v41 = vld [vmem:[%s6884_s3 + $0x18] sm:$0xff] (!%p258_p2)   ;;  %vm600_vm3 = vcmask (!%p258_p2), 1046528  }
   0x7   : > { %4803 = vmatpush3.bf16.msra.mxu0 (!%p258_p2), %v5410_v0  ;;  %5397 = vmatpush3.bf16.msra.mxu1 (!%p258_p2), %v5410_v0  ;;  %v5421_v45 = vld [vmem:[%s6884_s3 + $0x20] sm:$0xff] (!%p258_p2)   ;;  %vm880_vm4 = vsmask.f32 (!%p258_p2), 6400  ;;  %vm1045_vm5 = vcmask (!%p258_p2), 1045504   ;;  %vm1325_vm6 = vsmask.f32 (!%p258_p2), 5376 }
   0x8   : > { %4804 = vmatprep.mubr.msk.bf16.mxu0 (!%p258_p2), %vm5516_vm0, %v5515_v1  ;;  %4816 = vmatprep.mubr.msk.bf16.mxu1 (!%p258_p2), %vm5516_vm0, %v5515_v1  ;;  %vm1490_vm7 = vcmask (!%p258_p2), 1044480   ;;  %vm2997_vm8 = vcmask (!%p258_p2), 1040384   ;;  %vm2981_vm9 = vcmask (!%p258_p2), 15360  }
   0x9   : > { %4846 = vmatprep.subr.bf16.mxu0 (!%p258_p2), %v5515_v1  ;;  %4824 = vmatprep.subr.bf16.mxu1 (!%p258_p2), %v5515_v1 }
   0xd   : > { %s6890_s25 = smov (!%p299_p3, %s4356_s25), 1 }
   0xe   : > { %s5579_s28 = smul.u32 56, %s6890_s25 }
  0x10   : > { %s5585_s8 = scalar_lea.vmem %s6881_s0, %s5579_s28  ;;  %s5654_s17 = scalar_lea.vmem %s6882_s1, %s5579_s28 }
  0x11   : > { %v320_v2 = vld [vmem:[%s5585_s8] sm:$0xf]  ;;  %v321_v3 = vld [vmem:[%s5585_s8 + $0x4] sm:$0xf]  ;;  %v5590_v5 = vld [vmem:[%s5585_s8 + $0x8] sm:$0xff]   ;;  %s5700_s22 = scalar_lea.vmem %s6883_s2, %s5579_s28 }
  0x12   : > { %v4367_v4 = vcombine.low %v320_v2, %v321_v3  ;;  %v373_v8 = vshll.u32 %v5590_v5, 16  ;;  %v5594_v9 = vld [vmem:[%s5585_s8 + $0x18] sm:$0xff]   ;;  %v5597_v10 = vld [vmem:[%s5585_s8 + $0x20] sm:$0xff]   ;;  %v5600_v11 = vld [vmem:[%s5585_s8 + $0x10] sm:$0xff]   ;;  %v377_v21 = vshrl.u32 %v5590_v5, 16  ;;  %v602_v43 = vrot.slane %v5590_v5, 1 }
  0x13   : > { %v389_v14 = vshll.u32 %v5594_v9, 16  ;;  %v393_v15 = vshrl.u32 %v5594_v9, 16  ;;  %v397_v16 = vshll.u32 %v5597_v10, 16  ;;  %v5606_v17 = vld [vmem:[%s5585_s8 + $0x28] ss:$0 sps:$4 sm:$0x11]  }
  0x14   : > { %v366_v6 = vshrl.u32 %v4367_v4, 16  ;;  %v368_v7 = vshll.u32 %v4367_v4, 16  ;;  %v375_v13 = vrot.slane %v373_v8, 1  ;;  %v381_v22 = vshll.u32 %v5600_v11, 16  ;;  %v593_v38 = vld [vmem:[%s5585_s8] sm:$0xe] }
  0x15   : > { %v391_v19 = vrot.slane %v389_v14, 1  ;;  %v399_v23 = vrot.slane %v397_v16, 1  ;;  %v401_v27 = vshrl.u32 %v5597_v10, 16  ;;  %v405_v28 = vshll.u32 %v5606_v17, 16  ;;  %v5682_v51 = vld [vmem:[%s5585_s8 + $0xc] sm:$0xff]  }
  0x16   : > { %v370_v12 = vrot.slane %v368_v7, 1  ;;  %v379_v30 = vor.u32 %v377_v21, %v375_v13  ;;  %v383_v31 = vrot.slane %v381_v22, 1  ;;  %v385_v35 = vshrl.u32 %v5600_v11, 16  ;;  %v716_v52 = vld [vmem:[%s5585_s8 + $0x4] sm:$0xe] }
  0x17   : > { %v395_v26 = vor.u32 %v393_v15, %v391_v19  ;;  %v403_v32 = vor.u32 %v401_v27, %v399_v23  ;;  %v407_v33 = vrot.slane %v405_v28, 1  ;;  %v4387_v40 = vcombine.low %v593_v38, %v321_v3  ;;  %v5688_v53 = vld [vmem:[%s5585_s8 + $0x8] sm:$0xf] }
  0x18   : > { %v371_v18 = vor.u32 %v370_v12, %v366_v6  ;;  %v384_v34 = vsel %vm364_vm1, %v379_v30, %v383_v31  ;;  %v387_v37 = vor.u32 %v385_v35, %v383_v31  ;;  %v604_v46 = vrot.slane %v5600_v11, 1  ;;  %v5718_v6 = vld [vmem:[%s5585_s8 + $0x14] sm:$0xff]   ;;  %v5752_v27 = vld [vmem:[%s5585_s8 + $0x24] sm:$0xff]   ;;  %v5765_v35 = vld [vmem:[%s5585_s8 + $0x2c] ss:$0 sps:$4 sm:$0x33]  }
  0x19   : > { %v400_v29 = vsel %vm364_vm1, %v395_v26, %v399_v23  ;;  %v408_v36 = vsel %vm364_vm1, %v403_v32, %v407_v33  ;;  %v601_v42 = vrot.slane %v4387_v40, 1  ;;  %v606_v48 = vrot.slane %v5594_v9, 1 }
  0x1a   : > { %v376_v25 = vsel %vm364_vm1, %v371_v18, %v375_v13  ;;  %4817 = vmatmul.mubr.msk.bf16.vlgmr.msra.gmra.mrb[0].mxu1 %vm415_vm2, %v400_v29  ;;  %v392_v39 = vsel %vm364_vm1, %v387_v37, %v391_v19  ;;  %v605_v47 = vsel %vm600_vm3, %v602_v43, %v604_v46  ;;  %v608_v50 = vrot.slane %v5597_v10, 1  ;;  %v5426_v13 = vld [vmem:[%s6884_s3 + $0x30] sm:$0xff]   ;;  %v5737_v18 = vld [vmem:[%s5585_s8 + $0x1c] sm:$0xff]   ;;  %v5429_v37 = vld [vmem:[%s5585_s8 + $0x2c] ss:$0 sps:$4 sm:$0x11]  }
  0x1b   : > { %4805 = vmatmul.mubr.msk.bf16.vlgmr.msra.gmra.mrb[0].mxu0 %vm415_vm2, %v376_v25  ;;  %4825 = vmatpush3.bf16.msra.mxu1 %v5416_v24  ;;  %v603_v44 = vsel %vm600_vm3, %v601_v42, %v602_v43  ;;  %v607_v49 = vsel %vm600_vm3, %v604_v46, %v606_v48  ;;  %v890_v54 = vshrl.u32 %v5682_v51, 16  ;;  %v893_v55 = vshll.u32 %v5682_v51, 16  ;;  %v1038_v42 = vld [vmem:[%s5585_s8 + $0x4] sm:$0xc] }
  0x1c   : > { %4847 = vmatpush3.bf16.msra.mxu0 %v5415_v20  ;;  %4808 = vmatprep.mubr.msk.bf16.mxu0 %vm5516_vm0, %v5515_v1  ;;  %v609_v56 = vsel %vm600_vm3, %v606_v48, %v608_v50  ;;  %v4396_v57 = vcombine.low %v716_v52, %v5688_v53  ;;  %v610_v60 = vrot.slane %v5606_v17, 1  ;;  %v759_v62 = vrot.slane %v5682_v51, 1 }
  0x1d   : > { %4890 = vmatprep.subr.bf16.mxu0 %v5515_v1  ;;  %4820 = vmatprep.mubr.msk.bf16.mxu1 %vm5516_vm0, %v5515_v1  ;;  %v892_v63 = vrot.slane %v890_v54, 1  ;;  %v895_v0 = vrot.slane %v893_v55, 2  ;;  %v899_v8 = vshrl.u32 %v5718_v6, 16  ;;  %v761_v12 = vrot.slane %v5718_v6, 1 }
  0x1e   : > { %4868 = vmatprep.subr.bf16.mxu1 %v5515_v1  ;;  %v882_v58 = vshrl.u32 %v4396_v57, 16  ;;  %v885_v59 = vshll.u32 %v4396_v57, 16  ;;  %v758_v61 = vrot.slane %v4396_v57, 1  ;;  %v908_v20 = vshrl.u32 %v5737_v18, 16 }
  0x1f   : > { %v901_v14 = vrot.slane %v899_v8, 1  ;;  %v762_v17 = vsel %vm600_vm3, %v759_v62, %v761_v12  ;;  %v911_v21 = vshll.u32 %v5737_v18, 16  ;;  %v763_v22 = vrot.slane %v5737_v18, 1 }
  0x20   : > { %v884_v2 = vrot.slane %v882_v58, 1  ;;  %v887_v3 = vrot.slane %v885_v59, 2  ;;  %v760_v7 = vsel %vm600_vm3, %v758_v61, %v759_v62  ;;  %v910_v24 = vrot.slane %v908_v20, 1  ;;  %v5432_v58 = vld [vmem:[%s6884_s3 + $0x38] sm:$0xff]   ;;  %v5435_v62 = vld [vmem:[%s6884_s3 + $0x40] sm:$0xff]  }
  0x21   : > { %v913_v25 = vrot.slane %v911_v21, 2  ;;  %v764_v26 = vsel %vm600_vm3, %v761_v12, %v763_v22  ;;  %v917_v29 = vshrl.u32 %v5752_v27, 16  ;;  %v920_v30 = vshll.u32 %v5752_v27, 16 }
  0x22   : > { %4821 = vmatmul.mubr.msk.bf16.gmra.mrb[4].mxu1 %vm415_vm2, %v408_v36  ;;  %v765_v31 = vrot.slane %v5752_v27, 1  ;;  %v929_v40 = vshll.u32 %v5765_v35, 16  ;;  %v1047_v54 = vrot.slane %v5682_v51, 2  ;;  %v1053_v8 = vrot.slane %v5752_v27, 2 }
  0x23   : > { %4809 = vmatmul.mubr.msk.bf16.gmra.mrb[4].mxu0 %vm415_vm2, %v384_v34  ;;  %4826 = vmatprep.mubr.msk.bf16.mxu1 %vm5516_vm0, %v5515_v1  ;;  %v914_v28 = vor.u32 %v913_v25, %v910_v24  ;;  %v919_v33 = vrot.slane %v917_v29, 1  ;;  %v922_v34 = vrot.slane %v920_v30, 2 }
  0x24   : > { %4812 = vmatprep.mubr.msk.bf16.mxu0 %vm5516_vm0, %v5515_v1  ;;  %v766_v36 = vsel %vm600_vm3, %v763_v22, %v765_v31 }
  0x25   : > { %v923_v38 = vor.u32 %v922_v34, %v919_v33  ;;  %v5440_v34 = vld [vmem:[%s6885_s4] sm:$0xff]  }
  0x27   : > { %v924_v43 = vsel %vm880_vm4, %v914_v28, %v923_v38 }
  0x2a   : > { %4827 = vmatmul.mubr.msk.bf16.vlgmr.msra.gmra.mrb[8].mxu1 %vm415_vm2, %v4367_v4  ;;  %v611_v4 = vsel %vm600_vm3, %v608_v50, %v610_v60  ;;  %v5787_v50 = vld [vmem:[%s5585_s8 + $0xc] sm:$0xf]  ;;  %v1049_v60 = vrot.slane %v5718_v6, 2 }
  0x2b   : > { %4813 = vmatmul.mubr.msk.bf16.gmra.mrb[8].mxu0 %vm415_vm2, %v392_v39  ;;  %4869 = vmatpush3.bf16.msra.mxu1 %v5419_v41  ;;  %v926_v39 = vshrl.u32 %v5765_v35, 16  ;;  %v767_v41 = vrot.slane %v5429_v37, 1 }
  0x2c   : > { %4848 = vmatprep.mubr.msk.bf16.mxu0 %vm5516_vm0, %v5515_v1  ;;  %4830 = vmatprep.mubr.msk.bf16.mxu1 %vm5516_vm0, %v5515_v1 }
  0x2d   : > { %4912 = vmatprep.subr.bf16.mxu1 %v5515_v1  ;;  %v768_v46 = vsel %vm600_vm3, %v765_v31, %v767_v41 }
  0x32   : > { %4831 = vmatmul.mubr.msk.bf16.gmra.mrb[12].mxu1 %vm415_vm2, %v5590_v5  ;;  %v5424_v5 = vld [vmem:[%s6884_s3 + $0x28] sm:$0xff]  }
  0x33   : > { %4849 = vmatmul.mubr.msk.bf16.vlgmr.msra.gmra.mrb[12].mxu0 %vm415_vm2, %v603_v44  ;;  %4834 = vmatprep.mubr.msk.bf16.mxu1 %vm5516_vm0, %v5515_v1  ;;  %v928_v44 = vrot.slane %v926_v39, 1 }
  0x34   : > { %4891 = vmatpush3.bf16.msra.mxu0 %v5421_v45  ;;  %4852 = vmatprep.mubr.msk.bf16.mxu0 %vm5516_vm0, %v5515_v1  ;;  %v931_v45 = vrot.slane %v929_v40, 2 }
  0x35   : > { %4934 = vmatprep.subr.bf16.mxu0 %v5515_v1 }
  0x36   : > { %v932_v48 = vor.u32 %v931_v45, %v928_v44 }
  0x3a   : > { %4835 = vmatmul.mubr.msk.bf16.gmra.mrb[16].mxu1 %vm415_vm2, %v5600_v11  ;;  %v896_v11 = vor.u32 %v895_v0, %v892_v63  ;;  %v5815_v63 = vld [vmem:[%s5585_s8 + $0x18] sm:$0xff]   ;;  %v1050_v0 = vsel %vm1045_vm5, %v1047_v54, %v1049_v60 }
  0x3b   : > { %4853 = vmatmul.mubr.msk.bf16.gmra.mrb[16].mxu0 %vm415_vm2, %v605_v47  ;;  %4838 = vmatprep.mubr.msk.bf16.mxu1 %vm5516_vm0, %v5515_v1  ;;  %v4419_v47 = vcombine.low %v1038_v42, %v5688_v53  ;;  %v933_v53 = vsel %vm880_vm4, %v923_v38, %v932_v48  ;;  %v1344_v29 = vshrl.u32 %v5815_v63, 16  ;;  %v1347_v30 = vshll.u32 %v5815_v63, 16 }
  0x3c   : > { %4856 = vmatprep.mubr.msk.bf16.mxu0 %vm5516_vm0, %v5515_v1 }
  0x3d   : > { %v1046_v52 = vrot.slane %v4419_v47, 2  ;;  %v1494_v47 = vrot.slane %v5815_v63, 3 }
  0x3f   : > { %v1048_v57 = vsel %vm1045_vm5, %v1046_v52, %v1047_v54 }
  0x42   : > { %4839 = vmatmul.mubr.msk.bf16.gmra.mrb[20].mxu1 %vm415_vm2, %v5594_v9  ;;  %v902_v9 = vshll.u32 %v5718_v6, 16 }
  0x43   : > { %4857 = vmatmul.mubr.msk.bf16.gmra.mrb[20].mxu0 %vm415_vm2, %v607_v49  ;;  %4842 = vmatprep.mubr.msk.bf16.mxu1 %vm5516_vm0, %v5515_v1  ;;  %v1161_v49 = vld [vmem:[%s5585_s8 + $0x8] sm:$0xc] }
  0x44   : > { %4860 = vmatprep.mubr.msk.bf16.mxu0 %vm5516_vm0, %v5515_v1  ;;  %v904_v15 = vrot.slane %v902_v9, 2  ;;  %v4428_v55 = vcombine.low %v1161_v49, %v5787_v50 }
  0x46   : > { %v905_v19 = vor.u32 %v904_v15, %v901_v14  ;;  %v1203_v51 = vrot.slane %v4428_v55, 2  ;;  %v1327_v14 = vshrl.u32 %v4428_v55, 16  ;;  %v1330_v15 = vshll.u32 %v4428_v55, 16 }
  0x48   : > { %v906_v23 = vsel %vm880_vm4, %v896_v11, %v905_v19  ;;  %v915_v32 = vsel %vm880_vm4, %v905_v19, %v914_v28  ;;  %v5439_v19 = vld [vmem:[%s5585_s8 + $0x30] ss:$0 sps:$4 sm:$0x33]   ;;  %v1329_v21 = vrot.slane %v1327_v14, 2  ;;  %v1332_v22 = vrot.slane %v1330_v15, 3  ;;  %v5444_v15 = vld [vmem:[%s5654_s17] sm:$0xff]  }
  0x49   : > { %v1212_v25 = vrot.slane %v5439_v19, 2  ;;  %v5943_v19 = vld [vmem:[%s5654_s17 + $0x10] sm:$0xff]  }
  0x4a   : > { %4843 = vmatmul.mubr.msk.bf16.gmra.mrb[24].mxu1 %vm415_vm2, %v5597_v10  ;;  %v888_v10 = vor.u32 %v887_v3, %v884_v2  ;;  %v1206_v2 = vrot.slane %v5815_v63, 2  ;;  %v1051_v3 = vrot.slane %v5737_v18, 2  ;;  %v1333_v27 = vor.u32 %v1332_v22, %v1329_v21  ;;  %v5449_v21 = vld [vmem:[%s6885_s4 + $0x18] sm:$0xff]  }
  0x4b   : > { %4861 = vmatmul.mubr.msk.bf16.gmra.mrb[24].mxu0 %vm415_vm2, %v609_v56  ;;  %4870 = vmatprep.mubr.msk.bf16.mxu1 %vm5516_vm0, %v5515_v1  ;;  %v5795_v56 = vld [vmem:[%s5585_s8 + $0x10] sm:$0xff]  }
  0x4c   : > { %4864 = vmatprep.mubr.msk.bf16.mxu0 %vm5516_vm0, %v5515_v1  ;;  %v897_v16 = vsel %vm880_vm4, %v888_v10, %v896_v11  ;;  %v1204_v59 = vrot.slane %v5795_v56, 2  ;;  %v1052_v6 = vsel %vm1045_vm5, %v1049_v60, %v1051_v3  ;;  %v5842_v10 = vld [vmem:[%s5585_s8 + $0x28] sm:$0xff]   ;;  %v1054_v11 = vsel %vm1045_vm5, %v1051_v3, %v1053_v8  ;;  %v5917_v3 = vld [vmem:[%s5654_s17 + $0x4] sm:$0xf] }
  0x4d   : > { %v1210_v12 = vrot.slane %v5842_v10, 2  ;;  %v1492_v38 = vrot.slane %v5795_v56, 3  ;;  %v1362_v49 = vshrl.u32 %v5842_v10, 16 }
  0x4e   : > { %v1205_v61 = vsel %vm1045_vm5, %v1203_v51, %v1204_v59 }
  0x4f   : > { %v1213_v31 = vsel %vm1045_vm5, %v1210_v12, %v1212_v25  ;;  %v1495_v52 = vsel %vm1490_vm7, %v1492_v38, %v1494_v47 }
  0x52   : > { %4871 = vmatmul.mubr.msk.bf16.vlgmr.msra.gmra.mrb[28].mxu1 %vm415_vm2, %v760_v7 }
  0x53   : > { %4865 = vmatmul.mubr.msk.bf16.gmra.mrb[28].mxu0 %vm415_vm2, %v611_v4  ;;  %4913 = vmatpush3.bf16.msra.mxu1 %v5424_v5  ;;  %v1207_v4 = vsel %vm1045_vm5, %v1204_v59, %v1206_v2  ;;  %v5829_v5 = vld [vmem:[%s5585_s8 + $0x20] sm:$0xff]  }
  0x54   : > { %4892 = vmatprep.mubr.msk.bf16.mxu0 %vm5516_vm0, %v5515_v1  ;;  %4874 = vmatprep.mubr.msk.bf16.mxu1 %vm5516_vm0, %v5515_v1  ;;  %v1208_v7 = vrot.slane %v5829_v5, 2  ;;  %v1353_v40 = vshrl.u32 %v5829_v5, 16  ;;  %v1356_v41 = vshll.u32 %v5829_v5, 16 }
  0x55   : > { %4956 = vmatprep.subr.bf16.mxu1 %v5515_v1 }
  0x56   : > { %v1209_v9 = vsel %vm1045_vm5, %v1206_v2, %v1208_v7  ;;  %v1211_v18 = vsel %vm1045_vm5, %v1208_v7, %v1210_v12  ;;  %v1355_v45 = vrot.slane %v1353_v40, 2  ;;  %v1747_v2 = vld [vmem:[%s5654_s17] sm:$0xf] }
  0x5a   : > { %4875 = vmatmul.mubr.msk.bf16.gmra.mrb[32].mxu1 %vm415_vm2, %v762_v17  ;;  %v1338_v17 = vshll.u32 %v5795_v56, 16 }
  0x5b   : > { %4893 = vmatmul.mubr.msk.bf16.vlgmr.msra.gmra.mrb[32].mxu0 %vm415_vm2, %v897_v16  ;;  %4878 = vmatprep.mubr.msk.bf16.mxu1 %vm5516_vm0, %v5515_v1  ;;  %v1335_v16 = vshrl.u32 %v5795_v56, 16  ;;  %v5443_v56 = vld [vmem:[%s5585_s8 + $0x30] ss:$0 sps:$4 sm:$0x77]  }
  0x5c   : > { %4935 = vmatpush3.bf16.msra.mxu0 %v5426_v13  ;;  %4896 = vmatprep.mubr.msk.bf16.mxu0 %vm5516_vm0, %v5515_v1  ;;  %v1055_v13 = vrot.slane %v5765_v35, 2  ;;  %v1340_v24 = vrot.slane %v1338_v17, 3  ;;  %v1346_v35 = vrot.slane %v1344_v29, 2  ;;  %v1371_v51 = vshrl.u32 %v5443_v56, 16 }
  0x5d   : > { %4978 = vmatprep.subr.bf16.mxu0 %v5515_v1  ;;  %v1374_v59 = vshll.u32 %v5443_v56, 16  ;;  %v1809_v29 = vshrl.u32 %v5943_v19, 16 }
  0x5e   : > { %v1056_v20 = vsel %vm1045_vm5, %v1053_v8, %v1055_v13  ;;  %v1500_v8 = vrot.slane %v5443_v56, 3 }
  0x5f   : > { %v1376_v63 = vrot.slane %v1374_v59, 3 }
  0x62   : > { %4879 = vmatmul.mubr.msk.bf16.gmra.mrb[36].mxu1 %vm415_vm2, %v764_v26  ;;  %v1483_v26 = vld [vmem:[%s5585_s8 + $0x8] sm:$0x8] }
  0x63   : > { %4897 = vmatmul.mubr.msk.bf16.gmra.mrb[36].mxu0 %vm415_vm2, %v906_v23  ;;  %4882 = vmatprep.mubr.msk.bf16.mxu1 %vm5516_vm0, %v5515_v1  ;;  %v1337_v23 = vrot.slane %v1335_v16, 2  ;;  %v5445_v16 = vld [vmem:[%s6885_s4 + $0x10] sm:$0xff]  }
  0x64   : > { %4900 = vmatprep.mubr.msk.bf16.mxu0 %vm5516_vm0, %v5515_v1 }
  0x65   : > { %v1341_v28 = vor.u32 %v1340_v24, %v1337_v23  ;;  %v1805_v23 = vshll.u32 %v5943_v19, 16  ;;  %v5446_v24 = vld [vmem:[%s5654_s17 + $0x8] sm:$0xff]  }
  0x67   : > { %v1342_v33 = vsel %vm1325_vm6, %v1333_v27, %v1341_v28  ;;  %v5960_v27 = vld [vmem:[%s5654_s17 + $0x18] sm:$0xff]  }
  0x6a   : > { %4883 = vmatmul.mubr.msk.bf16.gmra.mrb[40].mxu1 %vm415_vm2, %v766_v36  ;;  %v1349_v36 = vrot.slane %v1347_v30, 3  ;;  %v1813_v30 = vshll.u32 %v5960_v27, 16 }
  0x6b   : > { %4901 = vmatmul.mubr.msk.bf16.gmra.mrb[40].mxu0 %vm415_vm2, %v915_v32  ;;  %4886 = vmatprep.mubr.msk.bf16.mxu1 %vm5516_vm0, %v5515_v1  ;;  %v4451_v32 = vcombine.low %v1483_v26, %v5787_v50  ;;  %v1365_v50 = vshll.u32 %v5842_v10, 16  ;;  %v1807_v26 = vrot.slane %v1805_v23, 1 }
  0x6c   : > { %4904 = vmatprep.mubr.msk.bf16.mxu0 %vm5516_vm0, %v5515_v1  ;;  %v1350_v39 = vor.u32 %v1349_v36, %v1346_v35  ;;  %v1817_v36 = vshrl.u32 %v5960_v27, 16 }
  0x6d   : > { %v1491_v37 = vrot.slane %v4451_v32, 3  ;;  %v1367_v55 = vrot.slane %v1365_v50, 3  ;;  %v1811_v32 = vor.u32 %v1809_v29, %v1807_v26  ;;  %v2059_v50 = vld [vmem:[%s5654_s17 + $0x4] sm:$0xe] }
  0x6e   : > { %v1351_v44 = vsel %vm1325_vm6, %v1341_v28, %v1350_v39 }
  0x6f   : > { %v1493_v42 = vsel %vm1490_vm7, %v1491_v37, %v1492_v38  ;;  %v5452_v38 = vld [vmem:[%s5654_s17 + $0x18] sm:$0xff]  }
  0x72   : > { %4887 = vmatmul.mubr.msk.bf16.gmra.mrb[44].mxu1 %vm415_vm2, %v768_v46  ;;  %v1358_v46 = vrot.slane %v1356_v41, 3  ;;  %v5987_v41 = vld [vmem:[%s5654_s17 + $0x28] ss:$0 sps:$4 sm:$0x11]  }
  0x73   : > { %4905 = vmatmul.mubr.msk.bf16.gmra.mrb[44].mxu0 %vm415_vm2, %v924_v43  ;;  %4914 = vmatprep.mubr.msk.bf16.mxu1 %vm5516_vm0, %v5515_v1  ;;  %v5442_v43 = vld [vmem:[%s6885_s4 + $0x8] sm:$0xff]  }
  0x74   : > { %4908 = vmatprep.mubr.msk.bf16.mxu0 %vm5516_vm0, %v5515_v1  ;;  %v1359_v48 = vor.u32 %v1358_v46, %v1355_v45  ;;  %v1829_v45 = vshll.u32 %v5987_v41, 16  ;;  %v5454_v46 = vld [vmem:[%s5654_s17 + $0x20] sm:$0xff]  }
  0x76   : > { %v1360_v54 = vsel %vm1325_vm6, %v1350_v39, %v1359_v48 }
  0x7a   : > { %4915 = vmatmul.mubr.msk.bf16.vlgmr.msra.gmra.mrb[48].mxu1 %vm415_vm2, %v1048_v57  ;;  %v1496_v57 = vrot.slane %v5829_v5, 3 }
  0x7b   : > { %4909 = vmatmul.mubr.msk.bf16.gmra.mrb[48].mxu0 %vm415_vm2, %v933_v53  ;;  %4957 = vmatpush3.bf16.msra.mxu1 %v5432_v58  ;;  %v1364_v53 = vrot.slane %v1362_v49, 2  ;;  %v1831_v49 = vrot.slane %v1829_v45, 1 }
  0x7c   : > { %4936 = vmatprep.mubr.msk.bf16.mxu0 %vm5516_vm0, %v5515_v1  ;;  %4918 = vmatprep.mubr.msk.bf16.mxu1 %vm5516_vm0, %v5515_v1  ;;  %v1497_v60 = vsel %vm1490_vm7, %v1494_v47, %v1496_v57 }
  0x7d   : > { %5000 = vmatprep.subr.bf16.mxu1 %v5515_v1  ;;  %v1368_v58 = vor.u32 %v1367_v55, %v1364_v53 }
  0x82   : > { %4919 = vmatmul.mubr.msk.bf16.gmra.mrb[52].mxu1 %vm415_vm2, %v1050_v0  ;;  %v1498_v0 = vrot.slane %v5842_v10, 3 }
  0x83   : > { %4937 = vmatmul.mubr.msk.bf16.vlgmr.msra.gmra.mrb[52].mxu0 %vm415_vm2, %v1205_v61  ;;  %4922 = vmatprep.mubr.msk.bf16.mxu1 %vm5516_vm0, %v5515_v1  ;;  %v1369_v61 = vsel %vm1325_vm6, %v1359_v48, %v1368_v58 }
  0x84   : > { %4979 = vmatpush3.bf16.msra.mxu0 %v5435_v62  ;;  %4940 = vmatprep.mubr.msk.bf16.mxu0 %vm5516_vm0, %v5515_v1  ;;  %v1373_v62 = vrot.slane %v1371_v51, 2  ;;  %v1499_v5 = vsel %vm1490_vm7, %v1496_v57, %v1498_v0 }
  0x85   : > { %5022 = vmatprep.subr.bf16.mxu0 %v5515_v1 }
  0x8a   : > { %4923 = vmatmul.mubr.msk.bf16.gmra.mrb[56].mxu1 %vm415_vm2, %v1052_v6  ;;  %v4471_v6 = vcombine.low %v1747_v2, %v5917_v3  ;;  %v5458_v2 = vld [vmem:[%s6885_s4 + $0x20] sm:$0xff]  }
  0x8b   : > { %4941 = vmatmul.mubr.msk.bf16.gmra.mrb[56].mxu0 %vm415_vm2, %v1207_v4  ;;  %4926 = vmatprep.mubr.msk.bf16.mxu1 %vm5516_vm0, %v5515_v1  ;;  %v1377_v4 = vor.u32 %v1376_v63, %v1373_v62 }
  0x8c   : > { %4944 = vmatprep.mubr.msk.bf16.mxu0 %vm5516_vm0, %v5515_v1  ;;  %v1792_v10 = vshll.u32 %v4471_v6, 16  ;;  %v1790_v12 = vshrl.u32 %v4471_v6, 16 }
  0x8d   : > { %v1378_v7 = vsel %vm1325_vm6, %v1368_v58, %v1377_v4 }
  0x8e   : > { %v1794_v13 = vrot.slane %v1792_v10, 1 }
  0x90   : > { %v1795_v17 = vor.u32 %v1794_v13, %v1790_v12  ;;  %v5461_v12 = vld [vmem:[%s6885_s4 + $0x28] sm:$0xff]   ;;  %v6041_v13 = vld [vmem:[%s5654_s17 + $0x14] sm:$0xff]  }
  0x92   : > { %4927 = vmatmul.mubr.msk.bf16.gmra.mrb[60].mxu1 %vm415_vm2, %v1054_v11  ;;  %v1501_v11 = vsel %vm1490_vm7, %v1498_v0, %v1500_v8 }
  0x93   : > { %4945 = vmatmul.mubr.msk.bf16.gmra.mrb[60].mxu0 %vm415_vm2, %v1209_v9  ;;  %4930 = vmatprep.mubr.msk.bf16.mxu1 %vm5516_vm0, %v5515_v1  ;;  %v5928_v9 = vld [vmem:[%s5654_s17 + $0x8] sm:$0xff]  }
  0x94   : > { %4948 = vmatprep.mubr.msk.bf16.mxu0 %vm5516_vm0, %v5515_v1  ;;  %v1797_v14 = vshll.u32 %v5928_v9, 16  ;;  %v1801_v22 = vshrl.u32 %v5928_v9, 16  ;;  %v1945_v55 = vrot.slane %v5928_v9, 1 }
  0x9a   : > { %4931 = vmatmul.mubr.msk.bf16.gmra.mrb[64].mxu1 %vm415_vm2, %v1056_v20 }
  0x9b   : > { %4949 = vmatmul.mubr.msk.bf16.gmra.mrb[64].mxu0 %vm415_vm2, %v1211_v18  ;;  %4958 = vmatprep.mubr.msk.bf16.mxu1 %vm5516_vm0, %v5515_v1  ;;  %v1799_v18 = vrot.slane %v1797_v14, 1 }
  0x9c   : > { %4952 = vmatprep.mubr.msk.bf16.mxu0 %vm5516_vm0, %v5515_v1 }
  0x9d   : > { %v1800_v20 = vsel %vm364_vm1, %v1795_v17, %v1799_v18  ;;  %v1803_v25 = vor.u32 %v1801_v22, %v1799_v18 }
  0x9f   : > { %v1808_v28 = vsel %vm364_vm1, %v1803_v25, %v1807_v26  ;;  %v6057_v26 = vld [vmem:[%s5654_s17 + $0x1c] sm:$0xff]  }
  0xa2   : > { %4959 = vmatmul.mubr.msk.bf16.vlgmr.msra.gmra.mrb[68].mxu1 %vm415_vm2, %v1342_v33  ;;  %v1815_v33 = vrot.slane %v1813_v30, 1 }
  0xa3   : > { %4953 = vmatmul.mubr.msk.bf16.gmra.mrb[68].mxu0 %vm415_vm2, %v1213_v31  ;;  %5001 = vmatpush3.bf16.msra.mxu1 %v5440_v34  ;;  %v5450_v31 = vld [vmem:[%s5654_s17 + $0x10] sm:$0xff]   ;;  %v5974_v34 = vld [vmem:[%s5654_s17 + $0x20] sm:$0xff]  }
  0xa4   : > { %4980 = vmatprep.mubr.msk.bf16.mxu0 %vm5516_vm0, %v5515_v1  ;;  %4962 = vmatprep.mubr.msk.bf16.mxu1 %vm5516_vm0, %v5515_v1  ;;  %v1816_v35 = vsel %vm364_vm1, %v1811_v32, %v1815_v33  ;;  %v1821_v37 = vshll.u32 %v5974_v34, 16  ;;  %v1819_v39 = vor.u32 %v1817_v36, %v1815_v33 }
  0xa5   : > { %5044 = vmatprep.subr.bf16.mxu1 %v5515_v1 }
  0xa6   : > { %v1823_v40 = vrot.slane %v1821_v37, 1  ;;  %v1951_v37 = vrot.slane %v5974_v34, 1 }
  0xaa   : > { %4963 = vmatmul.mubr.msk.bf16.gmra.mrb[72].mxu1 %vm415_vm2, %v1351_v44  ;;  %v1825_v44 = vshrl.u32 %v5974_v34, 16 }
  0xab   : > { %4981 = vmatmul.mubr.msk.bf16.vlgmr.msra.gmra.mrb[72].mxu0 %vm415_vm2, %v1493_v42  ;;  %4966 = vmatprep.mubr.msk.bf16.mxu1 %vm5516_vm0, %v5515_v1  ;;  %v1937_v42 = vld [vmem:[%s5654_s17] sm:$0xe] }
  0xac   : > { %5023 = vmatpush3.bf16.msra.mxu0 %v5442_v43  ;;  %4984 = vmatprep.mubr.msk.bf16.mxu0 %vm5516_vm0, %v5515_v1  ;;  %v1824_v43 = vsel %vm364_vm1, %v1819_v39, %v1823_v40  ;;  %v4485_v47 = vcombine.low %v1937_v42, %v5917_v3  ;;  %v1827_v48 = vor.u32 %v1825_v44, %v1823_v40  ;;  %v6072_v44 = vld [vmem:[%s5654_s17 + $0x24] sm:$0xff]  }
  0xad   : > { %5066 = vmatprep.subr.bf16.mxu0 %v5515_v1 }
  0xae   : > { %v1944_v53 = vrot.slane %v4485_v47, 1  ;;  %v1832_v51 = vsel %vm364_vm1, %v1827_v48, %v1831_v49 }
  0xb0   : > { %v1946_v0 = vsel %vm600_vm3, %v1944_v53, %v1945_v55  ;;  %v2108_v53 = vrot.slane %v6072_v44, 1 }
  0xb2   : > { %4967 = vmatmul.mubr.msk.bf16.gmra.mrb[76].mxu1 %vm415_vm2, %v1360_v54 }
  0xb3   : > { %4985 = vmatmul.mubr.msk.bf16.gmra.mrb[76].mxu0 %vm415_vm2, %v1495_v52  ;;  %4970 = vmatprep.mubr.msk.bf16.mxu1 %vm5516_vm0, %v5515_v1  ;;  %v6004_v52 = vld [vmem:[%s5654_s17 + $0x8] sm:$0xf] }
  0xb4   : > { %4988 = vmatprep.mubr.msk.bf16.mxu0 %vm5516_vm0, %v5515_v1  ;;  %v6013_v59 = vcombine.low %v2059_v50, %v6004_v52 }
  0xb6   : > { %v2101_v4 = vrot.slane %v6013_v59, 1 }
  0xba   : > { %4971 = vmatmul.mubr.msk.bf16.gmra.mrb[80].mxu1 %vm415_vm2, %v1369_v61 }
  0xbb   : > { %4989 = vmatmul.mubr.msk.bf16.gmra.mrb[80].mxu0 %vm415_vm2, %v1497_v60  ;;  %4974 = vmatprep.mubr.msk.bf16.mxu1 %vm5516_vm0, %v5515_v1  ;;  %v6016_v60 = vld [vmem:[%s5654_s17 + $0xc] sm:$0xff]  }
  0xbc   : > { %4992 = vmatprep.mubr.msk.bf16.mxu0 %vm5516_vm0, %v5515_v1 }
  0xc2   : > { %4975 = vmatmul.mubr.msk.bf16.gmra.mrb[84].mxu1 %vm415_vm2, %v1378_v7  ;;  %v1947_v7 = vrot.slane %v5943_v19, 1  ;;  %v2104_v19 = vrot.slane %v6041_v13, 1 }
  0xc3   : > { %4993 = vmatmul.mubr.msk.bf16.gmra.mrb[84].mxu0 %vm415_vm2, %v1499_v5  ;;  %5002 = vmatprep.mubr.msk.bf16.mxu1 %vm5516_vm0, %v5515_v1  ;;  %v2102_v5 = vrot.slane %v6016_v60, 1 }
  0xc4   : > { %4996 = vmatprep.mubr.msk.bf16.mxu0 %vm5516_vm0, %v5515_v1  ;;  %v1948_v17 = vsel %vm600_vm3, %v1945_v55, %v1947_v7  ;;  %v1953_v55 = vrot.slane %v5987_v41, 1  ;;  %v5465_v41 = vld [vmem:[%s5654_s17 + $0x2c] ss:$0 sps:$4 sm:$0x11]  }
  0xc5   : > { %v2105_v25 = vsel %vm600_vm3, %v2102_v5, %v2104_v19 }
  0xca   : > { %5003 = vmatmul.mubr.msk.bf16.vlgmr.msra.gmra.mrb[88].mxu1 %vm415_vm2, %v5444_v15 }
  0xcb   : > { %4997 = vmatmul.mubr.msk.bf16.gmra.mrb[88].mxu0 %vm415_vm2, %v1501_v11  ;;  %5045 = vmatpush3.bf16.msra.mxu1 %v5445_v16  ;;  %v2103_v11 = vsel %vm600_vm3, %v2101_v4, %v2102_v5 }
  0xcc   : > { %5024 = vmatprep.mubr.msk.bf16.mxu0 %vm5516_vm0, %v5515_v1  ;;  %5006 = vmatprep.mubr.msk.bf16.mxu1 %vm5516_vm0, %v5515_v1 }
  0xcd   : > { %5088 = vmatprep.subr.bf16.mxu1 %v5515_v1 }
  0xd2   : > { %5007 = vmatmul.mubr.msk.bf16.gmra.mrb[92].mxu1 %vm415_vm2, %v5446_v24 }
  0xd3   : > { %5025 = vmatmul.mubr.msk.bf16.vlgmr.msra.gmra.mrb[92].mxu0 %vm415_vm2, %v1800_v20  ;;  %5010 = vmatprep.mubr.msk.bf16.mxu1 %vm5516_vm0, %v5515_v1 }
  0xd4   : > { %5067 = vmatpush3.bf16.msra.mxu0 %v5449_v21  ;;  %5028 = vmatprep.mubr.msk.bf16.mxu0 %vm5516_vm0, %v5515_v1  ;;  %v1949_v21 = vrot.slane %v5960_v27, 1  ;;  %v2106_v27 = vrot.slane %v6057_v26, 1 }
  0xd5   : > { %5110 = vmatprep.subr.bf16.mxu0 %v5515_v1 }
  0xd6   : > { %v1950_v32 = vsel %vm600_vm3, %v1947_v7, %v1949_v21  ;;  %v1952_v50 = vsel %vm600_vm3, %v1949_v21, %v1951_v37  ;;  %v2109_v5 = vsel %vm600_vm3, %v2106_v27, %v2108_v53  ;;  %v2380_v21 = vld [vmem:[%s5654_s17 + $0x4] sm:$0xc] }
  0xda   : > { %5011 = vmatmul.mubr.msk.bf16.gmra.mrb[96].mxu1 %vm415_vm2, %v5450_v31 }
  0xdb   : > { %5029 = vmatmul.mubr.msk.bf16.gmra.mrb[96].mxu0 %vm415_vm2, %v1808_v28  ;;  %5014 = vmatprep.mubr.msk.bf16.mxu1 %vm5516_vm0, %v5515_v1 }
  0xdc   : > { %5032 = vmatprep.mubr.msk.bf16.mxu0 %vm5516_vm0, %v5515_v1 }
  0xe2   : > { %5015 = vmatmul.mubr.msk.bf16.gmra.mrb[100].mxu1 %vm415_vm2, %v5452_v38 }
  0xe3   : > { %5033 = vmatmul.mubr.msk.bf16.gmra.mrb[100].mxu0 %vm415_vm2, %v1816_v35  ;;  %5018 = vmatprep.mubr.msk.bf16.mxu1 %vm5516_vm0, %v5515_v1 }
  0xe4   : > { %5036 = vmatprep.mubr.msk.bf16.mxu0 %vm5516_vm0, %v5515_v1 }
  0xea   : > { %5019 = vmatmul.mubr.msk.bf16.gmra.mrb[104].mxu1 %vm415_vm2, %v5454_v46 }
  0xeb   : > { %5037 = vmatmul.mubr.msk.bf16.gmra.mrb[104].mxu0 %vm415_vm2, %v1824_v43  ;;  %5046 = vmatprep.mubr.msk.bf16.mxu1 %vm5516_vm0, %v5515_v1  ;;  %v2107_v43 = vsel %vm600_vm3, %v2104_v19, %v2106_v27 }
  0xec   : > { %5040 = vmatprep.mubr.msk.bf16.mxu0 %vm5516_vm0, %v5515_v1 }
  0xed   : > { %v6009_v58 = vpop.f32.mrb[0].mxu1 }
  0xee   : > { %v465_v54 = vpop.f32.mrb[0].mxu0  ;;  %v4818_v62 = vpop.f32.mrb[1].mxu1 }
  0xef   : > { %v4806_v56 = vpop.f32.mrb[1].mxu0  ;;  %v6018_v63 = vpop.f32.mrb[2].mxu1  ;;  %v2235_v62 = vshll.u32 %v6016_v60, 16 }
  0xf0   : > { %v468_v57 = vpop.f32.mrb[2].mxu0  ;;  %v4819_v3 = vpop.f32.mrb[3].mxu1 }
  0xf1   : > { %v4807_v61 = vpop.f32.mrb[3].mxu0 }
  0xf2   : > { %5047 = vmatmul.mubr.msk.bf16.vlgmr.msra.gmra.mrb[108].mxu1 %vm415_vm2, %v1946_v0  ;;  %v2232_v61 = vshrl.u32 %v6016_v60, 16 }
  0xf3   : > { %5041 = vmatmul.mubr.msk.bf16.gmra.mrb[108].mxu0 %vm415_vm2, %v1832_v51  ;;  %5089 = vmatpush3.bf16.msra.mxu1 %v5458_v2  ;;  %v2227_v51 = vshll.u32 %v6013_v59, 16 }
  0xf4   : > { %5068 = vmatprep.mubr.msk.bf16.mxu0 %vm5516_vm0, %v5515_v1  ;;  %5050 = vmatprep.mubr.msk.bf16.mxu1 %vm5516_vm0, %v5515_v1 }
  0xf5   : > { %5132 = vmatprep.subr.bf16.mxu1 %v5515_v1  ;;  %v6034_v10 = vpop.f32.mrb[4].mxu1 }
  0xf6   : > { %v473_v6 = vpop.f32.mrb[4].mxu0  ;;  %v4822_v15 = vpop.f32.mrb[5].mxu1 }
  0xf7   : > { %v4810_v8 = vpop.f32.mrb[5].mxu0  ;;  %v6043_v16 = vpop.f32.mrb[6].mxu1  ;;  %v2234_v15 = vrot.slane %v2232_v61, 1 }
  0xf8   : > { %v476_v9 = vpop.f32.mrb[6].mxu0  ;;  %v4823_v18 = vpop.f32.mrb[7].mxu1 }
  0xf9   : > { %v4811_v14 = vpop.f32.mrb[7].mxu0 }
  0xfa   : > { %5051 = vmatmul.mubr.msk.bf16.gmra.mrb[112].mxu1 %vm415_vm2, %v1948_v17  ;;  %v2229_v14 = vrot.slane %v2227_v51, 2  ;;  %v2237_v17 = vrot.slane %v2235_v62, 2  ;;  %v5468_v51 = vld [vmem:[%s6885_s4 + $0x38] sm:$0xff]  }
  0xfb   : > { %5069 = vmatmul.mubr.msk.bf16.vlgmr.msra.gmra.mrb[112].mxu0 %vm415_vm2, %v2103_v11  ;;  %5054 = vmatprep.mubr.msk.bf16.mxu1 %vm5516_vm0, %v5515_v1 }
  0xfc   : > { %5111 = vmatpush3.bf16.msra.mxu0 %v5461_v12  ;;  %5072 = vmatprep.mubr.msk.bf16.mxu0 %vm5516_vm0, %v5515_v1 }
  0xfd   : > { %5154 = vmatprep.subr.bf16.mxu0 %v5515_v1  ;;  %v554_v23 = vpop.f32.mrb[8].mxu1 }
  0xfe   : > { %v481_v20 = vpop.f32.mrb[8].mxu0  ;;  %v555_v28 = vadd.f32 %v554_v23, %v465_v54  ;;  %v4828_v29 = vpop.f32.mrb[9].mxu1 }
  0xff   : > { %v4814_v22 = vpop.f32.mrb[9].mxu0  ;;  %v557_v31 = vpop.f32.mrb[10].mxu1 }
 0x100   : > { %v484_v24 = vpop.f32.mrb[10].mxu0  ;;  %v558_v33 = vadd.f32 %v557_v31, %v468_v57  ;;  %v4829_v35 = vpop.f32.mrb[11].mxu1  ;;  %v2224_v57 = vshrl.u32 %v6013_v59, 16  ;;  %v1954_v59 = vsel %vm600_vm3, %v1951_v37, %v1953_v55 }
 0x101   : > { %v4815_v30 = vpop.f32.mrb[11].mxu0  ;;  %v4517_v35 = vcombine.low %v2380_v21, %v6004_v52 }
 0x102   : > { %5055 = vmatmul.mubr.msk.bf16.gmra.mrb[116].mxu1 %vm415_vm2, %v1950_v32  ;;  %v2226_v12 = vrot.slane %v2224_v57, 1 }
 0x103   : > { %5073 = vmatmul.mubr.msk.bf16.gmra.mrb[116].mxu0 %vm415_vm2, %v2105_v25  ;;  %5058 = vmatprep.mubr.msk.bf16.mxu1 %vm5516_vm0, %v5515_v1  ;;  %v2238_v25 = vor.u32 %v2237_v17, %v2234_v15 }
 0x104   : > { %5076 = vmatprep.mubr.msk.bf16.mxu0 %vm5516_vm0, %v5515_v1  ;;  %v2230_v23 = vor.u32 %v2229_v14, %v2226_v12  ;;  %v2262_v12 = vshll.u32 %v6072_v44, 16 }
 0x105   : > { %v562_v40 = vpop.f32.mrb[12].mxu1 }
 0x106   : > { %v667_v36 = vpop.f32.mrb[12].mxu0  ;;  %v563_v45 = vadd.f32 %v562_v40, %v473_v6  ;;  %v4832_v46 = vpop.f32.mrb[13].mxu1 }
 0x107   : > { %v4850_v38 = vpop.f32.mrb[13].mxu0  ;;  %v6068_v39 = vadd.f32 %v667_v36, %v555_v28  ;;  %v565_v49 = vpop.f32.mrb[14].mxu1  ;;  %v2241_v28 = vshrl.u32 %v6041_v13, 16 }
 0x108   : > { %v670_v42 = vpop.f32.mrb[14].mxu0  ;;  %v566_v54 = vadd.f32 %v565_v49, %v476_v9  ;;  %v4833_v34 = vpop.f32.mrb[15].mxu1  ;;  %v2388_v49 = vrot.slane %v6016_v60, 2 }
 0x109   : > { %v4851_v47 = vpop.f32.mrb[15].mxu0  ;;  %v6074_v48 = vadd.f32 %v670_v42, %v558_v33  ;;  %v2239_v42 = vsel %vm880_vm4, %v2230_v23, %v2238_v25  ;;  %v2250_v34 = vshrl.u32 %v6057_v26, 16 }
 0x10a   : > { %5059 = vmatmul.mubr.msk.bf16.gmra.mrb[120].mxu1 %vm415_vm2, %v1952_v50 }
 0x10b   : > { %5077 = vmatmul.mubr.msk.bf16.gmra.mrb[120].mxu0 %vm415_vm2, %v2107_v43  ;;  %5062 = vmatprep.mubr.msk.bf16.mxu1 %vm5516_vm0, %v5515_v1  ;;  %v5466_v43 = vld [vmem:[%s6885_s4 + $0x30] sm:$0xff]  }
 0x10c   : > { %5080 = vmatprep.mubr.msk.bf16.mxu0 %vm5516_vm0, %v5515_v1 }
 0x10d   : > { %v570_v3 = vpop.f32.mrb[16].mxu1 }
 0x10e   : > { %v675_v56 = vpop.f32.mrb[16].mxu0  ;;  %v571_v6 = vadd.f32 %v570_v3, %v481_v20  ;;  %v4836_v7 = vpop.f32.mrb[17].mxu1  ;;  %v2110_v20 = vrot.slane %v5465_v41, 1  ;;  %v2252_v41 = vrot.slane %v2250_v34, 1 }
 0x10f   : > { %v6089_v0 = vadd.f32 %v675_v56, %v563_v45  ;;  %v4854_v2 = vpop.f32.mrb[17].mxu0  ;;  %v573_v11 = vpop.f32.mrb[18].mxu1  ;;  %v2243_v45 = vrot.slane %v2241_v28, 1 }
 0x110   : > { %v678_v4 = vpop.f32.mrb[18].mxu0  ;;  %v574_v18 = vadd.f32 %v573_v11, %v484_v24  ;;  %v4837_v19 = vpop.f32.mrb[19].mxu1  ;;  %v2244_v24 = vshll.u32 %v6041_v13, 16  ;;  %v2111_v33 = vsel %vm600_vm3, %v2108_v53, %v2110_v20 }
 0x111   : > { %v6093_v8 = vadd.f32 %v678_v4, %v566_v54  ;;  %v4855_v9 = vpop.f32.mrb[19].mxu0 }
 0x112   : > { %5063 = vmatmul.mubr.msk.bf16.gmra.mrb[124].mxu1 %vm415_vm2, %v1954_v59  ;;  %v2246_v46 = vrot.slane %v2244_v24, 2  ;;  %v2264_v24 = vrot.slane %v2262_v12, 2 }
 0x113   : > { %5081 = vmatmul.mubr.msk.bf16.gmra.mrb[124].mxu0 %vm415_vm2, %v2109_v5  ;;  %5090 = vmatprep.mubr.msk.bf16.mxu1 %vm5516_vm0, %v5515_v1 }
 0x114   : > { %5084 = vmatprep.mubr.msk.bf16.mxu0 %vm5516_vm0, %v5515_v1  ;;  %v2247_v54 = vor.u32 %v2246_v46, %v2243_v45 }
 0x115   : > { %v578_v31 = vpop.f32.mrb[20].mxu1 }
 0x116   : > { %v683_v22 = vpop.f32.mrb[20].mxu0  ;;  %v579_v27 = vadd.f32 %v578_v31, %v6009_v58  ;;  %v4840_v36 = vpop.f32.mrb[21].mxu1  ;;  %v2387_v58 = vrot.slane %v4517_v35, 2  ;;  %v2248_v5 = vsel %vm880_vm4, %v2238_v25, %v2247_v54 }
 0x117   : > { %v6105_v29 = vadd.f32 %v683_v22, %v571_v6  ;;  %v4858_v30 = vpop.f32.mrb[21].mxu0  ;;  %v581_v40 = vpop.f32.mrb[22].mxu1 }
 0x118   : > { %v686_v32 = vpop.f32.mrb[22].mxu0  ;;  %v582_v47 = vadd.f32 %v581_v40, %v6018_v63  ;;  %v4841_v52 = vpop.f32.mrb[23].mxu1  ;;  %v2253_v63 = vshll.u32 %v6057_v26, 16  ;;  %v2389_v60 = vsel %vm1045_vm5, %v2387_v58, %v2388_v49  ;;  %v6156_v30 = vld [vmem:[%s5654_s17 + $0x2c] ss:$0 sps:$4 sm:$0x33]  }
 0x119   : > { %v6110_v37 = vadd.f32 %v686_v32, %v574_v18  ;;  %v4859_v38 = vpop.f32.mrb[23].mxu0  ;;  %v2271_v36 = vshll.u32 %v6156_v30, 16 }
 0x11a   : > { %5091 = vmatmul.mubr.msk.bf16.vlgmr.msra.gmra.mrb[128].mxu1 %vm415_vm2, %v2239_v42  ;;  %v2255_v6 = vrot.slane %v2253_v63, 2 }
 0x11b   : > { %5085 = vmatmul.mubr.msk.bf16.gmra.mrb[128].mxu0 %vm415_vm2, %v2111_v33  ;;  %5133 = vmatpush3.bf16.msra.mxu1 %v5466_v43 }
 0x11c   : > { %5112 = vmatprep.mubr.msk.bf16.mxu0 %vm5516_vm0, %v5515_v1  ;;  %5094 = vmatprep.mubr.msk.bf16.mxu1 %vm5516_vm0, %v5515_v1  ;;  %v2256_v11 = vor.u32 %v2255_v6, %v2252_v41 }
 0x11d   : > { %5176 = vmatprep.subr.bf16.mxu1 %v5515_v1  ;;  %v586_v56 = vpop.f32.mrb[24].mxu1 }
 0x11e   : > { %v691_v50 = vpop.f32.mrb[24].mxu0  ;;  %v587_v61 = vadd.f32 %v586_v56, %v6034_v10  ;;  %v4844_v62 = vpop.f32.mrb[25].mxu1  ;;  %v2390_v10 = vrot.slane %v6041_v13, 2  ;;  %v2257_v25 = vsel %vm880_vm4, %v2247_v54, %v2256_v11 }
 0x11f   : > { %v6126_v53 = vadd.f32 %v691_v50, %v579_v27  ;;  %v4862_v55 = vpop.f32.mrb[25].mxu0  ;;  %v589_v4 = vpop.f32.mrb[26].mxu1  ;;  %v2268_v27 = vshrl.u32 %v6156_v30, 16  ;;  %v2273_v50 = vrot.slane %v2271_v36, 2  ;;  %v5472_v36 = vld [vmem:[%s6885_s4 + $0x40] sm:$0xff]  }
 0x120   : > { %v694_v57 = vpop.f32.mrb[26].mxu0  ;;  %v590_v7 = vadd.f32 %v589_v4, %v6043_v16  ;;  %v4845_v9 = vpop.f32.mrb[27].mxu1  ;;  %v2259_v16 = vshrl.u32 %v6072_v44, 16  ;;  %v2391_v13 = vsel %vm1045_vm5, %v2388_v49, %v2390_v10 }
 0x121   : > { %v6134_v2 = vadd.f32 %v694_v57, %v582_v47  ;;  %v4863_v3 = vpop.f32.mrb[27].mxu0  ;;  %v2270_v49 = vrot.slane %v2268_v27, 1  ;;  %v6196_v9 = vld [vmem:[%s5654_s17 + $0x10] sm:$0xff]  }
 0x122   : > { %5095 = vmatmul.mubr.msk.bf16.gmra.mrb[132].mxu1 %vm415_vm2, %v2248_v5  ;;  %v2261_v28 = vrot.slane %v2259_v16, 1  ;;  %v2675_v12 = vshrl.u32 %v6196_v9, 16 }
 0x123   : > { %5113 = vmatmul.mubr.msk.bf16.vlgmr.msra.gmra.mrb[132].mxu0 %vm415_vm2, %v2389_v60  ;;  %5098 = vmatprep.mubr.msk.bf16.mxu1 %vm5516_vm0, %v5515_v1  ;;  %v2274_v55 = vor.u32 %v2273_v50, %v2270_v49  ;;  %v6187_v60 = vld [vmem:[%s5654_s17 + $0xc] sm:$0xf] }
 0x124   : > { %5155 = vmatpush3.bf16.msra.mxu0 %v5468_v51  ;;  %5116 = vmatprep.mubr.msk.bf16.mxu0 %vm5516_vm0, %v5515_v1  ;;  %v2265_v35 = vor.u32 %v2264_v24, %v2261_v28  ;;  %v2677_v24 = vrot.slane %v2675_v12, 2 }
 0x125   : > { %5198 = vmatprep.subr.bf16.mxu0 %v5515_v1  ;;  %v824_v17 = vpop.f32.mrb[28].mxu1 }
 0x126   : > { %v699_v59 = vpop.f32.mrb[28].mxu0  ;;  %v863_v19 = vadd.f32 %v824_v17, %v6068_v39  ;;  %v4872_v20 = vpop.f32.mrb[29].mxu1  ;;  %v2392_v39 = vrot.slane %v6057_v26, 2  ;;  %v2266_v58 = vsel %vm880_vm4, %v2256_v11, %v2265_v35  ;;  %v2275_v6 = vsel %vm880_vm4, %v2265_v35, %v2274_v55 }
 0x127   : > { %v6148_v14 = vadd.f32 %v699_v59, %v587_v61  ;;  %v4866_v15 = vpop.f32.mrb[29].mxu0  ;;  %v827_v23 = vpop.f32.mrb[30].mxu1  ;;  %v2396_v11 = vrot.slane %v6156_v30, 2 }
 0x128   : > { %v702_v18 = vpop.f32.mrb[30].mxu0  ;;  %v864_v31 = vadd.f32 %v827_v23, %v6074_v48  ;;  %v4873_v32 = vpop.f32.mrb[31].mxu1  ;;  %v2393_v43 = vsel %vm1045_vm5, %v2390_v10, %v2392_v39  ;;  %v2678_v15 = vshll.u32 %v6196_v9, 16 }
 0x129   : > { %v6152_v21 = vadd.f32 %v702_v18, %v590_v7  ;;  %v4867_v22 = vpop.f32.mrb[31].mxu0  ;;  %v2545_v18 = vrot.slane %v6196_v9, 2 }
 0x12a   : > { %5099 = vmatmul.mubr.msk.bf16.gmra.mrb[136].mxu1 %vm415_vm2, %v2257_v25  ;;  %v2680_v30 = vrot.slane %v2678_v15, 3 }
 0x12b   : > { %5117 = vmatmul.mubr.msk.bf16.gmra.mrb[136].mxu0 %vm415_vm2, %v2391_v13  ;;  %5102 = vmatprep.mubr.msk.bf16.mxu1 %vm5516_vm0, %v5515_v1 }
 0x12c   : > { %5120 = vmatprep.mubr.msk.bf16.mxu0 %vm5516_vm0, %v5515_v1 }
 0x12d   : > { %v832_v40 = vpop.f32.mrb[32].mxu1 }
 0x12e   : > { %v989_v33 = vpop.f32.mrb[32].mxu0  ;;  %v865_v26 = vadd.f32 %v832_v40, %v6089_v0  ;;  %v4876_v45 = vpop.f32.mrb[33].mxu1  ;;  %v2394_v0 = vrot.slane %v6072_v44, 2 }
 0x12f   : > { %v6168_v48 = vadd.f32 %v989_v33, %v863_v19  ;;  %v4894_v38 = vpop.f32.mrb[33].mxu0  ;;  %v835_v52 = vpop.f32.mrb[34].mxu1 }
 0x130   : > { %v992_v42 = vpop.f32.mrb[34].mxu0  ;;  %v866_v54 = vadd.f32 %v835_v52, %v6093_v8  ;;  %v4877_v34 = vpop.f32.mrb[35].mxu1  ;;  %v2502_v8 = vld [vmem:[%s5654_s17 + $0x8] sm:$0xc]  ;;  %v2395_v62 = vsel %vm1045_vm5, %v2392_v39, %v2394_v0  ;;  %v2397_v20 = vsel %vm1045_vm5, %v2394_v0, %v2396_v11  ;;  %v6220_v38 = vld [vmem:[%s5654_s17 + $0x18] sm:$0xff]  }
 0x131   : > { %v6172_v46 = vadd.f32 %v992_v42, %v864_v31  ;;  %v4895_v47 = vpop.f32.mrb[35].mxu0  ;;  %v4526_v7 = vcombine.low %v2502_v8, %v6187_v60  ;;  %v2687_v45 = vshll.u32 %v6220_v38, 16  ;;  %v2955_v52 = vld [vmem:[%s6886_s5] sm:$0x1] }
 0x132   : > { %5103 = vmatmul.mubr.msk.bf16.gmra.mrb[140].mxu1 %vm415_vm2, %v2266_v58 }
 0x133   : > { %5121 = vmatmul.mubr.msk.bf16.gmra.mrb[140].mxu0 %vm415_vm2, %v2393_v43  ;;  %5106 = vmatprep.mubr.msk.bf16.mxu1 %vm5516_vm0, %v5515_v1  ;;  %v2670_v16 = vshll.u32 %v4526_v7, 16  ;;  %v2681_v43 = vor.u32 %v2680_v30, %v2677_v24 }
 0x134   : > { %5124 = vmatprep.mubr.msk.bf16.mxu0 %vm5516_vm0, %v5515_v1 }
 0x135   : > { %v840_v51 = vpop.f32.mrb[36].mxu1  ;;  %v2672_v28 = vrot.slane %v2670_v16, 3 }
 0x136   : > { %v997_v63 = vpop.f32.mrb[36].mxu0  ;;  %v867_v44 = vadd.f32 %v840_v51, %v6105_v29  ;;  %v4880_v3 = vpop.f32.mrb[37].mxu1  ;;  %v2667_v29 = vshrl.u32 %v4526_v7, 16 }
 0x137   : > { %v6183_v56 = vadd.f32 %v997_v63, %v865_v26  ;;  %v4898_v57 = vpop.f32.mrb[37].mxu0  ;;  %v843_v41 = vpop.f32.mrb[38].mxu1  ;;  %v2684_v26 = vshrl.u32 %v6220_v38, 16  ;;  %v2689_v63 = vrot.slane %v2687_v45, 3  ;;  %v6245_v3 = vld [vmem:[%s5654_s17 + $0x20] sm:$0xff]  }
 0x138   : > { %v1000_v61 = vpop.f32.mrb[38].mxu0  ;;  %v868_v10 = vadd.f32 %v843_v41, %v6110_v37  ;;  %v4881_v59 = vpop.f32.mrb[39].mxu1  ;;  %v2544_v37 = vrot.slane %v4526_v7, 2  ;;  %v2669_v25 = vrot.slane %v2667_v29, 2  ;;  %v2696_v7 = vshll.u32 %v6245_v3, 16 }
 0x139   : > { %v6191_v4 = vadd.f32 %v1000_v61, %v866_v54  ;;  %v4899_v5 = vpop.f32.mrb[39].mxu0  ;;  %v2686_v0 = vrot.slane %v2684_v26, 2  ;;  %v2999_v61 = vsel %vm2997_vm8, %v2955_v52, 0 }
 0x13a   : > { %5107 = vmatmul.mubr.msk.bf16.gmra.mrb[144].mxu1 %vm415_vm2, %v2275_v6  ;;  %v2546_v27 = vsel %vm1045_vm5, %v2544_v37, %v2545_v18  ;;  %v2693_v6 = vshrl.u32 %v6245_v3, 16 }
 0x13b   : > { %5125 = vmatmul.mubr.msk.bf16.gmra.mrb[144].mxu0 %vm415_vm2, %v2395_v62  ;;  %5134 = vmatprep.mubr.msk.bf16.mxu1 %vm5516_vm0, %v5515_v1 }
 0x13c   : > { %5128 = vmatprep.mubr.msk.bf16.mxu0 %vm5516_vm0, %v5515_v1  ;;  %v2695_v15 = vrot.slane %v2693_v6, 2 }
 0x13d   : > { %v848_v22 = vpop.f32.mrb[40].mxu1 }
 0x13e   : > { %v1005_v17 = vpop.f32.mrb[40].mxu0  ;;  %v869_v31 = vadd.f32 %v848_v22, %v6126_v53  ;;  %v4884_v32 = vpop.f32.mrb[41].mxu1  ;;  %v2673_v53 = vor.u32 %v2672_v28, %v2669_v25  ;;  %v6265_v22 = vld [vmem:[%s5654_s17 + $0x28] sm:$0xff]  }
 0x13f   : > { %v6209_v13 = vadd.f32 %v1005_v17, %v867_v44  ;;  %v4902_v19 = vpop.f32.mrb[41].mxu0  ;;  %v851_v35 = vpop.f32.mrb[42].mxu1  ;;  %v2698_v17 = vrot.slane %v2696_v7, 3  ;;  %v2702_v30 = vshrl.u32 %v6265_v22, 16 }
 0x140   : > { %v1008_v23 = vpop.f32.mrb[42].mxu0  ;;  %v870_v40 = vadd.f32 %v851_v35, %v6134_v2  ;;  %v4885_v42 = vpop.f32.mrb[43].mxu1  ;;  %v2547_v2 = vrot.slane %v6220_v38, 2  ;;  %v2682_v34 = vsel %vm1325_vm6, %v2673_v53, %v2681_v43 }
 0x141   : > { %v6213_v39 = vadd.f32 %v1008_v23, %v868_v10  ;;  %v4903_v33 = vpop.f32.mrb[43].mxu0 }
 0x142   : > { %5135 = vmatmul.mubr.msk.bf16.vlgmr.msra.gmra.mrb[148].mxu1 %vm415_vm2, %v2546_v27  ;;  %v2548_v44 = vsel %vm1045_vm5, %v2545_v18, %v2547_v2  ;;  %v2704_v27 = vrot.slane %v2702_v30, 2 }
 0x143   : > { %5129 = vmatmul.mubr.msk.bf16.gmra.mrb[148].mxu0 %vm415_vm2, %v2397_v20  ;;  %5177 = vmatpush3.bf16.msra.mxu1 %v5472_v36 }
 0x144   : > { %5156 = vmatprep.mubr.msk.bf16.mxu0 %vm5516_vm0, %v5515_v1  ;;  %5138 = vmatprep.mubr.msk.bf16.mxu1 %vm5516_vm0, %v5515_v1 }
 0x145   : > { %5220 = vmatprep.subr.bf16.mxu1 %v5515_v1  ;;  %v856_v50 = vpop.f32.mrb[44].mxu1 }
 0x146   : > { %v1013_v47 = vpop.f32.mrb[44].mxu0  ;;  %v871_v55 = vadd.f32 %v856_v50, %v6148_v14  ;;  %v4888_v57 = vpop.f32.mrb[45].mxu1  ;;  %v2690_v14 = vor.u32 %v2689_v63, %v2686_v0  ;;  %v5476_v50 = vld [vmem:[%s5654_s17 + $0x30] ss:$0 sps:$4 sm:$0x33]  }
 0x147   : > { %v6235_v58 = vadd.f32 %v1013_v47, %v869_v31  ;;  %v4906_v49 = vpop.f32.mrb[45].mxu0  ;;  %v859_v62 = vpop.f32.mrb[46].mxu1  ;;  %v2705_v31 = vshll.u32 %v6265_v22, 16  ;;  %v2553_v57 = vrot.slane %v5476_v50, 2 }
 0x148   : > { %v1016_v54 = vpop.f32.mrb[46].mxu0  ;;  %v872_v5 = vadd.f32 %v859_v62, %v6152_v21  ;;  %v4889_v41 = vpop.f32.mrb[47].mxu1  ;;  %v2549_v21 = vrot.slane %v6245_v3, 2  ;;  %v2691_v12 = vsel %vm1325_vm6, %v2681_v43, %v2690_v14  ;;  %v6282_v43 = vld [vmem:[%s5654_s17 + $0x30] ss:$0 sps:$4 sm:$0x77]  }
 0x149   : > { %v6240_v8 = vadd.f32 %v1016_v54, %v870_v40  ;;  %v4907_v51 = vpop.f32.mrb[47].mxu0  ;;  %v2707_v53 = vrot.slane %v2705_v31, 3  ;;  %v2714_v63 = vshll.u32 %v6282_v43, 16 }
 0x14a   : > { %5139 = vmatmul.mubr.msk.bf16.gmra.mrb[152].mxu1 %vm415_vm2, %v2548_v44  ;;  %v2550_v25 = vsel %vm1045_vm5, %v2547_v2, %v2549_v21 }
 0x14b   : > { %5157 = vmatmul.mubr.msk.bf16.vlgmr.msra.gmra.mrb[152].mxu0 %vm415_vm2, %v2682_v34  ;;  %5142 = vmatprep.mubr.msk.bf16.mxu1 %vm5516_vm0, %v5515_v1  ;;  %v2708_v0 = vor.u32 %v2707_v53, %v2704_v27  ;;  %v5479_v53 = vld [vmem:[%s5700_s22] sm:$0xff]  }
 0x14c   : > { %5199 = vmatpush3.bf16.msra.mxu0 %v2999_v61  ;;  %5160 = vmatprep.mubr.msk.bf16.mxu0 %vm5516_vm0, %v5515_v1  ;;  %v2823_v61 = vld [vmem:[%s5654_s17 + $0x8] sm:$0x8] }
 0x14d   : > { %5242 = vmatprep.subr.bf16.mxu0 %v5515_v1  ;;  %v1112_v29 = vpop.f32.mrb[48].mxu1 }
 0x14e   : > { %v1021_v10 = vpop.f32.mrb[48].mxu0  ;;  %v1151_v37 = vadd.f32 %v1112_v29, %v6168_v48  ;;  %v4916_v18 = vpop.f32.mrb[49].mxu1  ;;  %v2699_v48 = vor.u32 %v2698_v17, %v2695_v15 }
 0x14f   : > { %v6258_v59 = vadd.f32 %v1021_v10, %v871_v55  ;;  %v4910_v11 = vpop.f32.mrb[49].mxu0  ;;  %v1115_v23 = vpop.f32.mrb[50].mxu1  ;;  %v2831_v18 = vrot.slane %v6196_v9, 3 }
 0x150   : > { %v1024_v16 = vpop.f32.mrb[50].mxu0  ;;  %v1152_v28 = vadd.f32 %v1115_v23, %v6172_v46  ;;  %v4917_v24 = vpop.f32.mrb[51].mxu1  ;;  %v2551_v46 = vrot.slane %v6265_v22, 2  ;;  %v2700_v42 = vsel %vm1325_vm6, %v2690_v14, %v2699_v48  ;;  %v2716_v14 = vrot.slane %v2714_v63, 3 }
 0x151   : > { %v6262_v19 = vadd.f32 %v1024_v16, %v872_v5  ;;  %v4911_v20 = vpop.f32.mrb[51].mxu0  ;;  %v2709_v5 = vsel %vm1325_vm6, %v2699_v48, %v2708_v0  ;;  %v4549_v16 = vcombine.low %v2823_v61, %v6187_v60  ;;  %v2835_v63 = vrot.slane %v6245_v3, 3 }
 0x152   : > { %5143 = vmatmul.mubr.msk.bf16.gmra.mrb[156].mxu1 %vm415_vm2, %v2550_v25  ;;  %v2552_v49 = vsel %vm1045_vm5, %v2549_v21, %v2551_v46  ;;  %v2554_v29 = vsel %vm1045_vm5, %v2551_v46, %v2553_v57  ;;  %v5480_v57 = vld [vmem:[%s5700_s22 + $0x8] sm:$0xff]  }
 0x153   : > { %5161 = vmatmul.mubr.msk.bf16.gmra.mrb[156].mxu0 %vm415_vm2, %v2691_v12  ;;  %5146 = vmatprep.mubr.msk.bf16.mxu1 %vm5516_vm0, %v5515_v1 }
 0x154   : > { %5164 = vmatprep.mubr.msk.bf16.mxu0 %vm5516_vm0, %v5515_v1 }
 0x155   : > { %v1120_v36 = vpop.f32.mrb[52].mxu1 }
 0x156   : > { %v1269_v32 = vpop.f32.mrb[52].mxu0  ;;  %v1153_v26 = vadd.f32 %v1120_v36, %v6183_v56  ;;  %v4920_v45 = vpop.f32.mrb[53].mxu1  ;;  %v2711_v56 = vshrl.u32 %v6282_v43, 16  ;;  %v2833_v36 = vrot.slane %v6220_v38, 3 }
 0x157   : > { %v6278_v33 = vadd.f32 %v1269_v32, %v1151_v37  ;;  %v4938_v35 = vpop.f32.mrb[53].mxu0  ;;  %v1123_v52 = vpop.f32.mrb[54].mxu1  ;;  %v2830_v37 = vrot.slane %v4549_v16, 3  ;;  %v5481_v16 = vld [vmem:[%s5700_s22 + $0x10] sm:$0xff]  }
 0x158   : > { %v1272_v40 = vpop.f32.mrb[54].mxu0  ;;  %v1154_v54 = vadd.f32 %v1123_v52, %v6191_v4  ;;  %v4921_v34 = vpop.f32.mrb[55].mxu1  ;;  %v2713_v41 = vrot.slane %v2711_v56, 2 }
 0x159   : > { %v6285_v47 = vadd.f32 %v1272_v40, %v1152_v28  ;;  %v4939_v2 = vpop.f32.mrb[55].mxu0  ;;  %v4566_v28 = vld [vmem:[%s6886_s5 + $0x1] sm:$0x1]  ;;  %v2832_v9 = vsel %vm1490_vm7, %v2830_v37, %v2831_v18  ;;  %v2834_v34 = vsel %vm1490_vm7, %v2831_v18, %v2833_v36 }
 0x15a   : > { %5147 = vmatmul.mubr.msk.bf16.gmra.mrb[160].mxu1 %vm415_vm2, %v2552_v49  ;;  %v2717_v17 = vor.u32 %v2716_v14, %v2713_v41  ;;  %v3185_v27 = vsel %vm2997_vm8, %v4566_v28, 0 }
 0x15b   : > { %5165 = vmatmul.mubr.msk.bf16.gmra.mrb[160].mxu0 %vm415_vm2, %v2700_v42  ;;  %5150 = vmatprep.mubr.msk.bf16.mxu1 %vm5516_vm0, %v5515_v1 }
 0x15c   : > { %5168 = vmatprep.mubr.msk.bf16.mxu0 %vm5516_vm0, %v5515_v1  ;;  %v2718_v25 = vsel %vm1325_vm6, %v2708_v0, %v2717_v17 }
 0x15d   : > { %v1128_v62 = vpop.f32.mrb[56].mxu1 }
 0x15e   : > { %v1277_v55 = vpop.f32.mrb[56].mxu0  ;;  %v1155_v6 = vadd.f32 %v1128_v62, %v6209_v13  ;;  %v4924_v7 = vpop.f32.mrb[57].mxu1 }
 0x15f   : > { %v6298_v51 = vadd.f32 %v1277_v55, %v1153_v26  ;;  %v4942_v4 = vpop.f32.mrb[57].mxu0  ;;  %v1131_v11 = vpop.f32.mrb[58].mxu1 }
 0x160   : > { %v1280_v44 = vpop.f32.mrb[58].mxu0  ;;  %v1156_v12 = vadd.f32 %v1131_v11, %v6213_v39  ;;  %v4925_v15 = vpop.f32.mrb[59].mxu1 }
 0x161   : > { %v6303_v10 = vadd.f32 %v1280_v44, %v1154_v54  ;;  %v4943_v21 = vpop.f32.mrb[59].mxu0 }
 0x162   : > { %5151 = vmatmul.mubr.msk.bf16.gmra.mrb[164].mxu1 %vm415_vm2, %v2554_v29  ;;  %v2837_v21 = vrot.slane %v6265_v22, 3 }
 0x163   : > { %5169 = vmatmul.mubr.msk.bf16.gmra.mrb[164].mxu0 %vm415_vm2, %v2709_v5  ;;  %5178 = vmatprep.mubr.msk.bf16.mxu1 %vm5516_vm0, %v5515_v1 }
 0x164   : > { %5172 = vmatprep.mubr.msk.bf16.mxu0 %vm5516_vm0, %v5515_v1  ;;  %v2838_v22 = vsel %vm1490_vm7, %v2835_v63, %v2837_v21 }
 0x165   : > { %v1136_v39 = vpop.f32.mrb[60].mxu1 }
 0x166   : > { %v1285_v13 = vpop.f32.mrb[60].mxu0  ;;  %v1157_v24 = vadd.f32 %v1136_v39, %v6235_v58  ;;  %v4928_v30 = vpop.f32.mrb[61].mxu1 }
 0x167   : > { %v6315_v20 = vadd.f32 %v1285_v13, %v1155_v6  ;;  %v4946_v60 = vpop.f32.mrb[61].mxu0  ;;  %v1139_v32 = vpop.f32.mrb[62].mxu1  ;;  %v2836_v6 = vsel %vm1490_vm7, %v2833_v36, %v2835_v63  ;;  %v6391_v30 = vld [vmem:[%s5700_s22 + $0x8] sm:$0xff]  }
 0x168   : > { %v1288_v23 = vpop.f32.mrb[62].mxu0  ;;  %v1158_v46 = vadd.f32 %v1139_v32, %v6240_v8  ;;  %v4929_v35 = vpop.f32.mrb[63].mxu1  ;;  %v4578_v8 = vld [vmem:[%s6886_s5 + $0x2] sm:$0x1] }
 0x169   : > { %v6322_v48 = vadd.f32 %v1288_v23, %v1156_v12  ;;  %v4947_v31 = vpop.f32.mrb[63].mxu0  ;;  %v3303_v38 = vsel %vm2997_vm8, %v4578_v8, 0  ;;  %v3084_v12 = vld [vmem:[%s5700_s22] sm:$0xf] }
 0x16a   : > { %5179 = vmatmul.mubr.msk.bf16.vlgmr.msra.gmra.mrb[168].mxu1 %vm415_vm2, %v2832_v9  ;;  %v5482_v9 = vld [vmem:[%s5700_s22 + $0x18] sm:$0xff]  }
 0x16b   : > { %5173 = vmatmul.mubr.msk.bf16.gmra.mrb[168].mxu0 %vm415_vm2, %v2718_v25  ;;  %5221 = vmatpush3.bf16.msra.mxu1 %v3185_v27 }
 0x16c   : > { %5200 = vmatprep.mubr.msk.bf16.mxu0 %vm5516_vm0, %v5515_v1  ;;  %5182 = vmatprep.mubr.msk.bf16.mxu1 %vm5516_vm0, %v5515_v1 }
 0x16d   : > { %5264 = vmatprep.subr.bf16.mxu1 %v5515_v1  ;;  %v1144_v26 = vpop.f32.mrb[64].mxu1 }
 0x16e   : > { %v1293_v58 = vpop.f32.mrb[64].mxu0  ;;  %v1159_v2 = vadd.f32 %v1144_v26, %v6258_v59  ;;  %v4932_v52 = vpop.f32.mrb[65].mxu1 }
 0x16f   : > { %v6337_v40 = vadd.f32 %v1293_v58, %v1157_v24  ;;  %v4950_v42 = vpop.f32.mrb[65].mxu0  ;;  %v1147_v54 = vpop.f32.mrb[66].mxu1  ;;  %v2839_v24 = vrot.slane %v6282_v43, 3 }
 0x170   : > { %v1296_v45 = vpop.f32.mrb[66].mxu0  ;;  %v1160_v0 = vadd.f32 %v1147_v54, %v6262_v19  ;;  %v4933_v56 = vpop.f32.mrb[67].mxu1 }
 0x171   : > { %v6342_v49 = vadd.f32 %v1296_v45, %v1158_v46  ;;  %v4951_v50 = vpop.f32.mrb[67].mxu0  ;;  %v2840_v43 = vsel %vm1490_vm7, %v2837_v21, %v2839_v24  ;;  %v3133_v45 = vshll.u32 %v6391_v30, 16  ;;  %v5483_v56 = vld [vmem:[%s5700_s22 + $0x20] sm:$0xff]  }
 0x172   : > { %5183 = vmatmul.mubr.msk.bf16.gmra.mrb[172].mxu1 %vm415_vm2, %v2834_v34  ;;  %v6410_v34 = vld [vmem:[%s5700_s22 + $0x10] sm:$0xff]  }
 0x173   : > { %5201 = vmatmul.mubr.msk.bf16.vlgmr.msra.gmra.mrb[172].mxu0 %vm2981_vm9, %v5479_v53  ;;  %5186 = vmatprep.mubr.msk.bf16.mxu1 %vm5516_vm0, %v5515_v1  ;;  %v3135_v54 = vrot.slane %v3133_v45, 1 }
 0x174   : > { %5243 = vmatpush3.bf16.msra.mxu0 %v3303_v38  ;;  %5204 = vmatprep.mubr.msk.bf16.mxu0 %vm5516_vm0, %v5515_v1 }
 0x175   : > { %5286 = vmatprep.subr.bf16.mxu0 %v5515_v1  ;;  %v1434_v4 = vpop.f32.mrb[68].mxu1 }
 0x176   : > { %v1301_v59 = vpop.f32.mrb[68].mxu0  ;;  %v1473_v62 = vadd.f32 %v1434_v4, %v6278_v33  ;;  %v4960_v44 = vpop.f32.mrb[69].mxu1 }
 0x177   : > { %v6355_v55 = vadd.f32 %v1301_v59, %v1159_v2  ;;  %v4954_v19 = vpop.f32.mrb[69].mxu0  ;;  %v1437_v14 = vpop.f32.mrb[70].mxu1 }
 0x178   : > { %v1304_v61 = vpop.f32.mrb[70].mxu0  ;;  %v1474_v3 = vadd.f32 %v1437_v14, %v6285_v47  ;;  %v4961_v7 = vpop.f32.mrb[71].mxu1  ;;  %v6375_v47 = vld [vmem:[%s5700_s22 + $0x4] sm:$0xf]  ;;  %v4585_v19 = vld [vmem:[%s6886_s5 + $0x3] sm:$0x1] }
 0x179   : > { %v6359_v5 = vadd.f32 %v1304_v61, %v1160_v0  ;;  %v4955_v41 = vpop.f32.mrb[71].mxu0  ;;  %v4567_v23 = vcombine.low %v3084_v12, %v6375_v47  ;;  %v3456_v21 = vsel %vm2997_vm8, %v4585_v19, 0 }
 0x17a   : > { %5187 = vmatmul.mubr.msk.bf16.gmra.mrb[176].mxu1 %vm415_vm2, %v2836_v6  ;;  %v3137_v6 = vshrl.u32 %v6391_v30, 16 }
 0x17b   : > { %5205 = vmatmul.mubr.msk.bf16.gmra.mrb[176].mxu0 %vm2981_vm9, %v5480_v57  ;;  %5190 = vmatprep.mubr.msk.bf16.mxu1 %vm5516_vm0, %v5515_v1  ;;  %v3128_v31 = vshll.u32 %v4567_v23, 16  ;;  %v3126_v53 = vshrl.u32 %v4567_v23, 16 }
 0x17c   : > { %5208 = vmatprep.mubr.msk.bf16.mxu0 %vm5516_vm0, %v5515_v1  ;;  %v3139_v12 = vor.u32 %v3137_v6, %v3135_v54 }
 0x17d   : > { %v1442_v15 = vpop.f32.mrb[72].mxu1  ;;  %v3130_v26 = vrot.slane %v3128_v31, 1  ;;  %v3145_v31 = vshrl.u32 %v6410_v34, 16 }
 0x17e   : > { %v1557_v33 = vpop.f32.mrb[72].mxu0  ;;  %v1475_v13 = vadd.f32 %v1442_v15, %v6298_v51  ;;  %v4964_v37 = vpop.f32.mrb[73].mxu1  ;;  %v6438_v15 = vld [vmem:[%s5700_s22 + $0x18] sm:$0xff]  }
 0x17f   : > { %v6370_v11 = vadd.f32 %v1557_v33, %v1473_v62  ;;  %v4982_v29 = vpop.f32.mrb[73].mxu0  ;;  %v1445_v39 = vpop.f32.mrb[74].mxu1  ;;  %v3131_v38 = vor.u32 %v3130_v26, %v3126_v53 }
 0x180   : > { %v1560_v17 = vpop.f32.mrb[74].mxu0  ;;  %v1476_v25 = vadd.f32 %v1445_v39, %v6303_v10  ;;  %v4965_v28 = vpop.f32.mrb[75].mxu1  ;;  %v3277_v29 = vrot.slane %v6391_v30, 1 }
 0x181   : > { %v6378_v18 = vadd.f32 %v1560_v17, %v1474_v3  ;;  %v4983_v60 = vpop.f32.mrb[75].mxu0  ;;  %v3136_v14 = vsel %vm364_vm1, %v3131_v38, %v3135_v54  ;;  %v3141_v3 = vshll.u32 %v6410_v34, 16  ;;  %v3153_v54 = vshrl.u32 %v6438_v15, 16 }
 0x182   : > { %5191 = vmatmul.mubr.msk.bf16.gmra.mrb[180].mxu1 %vm415_vm2, %v2838_v22 }
 0x183   : > { %5209 = vmatmul.mubr.msk.bf16.gmra.mrb[180].mxu0 %vm2981_vm9, %v5481_v16  ;;  %5194 = vmatprep.mubr.msk.bf16.mxu1 %vm5516_vm0, %v5515_v1 }
 0x184   : > { %5212 = vmatprep.mubr.msk.bf16.mxu0 %vm5516_vm0, %v5515_v1 }
 0x185   : > { %v1450_v46 = vpop.f32.mrb[76].mxu1 }
 0x186   : > { %v1565_v51 = vpop.f32.mrb[76].mxu0  ;;  %v1477_v27 = vadd.f32 %v1450_v46, %v6315_v20  ;;  %v4968_v58 = vpop.f32.mrb[77].mxu1  ;;  %v3270_v20 = vld [vmem:[%s5700_s22] sm:$0xe] }
 0x187   : > { %v6393_v32 = vadd.f32 %v1565_v51, %v1475_v13  ;;  %v4986_v10 = vpop.f32.mrb[77].mxu0  ;;  %v1453_v42 = vpop.f32.mrb[78].mxu1  ;;  %v4579_v57 = vcombine.low %v3270_v20, %v6375_v47  ;;  %v4597_v47 = vld [vmem:[%s6886_s5 + $0x4] sm:$0x1] }
 0x188   : > { %v1568_v35 = vpop.f32.mrb[78].mxu0  ;;  %v1478_v2 = vadd.f32 %v1453_v42, %v6322_v48  ;;  %v4969_v52 = vpop.f32.mrb[79].mxu1  ;;  %v3616_v51 = vsel %vm2997_vm8, %v4597_v47, 0  ;;  %v3149_v10 = vshll.u32 %v6438_v15, 16 }
 0x189   : > { %v6397_v36 = vadd.f32 %v1568_v35, %v1476_v25  ;;  %v4987_v8 = vpop.f32.mrb[79].mxu0 }
 0x18a   : > { %5195 = vmatmul.mubr.msk.bf16.gmra.mrb[184].mxu1 %vm415_vm2, %v2840_v43  ;;  %v3151_v58 = vrot.slane %v3149_v10, 1 }
 0x18b   : > { %5213 = vmatmul.mubr.msk.bf16.gmra.mrb[184].mxu0 %vm2981_vm9, %v5482_v9  ;;  %5222 = vmatprep.mubr.msk.bf16.mxu1 %vm5516_vm0, %v5515_v1 }
 0x18c   : > { %5216 = vmatprep.mubr.msk.bf16.mxu0 %vm5516_vm0, %v5515_v1 }
 0x18d   : > { %v1458_v59 = vpop.f32.mrb[80].mxu1 }
 0x18e   : > { %v1573_v50 = vpop.f32.mrb[80].mxu0  ;;  %v1479_v4 = vadd.f32 %v1458_v59, %v6337_v40  ;;  %v4972_v61 = vpop.f32.mrb[81].mxu1  ;;  %v3276_v40 = vrot.slane %v4579_v57, 1  ;;  %v5490_v57 = vld [vmem:[%s5700_s22 + $0x28] ss:$0 sps:$4 sm:$0x11]  }
 0x18f   : > { %v6412_v0 = vadd.f32 %v1573_v50, %v1477_v27  ;;  %v4990_v48 = vpop.f32.mrb[81].mxu0  ;;  %v1461_v41 = vpop.f32.mrb[82].mxu1 }
 0x190   : > { %v1576_v63 = vpop.f32.mrb[82].mxu0  ;;  %v1480_v7 = vadd.f32 %v1461_v41, %v6342_v49  ;;  %v4973_v33 = vpop.f32.mrb[83].mxu1  ;;  %v3143_v49 = vrot.slane %v3141_v3, 1  ;;  %v3278_v39 = vsel %vm600_vm3, %v3276_v40, %v3277_v29 }
 0x191   : > { %v6420_v62 = vadd.f32 %v1576_v63, %v1478_v2  ;;  %v4991_v44 = vpop.f32.mrb[83].mxu0  ;;  %v3155_v63 = vor.u32 %v3153_v54, %v3151_v58 }
 0x192   : > { %5223 = vmatmul.mubr.msk.bf16.vlgmr.msra.gmra.mrb[188].mxu1 %vm2981_vm9, %v3136_v14  ;;  %v3144_v30 = vsel %vm364_vm1, %v3139_v12, %v3143_v49  ;;  %v3147_v27 = vor.u32 %v3145_v31, %v3143_v49 }
 0x193   : > { %5217 = vmatmul.mubr.msk.bf16.gmra.mrb[188].mxu0 %vm2981_vm9, %v5483_v56  ;;  %5265 = vmatpush3.bf16.msra.mxu1 %v3456_v21 }
 0x194   : > { %5244 = vmatprep.mubr.msk.bf16.mxu0 %vm5516_vm0, %v5515_v1  ;;  %5226 = vmatprep.mubr.msk.bf16.mxu1 %vm5516_vm0, %v5515_v1  ;;  %v3152_v38 = vsel %vm364_vm1, %v3147_v27, %v3151_v58 }
 0x195   : > { %5308 = vmatprep.subr.bf16.mxu1 %v5515_v1  ;;  %v1466_v37 = vpop.f32.mrb[84].mxu1 }
 0x196   : > { %v1581_v16 = vpop.f32.mrb[84].mxu0  ;;  %v1481_v22 = vadd.f32 %v1466_v37, %v6355_v55  ;;  %v4976_v23 = vpop.f32.mrb[85].mxu1  ;;  %v3279_v55 = vrot.slane %v6410_v34, 1  ;;  %v6499_v37 = vld [vmem:[%s5700_s22 + $0x8] sm:$0xf] }
 0x197   : > { %v6440_v17 = vadd.f32 %v1581_v16, %v1479_v4  ;;  %v4994_v13 = vpop.f32.mrb[85].mxu0  ;;  %v1469_v24 = vpop.f32.mrb[86].mxu1 }
 0x198   : > { %v1584_v60 = vpop.f32.mrb[86].mxu0  ;;  %v1482_v9 = vadd.f32 %v1469_v24, %v6359_v5  ;;  %v4977_v46 = vpop.f32.mrb[87].mxu1  ;;  %v6461_v5 = vld [vmem:[%s5700_s22 + $0x20] sm:$0xff]   ;;  %v3280_v26 = vsel %vm600_vm3, %v3277_v29, %v3279_v55  ;;  %v3165_v29 = vshll.u32 %v5490_v57, 16 }
 0x199   : > { %v6445_v25 = vadd.f32 %v1584_v60, %v1480_v7  ;;  %v4995_v28 = vpop.f32.mrb[87].mxu0  ;;  %v3157_v34 = vshll.u32 %v6461_v5, 16  ;;  %v3161_v40 = vshrl.u32 %v6461_v5, 16  ;;  %v3388_v13 = vld [vmem:[%s5700_s22 + $0x4] sm:$0xe]  ;;  %v6510_v46 = vld [vmem:[%s5700_s22 + $0xc] sm:$0xff]  }
 0x19a   : > { %5227 = vmatmul.mubr.msk.bf16.gmra.mrb[192].mxu1 %vm2981_vm9, %v3144_v30  ;;  %v4586_v31 = vcombine.low %v3388_v13, %v6499_v37 }
 0x19b   : > { %5245 = vmatmul.mubr.msk.bf16.vlgmr.msra.gmra.mrb[192].mxu0 %vm2981_vm9, %v3278_v39  ;;  %5230 = vmatprep.mubr.msk.bf16.mxu1 %vm5516_vm0, %v5515_v1  ;;  %v3159_v19 = vrot.slane %v3157_v34, 1  ;;  %v4604_v34 = vld [vmem:[%s6886_s5 + $0x5] sm:$0x1] }
 0x19c   : > { %5287 = vmatpush3.bf16.msra.mxu0 %v3616_v51  ;;  %5248 = vmatprep.mubr.msk.bf16.mxu0 %vm5516_vm0, %v5515_v1  ;;  %v3548_v27 = vshrl.u32 %v4586_v31, 16  ;;  %v3551_v58 = vshll.u32 %v4586_v31, 16 }
 0x19d   : > { %5330 = vmatprep.subr.bf16.mxu0 %v5515_v1  ;;  %v1698_v43 = vpop.f32.mrb[88].mxu1  ;;  %v3160_v21 = vsel %vm364_vm1, %v3155_v63, %v3159_v19  ;;  %v3163_v47 = vor.u32 %v3161_v40, %v3159_v19  ;;  %v4611_v40 = vld [vmem:[%s6886_s5 + $0x6] sm:$0x1] }
 0x19e   : > { %v1589_v35 = vpop.f32.mrb[88].mxu0  ;;  %v1737_v45 = vadd.f32 %v1698_v43, %v6370_v11  ;;  %v5004_v2 = vpop.f32.mrb[89].mxu1  ;;  %v3281_v11 = vrot.slane %v6438_v15, 1  ;;  %v3167_v15 = vrot.slane %v3165_v29, 1 }
 0x19f   : > { %v6463_v8 = vadd.f32 %v1589_v35, %v1481_v22  ;;  %v4998_v42 = vpop.f32.mrb[89].mxu0  ;;  %v1701_v50 = vpop.f32.mrb[90].mxu1  ;;  %v3550_v2 = vrot.slane %v3548_v27, 1 }
 0x1a0   : > { %v1592_v53 = vpop.f32.mrb[90].mxu0  ;;  %v1738_v48 = vadd.f32 %v1701_v50, %v6378_v18  ;;  %v5005_v56 = vpop.f32.mrb[91].mxu1  ;;  %v3282_v41 = vsel %vm600_vm3, %v3279_v55, %v3281_v11  ;;  %v3559_v42 = vshll.u32 %v6510_v46, 16 }
 0x1a1   : > { %v6467_v52 = vadd.f32 %v1592_v53, %v1482_v9  ;;  %v4999_v20 = vpop.f32.mrb[91].mxu0  ;;  %v3168_v9 = vsel %vm364_vm1, %v3163_v47, %v3167_v15  ;;  %v3430_v53 = vrot.slane %v6510_v46, 1 }
 0x1a2   : > { %5231 = vmatmul.mubr.msk.bf16.gmra.mrb[196].mxu1 %vm2981_vm9, %v3152_v38  ;;  %v3553_v20 = vrot.slane %v3551_v58, 2  ;;  %v3561_v56 = vrot.slane %v3559_v42, 2 }
 0x1a3   : > { %5249 = vmatmul.mubr.msk.bf16.gmra.mrb[196].mxu0 %vm2981_vm9, %v3280_v26  ;;  %5234 = vmatprep.mubr.msk.bf16.mxu1 %vm5516_vm0, %v5515_v1 }
 0x1a4   : > { %5252 = vmatprep.mubr.msk.bf16.mxu0 %vm5516_vm0, %v5515_v1 }
 0x1a5   : > { %v1706_v61 = vpop.f32.mrb[92].mxu1 }
 0x1a6   : > { %v1888_v59 = vpop.f32.mrb[92].mxu0  ;;  %v1739_v14 = vadd.f32 %v1706_v61, %v6393_v32  ;;  %v5008_v6 = vpop.f32.mrb[93].mxu1  ;;  %v3283_v32 = vrot.slane %v6461_v5, 1  ;;  %v3556_v5 = vshrl.u32 %v6510_v46, 16  ;;  %v6533_v61 = vld [vmem:[%s5700_s22 + $0x14] sm:$0xff]  }
 0x1a7   : > { %v6481_v4 = vadd.f32 %v1888_v59, %v1737_v45  ;;  %v5026_v18 = vpop.f32.mrb[93].mxu0  ;;  %v1709_v33 = vpop.f32.mrb[94].mxu1 }
 0x1a8   : > { %v1891_v44 = vpop.f32.mrb[94].mxu0  ;;  %v1740_v16 = vadd.f32 %v1709_v33, %v6397_v36  ;;  %v5009_v12 = vpop.f32.mrb[95].mxu1  ;;  %v3284_v23 = vsel %vm600_vm3, %v3281_v11, %v3283_v32  ;;  %v3568_v33 = vshll.u32 %v6533_v61, 16 }
 0x1a9   : > { %v6485_v3 = vadd.f32 %v1891_v44, %v1738_v48  ;;  %v5027_v7 = vpop.f32.mrb[95].mxu0  ;;  %v3558_v48 = vrot.slane %v3556_v5, 1 }
 0x1aa   : > { %5235 = vmatmul.mubr.msk.bf16.gmra.mrb[200].mxu1 %vm2981_vm9, %v3160_v21  ;;  %v3565_v7 = vshrl.u32 %v6533_v61, 16  ;;  %v3570_v15 = vrot.slane %v3568_v33, 2 }
 0x1ab   : > { %5253 = vmatmul.mubr.msk.bf16.gmra.mrb[200].mxu0 %vm2981_vm9, %v3282_v41  ;;  %5238 = vmatprep.mubr.msk.bf16.mxu1 %vm5516_vm0, %v5515_v1  ;;  %v3562_v6 = vor.u32 %v3561_v56, %v3558_v48 }
 0x1ac   : > { %5256 = vmatprep.mubr.msk.bf16.mxu0 %vm5516_vm0, %v5515_v1  ;;  %v3567_v47 = vrot.slane %v3565_v7, 1 }
 0x1ad   : > { %v1714_v39 = vpop.f32.mrb[96].mxu1 }
 0x1ae   : > { %v1896_v49 = vpop.f32.mrb[96].mxu0  ;;  %v1741_v28 = vadd.f32 %v1714_v39, %v6412_v0  ;;  %v5012_v51 = vpop.f32.mrb[97].mxu1  ;;  %v3285_v0 = vrot.slane %v5490_v57, 1 }
 0x1af   : > { %v6501_v36 = vadd.f32 %v1896_v49, %v1739_v14  ;;  %v5030_v60 = vpop.f32.mrb[97].mxu0  ;;  %v1717_v10 = vpop.f32.mrb[98].mxu1  ;;  %v3734_v14 = vsel %vm2997_vm8, %v4604_v34, 0 }
 0x1b0   : > { %v1899_v22 = vpop.f32.mrb[98].mxu0  ;;  %v1742_v55 = vadd.f32 %v1717_v10, %v6420_v62  ;;  %v5013_v35 = vpop.f32.mrb[99].mxu1  ;;  %v3429_v62 = vrot.slane %v4586_v31, 1  ;;  %v3286_v54 = vsel %vm600_vm3, %v3283_v32, %v3285_v0 }
 0x1b1   : > { %v6505_v24 = vadd.f32 %v1899_v22, %v1740_v16  ;;  %v5031_v30 = vpop.f32.mrb[99].mxu0 }
 0x1b2   : > { %5239 = vmatmul.mubr.msk.bf16.gmra.mrb[204].mxu1 %vm2981_vm9, %v3168_v9  ;;  %v3431_v18 = vsel %vm600_vm3, %v3429_v62, %v3430_v53  ;;  %v6559_v30 = vld [vmem:[%s5700_s22 + $0x1c] sm:$0xff]  }
 0x1b3   : > { %5257 = vmatmul.mubr.msk.bf16.gmra.mrb[204].mxu0 %vm2981_vm9, %v3284_v23  ;;  %5266 = vmatprep.mubr.msk.bf16.mxu1 %vm5516_vm0, %v5515_v1  ;;  %v3887_v23 = vsel %vm2997_vm8, %v4611_v40, 0  ;;  %v3574_v9 = vshrl.u32 %v6559_v30, 16 }
 0x1b4   : > { %5260 = vmatprep.mubr.msk.bf16.mxu0 %vm5516_vm0, %v5515_v1 }
 0x1b5   : > { %v1722_v50 = vpop.f32.mrb[100].mxu1 }
 0x1b6   : > { %v1904_v43 = vpop.f32.mrb[100].mxu0  ;;  %v1743_v11 = vadd.f32 %v1722_v50, %v6440_v17  ;;  %v5016_v59 = vpop.f32.mrb[101].mxu1  ;;  %v3554_v17 = vor.u32 %v3553_v20, %v3550_v2  ;;  %v6579_v50 = vld [vmem:[%s5700_s22 + $0x24] sm:$0xff]  }
 0x1b7   : > { %v6522_v26 = vadd.f32 %v1904_v43, %v1741_v28  ;;  %v5034_v45 = vpop.f32.mrb[101].mxu0  ;;  %v1725_v57 = vpop.f32.mrb[102].mxu1  ;;  %v3576_v43 = vrot.slane %v3574_v9, 1  ;;  %v3583_v56 = vshrl.u32 %v6579_v50, 16 }
 0x1b8   : > { %v1907_v38 = vpop.f32.mrb[102].mxu0  ;;  %v1744_v44 = vadd.f32 %v1725_v57, %v6445_v25  ;;  %v5017_v41 = vpop.f32.mrb[103].mxu1  ;;  %v3432_v25 = vrot.slane %v6533_v61, 1  ;;  %v3563_v49 = vsel %vm880_vm4, %v3554_v17, %v3562_v6 }
 0x1b9   : > { %v6529_v63 = vadd.f32 %v1907_v38, %v1742_v55  ;;  %v5035_v19 = vpop.f32.mrb[103].mxu0  ;;  %v3577_v55 = vshll.u32 %v6559_v30, 16 }
 0x1ba   : > { %5267 = vmatmul.mubr.msk.bf16.vlgmr.msra.gmra.mrb[208].mxu1 %vm2981_vm9, %v3431_v18  ;;  %v3433_v51 = vsel %vm600_vm3, %v3430_v53, %v3432_v25  ;;  %v3585_v18 = vrot.slane %v3583_v56, 1  ;;  %v4623_v56 = vld [vmem:[%s6886_s5 + $0x7] sm:$0x1] }
 0x1bb   : > { %5261 = vmatmul.mubr.msk.bf16.gmra.mrb[208].mxu0 %vm2981_vm9, %v3286_v54  ;;  %5309 = vmatpush3.bf16.msra.mxu1 %v3734_v14  ;;  %v3579_v62 = vrot.slane %v3577_v55, 2 }
 0x1bc   : > { %5288 = vmatprep.mubr.msk.bf16.mxu0 %vm5516_vm0, %v5515_v1  ;;  %5270 = vmatprep.mubr.msk.bf16.mxu1 %vm5516_vm0, %v5515_v1 }
 0x1bd   : > { %5352 = vmatprep.subr.bf16.mxu1 %v5515_v1  ;;  %v1730_v12 = vpop.f32.mrb[104].mxu1 }
 0x1be   : > { %v1912_v21 = vpop.f32.mrb[104].mxu0  ;;  %v1745_v13 = vadd.f32 %v1730_v12, %v6463_v8  ;;  %v5020_v60 = vpop.f32.mrb[105].mxu1  ;;  %v3571_v8 = vor.u32 %v3570_v15, %v3567_v47  ;;  %v5496_v12 = vld [vmem:[%s5700_s22 + $0x2c] ss:$0 sps:$4 sm:$0x11]  }
 0x1bf   : > { %v6549_v29 = vadd.f32 %v1912_v21, %v1743_v11  ;;  %v5038_v16 = vpop.f32.mrb[105].mxu0  ;;  %v1733_v28 = vpop.f32.mrb[106].mxu1  ;;  %v3586_v11 = vshll.u32 %v6579_v50, 16  ;;  %v3438_v60 = vrot.slane %v5496_v12, 1 }
 0x1c0   : > { %v1915_v32 = vpop.f32.mrb[106].mxu0  ;;  %v1746_v31 = vadd.f32 %v1733_v28, %v6467_v52  ;;  %v5021_v10 = vpop.f32.mrb[107].mxu1  ;;  %v3434_v52 = vrot.slane %v6559_v30, 1  ;;  %v3572_v42 = vsel %vm880_vm4, %v3562_v6, %v3571_v8  ;;  %v6596_v6 = vld [vmem:[%s5700_s22 + $0x2c] ss:$0 sps:$4 sm:$0x33]  }
 0x1c1   : > { %v6554_v39 = vadd.f32 %v1915_v32, %v1744_v44  ;;  %v5039_v22 = vpop.f32.mrb[107].mxu0  ;;  %v3588_v17 = vrot.slane %v3586_v11, 2  ;;  %v3595_v15 = vshll.u32 %v6596_v6, 16  ;;  %v6643_v11 = vld [vmem:[%s5700_s22 + $0x10] sm:$0xff]  }
 0x1c2   : > { %5271 = vmatmul.mubr.msk.bf16.gmra.mrb[212].mxu1 %vm2981_vm9, %v3433_v51  ;;  %v3435_v54 = vsel %vm600_vm3, %v3432_v25, %v3434_v52 }
 0x1c3   : > { %5289 = vmatmul.mubr.msk.bf16.vlgmr.msra.gmra.mrb[212].mxu0 %vm2981_vm9, %v3563_v49  ;;  %5274 = vmatprep.mubr.msk.bf16.mxu1 %vm5516_vm0, %v5515_v1  ;;  %v3589_v47 = vor.u32 %v3588_v17, %v3585_v18  ;;  %v4047_v17 = vsel %vm2997_vm8, %v4623_v56, 0  ;;  %v6706_v56 = vld [vmem:[%s5700_s22 + $0x28] sm:$0xff]  }
 0x1c4   : > { %5331 = vmatpush3.bf16.msra.mxu0 %v3887_v23  ;;  %5292 = vmatprep.mubr.msk.bf16.mxu0 %vm5516_vm0, %v5515_v1  ;;  %v3701_v23 = vld [vmem:[%s5700_s22 + $0x4] sm:$0xc] }
 0x1c5   : > { %5374 = vmatprep.subr.bf16.mxu0 %v5515_v1  ;;  %v2010_v0 = vpop.f32.mrb[108].mxu1 }
 0x1c6   : > { %v1920_v35 = vpop.f32.mrb[108].mxu0  ;;  %v2049_v53 = vadd.f32 %v2010_v0, %v6481_v4  ;;  %v5048_v45 = vpop.f32.mrb[109].mxu1  ;;  %v3580_v4 = vor.u32 %v3579_v62, %v3576_v43 }
 0x1c7   : > { %v6572_v27 = vadd.f32 %v1920_v35, %v1745_v13  ;;  %v5042_v58 = vpop.f32.mrb[109].mxu0  ;;  %v2013_v38 = vpop.f32.mrb[110].mxu1 }
 0x1c8   : > { %v1923_v5 = vpop.f32.mrb[110].mxu0  ;;  %v2050_v34 = vadd.f32 %v2013_v38, %v6485_v3  ;;  %v5049_v48 = vpop.f32.mrb[111].mxu1  ;;  %v3436_v3 = vrot.slane %v6579_v50, 1  ;;  %v3581_v14 = vsel %vm880_vm4, %v3571_v8, %v3580_v4  ;;  %v3597_v8 = vrot.slane %v3595_v15, 2 }
 0x1c9   : > { %v6576_v2 = vadd.f32 %v1923_v5, %v1746_v31  ;;  %v5043_v20 = vpop.f32.mrb[111].mxu0  ;;  %v3590_v31 = vsel %vm880_vm4, %v3580_v4, %v3589_v47  ;;  %v4605_v5 = vcombine.low %v3701_v23, %v6499_v37 }
 0x1ca   : > { %5275 = vmatmul.mubr.msk.bf16.gmra.mrb[216].mxu1 %vm2981_vm9, %v3435_v54  ;;  %v3437_v16 = vsel %vm600_vm3, %v3434_v52, %v3436_v3  ;;  %v3439_v0 = vsel %vm600_vm3, %v3436_v3, %v3438_v60 }
 0x1cb   : > { %5293 = vmatmul.mubr.msk.bf16.gmra.mrb[216].mxu0 %vm2981_vm9, %v3572_v42  ;;  %5278 = vmatprep.mubr.msk.bf16.mxu1 %vm5516_vm0, %v5515_v1  ;;  %v3707_v37 = vrot.slane %v4605_v5, 2 }
 0x1cc   : > { %5296 = vmatprep.mubr.msk.bf16.mxu0 %vm5516_vm0, %v5515_v1 }
 0x1cd   : > { %v2018_v44 = vpop.f32.mrb[112].mxu1 }
 0x1ce   : > { %v2167_v59 = vpop.f32.mrb[112].mxu0  ;;  %v2051_v7 = vadd.f32 %v2018_v44, %v6501_v36  ;;  %v5052_v33 = vpop.f32.mrb[113].mxu1  ;;  %v3592_v36 = vshrl.u32 %v6596_v6, 16 }
 0x1cf   : > { %v6592_v19 = vadd.f32 %v2167_v59, %v2049_v53  ;;  %v5070_v57 = vpop.f32.mrb[113].mxu0  ;;  %v2021_v40 = vpop.f32.mrb[114].mxu1  ;;  %v6628_v53 = vld [vmem:[%s5700_s22 + $0xc] sm:$0xf] }
 0x1d0   : > { %v2170_v41 = vpop.f32.mrb[114].mxu0  ;;  %v2052_v32 = vadd.f32 %v2021_v40, %v6505_v24  ;;  %v5053_v49 = vpop.f32.mrb[115].mxu1  ;;  %v3594_v10 = vrot.slane %v3592_v36, 1 }
 0x1d1   : > { %v6599_v21 = vadd.f32 %v2170_v41, %v2050_v34  ;;  %v5071_v25 = vpop.f32.mrb[115].mxu0 }
 0x1d2   : > { %5279 = vmatmul.mubr.msk.bf16.gmra.mrb[220].mxu1 %vm2981_vm9, %v3437_v16  ;;  %v3598_v62 = vor.u32 %v3597_v8, %v3594_v10  ;;  %v4630_v25 = vld [vmem:[%s6886_s5 + $0x8] sm:$0x1]  ;;  %v3712_v10 = vrot.slane %v6559_v30, 2 }
 0x1d3   : > { %5297 = vmatmul.mubr.msk.bf16.gmra.mrb[220].mxu0 %vm2981_vm9, %v3581_v14  ;;  %5282 = vmatprep.mubr.msk.bf16.mxu1 %vm5516_vm0, %v5515_v1 }
 0x1d4   : > { %5300 = vmatprep.mubr.msk.bf16.mxu0 %vm5516_vm0, %v5515_v1  ;;  %v3599_v48 = vsel %vm880_vm4, %v3589_v47, %v3598_v62  ;;  %v6667_v47 = vld [vmem:[%s5700_s22 + $0x18] sm:$0xff]  }
 0x1d5   : > { %v2026_v28 = vpop.f32.mrb[116].mxu1 }
 0x1d6   : > { %v2175_v13 = vpop.f32.mrb[116].mxu0  ;;  %v2053_v9 = vadd.f32 %v2026_v28, %v6522_v26  ;;  %v5056_v55 = vpop.f32.mrb[117].mxu1  ;;  %v3819_v26 = vld [vmem:[%s5700_s22 + $0x8] sm:$0xc] }
 0x1d7   : > { %v6612_v22 = vadd.f32 %v2175_v13, %v2051_v7  ;;  %v5074_v24 = vpop.f32.mrb[117].mxu0  ;;  %v2029_v58 = vpop.f32.mrb[118].mxu1  ;;  %v6640_v4 = vcombine.low %v3819_v26, %v6628_v53  ;;  %v3861_v7 = vrot.slane %v6643_v11, 2 }
 0x1d8   : > { %v2178_v51 = vpop.f32.mrb[118].mxu0  ;;  %v2054_v42 = vadd.f32 %v2029_v58, %v6529_v63  ;;  %v5057_v43 = vpop.f32.mrb[119].mxu1  ;;  %v3708_v63 = vrot.slane %v6510_v46, 2  ;;  %v6687_v58 = vld [vmem:[%s5700_s22 + $0x20] sm:$0xff]  }
 0x1d9   : > { %v6617_v35 = vadd.f32 %v2178_v51, %v2052_v32  ;;  %v5075_v52 = vpop.f32.mrb[119].mxu0 }
 0x1da   : > { %5283 = vmatmul.mubr.msk.bf16.gmra.mrb[224].mxu1 %vm2981_vm9, %v3439_v0  ;;  %v3709_v44 = vsel %vm1045_vm5, %v3707_v37, %v3708_v63  ;;  %v3865_v37 = vrot.slane %v6687_v58, 2 }
 0x1db   : > { %5301 = vmatmul.mubr.msk.bf16.gmra.mrb[224].mxu0 %vm2981_vm9, %v3590_v31  ;;  %5310 = vmatprep.mubr.msk.bf16.mxu1 %vm5516_vm0, %v5515_v1 }
 0x1dc   : > { %5304 = vmatprep.mubr.msk.bf16.mxu0 %vm5516_vm0, %v5515_v1 }
 0x1dd   : > { %v2034_v54 = vpop.f32.mrb[120].mxu1 }
 0x1de   : > { %v2183_v45 = vpop.f32.mrb[120].mxu0  ;;  %v2055_v59 = vadd.f32 %v2034_v54, %v6549_v29  ;;  %v5060_v3 = vpop.f32.mrb[121].mxu1  ;;  %v3860_v29 = vrot.slane %v6640_v4, 2 }
 0x1df   : > { %v6633_v20 = vadd.f32 %v2183_v45, %v2053_v9  ;;  %v5078_v38 = vpop.f32.mrb[121].mxu0  ;;  %v2037_v18 = vpop.f32.mrb[122].mxu1 }
 0x1e0   : > { %v2186_v34 = vpop.f32.mrb[122].mxu0  ;;  %v2056_v41 = vadd.f32 %v2037_v18, %v6554_v39  ;;  %v5061_v14 = vpop.f32.mrb[123].mxu1  ;;  %v3710_v39 = vrot.slane %v6533_v61, 2  ;;  %v3862_v49 = vsel %vm1045_vm5, %v3860_v29, %v3861_v7  ;;  %v4165_v61 = vsel %vm2997_vm8, %v4630_v25, 0 }
 0x1e1   : > { %v6646_v46 = vadd.f32 %v2186_v34, %v2054_v42  ;;  %v5079_v57 = vpop.f32.mrb[123].mxu0 }
 0x1e2   : > { %5311 = vmatmul.mubr.msk.bf16.vlgmr.msra.gmra.mrb[228].mxu1 %vm2981_vm9, %v3709_v44  ;;  %v3711_v23 = vsel %vm1045_vm5, %v3708_v63, %v3710_v39  ;;  %v3713_v26 = vsel %vm1045_vm5, %v3710_v39, %v3712_v10  ;;  %v3714_v63 = vrot.slane %v6579_v50, 2  ;;  %v3990_v39 = vshll.u32 %v6643_v11, 16 }
 0x1e3   : > { %5305 = vmatmul.mubr.msk.bf16.gmra.mrb[228].mxu0 %vm2981_vm9, %v3599_v48  ;;  %5353 = vmatpush3.bf16.msra.mxu1 %v4047_v17  ;;  %v3867_v17 = vrot.slane %v6706_v56, 2 }
 0x1e4   : > { %5332 = vmatprep.mubr.msk.bf16.mxu0 %vm5516_vm0, %v5515_v1  ;;  %5314 = vmatprep.mubr.msk.bf16.mxu1 %vm5516_vm0, %v5515_v1 }
 0x1e5   : > { %v2042_v12 = vpop.f32.mrb[124].mxu1 }
 0x1e6   : > { %v2191_v33 = vpop.f32.mrb[124].mxu0  ;;  %v2057_v36 = vadd.f32 %v2042_v12, %v6572_v27  ;;  %v5064_v15 = vpop.f32.mrb[125].mxu1  ;;  %v3863_v27 = vrot.slane %v6667_v47, 2 }
 0x1e7   : > { %v6663_v40 = vadd.f32 %v2191_v33, %v2055_v59  ;;  %v5082_v16 = vpop.f32.mrb[125].mxu0  ;;  %v2045_v24 = vpop.f32.mrb[126].mxu1  ;;  %v3987_v33 = vshrl.u32 %v6643_v11, 16 }
 0x1e8   : > { %v2194_v32 = vpop.f32.mrb[126].mxu0  ;;  %v2058_v28 = vadd.f32 %v2045_v24, %v6576_v2  ;;  %v5065_v51 = vpop.f32.mrb[127].mxu1  ;;  %v3864_v52 = vsel %vm1045_vm5, %v3861_v7, %v3863_v27  ;;  %v3866_v48 = vsel %vm1045_vm5, %v3863_v27, %v3865_v37  ;;  %v3979_v7 = vshrl.u32 %v6640_v4, 16 }
 0x1e9   : > { %v6670_v13 = vadd.f32 %v2194_v32, %v2056_v41  ;;  %v5083_v60 = vpop.f32.mrb[127].mxu0  ;;  %v3715_v41 = vsel %vm1045_vm5, %v3712_v10, %v3714_v63  ;;  %v3989_v51 = vrot.slane %v3987_v33, 2  ;;  %v3992_v27 = vrot.slane %v3990_v39, 3 }
 0x1ea   : > { %5315 = vmatmul.mubr.msk.bf16.gmra.mrb[232].mxu1 %vm2981_vm9, %v3711_v23  ;;  %v3981_v23 = vrot.slane %v3979_v7, 2 }
 0x1eb   : > { %5333 = vmatmul.mubr.msk.bf16.vlgmr.msra.gmra.mrb[232].mxu0 %vm2981_vm9, %v3862_v49  ;;  %5318 = vmatprep.mubr.msk.bf16.mxu1 %vm5516_vm0, %v5515_v1  ;;  %v3868_v49 = vsel %vm1045_vm5, %v3865_v37, %v3867_v17 }
 0x1ec   : > { %5375 = vmatpush3.bf16.msra.mxu0 %v4165_v61  ;;  %5336 = vmatprep.mubr.msk.bf16.mxu0 %vm5516_vm0, %v5515_v1 }
 0x1ed   : > { %v2331_v9 = vpop.f32.mrb[128].mxu1 }
 0x1ee   : > { %v2199_v31 = vpop.f32.mrb[128].mxu0  ;;  %v2370_v0 = vadd.f32 %v2331_v9, %v6592_v19  ;;  %v5092_v5 = vpop.f32.mrb[129].mxu1 }
 0x1ef   : > { %v6683_v8 = vadd.f32 %v2199_v31, %v2057_v36  ;;  %v5086_v2 = vpop.f32.mrb[129].mxu0  ;;  %v2334_v62 = vpop.f32.mrb[130].mxu1 }
 0x1f0   : > { %v2202_v55 = vpop.f32.mrb[130].mxu0  ;;  %v2371_v30 = vadd.f32 %v2334_v62, %v6599_v21  ;;  %v5093_v45 = vpop.f32.mrb[131].mxu1  ;;  %v4132_v2 = vld [vmem:[%s5700_s22 + $0x8] sm:$0x8] }
 0x1f1   : > { %v6690_v42 = vadd.f32 %v2202_v55, %v2058_v28  ;;  %v5087_v43 = vpop.f32.mrb[131].mxu0  ;;  %v4631_v45 = vcombine.low %v4132_v2, %v6628_v53 }
 0x1f2   : > { %5319 = vmatmul.mubr.msk.bf16.gmra.mrb[236].mxu1 %vm2981_vm9, %v3713_v26 }
 0x1f3   : > { %5337 = vmatmul.mubr.msk.bf16.gmra.mrb[236].mxu0 %vm2981_vm9, %v3864_v52  ;;  %5322 = vmatprep.mubr.msk.bf16.mxu1 %vm5516_vm0, %v5515_v1  ;;  %v3993_v52 = vor.u32 %v3992_v27, %v3989_v51  ;;  %v4138_v53 = vrot.slane %v4631_v45, 3 }
 0x1f4   : > { %5340 = vmatprep.mubr.msk.bf16.mxu0 %vm5516_vm0, %v5515_v1 }
 0x1f5   : > { %v2339_v21 = vpop.f32.mrb[132].mxu1 }
 0x1f6   : > { %v2453_v19 = vpop.f32.mrb[132].mxu0  ;;  %v2372_v59 = vadd.f32 %v2339_v21, %v6612_v22  ;;  %v5096_v3 = vpop.f32.mrb[133].mxu1  ;;  %v3716_v22 = vrot.slane %v6596_v6, 2  ;;  %v5504_v6 = vld [vmem:[%s5700_s22 + $0x30] ss:$0 sps:$4 sm:$0x33]  }
 0x1f7   : > { %v6702_v38 = vadd.f32 %v2453_v19, %v2370_v0  ;;  %v5114_v54 = vpop.f32.mrb[133].mxu0  ;;  %v2342_v44 = vpop.f32.mrb[134].mxu1  ;;  %v3996_v0 = vshrl.u32 %v6667_v47, 16 }
 0x1f8   : > { %v2456_v34 = vpop.f32.mrb[134].mxu0  ;;  %v2373_v50 = vadd.f32 %v2342_v44, %v6617_v35  ;;  %v5097_v14 = vpop.f32.mrb[135].mxu1  ;;  %v3982_v35 = vshll.u32 %v6640_v4, 16  ;;  %v3717_v4 = vsel %vm1045_vm5, %v3714_v63, %v3716_v22 }
 0x1f9   : > { %v6709_v57 = vadd.f32 %v2456_v34, %v2371_v30  ;;  %v5115_v18 = vpop.f32.mrb[135].mxu0 }
 0x1fa   : > { %5323 = vmatmul.mubr.msk.bf16.gmra.mrb[240].mxu1 %vm2981_vm9, %v3715_v41  ;;  %v3984_v28 = vrot.slane %v3982_v35, 3 }
 0x1fb   : > { %5341 = vmatmul.mubr.msk.bf16.gmra.mrb[240].mxu0 %vm2981_vm9, %v3866_v48  ;;  %5326 = vmatprep.mubr.msk.bf16.mxu1 %vm5516_vm0, %v5515_v1  ;;  %v3998_v48 = vrot.slane %v3996_v0, 2  ;;  %v5506_v0 = vld [vmem:[%s5700_s22 + $0x30] ss:$0 sps:$4 sm:$0x77]   ;;  %s5399_s22 = smul.u32 80, %s6890_s25 }
 0x1fc   : > { %5344 = vmatprep.mubr.msk.bf16.mxu0 %vm5516_vm0, %v5515_v1  ;;  %v3985_v55 = vor.u32 %v3984_v28, %v3981_v23  ;;  %v4026_v45 = vshll.u32 %v5506_v0, 16 }
 0x1fd   : > { %v2347_v12 = vpop.f32.mrb[136].mxu1  ;;  %s6842_s17 = scalar_lea.vmem %s6888_s7, %s5399_s22 }
 0x1fe   : > { %v2461_v29 = vpop.f32.mrb[136].mxu0  ;;  %v2374_v36 = vadd.f32 %v2347_v12, %v6633_v20  ;;  %v5100_v15 = vpop.f32.mrb[137].mxu1  ;;  %v3869_v20 = vrot.slane %v5504_v6, 2  ;;  %v3994_v34 = vsel %vm1325_vm6, %v3985_v55, %v3993_v52 }
 0x1ff   : > { %v6725_v25 = vadd.f32 %v2461_v29, %v2372_v59  ;;  %v5118_v16 = vpop.f32.mrb[137].mxu0  ;;  %v2350_v24 = vpop.f32.mrb[138].mxu1  ;;  %v4141_v15 = vrot.slane %v6667_v47, 3 }
 0x200   : > { %v2464_v32 = vpop.f32.mrb[138].mxu0  ;;  %v2375_v31 = vadd.f32 %v2350_v24, %v6646_v46  ;;  %v5101_v10 = vpop.f32.mrb[139].mxu1  ;;  %v3999_v46 = vshll.u32 %v6667_v47, 16  ;;  %v3870_v30 = vsel %vm1045_vm5, %v3867_v17, %v3869_v20 }
 0x201   : > { %v6730_v60 = vadd.f32 %v2464_v32, %v2373_v50  ;;  %v5119_v61 = vpop.f32.mrb[139].mxu0  ;;  %v4005_v50 = vshrl.u32 %v6687_v58, 16 }
 0x202   : > { %5327 = vmatmul.mubr.msk.bf16.gmra.mrb[244].mxu1 %vm2981_vm9, %v3717_v4  ;;  %v4001_v59 = vrot.slane %v3999_v46, 3  ;;  %v4014_v4 = vshrl.u32 %v6706_v56, 16 }
 0x203   : > { %5345 = vmatmul.mubr.msk.bf16.gmra.mrb[244].mxu0 %vm2981_vm9, %v3868_v49  ;;  %5354 = vmatprep.mubr.msk.bf16.mxu1 %vm5516_vm0, %v5515_v1  ;;  %v4007_v32 = vrot.slane %v4005_v50, 2  ;;  %v4145_v50 = vrot.slane %v6706_v56, 3 }
 0x204   : > { %5348 = vmatprep.mubr.msk.bf16.mxu0 %vm5516_vm0, %v5515_v1  ;;  %v4002_v41 = vor.u32 %v4001_v59, %v3998_v48  ;;  %v4016_v55 = vrot.slane %v4014_v4, 2 }
 0x205   : > { %v2355_v62 = vpop.f32.mrb[140].mxu1 }
 0x206   : > { %v2469_v9 = vpop.f32.mrb[140].mxu0  ;;  %v2376_v37 = vadd.f32 %v2355_v62, %v6663_v40  ;;  %v5104_v19 = vpop.f32.mrb[141].mxu1  ;;  %v4139_v40 = vrot.slane %v6643_v11, 3  ;;  %v4003_v12 = vsel %vm1325_vm6, %v3993_v52, %v4002_v41 }
 0x207   : > { %v6743_v5 = vadd.f32 %v2469_v9, %v2374_v36  ;;  %v5122_v43 = vpop.f32.mrb[141].mxu0  ;;  %v2358_v21 = vpop.f32.mrb[142].mxu1 }
 0x208   : > { %v2472_v26 = vpop.f32.mrb[142].mxu0  ;;  %v2377_v3 = vadd.f32 %v2358_v21, %v6670_v13  ;;  %v5105_v18 = vpop.f32.mrb[143].mxu1  ;;  %v4008_v13 = vshll.u32 %v6687_v58, 16  ;;  %v4140_v7 = vsel %vm1490_vm7, %v4138_v53, %v4139_v40  ;;  %v4142_v27 = vsel %vm1490_vm7, %v4139_v40, %v4141_v15 }
 0x209   : > { %v6748_v63 = vadd.f32 %v2472_v26, %v2375_v31  ;;  %v5123_v54 = vpop.f32.mrb[143].mxu0  ;;  %v4028_v40 = vrot.slane %v4026_v45, 3 }
 0x20a   : > { %5355 = vmatmul.mubr.msk.bf16.vlgmr.msra.gmra.mrb[248].mxu1 %vm2981_vm9, %v3994_v34  ;;  %v4010_v49 = vrot.slane %v4008_v13, 3 }
 0x20b   : > { %5349 = vmatmul.mubr.msk.bf16.gmra.mrb[248].mxu0 %vm2981_vm9, %v3870_v30  ;;  %5358 = vmatprep.mubr.msk.bf16.mxu1 %vm5516_vm0, %v5515_v1  ;;  %v4023_v30 = vshrl.u32 %v5506_v0, 16 }
 0x20c   : > { %5376 = vmatprep.mubr.msk.bf16.mxu0 %vm5516_vm0, %v5515_v1 }
 0x20d   : > { %v2363_v22 = vpop.f32.mrb[144].mxu1  ;;  %v4025_v53 = vrot.slane %v4023_v30, 2 }
 0x20e   : > { %v2477_v44 = vpop.f32.mrb[144].mxu0  ;;  %v2378_v11 = vadd.f32 %v2363_v22, %v6683_v8  ;;  %v5108_v35 = vpop.f32.mrb[145].mxu1  ;;  %v4011_v8 = vor.u32 %v4010_v49, %v4007_v32 }
 0x20f   : > { %v6761_v14 = vadd.f32 %v2477_v44, %v2376_v37  ;;  %v5126_v17 = vpop.f32.mrb[145].mxu0  ;;  %v2366_v16 = vpop.f32.mrb[146].mxu1  ;;  %v4029_v13 = vor.u32 %v4028_v40, %v4025_v53 }
 0x210   : > { %v2480_v29 = vpop.f32.mrb[146].mxu0  ;;  %v2379_v6 = vadd.f32 %v2366_v16, %v6690_v42  ;;  %v5109_v36 = vpop.f32.mrb[147].mxu1  ;;  %v4017_v42 = vshll.u32 %v6706_v56, 16  ;;  %v4012_v2 = vsel %vm1325_vm6, %v4002_v41, %v4011_v8 }
 0x211   : > { %v6765_v33 = vadd.f32 %v2480_v29, %v2377_v3  ;;  %v5127_v39 = vpop.f32.mrb[147].mxu0 }
 0x212   : > { %5359 = vmatmul.mubr.msk.bf16.gmra.mrb[252].mxu1 %vm2981_vm9, %v4003_v12  ;;  %v4019_v52 = vrot.slane %v4017_v42, 3 }
 0x213   : > { %5377 = vmatmul.mubr.msk.bf16.vlgmr.msra.gmra.mrb[252].mxu0 %vm2981_vm9, %v4140_v7  ;;  %5362 = vmatprep.mubr.msk.bf16.mxu1 %vm5516_vm0, %v5515_v1 }
 0x214   : > { %5380 = vmatprep.mubr.msk.bf16.mxu0 %vm5516_vm0, %v5515_v1  ;;  %v4020_v26 = vor.u32 %v4019_v52, %v4016_v55 }
 0x215   : > { %v2610_v28 = vpop.f32.mrb[148].mxu1 }
 0x216   : > { %v2485_v61 = vpop.f32.mrb[148].mxu0  ;;  %v2649_v47 = vadd.f32 %v2610_v28, %v6702_v38  ;;  %v5136_v31 = vpop.f32.mrb[149].mxu1  ;;  %v4143_v38 = vrot.slane %v6687_v58, 3  ;;  %v4021_v18 = vsel %vm1325_vm6, %v4011_v8, %v4020_v26  ;;  %v4030_v56 = vsel %vm1325_vm6, %v4020_v26, %v4029_v13 }
 0x217   : > { %v6778_v24 = vadd.f32 %v2485_v61, %v2378_v11  ;;  %v5130_v23 = vpop.f32.mrb[149].mxu0  ;;  %v2613_v9 = vpop.f32.mrb[150].mxu1 }
 0x218   : > { %v2488_v51 = vpop.f32.mrb[150].mxu0  ;;  %v2650_v46 = vadd.f32 %v2613_v9, %v6709_v57  ;;  %v5137_v43 = vpop.f32.mrb[151].mxu1  ;;  %v4144_v21 = vsel %vm1490_vm7, %v4141_v15, %v4143_v38 }
 0x219   : > { %v6782_v10 = vadd.f32 %v2488_v51, %v2379_v6  ;;  %v5131_v20 = vpop.f32.mrb[151].mxu0  ;;  %v4147_v6 = vrot.slane %v5506_v0, 3 }
 0x21a   : > { %5363 = vmatmul.mubr.msk.bf16.gmra.mrb[0].mxu1 %vm2981_vm9, %v4012_v2 }
 0x21b   : > { %5381 = vmatmul.mubr.msk.bf16.gmra.mrb[0].mxu0 %vm2981_vm9, %v4142_v27  ;;  %5366 = vmatprep.mubr.msk.bf16.mxu1 %vm5516_vm0, %v5515_v1  ;;  %v4148_v4 = vsel %vm1490_vm7, %v4145_v50, %v4147_v6 }
 0x21c   : > { %5384 = vmatprep.mubr.msk.bf16.mxu0 %vm5516_vm0, %v5515_v1 }
 0x21d   : > { %v2618_v19 = vpop.f32.mrb[152].mxu1 }
 0x21e   : > { %v2774_v62 = vpop.f32.mrb[152].mxu0  ;;  %v2651_v34 = vadd.f32 %v2618_v19, %v6725_v25  ;;  %v5140_v48 = vpop.f32.mrb[153].mxu1 }
 0x21f   : > { %v6794_v37 = vadd.f32 %v2774_v62, %v2649_v47  ;;  %v5158_v57 = vpop.f32.mrb[153].mxu0  ;;  %v2621_v3 = vpop.f32.mrb[154].mxu1 }
 0x220   : > { %v2777_v54 = vpop.f32.mrb[154].mxu0  ;;  %v2652_v44 = vadd.f32 %v2621_v3, %v6730_v60  ;;  %v5141_v41 = vpop.f32.mrb[155].mxu1  ;;  %v4146_v60 = vsel %vm1490_vm7, %v4143_v38, %v4145_v50 }
 0x221   : > { %v6798_v58 = vadd.f32 %v2777_v54, %v2650_v46  ;;  %v5159_v59 = vpop.f32.mrb[155].mxu0 }
 0x222   : > { %5367 = vmatmul.mubr.msk.bf16.gmra.mrb[4].mxu1 %vm2981_vm9, %v4021_v18 }
 0x223   : > { %5385 = vmatmul.mubr.msk.bf16.gmra.mrb[4].mxu0 %vm2981_vm9, %v4144_v21  ;;  %5370 = vmatprep.mubr.msk.bf16.mxu1 %vm5516_vm0, %v5515_v1 }
 0x224   : > { %5388 = vmatprep.mubr.msk.bf16.mxu0 %vm5516_vm0, %v5515_v1 }
 0x225   : > { %v2626_v29 = vpop.f32.mrb[156].mxu1 }
 0x226   : > { %v2782_v25 = vpop.f32.mrb[156].mxu0  ;;  %v2653_v11 = vadd.f32 %v2626_v29, %v6743_v5  ;;  %v5144_v35 = vpop.f32.mrb[157].mxu1 }
 0x227   : > { %v2815_v17 = vadd.f32 %v2782_v25, %v2651_v34  ;;  %v5162_v22 = vpop.f32.mrb[157].mxu0  ;;  %v2629_v12 = vpop.f32.mrb[158].mxu1 }
 0x228   : > { %v2785_v7 = vpop.f32.mrb[158].mxu0  ;;  %v2654_v32 = vadd.f32 %v2629_v12, %v6748_v63  ;;  %v5145_v49 = vpop.f32.mrb[159].mxu1 }
 0x229   : > { %v2816_v39 = vadd.f32 %v2785_v7, %v2652_v44  ;;  %v5163_v16 = vpop.f32.mrb[159].mxu0 }
 0x22a   : > { %5371 = vmatmul.mubr.msk.bf16.gmra.mrb[8].mxu1 %vm2981_vm9, %v4030_v56 }
 0x22b   : > { %5389 = vmatmul.mubr.msk.bf16.gmra.mrb[8].mxu0 %vm2981_vm9, %v4146_v60 }
 0x22c   : > { %5392 = vmatprep.mubr.msk.bf16.mxu0 %vm5516_vm0, %v5515_v1 }
 0x22d   : > { %v2634_v8 = vpop.f32.mrb[160].mxu1 }
 0x22e   : > { %v2790_v36 = vpop.f32.mrb[160].mxu0  ;;  %v2655_v42 = vadd.f32 %v2634_v8, %v6761_v14  ;;  %v5148_v23 = vpop.f32.mrb[161].mxu1 }
 0x22f   : > { %v2817_v15 = vadd.f32 %v2790_v36, %v2653_v11  ;;  %v5166_v5 = vpop.f32.mrb[161].mxu0  ;;  %v2637_v51 = vpop.f32.mrb[162].mxu1 }
 0x230   : > { %v2793_v61 = vpop.f32.mrb[162].mxu0  ;;  %v2656_v27 = vadd.f32 %v2637_v51, %v6765_v33  ;;  %v5149_v1 = vpop.f32.mrb[163].mxu1 }
 0x231   : > { %v2818_v63 = vadd.f32 %v2793_v61, %v2654_v32  ;;  %v5167_v28 = vpop.f32.mrb[163].mxu0 }
 0x233   : > { %5393 = vmatmul.mubr.msk.bf16.gmra.mrb[12].mxu0 %vm2981_vm9, %v4148_v4 }
 0x235   : > { %v2642_v2 = vpop.f32.mrb[164].mxu1 }
 0x236   : > { %v2798_v47 = vpop.f32.mrb[164].mxu0  ;;  %v2657_v55 = vadd.f32 %v2642_v2, %v6778_v24  ;;  %v5152_v52 = vpop.f32.mrb[165].mxu1 }
 0x237   : > { %v2819_v31 = vadd.f32 %v2798_v47, %v2655_v42  ;;  %v5170_v20 = vpop.f32.mrb[165].mxu0  ;;  %v2645_v14 = vpop.f32.mrb[166].mxu1 }
 0x238   : > { %v2801_v9 = vpop.f32.mrb[166].mxu0  ;;  %v2658_v43 = vadd.f32 %v2645_v14, %v6782_v10  ;;  %v5153_v38 = vpop.f32.mrb[167].mxu1 }
 0x239   : > { %v2820_v0 = vadd.f32 %v2801_v9, %v2656_v27  ;;  %v5171_v46 = vpop.f32.mrb[167].mxu0 }
 0x23d   : > { %v2896_v30 = vpop.f32.mrb[168].mxu1 }
 0x23e   : > { %v2806_v62 = vpop.f32.mrb[168].mxu0  ;;  %v2935_v57 = vadd.f32 %v2896_v30, %v6794_v37  ;;  %v5180_v19 = vpop.f32.mrb[169].mxu1 }
 0x23f   : > { %v2821_v26 = vadd.f32 %v2806_v62, %v2657_v55  ;;  %v5174_v33 = vpop.f32.mrb[169].mxu0  ;;  %v2899_v34 = vpop.f32.mrb[170].mxu1 }
 0x240   : > { %v2809_v45 = vpop.f32.mrb[170].mxu0  ;;  %v2936_v24 = vadd.f32 %v2899_v34, %v6798_v58  ;;  %v5181_v48 = vpop.f32.mrb[171].mxu1 }
 0x241   : > { %v2822_v54 = vadd.f32 %v2809_v45, %v2658_v43  ;;  %v5175_v21 = vpop.f32.mrb[171].mxu0 }
 0x245   : > { %v2904_v53 = vpop.f32.mrb[172].mxu1 }
 0x246   : > { %v3035_v59 = vpop.f32.mrb[172].mxu0  ;;  %v2937_v40 = vadd.f32 %v2904_v53, %v2815_v17  ;;  %v5184_v44 = vpop.f32.mrb[173].mxu1 }
 0x247   : > { %v3074_v3 = vadd.f32 %v3035_v59, %v2935_v57  ;;  %v5202_v18 = vpop.f32.mrb[173].mxu0  ;;  %v2907_v25 = vpop.f32.mrb[174].mxu1 }
 0x248   : > { %v3038_v10 = vpop.f32.mrb[174].mxu0  ;;  %v2938_v13 = vadd.f32 %v2907_v25, %v2816_v39  ;;  %v5185_v22 = vpop.f32.mrb[175].mxu1 }
 0x249   : > { %v3075_v41 = vadd.f32 %v3038_v10, %v2936_v24  ;;  %v5203_v50 = vpop.f32.mrb[175].mxu0 }
 0x24d   : > { %v2912_v60 = vpop.f32.mrb[176].mxu1 }
 0x24e   : > { %v3043_v37 = vpop.f32.mrb[176].mxu0  ;;  %v2939_v35 = vadd.f32 %v2912_v60, %v2817_v15  ;;  %v5188_v58 = vpop.f32.mrb[177].mxu1 }
 0x24f   : > { %v3076_v29 = vadd.f32 %v3043_v37, %v2937_v40  ;;  %v5206_v7 = vpop.f32.mrb[177].mxu0  ;;  %v2915_v56 = vpop.f32.mrb[178].mxu1 }
 0x250   : > { %v3046_v11 = vpop.f32.mrb[178].mxu0  ;;  %v2940_v32 = vadd.f32 %v2915_v56, %v2818_v63  ;;  %v5189_v49 = vpop.f32.mrb[179].mxu1 }
 0x251   : > { %v3077_v16 = vadd.f32 %v3046_v11, %v2938_v13  ;;  %v5207_v12 = vpop.f32.mrb[179].mxu0 }
 0x255   : > { %v2920_v5 = vpop.f32.mrb[180].mxu1 }
 0x256   : > { %v3051_v6 = vpop.f32.mrb[180].mxu0  ;;  %v2941_v61 = vadd.f32 %v2920_v5, %v2819_v31  ;;  %v5192_v39 = vpop.f32.mrb[181].mxu1 }
 0x257   : > { %v3078_v17 = vadd.f32 %v3051_v6, %v2939_v35  ;;  %v5210_v36 = vpop.f32.mrb[181].mxu0  ;;  %v2923_v23 = vpop.f32.mrb[182].mxu1 }
 0x258   : > { %v3054_v8 = vpop.f32.mrb[182].mxu0  ;;  %v2942_v28 = vadd.f32 %v2923_v23, %v2820_v0  ;;  %v5193_v51 = vpop.f32.mrb[183].mxu1 }
 0x259   : > { %v3079_v4 = vadd.f32 %v3054_v8, %v2940_v32  ;;  %v5211_v42 = vpop.f32.mrb[183].mxu0 }
 0x25d   : > { %v2928_v47 = vpop.f32.mrb[184].mxu1 }
 0x25e   : > { %v3059_v27 = vpop.f32.mrb[184].mxu0  ;;  %v2943_v2 = vadd.f32 %v2928_v47, %v2821_v26  ;;  %v5196_v63 = vpop.f32.mrb[185].mxu1 }
 0x25f   : > { %v3080_v15 = vadd.f32 %v3059_v27, %v2941_v61  ;;  %v5214_v1 = vpop.f32.mrb[185].mxu0  ;;  %v2931_v52 = vpop.f32.mrb[186].mxu1 }
 0x260   : > { %v3062_v20 = vpop.f32.mrb[186].mxu0  ;;  %v2944_v46 = vadd.f32 %v2931_v52, %v2822_v54  ;;  %v5197_v14 = vpop.f32.mrb[187].mxu1 }
 0x261   : > { %v3081_v9 = vadd.f32 %v3062_v20, %v2942_v28  ;;  %v5215_v55 = vpop.f32.mrb[187].mxu0 }
 0x265   : > { %v3221_v62 = vpop.f32.mrb[188].mxu1 }
 0x266   : > { %v3067_v43 = vpop.f32.mrb[188].mxu0  ;;  %v3260_v30 = vadd.f32 %v3221_v62, %v3074_v3  ;;  %v5224_v0 = vpop.f32.mrb[189].mxu1 }
 0x267   : > { %v3082_v31 = vadd.f32 %v3067_v43, %v2943_v2  ;;  %v5218_v38 = vpop.f32.mrb[189].mxu0  ;;  %v3224_v19 = vpop.f32.mrb[190].mxu1 }
 0x268   : > { %v3070_v33 = vpop.f32.mrb[190].mxu0  ;;  %v3261_v21 = vadd.f32 %v3224_v19, %v3075_v41  ;;  %v5225_v34 = vpop.f32.mrb[191].mxu1 }
 0x269   : > { %v3083_v45 = vadd.f32 %v3070_v33, %v2944_v46  ;;  %v5219_v57 = vpop.f32.mrb[191].mxu0 }
 0x26d   : > { %v3229_v59 = vpop.f32.mrb[192].mxu1 }
 0x26e   : > { %v3339_v24 = vpop.f32.mrb[192].mxu0  ;;  %v3262_v53 = vadd.f32 %v3229_v59, %v3076_v29  ;;  %v5228_v54 = vpop.f32.mrb[193].mxu1 }
 0x26f   : > { %v3378_v26 = vadd.f32 %v3339_v24, %v3260_v30  ;;  %v5246_v48 = vpop.f32.mrb[193].mxu0  ;;  %v3232_v44 = vpop.f32.mrb[194].mxu1 }
 0x270   : > { %v3342_v18 = vpop.f32.mrb[194].mxu0  ;;  %v3263_v50 = vadd.f32 %v3232_v44, %v3077_v16  ;;  %v5229_v25 = vpop.f32.mrb[195].mxu1 }
 0x271   : > { %v3379_v10 = vadd.f32 %v3342_v18, %v3261_v21  ;;  %v5247_v40 = vpop.f32.mrb[195].mxu0 }
 0x275   : > { %v3237_v37 = vpop.f32.mrb[196].mxu1 }
 0x276   : > { %v3347_v13 = vpop.f32.mrb[196].mxu0  ;;  %v3264_v60 = vadd.f32 %v3237_v37, %v3078_v17  ;;  %v5232_v41 = vpop.f32.mrb[197].mxu1 }
 0x277   : > { %v3380_v3 = vadd.f32 %v3347_v13, %v3262_v53  ;;  %v5250_v22 = vpop.f32.mrb[197].mxu0  ;;  %v3240_v58 = vpop.f32.mrb[198].mxu1 }
 0x278   : > { %v3350_v7 = vpop.f32.mrb[198].mxu0  ;;  %v3265_v12 = vadd.f32 %v3240_v58, %v3079_v4  ;;  %v5233_v56 = vpop.f32.mrb[199].mxu1 }
 0x279   : > { %v3381_v11 = vadd.f32 %v3350_v7, %v3263_v50  ;;  %v5251_v35 = vpop.f32.mrb[199].mxu0 }
 0x27d   : > { %v3245_v6 = vpop.f32.mrb[200].mxu1 }
 0x27e   : > { %v3355_v32 = vpop.f32.mrb[200].mxu0  ;;  %v3266_v5 = vadd.f32 %v3245_v6, %v3080_v15  ;;  %v5236_v16 = vpop.f32.mrb[201].mxu1 }
 0x27f   : > { %v3382_v29 = vadd.f32 %v3355_v32, %v3264_v60  ;;  %v5254_v49 = vpop.f32.mrb[201].mxu0  ;;  %v3248_v39 = vpop.f32.mrb[202].mxu1 }
 0x280   : > { %v3358_v36 = vpop.f32.mrb[202].mxu0  ;;  %v3267_v42 = vadd.f32 %v3248_v39, %v3081_v9  ;;  %v5237_v23 = vpop.f32.mrb[203].mxu1 }
 0x281   : > { %v3383_v8 = vadd.f32 %v3358_v36, %v3265_v12  ;;  %v5255_v61 = vpop.f32.mrb[203].mxu0 }
 0x285   : > { %v3253_v27 = vpop.f32.mrb[204].mxu1 }
 0x286   : > { %v3363_v28 = vpop.f32.mrb[204].mxu0  ;;  %v3268_v47 = vadd.f32 %v3253_v27, %v3082_v31  ;;  %v5240_v4 = vpop.f32.mrb[205].mxu1 }
 0x287   : > { %v3384_v17 = vadd.f32 %v3363_v28, %v3266_v5  ;;  %v5258_v51 = vpop.f32.mrb[205].mxu0  ;;  %v3256_v63 = vpop.f32.mrb[206].mxu1 }
 0x288   : > { %v3366_v1 = vpop.f32.mrb[206].mxu0  ;;  %v3269_v55 = vadd.f32 %v3256_v63, %v3083_v45  ;;  %v5241_v52 = vpop.f32.mrb[207].mxu1 }
 0x289   : > { %v3385_v20 = vadd.f32 %v3366_v1, %v3267_v42  ;;  %v5259_v2 = vpop.f32.mrb[207].mxu0 }
 0x28d   : > { %v3492_v43 = vpop.f32.mrb[208].mxu1 }
 0x28e   : > { %v3371_v46 = vpop.f32.mrb[208].mxu0  ;;  %v3531_v62 = vadd.f32 %v3492_v43, %v3378_v26  ;;  %v5268_v9 = vpop.f32.mrb[209].mxu1 }
 0x28f   : > { %v3386_v15 = vadd.f32 %v3371_v46, %v3268_v47  ;;  %v5262_v14 = vpop.f32.mrb[209].mxu0  ;;  %v3495_v0 = vpop.f32.mrb[210].mxu1 }
 0x290   : > { %v3374_v38 = vpop.f32.mrb[210].mxu0  ;;  %v3532_v57 = vadd.f32 %v3495_v0, %v3379_v10  ;;  %v5269_v19 = vpop.f32.mrb[211].mxu1 }
 0x291   : > { %v3387_v33 = vadd.f32 %v3374_v38, %v3269_v55  ;;  %v5263_v30 = vpop.f32.mrb[211].mxu0 }
 0x295   : > { %v3500_v24 = vpop.f32.mrb[212].mxu1 }
 0x296   : > { %v3652_v21 = vpop.f32.mrb[212].mxu0  ;;  %v3533_v59 = vadd.f32 %v3500_v24, %v3380_v3  ;;  %v5272_v45 = vpop.f32.mrb[213].mxu1 }
 0x297   : > { %v3691_v31 = vadd.f32 %v3652_v21, %v3531_v62  ;;  %v5290_v34 = vpop.f32.mrb[213].mxu0  ;;  %v3503_v54 = vpop.f32.mrb[214].mxu1 }
 0x298   : > { %v3655_v48 = vpop.f32.mrb[214].mxu0  ;;  %v3534_v40 = vadd.f32 %v3503_v54, %v3381_v11  ;;  %v5273_v44 = vpop.f32.mrb[215].mxu1 }
 0x299   : > { %v3692_v18 = vadd.f32 %v3655_v48, %v3532_v57  ;;  %v5291_v53 = vpop.f32.mrb[215].mxu0 }
 0x29d   : > { %v3508_v13 = vpop.f32.mrb[216].mxu1 }
 0x29e   : > { %v3660_v50 = vpop.f32.mrb[216].mxu0  ;;  %v3535_v37 = vadd.f32 %v3508_v13, %v3382_v29  ;;  %v5276_v10 = vpop.f32.mrb[217].mxu1 }
 0x29f   : > { %v3693_v26 = vadd.f32 %v3660_v50, %v3533_v59  ;;  %v5294_v25 = vpop.f32.mrb[217].mxu0  ;;  %v3511_v41 = vpop.f32.mrb[218].mxu1 }
 0x2a0   : > { %v3663_v22 = vpop.f32.mrb[218].mxu0  ;;  %v3536_v35 = vadd.f32 %v3511_v41, %v3383_v8  ;;  %v5277_v58 = vpop.f32.mrb[219].mxu1 }
 0x2a1   : > { %v3694_v7 = vadd.f32 %v3663_v22, %v3534_v40  ;;  %v5295_v60 = vpop.f32.mrb[219].mxu0 }
 0x2a5   : > { %v3516_v32 = vpop.f32.mrb[220].mxu1 }
 0x2a6   : > { %v3668_v12 = vpop.f32.mrb[220].mxu0  ;;  %v3537_v6 = vadd.f32 %v3516_v32, %v3384_v17  ;;  %v5280_v11 = vpop.f32.mrb[221].mxu1 }
 0x2a7   : > { %v3695_v3 = vadd.f32 %v3668_v12, %v3535_v37  ;;  %v5298_v56 = vpop.f32.mrb[221].mxu0  ;;  %v3519_v16 = vpop.f32.mrb[222].mxu1 }
 0x2a8   : > { %v3671_v49 = vpop.f32.mrb[222].mxu0  ;;  %v3538_v61 = vadd.f32 %v3519_v16, %v3385_v20  ;;  %v5281_v39 = vpop.f32.mrb[223].mxu1 }
 0x2a9   : > { %v3696_v36 = vadd.f32 %v3671_v49, %v3536_v35  ;;  %v5299_v5 = vpop.f32.mrb[223].mxu0 }
 0x2ad   : > { %v3524_v28 = vpop.f32.mrb[224].mxu1 }
 0x2ae   : > { %v3676_v42 = vpop.f32.mrb[224].mxu0  ;;  %v3539_v27 = vadd.f32 %v3524_v28, %v3386_v15  ;;  %v5284_v8 = vpop.f32.mrb[225].mxu1 }
 0x2af   : > { %v3697_v29 = vadd.f32 %v3676_v42, %v3537_v6  ;;  %v5302_v23 = vpop.f32.mrb[225].mxu0  ;;  %v3527_v4 = vpop.f32.mrb[226].mxu1 }
 0x2b0   : > { %v3679_v51 = vpop.f32.mrb[226].mxu0  ;;  %v3540_v2 = vadd.f32 %v3527_v4, %v3387_v33  ;;  %v5285_v63 = vpop.f32.mrb[227].mxu1 }
 0x2b1   : > { %v3698_v1 = vadd.f32 %v3679_v51, %v3538_v61  ;;  %v5303_v47 = vpop.f32.mrb[227].mxu0 }
 0x2b5   : > { %v3770_v46 = vpop.f32.mrb[228].mxu1 }
 0x2b6   : > { %v3684_v55 = vpop.f32.mrb[228].mxu0  ;;  %v3809_v43 = vadd.f32 %v3770_v46, %v3691_v31  ;;  %v5312_v20 = vpop.f32.mrb[229].mxu1 }
 0x2b7   : > { %v3699_v17 = vadd.f32 %v3684_v55, %v3539_v27  ;;  %v5306_v52 = vpop.f32.mrb[229].mxu0  ;;  %v3773_v9 = vpop.f32.mrb[230].mxu1 }
 0x2b8   : > { %v3687_v14 = vpop.f32.mrb[230].mxu0  ;;  %v3810_v30 = vadd.f32 %v3773_v9, %v3692_v18  ;;  %v5313_v0 = vpop.f32.mrb[231].mxu1 }
 0x2b9   : > { %v3700_v38 = vadd.f32 %v3687_v14, %v3540_v2  ;;  %v5307_v62 = vpop.f32.mrb[231].mxu0 }
 0x2bd   : > { %v3778_v21 = vpop.f32.mrb[232].mxu1 }
 0x2be   : > { %v3923_v57 = vpop.f32.mrb[232].mxu0  ;;  %v3811_v24 = vadd.f32 %v3778_v21, %v3693_v26  ;;  %v5316_v33 = vpop.f32.mrb[233].mxu1 }
 0x2bf   : > { %v3962_v15 = vadd.f32 %v3923_v57, %v3809_v43  ;;  %v5334_v19 = vpop.f32.mrb[233].mxu0  ;;  %v3781_v45 = vpop.f32.mrb[234].mxu1 }
 0x2c0   : > { %v3926_v34 = vpop.f32.mrb[234].mxu0  ;;  %v3812_v53 = vadd.f32 %v3781_v45, %v3694_v7  ;;  %v5317_v54 = vpop.f32.mrb[235].mxu1 }
 0x2c1   : > { %v3963_v48 = vadd.f32 %v3926_v34, %v3810_v30  ;;  %v5335_v59 = vpop.f32.mrb[235].mxu0 }
 0x2c5   : > { %v3786_v50 = vpop.f32.mrb[236].mxu1 }
 0x2c6   : > { %v3931_v40 = vpop.f32.mrb[236].mxu0  ;;  %v3813_v13 = vadd.f32 %v3786_v50, %v3695_v3  ;;  %v5320_v18 = vpop.f32.mrb[237].mxu1 }
 0x2c7   : > { %v3964_v31 = vadd.f32 %v3931_v40, %v3811_v24  ;;  %v5338_v44 = vpop.f32.mrb[237].mxu0  ;;  %v3789_v10 = vpop.f32.mrb[238].mxu1 }
 0x2c8   : > { %v3934_v25 = vpop.f32.mrb[238].mxu0  ;;  %v3814_v60 = vadd.f32 %v3789_v10, %v3696_v36  ;;  %v5321_v41 = vpop.f32.mrb[239].mxu1 }
 0x2c9   : > { %v3965_v22 = vadd.f32 %v3934_v25, %v3812_v53  ;;  %v5339_v37 = vpop.f32.mrb[239].mxu0 }
 0x2cd   : > { %v3794_v12 = vpop.f32.mrb[240].mxu1 }
 0x2ce   : > { %v3939_v35 = vpop.f32.mrb[240].mxu0  ;;  %v3815_v32 = vadd.f32 %v3794_v12, %v3697_v29  ;;  %v5324_v7 = vpop.f32.mrb[241].mxu1 }
 0x2cf   : > { %v3966_v26 = vadd.f32 %v3939_v35, %v3813_v13  ;;  %v5342_v58 = vpop.f32.mrb[241].mxu0  ;;  %v3797_v11 = vpop.f32.mrb[242].mxu1 }
 0x2d0   : > { %v3942_v56 = vpop.f32.mrb[242].mxu0  ;;  %v3816_v5 = vadd.f32 %v3797_v11, %v3698_v1  ;;  %v5325_v16 = vpop.f32.mrb[243].mxu1 }
 0x2d1   : > { %v3967_v49 = vadd.f32 %v3942_v56, %v3814_v60  ;;  %v5343_v6 = vpop.f32.mrb[243].mxu0 }
 0x2d5   : > { %v3802_v42 = vpop.f32.mrb[244].mxu1 }
 0x2d6   : > { %v3947_v61 = vpop.f32.mrb[244].mxu0  ;;  %v3817_v36 = vadd.f32 %v3802_v42, %v3699_v17  ;;  %v5328_v28 = vpop.f32.mrb[245].mxu1 }
 0x2d7   : > { %v6825_v3 = vadd.f32 %v3947_v61, %v3815_v32  ;;  %v5346_v39 = vpop.f32.mrb[245].mxu0  ;;  %v3805_v8 = vpop.f32.mrb[246].mxu1 }
 0x2d8   : > { %v3950_v23 = vpop.f32.mrb[246].mxu0  ;;  %v3818_v29 = vadd.f32 %v3805_v8, %v3700_v38  ;;  %v5329_v47 = vpop.f32.mrb[247].mxu1  ;;  %v6837_v38 = vld [vmem:[%s6887_s6] ss:$0 sm:$0xff] }
 0x2d9   : > { %v6827_v51 = vadd.f32 %v3950_v23, %v3816_v5  ;;  %v5347_v27 = vpop.f32.mrb[247].mxu0 }
 0x2dd   : > { %v4083_v63 = vpop.f32.mrb[248].mxu1 }
 0x2de   : > { %v3955_v4 = vpop.f32.mrb[248].mxu0  ;;  %v4122_v52 = vadd.f32 %v4083_v63, %v3962_v15  ;;  %v5356_v46 = vpop.f32.mrb[249].mxu1 }
 0x2df   : > { %v6829_v2 = vadd.f32 %v3955_v4, %v3817_v36  ;;  %v5350_v1 = vpop.f32.mrb[249].mxu0  ;;  %v4086_v17 = vpop.f32.mrb[250].mxu1 }
 0x2e0   : > { %v3958_v55 = vpop.f32.mrb[250].mxu0  ;;  %v4123_v20 = vadd.f32 %v4086_v17, %v3963_v48  ;;  %v5357_v62 = vpop.f32.mrb[251].mxu1 }
 0x2e1   : > { %v6831_v14 = vadd.f32 %v3958_v55, %v3818_v29  ;;  %v5351_v43 = vpop.f32.mrb[251].mxu0 }
 0x2e5   : > { %v4091_v57 = vpop.f32.mrb[252].mxu1 }
 0x2e6   : > { %v4201_v9 = vpop.f32.mrb[252].mxu0  ;;  %v4124_v19 = vadd.f32 %v4091_v57, %v3964_v31  ;;  %v5360_v34 = vpop.f32.mrb[253].mxu1 }
 0x2e7   : > { %v4240_v30 = vadd.f32 %v4201_v9, %v4122_v52  ;;  %v5378_v0 = vpop.f32.mrb[253].mxu0  ;;  %v4094_v48 = vpop.f32.mrb[254].mxu1 }
 0x2e8   : > { %v4204_v15 = vpop.f32.mrb[254].mxu0  ;;  %v4125_v59 = vadd.f32 %v4094_v48, %v3965_v22  ;;  %v5361_v53 = vpop.f32.mrb[255].mxu1 }
 0x2e9   : > { %v4257_v21 = vadd.f32 %v6837_v38, %v4240_v30  ;;  %v4241_v24 = vadd.f32 %v4204_v15, %v4123_v20  ;;  %v5379_v33 = vpop.f32.mrb[255].mxu0 }
 0x2eb   : > { %4267 = vst.msk [vmem:[%s6842_s17] sm:$0xff] %vm2981_vm9, %v4257_v21  ;;  %v4258_v45 = vadd.f32 %v6837_v38, %v4241_v24 }
 0x2ed   : > { %4268 = vst.msk [vmem:[%s6842_s17 + $0x8] sm:$0xff] %vm2981_vm9, %v4258_v45  ;;  %v4099_v31 = vpop.f32.mrb[0].mxu1 }
 0x2ee   : > { %v4209_v54 = vpop.f32.mrb[0].mxu0  ;;  %v4126_v25 = vadd.f32 %v4099_v31, %v3966_v26  ;;  %v5364_v18 = vpop.f32.mrb[1].mxu1 }
 0x2ef   : > { %v4242_v40 = vadd.f32 %v4209_v54, %v4124_v19  ;;  %v5382_v44 = vpop.f32.mrb[1].mxu0  ;;  %v4102_v60 = vpop.f32.mrb[2].mxu1 }
 0x2f0   : > { %v4212_v50 = vpop.f32.mrb[2].mxu0  ;;  %v4127_v22 = vadd.f32 %v4102_v60, %v3967_v49  ;;  %v5365_v35 = vpop.f32.mrb[3].mxu1 }
 0x2f1   : > { %v4259_v13 = vadd.f32 %v6837_v38, %v4242_v40  ;;  %v4243_v37 = vadd.f32 %v4212_v50, %v4125_v59  ;;  %v5383_v10 = vpop.f32.mrb[3].mxu0 }
 0x2f3   : > { %4269 = vst.msk [vmem:[%s6842_s17 + $0x10] sm:$0xff] %vm2981_vm9, %v4259_v13  ;;  %v4260_v41 = vadd.f32 %v6837_v38, %v4243_v37 }
 0x2f5   : > { %4270 = vst.msk [vmem:[%s6842_s17 + $0x18] sm:$0xff] %vm2981_vm9, %v4260_v41  ;;  %v4107_v26 = vpop.f32.mrb[4].mxu1 }
 0x2f6   : > { %v4217_v58 = vpop.f32.mrb[4].mxu0  ;;  %v4128_v7 = vadd.f32 %v4107_v26, %v6825_v3  ;;  %v5368_v11 = vpop.f32.mrb[5].mxu1 }
 0x2f7   : > { %v4244_v12 = vadd.f32 %v4217_v58, %v4126_v25  ;;  %v5386_v56 = vpop.f32.mrb[5].mxu0  ;;  %v4110_v61 = vpop.f32.mrb[6].mxu1 }
 0x2f8   : > { %v4220_v32 = vpop.f32.mrb[6].mxu0  ;;  %v4129_v49 = vadd.f32 %v4110_v61, %v6827_v51  ;;  %v5369_v42 = vpop.f32.mrb[7].mxu1 }
 0x2f9   : > { %v4261_v6 = vadd.f32 %v6837_v38, %v4244_v12  ;;  %v4245_v5 = vadd.f32 %v4220_v32, %v4127_v22  ;;  %v5387_v16 = vpop.f32.mrb[7].mxu0 }
 0x2fb   : > { %4271 = vst.msk [vmem:[%s6842_s17 + $0x20] sm:$0xff] %vm2981_vm9, %v4261_v6  ;;  %v4262_v39 = vadd.f32 %v6837_v38, %v4245_v5 }
 0x2fd   : > { %4272 = vst.msk [vmem:[%s6842_s17 + $0x28] sm:$0xff] %vm2981_vm9, %v4262_v39  ;;  %v4115_v28 = vpop.f32.mrb[8].mxu1 }
 0x2fe   : > { %v4225_v23 = vpop.f32.mrb[8].mxu0  ;;  %v4130_v8 = vadd.f32 %v4115_v28, %v6829_v2  ;;  %v5372_v47 = vpop.f32.mrb[9].mxu1 }
 0x2ff   : > { %v4246_v36 = vadd.f32 %v4225_v23, %v4128_v7  ;;  %v5390_v3 = vpop.f32.mrb[9].mxu0  ;;  %v4118_v51 = vpop.f32.mrb[10].mxu1 }
 0x300   : > { %v4228_v27 = vpop.f32.mrb[10].mxu0  ;;  %v4131_v63 = vadd.f32 %v4118_v51, %v6831_v14  ;;  %v5373_v52 = vpop.f32.mrb[11].mxu1 }
 0x301   : > { %v4263_v29 = vadd.f32 %v6837_v38, %v4246_v36  ;;  %v4247_v4 = vadd.f32 %v4228_v27, %v4129_v49  ;;  %v5391_v1 = vpop.f32.mrb[11].mxu0 }
 0x303   : > { %4273 = vst.msk [vmem:[%s6842_s17 + $0x30] sm:$0xff] %vm2981_vm9, %v4263_v29  ;;  %v4264_v55 = vadd.f32 %v6837_v38, %v4247_v4 }
 0x305   : > { %4274 = vst.msk [vmem:[%s6842_s17 + $0x38] sm:$0xff] %vm2981_vm9, %v4264_v55 }
 0x306   : > { %v4233_v46 = vpop.f32.mrb[12].mxu0 }
 0x307   : > { %v4248_v43 = vadd.f32 %v4233_v46, %v4130_v8  ;;  %v5394_v2 = vpop.f32.mrb[13].mxu0 }
 0x308   : > { %v4236_v17 = vpop.f32.mrb[14].mxu0 }
 0x309   : > { %v4265_v20 = vadd.f32 %v6837_v38, %v4248_v43  ;;  %v4249_v62 = vadd.f32 %v4236_v17, %v4131_v63  ;;  %v5395_v9 = vpop.f32.mrb[15].mxu0 }
 0x30b   : > { %4275 = vst.msk [vmem:[%s6842_s17 + $0x40] sm:$0xff] %vm2981_vm9, %v4265_v20  ;;  %v4266_v30 = vadd.f32 %v6837_v38, %v4249_v62 }
 0x30d   : > { %4276 = vst.msk [vmem:[%s6842_s17 + $0x48] sm:$0xff] %vm2981_vm9, %v4266_v30 }
 0x30e PF: > { %s17_s24 = sadd.s32 1, %s5513_s24  }
 0x30f   : > { %p14_p4 = scmp.ge.s32.totalorder %s17_s24, 4  }
 0x311   :  { %16 = sbr.rel (!%p14_p4) target bundleno = 1 (0x1), region = 108 }

</bundles_post_ra>
